<compile_context>
chip_gen: v5e
topology: v5e:2x2
jax: 0.10.0
libtpu: 0.0.40
codegen_flags: <defaults>
</compile_context>

<pallas_src>
import functools

import jax
import jax.numpy as jnp
from jax import lax
from jax.experimental import pallas as pl
from jax.experimental.pallas import tpu as pltpu

_PREC = lax.Precision.HIGHEST


def _bilinear_up_matrix(n_in: int, scale: int = 2) -> jnp.ndarray:
    """(n_in*scale, n_in) 1-D bilinear upsampling matrix, align_corners=False
    (half-pixel centers) -- matches torch.nn.Upsample(mode='bilinear')."""
    n_out = n_in * scale
    o = jnp.arange(n_out, dtype=jnp.float32)
    src = (o + 0.5) / scale - 0.5
    src = jnp.maximum(src, 0.0)              # PyTorch clamps negative src to 0
    i0 = jnp.clip(jnp.floor(src).astype(jnp.int32), 0, n_in - 1)
    i1 = jnp.clip(i0 + 1, 0, n_in - 1)
    w1 = src - i0.astype(jnp.float32)
    w0 = 1.0 - w1
    u = jnp.zeros((n_out, n_in), jnp.float32)
    u = u.at[jnp.arange(n_out), i0].add(w0)
    u = u.at[jnp.arange(n_out), i1].add(w1)
    return u


def _border_masks(hh: int, ww: int) -> jnp.ndarray:
    """(9, 1, hh*ww) f32 validity masks for the 9 taps of a 3x3 conv with
    padding=1, applied on a row-major flattened (hh, ww) plane."""
    a = jnp.arange(hh)
    b = jnp.arange(ww)
    masks = []
    for ky in range(3):
        for kx in range(3):
            sy, sx = ky - 1, kx - 1
            va = ((a + sy) >= 0) & ((a + sy) < hh)
            vb = ((b + sx) >= 0) & ((b + sx) < ww)
            m = (va[:, None] & vb[None, :]).astype(jnp.float32)
            masks.append(m.reshape(1, hh * ww))
    return jnp.stack(masks, axis=0)


def _upsampling_block_kernel(x_ref, bmat_ref, mask_ref, w1_ref, b1_ref,
                             w2_ref, b2_ref, a1_ref, a2_ref,
                             o_ref,
                             u_ref, col1_ref, y1_ref, col2_ref,
                             *, cin, cout, hh, ww):
    s = hh * ww
    a1 = a1_ref[0]                      # PReLU #1 slope (SMEM scalar)
    a2 = a2_ref[0]                      # PReLU #2 slope (SMEM scalar)

    # ---- bilinear 2x upsample: one MXU matmul, then PReLU #1 --------------
    u = jnp.dot(x_ref[0], bmat_ref[...],
                preferred_element_type=jnp.float32, precision=_PREC)  # (cin, s)
    u_ref[...] = jnp.where(u >= 0.0, u, a1 * u)

    # ---- im2col builder: 9 shifted/masked copies of a (c, s) slab ---------
    def build_cols(src_ref, dst_ref, c):
        for t in range(9):                       # static, low register pressure
            ky, kx = t // 3, t % 3
            delta = (ky - 1) * ww + (kx - 1)     # flattened-spatial shift
            v = src_ref[...]                     # (c, s)
            if delta != 0:
                v = pltpu.roll(v, shift=(-delta) % s, axis=1) * mask_ref[t]
            dst_ref[t * c:(t + 1) * c, :] = v

    # ---- Conv2d(cin -> cout, 3x3, pad=1): one MXU matmul + PReLU #2 -------
    build_cols(u_ref, col1_ref, cin)
    y1 = jnp.dot(w1_ref[...], col1_ref[...],
                 preferred_element_type=jnp.float32, precision=_PREC)  # (cout, s)
    y1 = y1 + b1_ref[...]
    y1_ref[...] = jnp.where(y1 >= 0.0, y1, a2 * y1)

    # ---- Conv2d(cout -> cout, 3x3, pad=1): one MXU matmul -----------------
    build_cols(y1_ref, col2_ref, cout)
    y2 = jnp.dot(w2_ref[...], col2_ref[...],
                 preferred_element_type=jnp.float32, precision=_PREC)  # (cout, s)
    o_ref[0] = (y2 + b2_ref[...]).astype(o_ref.dtype)


def upsampling_block_forward(x, params):
    """Pallas forward of UpSamplingBlock.  x: (N, C_in, H, W) float32."""
    n, cin, h, w = x.shape
    w1, b1 = params["w1"], params["b1"]          # (Cout, Cin, 3, 3), (Cout,)
    w2, b2 = params["w2"], params["b2"]          # (Cout, Cout, 3, 3), (Cout,)
    a1, a2 = params["a1"], params["a2"]          # (1,), (1,)
    cout = w1.shape[0]
    hh, ww = 2 * h, 2 * w
    hw, s = h * w, hh * ww

    # Constants precomputed in the wrapper (tiny XLA work, DMA'd once and kept
    # resident since their block index never changes).
    uh = _bilinear_up_matrix(h)                  # (2H, H)
    uw = _bilinear_up_matrix(w)                  # (2W, W)
    bmat = jnp.kron(uh, uw).T                    # (H*W, 4HW): [h*W+w, a*2W+b]
    masks = _border_masks(hh, ww)                # (9, 1, s)
    # conv weights as (Cout, 9*Cin) matrices, column order (tap, in_channel)
    w1mat = jnp.transpose(w1, (2, 3, 1, 0)).reshape(9 * cin, cout).T
    w2mat = jnp.transpose(w2, (2, 3, 1, 0)).reshape(9 * cout, cout).T
    b1c = b1.reshape(cout, 1)
    b2c = b2.reshape(cout, 1)
    x_flat = x.reshape(n, cin, hw)               # lane-dense input slab (free)

    kernel = functools.partial(_upsampling_block_kernel,
                               cin=cin, cout=cout, hh=hh, ww=ww)
    smem = pl.BlockSpec(memory_space=pltpu.MemorySpace.SMEM)

    def const_spec(shape):
        return pl.BlockSpec(shape, lambda i, _s=shape: (0,) * len(_s))

    flops = 2 * n * s * (cin * hw + 9 * cin * cout + 9 * cout * cout)
    bytes_accessed = 4 * (x_flat.size + n * cout * s + bmat.size + masks.size
                          + w1mat.size + w2mat.size + b1c.size + b2c.size + 2)
    cost = pl.CostEstimate(flops=flops, transcendentals=0,
                           bytes_accessed=bytes_accessed)

    out = pl.pallas_call(
        kernel,
        out_shape=jax.ShapeDtypeStruct((n, cout, s), x.dtype),
        grid=(n,),
        in_specs=[
            pl.BlockSpec((1, cin, hw), lambda i: (i, 0, 0)),     # x slab
            const_spec((hw, s)),                                 # bilinear kron
            pl.BlockSpec((9, 1, s), lambda i: (0, 0, 0)),        # border masks
            const_spec((cout, 9 * cin)),                         # conv1 weights
            const_spec((cout, 1)),                               # conv1 bias
            const_spec((cout, 9 * cout)),                        # conv2 weights
            const_spec((cout, 1)),                               # conv2 bias
            smem,                                                # PReLU slope 1
            smem,                                                # PReLU slope 2
        ],
        out_specs=pl.BlockSpec((1, cout, s), lambda i: (i, 0, 0)),
        scratch_shapes=[
            pltpu.VMEM((cin, s), jnp.float32),        # upsampled slab
            pltpu.VMEM((9 * cin, s), jnp.float32),    # conv1 im2col
            pltpu.VMEM((cout, s), jnp.float32),       # conv1 output slab
            pltpu.VMEM((9 * cout, s), jnp.float32),   # conv2 im2col
        ],
        compiler_params=pltpu.CompilerParams(
            dimension_semantics=("parallel",)),
        cost_estimate=cost,
    )(x_flat, bmat, masks, w1mat, b1c, w2mat, b2c, a1, a2)
    return out.reshape(n, cout, hh, ww)


def reference_forward(x, params):
    """Pure-JAX reference mirroring the PyTorch module (sanity check)."""
    w1, b1, w2, b2 = params["w1"], params["b1"], params["w2"], params["b2"]
    a1, a2 = params["a1"], params["a2"]
    n, cin, h, w = x.shape
    uh = _bilinear_up_matrix(h)
    uw = _bilinear_up_matrix(w)
    y = jnp.einsum("ah,nchw->ncaw", uh, x, precision=_PREC)
    y = jnp.einsum("bw,ncaw->ncab", uw, y, precision=_PREC)
    y = jnp.where(y >= 0, y, a1[0] * y)
    y = lax.conv_general_dilated(y, w1, (1, 1), [(1, 1), (1, 1)],
                                 dimension_numbers=("NCHW", "OIHW", "NCHW"),
                                 precision=_PREC)
    y = y + b1[None, :, None, None]
    y = jnp.where(y >= 0, y, a2[0] * y)
    y = lax.conv_general_dilated(y, w2, (1, 1), [(1, 1), (1, 1)],
                                 dimension_numbers=("NCHW", "OIHW", "NCHW"),
                                 precision=_PREC)
    y = y + b2[None, :, None, None]
    return y


if __name__ == "__main__":
    n, cin, cout, h, w = 2, 4, 4, 16, 16
    key = jax.random.PRNGKey(0)
    kx, k1, k2, k3, k4 = jax.random.split(key, 5)
    x = jax.random.normal(kx, (n, cin, h, w), jnp.float32)
    params = dict(
        w1=0.1 * jax.random.normal(k1, (cout, cin, 3, 3), jnp.float32),
        b1=0.05 * jax.random.normal(k2, (cout,), jnp.float32),
        w2=0.1 * jax.random.normal(k3, (cout, cout, 3, 3), jnp.float32),
        b2=0.05 * jax.random.normal(k4, (cout,), jnp.float32),
        a1=jnp.array([0.25], jnp.float32),     # nn.PReLU default init
        a2=jnp.array([0.25], jnp.float32),
    )

    out = jax.block_until_ready(upsampling_block_forward(x, params))
    ref = jax.block_until_ready(reference_forward(x, params))

    assert out.shape == (n, cout, 2 * h, 2 * w), out.shape
    max_err = float(jnp.max(jnp.abs(out - ref)))
    if not max_err < 1e-4:
        raise SystemExit(f"mismatch vs reference: max abs err = {max_err}")
    print("KERNEL_OK")
</pallas_src>

<mosaic_0001>
module attributes {stable_mosaic.version = 11 : i64} {
  func.func @_upsampling_block_kernel(%arg0: i32, %arg1: memref<1x4x256xf32, #tpu.memory_space<vmem>>, %arg2: memref<256x1024xf32, #tpu.memory_space<vmem>>, %arg3: memref<9x1x1024xf32, #tpu.memory_space<vmem>>, %arg4: memref<4x36xf32, #tpu.memory_space<vmem>>, %arg5: memref<4x1xf32, #tpu.memory_space<vmem>>, %arg6: memref<4x36xf32, #tpu.memory_space<vmem>>, %arg7: memref<4x1xf32, #tpu.memory_space<vmem>>, %arg8: memref<1xf32, #tpu.memory_space<smem>>, %arg9: memref<1xf32, #tpu.memory_space<smem>>, %arg10: memref<1x4x1024xf32, #tpu.memory_space<vmem>>, %arg11: memref<4x1024xf32, #tpu.memory_space<vmem>>, %arg12: memref<36x1024xf32, #tpu.memory_space<vmem>>, %arg13: memref<4x1024xf32, #tpu.memory_space<vmem>>, %arg14: memref<36x1024xf32, #tpu.memory_space<vmem>>) attributes {dimension_semantics = [#tpu.dimension_semantics<parallel>], iteration_bounds = array<i64: 2>, scalar_prefetch = 0 : i64, scratch_operands = 4 : i64, tpu.core_type = #tpu.core_type<tc>, window_params = [{transform_indices = @transform_0, window_bounds = array<i64: 1, 4, 256>}, {pipeline_mode = #tpu.pipeline_mode<synchronous>, transform_indices = @transform_1, window_bounds = array<i64: 256, 1024>}, {pipeline_mode = #tpu.pipeline_mode<synchronous>, transform_indices = @transform_2, window_bounds = array<i64: 9, 1, 1024>}, {pipeline_mode = #tpu.pipeline_mode<synchronous>, transform_indices = @transform_3, window_bounds = array<i64: 4, 36>}, {pipeline_mode = #tpu.pipeline_mode<synchronous>, transform_indices = @transform_4, window_bounds = array<i64: 4, 1>}, {pipeline_mode = #tpu.pipeline_mode<synchronous>, transform_indices = @transform_5, window_bounds = array<i64: 4, 36>}, {pipeline_mode = #tpu.pipeline_mode<synchronous>, transform_indices = @transform_6, window_bounds = array<i64: 4, 1>}, {transform_indices = @transform_7, window_bounds = array<i64: 1>}, {transform_indices = @transform_8, window_bounds = array<i64: 1>}, {transform_indices = @transform_9, window_bounds = array<i64: 1, 4, 1024>}]} {
    %c0 = arith.constant 0 : index
    %0 = memref.load %arg8[%c0] : memref<1xf32, #tpu.memory_space<smem>>
    %c0_0 = arith.constant 0 : index
    %1 = memref.load %arg9[%c0_0] : memref<1xf32, #tpu.memory_space<smem>>
    %c0_1 = arith.constant 0 : index
    %c0_2 = arith.constant 0 : index
    %c0_3 = arith.constant 0 : index
    %2 = vector.load %arg1[%c0_1, %c0_2, %c0_3] : memref<1x4x256xf32, #tpu.memory_space<vmem>>, vector<1x4x256xf32>
    %3 = vector.shape_cast %2 : vector<1x4x256xf32> to vector<4x256xf32>
    %c0_4 = arith.constant 0 : index
    %c0_5 = arith.constant 0 : index
    %4 = vector.load %arg2[%c0_4, %c0_5] : memref<256x1024xf32, #tpu.memory_space<vmem>>, vector<256x1024xf32>
    %cst = arith.constant dense<0.000000e+00> : vector<4x1024xf32>
    %5 = tpu.matmul %3, %4, %cst {dimension_numbers = #tpu.dot_dimension_numbers<[1], [0], [0], [1], [0, 0, 1, 1], [], []>, precision = #tpu.contract_precision<fp32>} : vector<4x256xf32>, vector<256x1024xf32>, vector<4x1024xf32> -> vector<4x1024xf32>
    %cst_6 = arith.constant 0.000000e+00 : f32
    %6 = vector.broadcast %cst_6 : f32 to vector<4x1024xf32>
    %7 = arith.cmpf oge, %5, %6 : vector<4x1024xf32>
    %8 = vector.broadcast %0 : f32 to vector<4x1024xf32>
    %9 = arith.mulf %8, %5 : vector<4x1024xf32>
    %10 = arith.select %7, %5, %9 : vector<4x1024xi1>, vector<4x1024xf32>
    %c0_7 = arith.constant 0 : index
    %c0_8 = arith.constant 0 : index
    %11 = vector.load %arg11[%c0_7, %c0_8] : memref<4x1024xf32, #tpu.memory_space<vmem>>, vector<4x1024xf32>
    tpu.vector_store %arg11[%c0_7, %c0_8], %10 {strides = array<i32>} : memref<4x1024xf32, #tpu.memory_space<vmem>>, vector<4x1024xf32>,
    %c0_9 = arith.constant 0 : index
    %c0_10 = arith.constant 0 : index
    %12 = vector.load %arg11[%c0_9, %c0_10] : memref<4x1024xf32, #tpu.memory_space<vmem>>, vector<4x1024xf32>
    %c33_i32 = arith.constant 33 : i32
    %13 = tpu.dynamic_rotate %12 by %c33_i32 dim 1 : vector<4x1024xf32>, i32 -> vector<4x1024xf32>
    %c0_11 = arith.constant 0 : index
    %c0_12 = arith.constant 0 : index
    %c0_13 = arith.constant 0 : index
    %14 = vector.load %arg3[%c0_11, %c0_12, %c0_13] : memref<9x1x1024xf32, #tpu.memory_space<vmem>>, vector<1x1x1024xf32>
    %15 = vector.shape_cast %14 : vector<1x1x1024xf32> to vector<1x1024xf32>
    %16 = vector.broadcast %15 : vector<1x1024xf32> to vector<4x1024xf32>
    %17 = arith.mulf %13, %16 : vector<4x1024xf32>
    %c0_14 = arith.constant 0 : index
    %c0_15 = arith.constant 0 : index
    %18 = vector.load %arg12[%c0_14, %c0_15] : memref<36x1024xf32, #tpu.memory_space<vmem>>, vector<4x1024xf32>
    tpu.vector_store %arg12[%c0_14, %c0_15], %17 {strides = array<i32>} : memref<36x1024xf32, #tpu.memory_space<vmem>>, vector<4x1024xf32>,
    %c0_16 = arith.constant 0 : index
    %c0_17 = arith.constant 0 : index
    %19 = vector.load %arg11[%c0_16, %c0_17] : memref<4x1024xf32, #tpu.memory_space<vmem>>, vector<4x1024xf32>
    %c32_i32 = arith.constant 32 : i32
    %20 = tpu.dynamic_rotate %19 by %c32_i32 dim 1 : vector<4x1024xf32>, i32 -> vector<4x1024xf32>
    %c1 = arith.constant 1 : index
    %c0_18 = arith.constant 0 : index
    %c0_19 = arith.constant 0 : index
    %21 = vector.load %arg3[%c1, %c0_18, %c0_19] : memref<9x1x1024xf32, #tpu.memory_space<vmem>>, vector<1x1x1024xf32>
    %22 = vector.shape_cast %21 : vector<1x1x1024xf32> to vector<1x1024xf32>
    %23 = vector.broadcast %22 : vector<1x1024xf32> to vector<4x1024xf32>
    %24 = arith.mulf %20, %23 : vector<4x1024xf32>
    %c4 = arith.constant 4 : index
    %c0_20 = arith.constant 0 : index
    %25 = vector.load %arg12[%c4, %c0_20] : memref<36x1024xf32, #tpu.memory_space<vmem>>, vector<4x1024xf32>
    tpu.vector_store %arg12[%c4, %c0_20], %24 {strides = array<i32>} : memref<36x1024xf32, #tpu.memory_space<vmem>>, vector<4x1024xf32>,
    %c0_21 = arith.constant 0 : index
    %c0_22 = arith.constant 0 : index
    %26 = vector.load %arg11[%c0_21, %c0_22] : memref<4x1024xf32, #tpu.memory_space<vmem>>, vector<4x1024xf32>
    %c31_i32 = arith.constant 31 : i32
    %27 = tpu.dynamic_rotate %26 by %c31_i32 dim 1 : vector<4x1024xf32>, i32 -> vector<4x1024xf32>
    %c2 = arith.constant 2 : index
    %c0_23 = arith.constant 0 : index
    %c0_24 = arith.constant 0 : index
    %28 = vector.load %arg3[%c2, %c0_23, %c0_24] : memref<9x1x1024xf32, #tpu.memory_space<vmem>>, vector<1x1x1024xf32>
    %29 = vector.shape_cast %28 : vector<1x1x1024xf32> to vector<1x1024xf32>
    %30 = vector.broadcast %29 : vector<1x1024xf32> to vector<4x1024xf32>
    %31 = arith.mulf %27, %30 : vector<4x1024xf32>
    %c8 = arith.constant 8 : index
    %c0_25 = arith.constant 0 : index
    %32 = vector.load %arg12[%c8, %c0_25] : memref<36x1024xf32, #tpu.memory_space<vmem>>, vector<4x1024xf32>
    tpu.vector_store %arg12[%c8, %c0_25], %31 {strides = array<i32>} : memref<36x1024xf32, #tpu.memory_space<vmem>>, vector<4x1024xf32>,
    %c0_26 = arith.constant 0 : index
    %c0_27 = arith.constant 0 : index
    %33 = vector.load %arg11[%c0_26, %c0_27] : memref<4x1024xf32, #tpu.memory_space<vmem>>, vector<4x1024xf32>
    %c1_i32 = arith.constant 1 : i32
    %34 = tpu.dynamic_rotate %33 by %c1_i32 dim 1 : vector<4x1024xf32>, i32 -> vector<4x1024xf32>
    %c3 = arith.constant 3 : index
    %c0_28 = arith.constant 0 : index
    %c0_29 = arith.constant 0 : index
    %35 = vector.load %arg3[%c3, %c0_28, %c0_29] : memref<9x1x1024xf32, #tpu.memory_space<vmem>>, vector<1x1x1024xf32>
    %36 = vector.shape_cast %35 : vector<1x1x1024xf32> to vector<1x1024xf32>
    %37 = vector.broadcast %36 : vector<1x1024xf32> to vector<4x1024xf32>
    %38 = arith.mulf %34, %37 : vector<4x1024xf32>
    %c12 = arith.constant 12 : index
    %c0_30 = arith.constant 0 : index
    %39 = vector.load %arg12[%c12, %c0_30] : memref<36x1024xf32, #tpu.memory_space<vmem>>, vector<4x1024xf32>
    tpu.vector_store %arg12[%c12, %c0_30], %38 {strides = array<i32>} : memref<36x1024xf32, #tpu.memory_space<vmem>>, vector<4x1024xf32>,
    %c0_31 = arith.constant 0 : index
    %c0_32 = arith.constant 0 : index
    %40 = vector.load %arg11[%c0_31, %c0_32] : memref<4x1024xf32, #tpu.memory_space<vmem>>, vector<4x1024xf32>
    %c16 = arith.constant 16 : index
    %c0_33 = arith.constant 0 : index
    %41 = vector.load %arg12[%c16, %c0_33] : memref<36x1024xf32, #tpu.memory_space<vmem>>, vector<4x1024xf32>
    tpu.vector_store %arg12[%c16, %c0_33], %40 {strides = array<i32>} : memref<36x1024xf32, #tpu.memory_space<vmem>>, vector<4x1024xf32>,
    %c0_34 = arith.constant 0 : index
    %c0_35 = arith.constant 0 : index
    %42 = vector.load %arg11[%c0_34, %c0_35] : memref<4x1024xf32, #tpu.memory_space<vmem>>, vector<4x1024xf32>
    %c1023_i32 = arith.constant 1023 : i32
    %43 = tpu.dynamic_rotate %42 by %c1023_i32 dim 1 : vector<4x1024xf32>, i32 -> vector<4x1024xf32>
    %c5 = arith.constant 5 : index
    %c0_36 = arith.constant 0 : index
    %c0_37 = arith.constant 0 : index
    %44 = vector.load %arg3[%c5, %c0_36, %c0_37] : memref<9x1x1024xf32, #tpu.memory_space<vmem>>, vector<1x1x1024xf32>
    %45 = vector.shape_cast %44 : vector<1x1x1024xf32> to vector<1x1024xf32>
    %46 = vector.broadcast %45 : vector<1x1024xf32> to vector<4x1024xf32>
    %47 = arith.mulf %43, %46 : vector<4x1024xf32>
    %c20 = arith.constant 20 : index
    %c0_38 = arith.constant 0 : index
    %48 = vector.load %arg12[%c20, %c0_38] : memref<36x1024xf32, #tpu.memory_space<vmem>>, vector<4x1024xf32>
    tpu.vector_store %arg12[%c20, %c0_38], %47 {strides = array<i32>} : memref<36x1024xf32, #tpu.memory_space<vmem>>, vector<4x1024xf32>,
    %c0_39 = arith.constant 0 : index
    %c0_40 = arith.constant 0 : index
    %49 = vector.load %arg11[%c0_39, %c0_40] : memref<4x1024xf32, #tpu.memory_space<vmem>>, vector<4x1024xf32>
    %c993_i32 = arith.constant 993 : i32
    %50 = tpu.dynamic_rotate %49 by %c993_i32 dim 1 : vector<4x1024xf32>, i32 -> vector<4x1024xf32>
    %c6 = arith.constant 6 : index
    %c0_41 = arith.constant 0 : index
    %c0_42 = arith.constant 0 : index
    %51 = vector.load %arg3[%c6, %c0_41, %c0_42] : memref<9x1x1024xf32, #tpu.memory_space<vmem>>, vector<1x1x1024xf32>
    %52 = vector.shape_cast %51 : vector<1x1x1024xf32> to vector<1x1024xf32>
    %53 = vector.broadcast %52 : vector<1x1024xf32> to vector<4x1024xf32>
    %54 = arith.mulf %50, %53 : vector<4x1024xf32>
    %c24 = arith.constant 24 : index
    %c0_43 = arith.constant 0 : index
    %55 = vector.load %arg12[%c24, %c0_43] : memref<36x1024xf32, #tpu.memory_space<vmem>>, vector<4x1024xf32>
    tpu.vector_store %arg12[%c24, %c0_43], %54 {strides = array<i32>} : memref<36x1024xf32, #tpu.memory_space<vmem>>, vector<4x1024xf32>,
    %c0_44 = arith.constant 0 : index
    %c0_45 = arith.constant 0 : index
    %56 = vector.load %arg11[%c0_44, %c0_45] : memref<4x1024xf32, #tpu.memory_space<vmem>>, vector<4x1024xf32>
    %c992_i32 = arith.constant 992 : i32
    %57 = tpu.dynamic_rotate %56 by %c992_i32 dim 1 : vector<4x1024xf32>, i32 -> vector<4x1024xf32>
    %c7 = arith.constant 7 : index
    %c0_46 = arith.constant 0 : index
    %c0_47 = arith.constant 0 : index
    %58 = vector.load %arg3[%c7, %c0_46, %c0_47] : memref<9x1x1024xf32, #tpu.memory_space<vmem>>, vector<1x1x1024xf32>
    %59 = vector.shape_cast %58 : vector<1x1x1024xf32> to vector<1x1024xf32>
    %60 = vector.broadcast %59 : vector<1x1024xf32> to vector<4x1024xf32>
    %61 = arith.mulf %57, %60 : vector<4x1024xf32>
    %c28 = arith.constant 28 : index
    %c0_48 = arith.constant 0 : index
    %62 = vector.load %arg12[%c28, %c0_48] : memref<36x1024xf32, #tpu.memory_space<vmem>>, vector<4x1024xf32>
    tpu.vector_store %arg12[%c28, %c0_48], %61 {strides = array<i32>} : memref<36x1024xf32, #tpu.memory_space<vmem>>, vector<4x1024xf32>,
    %c0_49 = arith.constant 0 : index
    %c0_50 = arith.constant 0 : index
    %63 = vector.load %arg11[%c0_49, %c0_50] : memref<4x1024xf32, #tpu.memory_space<vmem>>, vector<4x1024xf32>
    %c991_i32 = arith.constant 991 : i32
    %64 = tpu.dynamic_rotate %63 by %c991_i32 dim 1 : vector<4x1024xf32>, i32 -> vector<4x1024xf32>
    %c8_51 = arith.constant 8 : index
    %c0_52 = arith.constant 0 : index
    %c0_53 = arith.constant 0 : index
    %65 = vector.load %arg3[%c8_51, %c0_52, %c0_53] : memref<9x1x1024xf32, #tpu.memory_space<vmem>>, vector<1x1x1024xf32>
    %66 = vector.shape_cast %65 : vector<1x1x1024xf32> to vector<1x1024xf32>
    %67 = vector.broadcast %66 : vector<1x1024xf32> to vector<4x1024xf32>
    %68 = arith.mulf %64, %67 : vector<4x1024xf32>
    %c32 = arith.constant 32 : index
    %c0_54 = arith.constant 0 : index
    %69 = vector.load %arg12[%c32, %c0_54] : memref<36x1024xf32, #tpu.memory_space<vmem>>, vector<4x1024xf32>
    tpu.vector_store %arg12[%c32, %c0_54], %68 {strides = array<i32>} : memref<36x1024xf32, #tpu.memory_space<vmem>>, vector<4x1024xf32>,
    %c0_55 = arith.constant 0 : index
    %c0_56 = arith.constant 0 : index
    %70 = vector.load %arg4[%c0_55, %c0_56] : memref<4x36xf32, #tpu.memory_space<vmem>>, vector<4x36xf32>
    %c0_57 = arith.constant 0 : index
    %c0_58 = arith.constant 0 : index
    %71 = vector.load %arg12[%c0_57, %c0_58] : memref<36x1024xf32, #tpu.memory_space<vmem>>, vector<36x1024xf32>
    %cst_59 = arith.constant dense<0.000000e+00> : vector<4x1024xf32>
    %72 = tpu.matmul %70, %71, %cst_59 {dimension_numbers = #tpu.dot_dimension_numbers<[1], [0], [0], [1], [0, 0, 1, 1], [], []>, precision = #tpu.contract_precision<fp32>} : vector<4x36xf32>, vector<36x1024xf32>, vector<4x1024xf32> -> vector<4x1024xf32>
    %c0_60 = arith.constant 0 : index
    %c0_61 = arith.constant 0 : index
    %73 = vector.load %arg5[%c0_60, %c0_61] : memref<4x1xf32, #tpu.memory_space<vmem>>, vector<4x1xf32>
    %74 = vector.broadcast %73 : vector<4x1xf32> to vector<4x1024xf32>
    %75 = arith.addf %72, %74 : vector<4x1024xf32>
    %cst_62 = arith.constant 0.000000e+00 : f32
    %76 = vector.broadcast %cst_62 : f32 to vector<4x1024xf32>
    %77 = arith.cmpf oge, %75, %76 : vector<4x1024xf32>
    %78 = vector.broadcast %1 : f32 to vector<4x1024xf32>
    %79 = arith.mulf %78, %75 : vector<4x1024xf32>
    %80 = arith.select %77, %75, %79 : vector<4x1024xi1>, vector<4x1024xf32>
    %c0_63 = arith.constant 0 : index
    %c0_64 = arith.constant 0 : index
    %81 = vector.load %arg13[%c0_63, %c0_64] : memref<4x1024xf32, #tpu.memory_space<vmem>>, vector<4x1024xf32>
    tpu.vector_store %arg13[%c0_63, %c0_64], %80 {strides = array<i32>} : memref<4x1024xf32, #tpu.memory_space<vmem>>, vector<4x1024xf32>,
    %c0_65 = arith.constant 0 : index
    %c0_66 = arith.constant 0 : index
    %82 = vector.load %arg13[%c0_65, %c0_66] : memref<4x1024xf32, #tpu.memory_space<vmem>>, vector<4x1024xf32>
    %c33_i32_67 = arith.constant 33 : i32
    %83 = tpu.dynamic_rotate %82 by %c33_i32_67 dim 1 : vector<4x1024xf32>, i32 -> vector<4x1024xf32>
    %c0_68 = arith.constant 0 : index
    %c0_69 = arith.constant 0 : index
    %c0_70 = arith.constant 0 : index
    %84 = vector.load %arg3[%c0_68, %c0_69, %c0_70] : memref<9x1x1024xf32, #tpu.memory_space<vmem>>, vector<1x1x1024xf32>
    %85 = vector.shape_cast %84 : vector<1x1x1024xf32> to vector<1x1024xf32>
    %86 = vector.broadcast %85 : vector<1x1024xf32> to vector<4x1024xf32>
    %87 = arith.mulf %83, %86 : vector<4x1024xf32>
    %c0_71 = arith.constant 0 : index
    %c0_72 = arith.constant 0 : index
    %88 = vector.load %arg14[%c0_71, %c0_72] : memref<36x1024xf32, #tpu.memory_space<vmem>>, vector<4x1024xf32>
    tpu.vector_store %arg14[%c0_71, %c0_72], %87 {strides = array<i32>} : memref<36x1024xf32, #tpu.memory_space<vmem>>, vector<4x1024xf32>,
    %c0_73 = arith.constant 0 : index
    %c0_74 = arith.constant 0 : index
    %89 = vector.load %arg13[%c0_73, %c0_74] : memref<4x1024xf32, #tpu.memory_space<vmem>>, vector<4x1024xf32>
    %c32_i32_75 = arith.constant 32 : i32
    %90 = tpu.dynamic_rotate %89 by %c32_i32_75 dim 1 : vector<4x1024xf32>, i32 -> vector<4x1024xf32>
    %c1_76 = arith.constant 1 : index
    %c0_77 = arith.constant 0 : index
    %c0_78 = arith.constant 0 : index
    %91 = vector.load %arg3[%c1_76, %c0_77, %c0_78] : memref<9x1x1024xf32, #tpu.memory_space<vmem>>, vector<1x1x1024xf32>
    %92 = vector.shape_cast %91 : vector<1x1x1024xf32> to vector<1x1024xf32>
    %93 = vector.broadcast %92 : vector<1x1024xf32> to vector<4x1024xf32>
    %94 = arith.mulf %90, %93 : vector<4x1024xf32>
    %c4_79 = arith.constant 4 : index
    %c0_80 = arith.constant 0 : index
    %95 = vector.load %arg14[%c4_79, %c0_80] : memref<36x1024xf32, #tpu.memory_space<vmem>>, vector<4x1024xf32>
    tpu.vector_store %arg14[%c4_79, %c0_80], %94 {strides = array<i32>} : memref<36x1024xf32, #tpu.memory_space<vmem>>, vector<4x1024xf32>,
    %c0_81 = arith.constant 0 : index
    %c0_82 = arith.constant 0 : index
    %96 = vector.load %arg13[%c0_81, %c0_82] : memref<4x1024xf32, #tpu.memory_space<vmem>>, vector<4x1024xf32>
    %c31_i32_83 = arith.constant 31 : i32
    %97 = tpu.dynamic_rotate %96 by %c31_i32_83 dim 1 : vector<4x1024xf32>, i32 -> vector<4x1024xf32>
    %c2_84 = arith.constant 2 : index
    %c0_85 = arith.constant 0 : index
    %c0_86 = arith.constant 0 : index
    %98 = vector.load %arg3[%c2_84, %c0_85, %c0_86] : memref<9x1x1024xf32, #tpu.memory_space<vmem>>, vector<1x1x1024xf32>
    %99 = vector.shape_cast %98 : vector<1x1x1024xf32> to vector<1x1024xf32>
    %100 = vector.broadcast %99 : vector<1x1024xf32> to vector<4x1024xf32>
    %101 = arith.mulf %97, %100 : vector<4x1024xf32>
    %c8_87 = arith.constant 8 : index
    %c0_88 = arith.constant 0 : index
    %102 = vector.load %arg14[%c8_87, %c0_88] : memref<36x1024xf32, #tpu.memory_space<vmem>>, vector<4x1024xf32>
    tpu.vector_store %arg14[%c8_87, %c0_88], %101 {strides = array<i32>} : memref<36x1024xf32, #tpu.memory_space<vmem>>, vector<4x1024xf32>,
    %c0_89 = arith.constant 0 : index
    %c0_90 = arith.constant 0 : index
    %103 = vector.load %arg13[%c0_89, %c0_90] : memref<4x1024xf32, #tpu.memory_space<vmem>>, vector<4x1024xf32>
    %c1_i32_91 = arith.constant 1 : i32
    %104 = tpu.dynamic_rotate %103 by %c1_i32_91 dim 1 : vector<4x1024xf32>, i32 -> vector<4x1024xf32>
    %c3_92 = arith.constant 3 : index
    %c0_93 = arith.constant 0 : index
    %c0_94 = arith.constant 0 : index
    %105 = vector.load %arg3[%c3_92, %c0_93, %c0_94] : memref<9x1x1024xf32, #tpu.memory_space<vmem>>, vector<1x1x1024xf32>
    %106 = vector.shape_cast %105 : vector<1x1x1024xf32> to vector<1x1024xf32>
    %107 = vector.broadcast %106 : vector<1x1024xf32> to vector<4x1024xf32>
    %108 = arith.mulf %104, %107 : vector<4x1024xf32>
    %c12_95 = arith.constant 12 : index
    %c0_96 = arith.constant 0 : index
    %109 = vector.load %arg14[%c12_95, %c0_96] : memref<36x1024xf32, #tpu.memory_space<vmem>>, vector<4x1024xf32>
    tpu.vector_store %arg14[%c12_95, %c0_96], %108 {strides = array<i32>} : memref<36x1024xf32, #tpu.memory_space<vmem>>, vector<4x1024xf32>,
    %c0_97 = arith.constant 0 : index
    %c0_98 = arith.constant 0 : index
    %110 = vector.load %arg13[%c0_97, %c0_98] : memref<4x1024xf32, #tpu.memory_space<vmem>>, vector<4x1024xf32>
    %c16_99 = arith.constant 16 : index
    %c0_100 = arith.constant 0 : index
    %111 = vector.load %arg14[%c16_99, %c0_100] : memref<36x1024xf32, #tpu.memory_space<vmem>>, vector<4x1024xf32>
    tpu.vector_store %arg14[%c16_99, %c0_100], %110 {strides = array<i32>} : memref<36x1024xf32, #tpu.memory_space<vmem>>, vector<4x1024xf32>,
    %c0_101 = arith.constant 0 : index
    %c0_102 = arith.constant 0 : index
    %112 = vector.load %arg13[%c0_101, %c0_102] : memref<4x1024xf32, #tpu.memory_space<vmem>>, vector<4x1024xf32>
    %c1023_i32_103 = arith.constant 1023 : i32
    %113 = tpu.dynamic_rotate %112 by %c1023_i32_103 dim 1 : vector<4x1024xf32>, i32 -> vector<4x1024xf32>
    %c5_104 = arith.constant 5 : index
    %c0_105 = arith.constant 0 : index
    %c0_106 = arith.constant 0 : index
    %114 = vector.load %arg3[%c5_104, %c0_105, %c0_106] : memref<9x1x1024xf32, #tpu.memory_space<vmem>>, vector<1x1x1024xf32>
    %115 = vector.shape_cast %114 : vector<1x1x1024xf32> to vector<1x1024xf32>
    %116 = vector.broadcast %115 : vector<1x1024xf32> to vector<4x1024xf32>
    %117 = arith.mulf %113, %116 : vector<4x1024xf32>
    %c20_107 = arith.constant 20 : index
    %c0_108 = arith.constant 0 : index
    %118 = vector.load %arg14[%c20_107, %c0_108] : memref<36x1024xf32, #tpu.memory_space<vmem>>, vector<4x1024xf32>
    tpu.vector_store %arg14[%c20_107, %c0_108], %117 {strides = array<i32>} : memref<36x1024xf32, #tpu.memory_space<vmem>>, vector<4x1024xf32>,
    %c0_109 = arith.constant 0 : index
    %c0_110 = arith.constant 0 : index
    %119 = vector.load %arg13[%c0_109, %c0_110] : memref<4x1024xf32, #tpu.memory_space<vmem>>, vector<4x1024xf32>
    %c993_i32_111 = arith.constant 993 : i32
    %120 = tpu.dynamic_rotate %119 by %c993_i32_111 dim 1 : vector<4x1024xf32>, i32 -> vector<4x1024xf32>
    %c6_112 = arith.constant 6 : index
    %c0_113 = arith.constant 0 : index
    %c0_114 = arith.constant 0 : index
    %121 = vector.load %arg3[%c6_112, %c0_113, %c0_114] : memref<9x1x1024xf32, #tpu.memory_space<vmem>>, vector<1x1x1024xf32>
    %122 = vector.shape_cast %121 : vector<1x1x1024xf32> to vector<1x1024xf32>
    %123 = vector.broadcast %122 : vector<1x1024xf32> to vector<4x1024xf32>
    %124 = arith.mulf %120, %123 : vector<4x1024xf32>
    %c24_115 = arith.constant 24 : index
    %c0_116 = arith.constant 0 : index
    %125 = vector.load %arg14[%c24_115, %c0_116] : memref<36x1024xf32, #tpu.memory_space<vmem>>, vector<4x1024xf32>
    tpu.vector_store %arg14[%c24_115, %c0_116], %124 {strides = array<i32>} : memref<36x1024xf32, #tpu.memory_space<vmem>>, vector<4x1024xf32>,
    %c0_117 = arith.constant 0 : index
    %c0_118 = arith.constant 0 : index
    %126 = vector.load %arg13[%c0_117, %c0_118] : memref<4x1024xf32, #tpu.memory_space<vmem>>, vector<4x1024xf32>
    %c992_i32_119 = arith.constant 992 : i32
    %127 = tpu.dynamic_rotate %126 by %c992_i32_119 dim 1 : vector<4x1024xf32>, i32 -> vector<4x1024xf32>
    %c7_120 = arith.constant 7 : index
    %c0_121 = arith.constant 0 : index
    %c0_122 = arith.constant 0 : index
    %128 = vector.load %arg3[%c7_120, %c0_121, %c0_122] : memref<9x1x1024xf32, #tpu.memory_space<vmem>>, vector<1x1x1024xf32>
    %129 = vector.shape_cast %128 : vector<1x1x1024xf32> to vector<1x1024xf32>
    %130 = vector.broadcast %129 : vector<1x1024xf32> to vector<4x1024xf32>
    %131 = arith.mulf %127, %130 : vector<4x1024xf32>
    %c28_123 = arith.constant 28 : index
    %c0_124 = arith.constant 0 : index
    %132 = vector.load %arg14[%c28_123, %c0_124] : memref<36x1024xf32, #tpu.memory_space<vmem>>, vector<4x1024xf32>
    tpu.vector_store %arg14[%c28_123, %c0_124], %131 {strides = array<i32>} : memref<36x1024xf32, #tpu.memory_space<vmem>>, vector<4x1024xf32>,
    %c0_125 = arith.constant 0 : index
    %c0_126 = arith.constant 0 : index
    %133 = vector.load %arg13[%c0_125, %c0_126] : memref<4x1024xf32, #tpu.memory_space<vmem>>, vector<4x1024xf32>
    %c991_i32_127 = arith.constant 991 : i32
    %134 = tpu.dynamic_rotate %133 by %c991_i32_127 dim 1 : vector<4x1024xf32>, i32 -> vector<4x1024xf32>
    %c8_128 = arith.constant 8 : index
    %c0_129 = arith.constant 0 : index
    %c0_130 = arith.constant 0 : index
    %135 = vector.load %arg3[%c8_128, %c0_129, %c0_130] : memref<9x1x1024xf32, #tpu.memory_space<vmem>>, vector<1x1x1024xf32>
    %136 = vector.shape_cast %135 : vector<1x1x1024xf32> to vector<1x1024xf32>
    %137 = vector.broadcast %136 : vector<1x1024xf32> to vector<4x1024xf32>
    %138 = arith.mulf %134, %137 : vector<4x1024xf32>
    %c32_131 = arith.constant 32 : index
    %c0_132 = arith.constant 0 : index
    %139 = vector.load %arg14[%c32_131, %c0_132] : memref<36x1024xf32, #tpu.memory_space<vmem>>, vector<4x1024xf32>
    tpu.vector_store %arg14[%c32_131, %c0_132], %138 {strides = array<i32>} : memref<36x1024xf32, #tpu.memory_space<vmem>>, vector<4x1024xf32>,
    %c0_133 = arith.constant 0 : index
    %c0_134 = arith.constant 0 : index
    %140 = vector.load %arg6[%c0_133, %c0_134] : memref<4x36xf32, #tpu.memory_space<vmem>>, vector<4x36xf32>
    %c0_135 = arith.constant 0 : index
    %c0_136 = arith.constant 0 : index
    %141 = vector.load %arg14[%c0_135, %c0_136] : memref<36x1024xf32, #tpu.memory_space<vmem>>, vector<36x1024xf32>
    %cst_137 = arith.constant dense<0.000000e+00> : vector<4x1024xf32>
    %142 = tpu.matmul %140, %141, %cst_137 {dimension_numbers = #tpu.dot_dimension_numbers<[1], [0], [0], [1], [0, 0, 1, 1], [], []>, precision = #tpu.contract_precision<fp32>} : vector<4x36xf32>, vector<36x1024xf32>, vector<4x1024xf32> -> vector<4x1024xf32>
    %c0_138 = arith.constant 0 : index
    %c0_139 = arith.constant 0 : index
    %143 = vector.load %arg7[%c0_138, %c0_139] : memref<4x1xf32, #tpu.memory_space<vmem>>, vector<4x1xf32>
    %144 = vector.broadcast %143 : vector<4x1xf32> to vector<4x1024xf32>
    %145 = arith.addf %142, %144 : vector<4x1024xf32>
    %c0_140 = arith.constant 0 : index
    %c0_141 = arith.constant 0 : index
    %c0_142 = arith.constant 0 : index
    %146 = vector.load %arg10[%c0_140, %c0_141, %c0_142] : memref<1x4x1024xf32, #tpu.memory_space<vmem>>, vector<1x4x1024xf32>
    %147 = vector.shape_cast %146 : vector<1x4x1024xf32> to vector<4x1024xf32>
    %148 = vector.shape_cast %145 : vector<4x1024xf32> to vector<1x4x1024xf32>
    tpu.vector_store %arg10[%c0_140, %c0_141, %c0_142], %148 {strides = array<i32>} : memref<1x4x1024xf32, #tpu.memory_space<vmem>>, vector<1x4x1024xf32>,
    return
  }
  func.func @transform_0(%arg0: i32) -> (i32, i32, i32) {
    %c0_i32 = arith.constant 0 : i32
    %c0_i32_0 = arith.constant 0 : i32
    %c0_i32_1 = arith.constant 0 : i32
    return %arg0, %c0_i32, %c0_i32_0 : i32, i32, i32
  }
  func.func @transform_1(%arg0: i32) -> (i32, i32) {
    %c0_i32 = arith.constant 0 : i32
    %c0_i32_0 = arith.constant 0 : i32
    %c0_i32_1 = arith.constant 0 : i32
    return %c0_i32, %c0_i32_0 : i32, i32
  }
  func.func @transform_2(%arg0: i32) -> (i32, i32, i32) {
    %c0_i32 = arith.constant 0 : i32
    %c0_i32_0 = arith.constant 0 : i32
    %c0_i32_1 = arith.constant 0 : i32
    %c0_i32_2 = arith.constant 0 : i32
    return %c0_i32, %c0_i32_0, %c0_i32_1 : i32, i32, i32
  }
  func.func @transform_3(%arg0: i32) -> (i32, i32) {
    %c0_i32 = arith.constant 0 : i32
    %c0_i32_0 = arith.constant 0 : i32
    %c0_i32_1 = arith.constant 0 : i32
    return %c0_i32, %c0_i32_0 : i32, i32
  }
  func.func @transform_4(%arg0: i32) -> (i32, i32) {
    %c0_i32 = arith.constant 0 : i32
    %c0_i32_0 = arith.constant 0 : i32
    %c0_i32_1 = arith.constant 0 : i32
    return %c0_i32, %c0_i32_0 : i32, i32
  }
  func.func @transform_5(%arg0: i32) -> (i32, i32) {
    %c0_i32 = arith.constant 0 : i32
    %c0_i32_0 = arith.constant 0 : i32
    %c0_i32_1 = arith.constant 0 : i32
    return %c0_i32, %c0_i32_0 : i32, i32
  }
  func.func @transform_6(%arg0: i32) -> (i32, i32) {
    %c0_i32 = arith.constant 0 : i32
    %c0_i32_0 = arith.constant 0 : i32
    %c0_i32_1 = arith.constant 0 : i32
    return %c0_i32, %c0_i32_0 : i32, i32
  }
  func.func @transform_7(%arg0: i32) -> i32 {
    %c0_i32 = arith.constant 0 : i32
    %c0_i32_0 = arith.constant 0 : i32
    return %c0_i32 : i32
  }
  func.func @transform_8(%arg0: i32) -> i32 {
    %c0_i32 = arith.constant 0 : i32
    %c0_i32_0 = arith.constant 0 : i32
    return %c0_i32 : i32
  }
  func.func @transform_9(%arg0: i32) -> (i32, i32, i32) {
    %c0_i32 = arith.constant 0 : i32
    %c0_i32_0 = arith.constant 0 : i32
    %c0_i32_1 = arith.constant 0 : i32
    return %arg0, %c0_i32, %c0_i32_0 : i32, i32, i32
  }
}

</mosaic_0001>

<bundles_post_ra>
// kernel: tpu_custom_call.1
= control target key start
LH: loop header
LB: loop body
LE: loop exit
PB: predicated region body
PF: predicated region fallthrough
CT: control target
= control target key end

     0   :  { %s18349_s0 = inlined_call_operand.hbm [shape: f32[2,4,256], index: 0, kind: input, shape index: {}]   ;;  %s18350_s1 = inlined_call_operand.hbm [shape: f32[256,1024], index: 1, kind: input, shape index: {}]   ;;  %s18351_s2 = inlined_call_operand.hbm [shape: f32[9,1,1024], index: 2, kind: input, shape index: {}]   ;;  %s18352_s3 = inlined_call_operand.vmem [shape: f32[4,36], index: 3, kind: input, shape index: {}]   ;;  %s18353_s4 = inlined_call_operand.vmem [shape: f32[4,1], index: 4, kind: input, shape index: {}]   ;;  %s18354_s5 = inlined_call_operand.vmem [shape: f32[4,36], index: 5, kind: input, shape index: {}]   ;;  %s18355_s6 = inlined_call_operand.vmem [shape: f32[4,1], index: 6, kind: input, shape index: {}]   ;;  %s18356_s7 = inlined_call_operand.<no memory space> [shape: f32[1], index: 7, kind: input, shape index: {}]   ;;  %s18357_s8 = inlined_call_operand.<no memory space> [shape: f32[1], index: 8, kind: input, shape index: {}]   ;;  %s18358_s9 = inlined_call_operand.hbm [shape: f32[2,4,1024], index: 9, kind: output, shape index: {}]  }
   0x1   :  { %18644 = sst [smem:[#allocation67_spill]] %s18350_s1 }
   0x2   :  { %18645 = sst [smem:[#allocation68_spill]] %s18351_s2 }
   0x3   :  { %14 = sst [smem:[#allocation6]] %s18356_s7 }
   0x4   :  { %15 = sst [smem:[#allocation7]] %s18357_s8 }
   0x5   :  { %16 = vsyncpa [#allocation9], 0 }
   0x6   :  { %18 = vsyncpa [#allocation9 + $0x1], 0 }
   0x7   :  { %19 = vsyncpa [#allocation12], 0 }
   0x8   :  { %20 = vsyncpa [#allocation10], 0 }
   0x9   :  { %22 = vsyncpa [#allocation10 + $0x1], 0  ;;  %s11722_s13 = smov 0   ;;  %s11724_s14 = smov 0  }
   0xa   :  { %s11726_s15 = smov 0   ;;  %s11728_s16 = smov 0  }
   0xb LB: > { %s18646_s1 = sld [smem:[#allocation67_spill]]  ;;  %s11746_s18 = sadd.s32 4294967295, %s11649_s16   ;;  %s11649_s16 = sphi %s11728_s16, %s19260_s16   ;;  %s11645_s15 = sphi %s11726_s15, %s19259_s15   ;;  %s11641_s14 = sphi %s11724_s14, %s19258_s14   ;;  %s11637_s13 = sphi %s11722_s13, %s19257_s13  }
   0xc   : > { %p11365_p0 = scmp.ge.s32.totalorder %s11649_s16, 1  ;;  %p49_p1 = scmp.eq.s32.totalorder %s11746_s18, 0 }
   0xd   : > { %p253_p2 = scmp.lt.s32.totalorder %s11649_s16, 3  ;;  %s11651_s20 = smov [#allocation11]  }
   0xe   : > { %s266_s21 = sshll.u32 %s11651_s20, 4  ;;  %s18648_s2 = sld [smem:[#allocation68_spill]]  ;;  %s267_s21 = int_to_ptr.vmem [resolvable:$true] %s266_s21 }
   0xf   : > { %p11751_p3 = pnand %p11365_p0, %p253_p2  ;;  %s11652_s25 = smov [#allocation13]  }
  0x10   : > { %s280_s26 = sshll.u32 %s11652_s25, 4  ;;  %s11653_s27 = smov 1024   ;;  %s281_s26 = int_to_ptr.vmem [resolvable:$true] %s280_s26 }
  0x11   : > { %s264_s17 = sshll.u32 %s18646_s1, 4  ;;  %p11396_p4 = pneg %p11751_p3  ;;  %s265_s17 = int_to_ptr.hbm [resolvable:$true] %s264_s17 }
  0x12   : > { %s11654_s28 = smov 64   ;;  %s11655_s29 = smov 128  }
  0x13   : > { %p11397_p6 = pnand %p11396_p4, %p49_p1  ;;  %s11656_s30 = smov 8  }
  0x14   : > { %s278_s24 = sshll.u32 %s18648_s2, 4  ;;  %s11364_s10 = sadd.s32 4294967294, %s11649_s16   ;;  %s279_s24 = int_to_ptr.hbm [resolvable:$true] %s278_s24 }
  0x15   : > { %11399 = dma.hbm_to_vmem [thread:$0]  (!%p11397_p6), %s265_s17, 32768, %s267_s21, [#allocation12], %s11653_s27, %s11653_s27, %s11654_s28  }
  0x16   : > { %11402 = dma.hbm_to_vmem [thread:$0]  (!%p11397_p6), %s279_s24, 1152, %s281_s26, [#allocation12], %s11655_s29, %s11655_s29, %s11656_s30  }
  0x17   : > { %s11765_s11 = sadd.s32 1, %s11649_s16   ;;  %s35_s7 = sadd.s32 1, %s11645_s15 }
  0x18   : > { %s32_s12 = ssub.s32 %s11649_s16, %s11765_s11  ;;  %p42_p8 = scmp.ne.s32.totalorder %s11645_s15, %s11641_s14 }
  0x19   : > { %p33_p7 = scmp.eq.s32.totalorder %s32_s12, 0  ;;  %p43_p9 = scmp.eq.s32.totalorder %s11649_s16, 0 }
  0x1a   : > { %p48_p10 = scmp.ne.s32.totalorder %s11641_s14, %s11637_s13  ;;  %p240_p13 = scmp.eq.s32.totalorder %s11746_s18, 1 }
  0x1b   : > { %s11776_s8 = scalar_select %p33_p7, %s11645_s15, %s35_s7  }
  0x1c   : > { %p11778_p11 = por %p43_p9, %p42_p8  ;;  %p11784_p12 = por %p49_p1, %p48_p10 }
  0x1d   : > { %p246_p0 = scmp.eq.s32.totalorder %s11364_s10, 1  ;;  %p11413_p2 = scmp.lt.s32.totalorder %s11649_s16, 2 }
  0x1e   : > { %s312_s21 = sand.u32 1, %s11645_s15   ;;  %p11791_p4 = por %p240_p13, %p42_p8 }
  0x1f   : > { %p11795_p6 = por %p246_p0, %p48_p10  ;;  %s11369_s24 = sshll.u32 %s312_s21, 3 }
  0x20   : > { %s11382_s25 = sshll.u32 %s11649_s16, 3  ;;  %s316_s29 = scalar_lea.vmem [#allocation8], %s11369_s24 }
  0x21   : > { %s321_s28 = scalar_lea.hbm %s18349_s0, %s11382_s25  ;;  %s325_s30 = sshll.u32 %s316_s29, 4  ;;  %s326_s30 = int_to_ptr.vmem [resolvable:$true] %s325_s30 }
  0x22   : > { %s323_s12 = sshll.u32 %s321_s28, 4  ;;  %p11805_p7 = pnand %p11413_p2, %p11778_p11  ;;  %s324_s12 = int_to_ptr.hbm [resolvable:$true] %s323_s12 }
  0x23   : > { %s313_s7 = scalar_lea.sflag [#allocation9], %s312_s21  ;;  %s11549_s1 = sshra.s32 %s324_s12, 4  ;;  %s11550_s1 = int_to_ptr.hbm [resolvable:$true] %s11549_s1 }
  0x24   : > { %s11551_s2 = scalar_lea.hbm %s11550_s1, 8  ;;  %p11553_p9 = pneg %p11805_p7 }
  0x25   : > { %p11552_p8 = scmp.ne.s32.totalorder %s11550_s1, %s11551_s2  ;;  %s11556_s26 = scalar_lea.hbm %s18349_s0, 16 }
  0x26   : > { %p11557_p11 = scmp.lt.s32.totalorder %s11550_s1, %s18349_s0  ;;  %p11558_p0 = scmp.lt.s32.totalorder %s11556_s26, %s11551_s2 }
  0x27   : > { %p11554_p10 = pnand %p11553_p9, %p11552_p8 }
  0x28   : > { %p11559_p2 = por %p11558_p0, %p11557_p11 }
  0x29   : > { %p11555_p13 = pneg %p11554_p10 }
  0x2b   : > { %p11560_p5 = pnand %p11559_p2, %p11555_p13 }
  0x2d   : > { %11563 = shalt.err (!%p11560_p5)
}
  0x2e   : > { %11406 = dma.hbm_to_vmem [thread:$0]  (!%p11805_p7), %s324_s12, 128, %s326_s30, %s313_s7  }
  0x2f   : > { %334 = sbr.rel (%p11751_p3) target bundleno = 1920 (0x780), region = 56 }
  0x34   : > { %s11822_s21 = sand.u32 1, %s11641_s14  }
  0x35   : > { %s11373_s28 = sshll.u32 %s11822_s21, 3  ;;  %s337_s29 = scalar_lea.sflag [#allocation9], %s11822_s21 }
  0x36   : > { %s11826_s24 = scalar_lea.vmem [#allocation8], %s11373_s28 }
  0x37   : > { %11624 = dma.done.wait (%p11784_p12), %s337_s29, 128  }
  0x38   : > { %11626 = vsyncadd (%p11784_p12), %s337_s29, 4294967168 }
  0x39   : > { %11628 = dma.done.wait (%p49_p1), [#allocation12], 33920  }
  0x3a   : > { %11630 = vsyncadd (%p49_p1), [#allocation12], 4294933376  ;;  %v509_v0 = vld [vmem:[#allocation11 + $0x3c0] sm:$0xff]  ;;  %s13567_s1 = sld [smem:[#allocation6]]  ;;  %vm6144_vm2 = vcmask 1043456   ;;  %s11657_s2 = smov 33  }
  0x3b   : > { %v501_v1 = vld [vmem:[#allocation11 + $0x380] sm:$0xff]  ;;  %v11836_v3 = vand.u32 4294901760, %v509_v0  ;;  %s11658_s19 = smov 32   ;;  %s11659_s20 = smov 31  }
  0x3c   : > { %v493_v2 = vld [vmem:[#allocation11 + $0x340] sm:$0xff]  ;;  %v11838_v4 = vand.u32 4294901760, %v501_v1  ;;  %s11660_s30 = smov 1   ;;  %s11661_s12 = smov 127  }
  0x3d   : > { %v11840_v5 = vand.u32 4294901760, %v493_v2  ;;  %v485_v6 = vld [vmem:[#allocation11 + $0x300] sm:$0xff]  ;;  %652 = vmatpush.msra.mxu0 %v11836_v3  ;;  %848 = vmatpush.msra.mxu3 %v11836_v3  ;;  %v11851_v14 = vsub.f32 %v509_v0, %v11836_v3  ;;  %v388_v0 = vld [vmem:[%s11826_s24] sm:$0xff]  ;;  %s11662_s10 = smov 97   ;;  %s11663_s7 = smov 96  }
  0x3e   : > { %v477_v7 = vld [vmem:[#allocation11 + $0x2c0] sm:$0xff]  ;;  %v11842_v9 = vand.u32 4294901760, %v485_v6  ;;  %v11854_v15 = vsub.f32 %v501_v1, %v11838_v4  ;;  %646 = vst [vmem:[#allocation1] ss:$2 sm:$0xff] %v388_v0  ;;  %s11664_s25 = smov 95   ;;  %s387_s29 = sld [smem:[#allocation7]] }
  0x3f   : > { %v469_v8 = vld [vmem:[#allocation11 + $0x280] sm:$0xff]  ;;  %v11844_v10 = vand.u32 4294901760, %v477_v7  ;;  %v11857_v16 = vsub.f32 %v493_v2, %v11840_v5  ;;  %654 = vmatpush.msra.mxu0 %v11838_v4  ;;  %795 = vmatpush.msra.mxu2 %v11851_v14  ;;  %v18373_v23 = vand.u32 4294901760, %v11851_v14 }
  0x40   : > { %v11846_v11 = vand.u32 4294901760, %v469_v8  ;;  %v461_v12 = vld [vmem:[#allocation11 + $0x240] sm:$0xff]  ;;  %v11862_v19 = vsub.f32 %v485_v6, %v11842_v9  ;;  %v18371_v24 = vand.u32 4294901760, %v11854_v15  ;;  %850 = vmatpush.msra.mxu3 %v11838_v4 }
  0x41   : > { %v453_v13 = vld [vmem:[#allocation11 + $0x200] sm:$0xff]  ;;  %v11859_v17 = vand.u32 4294901760, %v461_v12  ;;  %v11865_v20 = vsub.f32 %v477_v7, %v11844_v10  ;;  %v18370_v25 = vand.u32 4294901760, %v11857_v16  ;;  %656 = vmatpush.msra.mxu0 %v11840_v5  ;;  %798 = vmatpush.msra.mxu2 %v11854_v15  ;;  %v695_v30 = vsub.f32 %v11851_v14, %v18373_v23 }
  0x42   : > { %v445_v18 = vld [vmem:[#allocation11 + $0x1c0] sm:$0xff]  ;;  %v11868_v21 = vsub.f32 %v469_v8, %v11846_v11  ;;  %v11870_v22 = vand.u32 4294901760, %v453_v13  ;;  %v18369_v26 = vand.u32 4294901760, %v11862_v19  ;;  %v701_v31 = vsub.f32 %v11854_v15, %v18371_v24  ;;  %852 = vmatpush.msra.mxu3 %v11840_v5 }
  0x43   : > { %v11880_v27 = vsub.f32 %v461_v12, %v11859_v17  ;;  %v11882_v28 = vand.u32 4294901760, %v445_v18  ;;  %v437_v29 = vld [vmem:[#allocation11 + $0x180] sm:$0xff]  ;;  %v707_v32 = vsub.f32 %v11857_v16, %v18370_v25  ;;  %v18368_v33 = vand.u32 4294901760, %v11865_v20  ;;  %658 = vmatpush.msra.mxu0 %v11842_v9  ;;  %801 = vmatpush.msra.mxu2 %v11857_v16 }
  0x44   : > { %v11898_v34 = vsub.f32 %v453_v13, %v11870_v22  ;;  %v18365_v35 = vand.u32 4294901760, %v11868_v21  ;;  %v429_v36 = vld [vmem:[#allocation11 + $0x140] sm:$0xff]  ;;  %v696_v37 = vand.u32 4294901760, %v695_v30  ;;  %v702_v38 = vand.u32 4294901760, %v701_v31  ;;  %854 = vmatpush.msra.mxu3 %v11842_v9 }
  0x45   : > { %v713_v39 = vsub.f32 %v11862_v19, %v18369_v26  ;;  %v11906_v40 = vand.u32 4294901760, %v437_v29  ;;  %v11910_v41 = vsub.f32 %v445_v18, %v11882_v28  ;;  %v18364_v42 = vand.u32 4294901760, %v11880_v27  ;;  %v421_v43 = vld [vmem:[#allocation11 + $0x100] sm:$0xff]  ;;  %660 = vmatpush.msra.mxu0 %v11844_v10  ;;  %804 = vmatpush.msra.mxu2 %v11862_v19 }
  0x46   : > { %697 = vmatpush.msra.mxu1 %v696_v37  ;;  %v708_v44 = vand.u32 4294901760, %v707_v32  ;;  %v719_v45 = vsub.f32 %v11865_v20, %v18368_v33  ;;  %v11917_v46 = vand.u32 4294901760, %v429_v36  ;;  %856 = vmatpush.msra.mxu3 %v11844_v10  ;;  %v725_v47 = vsub.f32 %v11868_v21, %v18365_v35  ;;  %v413_v49 = vld [vmem:[#allocation11 + $0xc0] sm:$0xff] }
  0x47   : > { %v18362_v48 = vand.u32 4294901760, %v11898_v34  ;;  %662 = vmatpush.msra.mxu0 %v11846_v11  ;;  %v714_v50 = vand.u32 4294901760, %v713_v39  ;;  %v11927_v51 = vsub.f32 %v437_v29, %v11906_v40  ;;  %v11929_v52 = vand.u32 4294901760, %v421_v43  ;;  %807 = vmatpush.msra.mxu2 %v11865_v20  ;;  %v405_v55 = vld [vmem:[#allocation11 + $0x80] sm:$0xff] }
  0x48   : > { %703 = vmatpush.msra.mxu1 %v702_v38  ;;  %858 = vmatpush.msra.mxu3 %v11846_v11  ;;  %v731_v53 = vsub.f32 %v11880_v27, %v18364_v42  ;;  %v18361_v54 = vand.u32 4294901760, %v11910_v41  ;;  %v637_v56 = vld [vmem:[#allocation11 + $0x7c0] sm:$0xff]  ;;  %v720_v57 = vand.u32 4294901760, %v719_v45  ;;  %v11939_v58 = vsub.f32 %v429_v36, %v11917_v46 }
  0x49   : > { %664 = vmatpush.msra.mxu0 %v11859_v17  ;;  %v11941_v59 = vand.u32 4294901760, %v413_v49  ;;  %v629_v60 = vld [vmem:[#allocation11 + $0x780] sm:$0xff]  ;;  %810 = vmatpush.msra.mxu2 %v11868_v21  ;;  %v726_v61 = vand.u32 4294901760, %v725_v47  ;;  %v737_v62 = vsub.f32 %v11898_v34, %v18362_v48  ;;  %v11951_v1 = vsub.f32 %v421_v43, %v11929_v52 }
  0x4a   : > { %709 = vmatpush.msra.mxu1 %v708_v44  ;;  %860 = vmatpush.msra.mxu3 %v11859_v17  ;;  %v397_v63 = vld [vmem:[#allocation11 + $0x40] sm:$0xff]  ;;  %v11953_v2 = vand.u32 4294901760, %v405_v55  ;;  %v18360_v6 = vand.u32 4294901760, %v11927_v51  ;;  %v11956_v7 = vand.u32 4294901760, %v637_v56  ;;  %v732_v12 = vand.u32 4294901760, %v731_v53 }
  0x4b   : > { %18654 = vst [vmem:[#allocation18_spill] sm:$0xff] %v11941_v59  ;;  %666 = vmatpush.msra.mxu0 %v11870_v22  ;;  %v621_v8 = vld [vmem:[#allocation11 + $0x740] sm:$0xff]  ;;  %813 = vmatpush.msra.mxu2 %v11880_v27  ;;  %v743_v13 = vsub.f32 %v11910_v41, %v18361_v54  ;;  %v11963_v29 = vand.u32 4294901760, %v629_v60  ;;  %v11967_v30 = vsub.f32 %v413_v49, %v11941_v59  ;;  %v11969_v31 = vand.u32 4294901760, %v397_v63 }
  0x4c   : > { %715 = vmatpush.msra.mxu1 %v714_v50  ;;  %18655 = vst [vmem:[#allocation19_spill] sm:$0xff] %v11953_v2  ;;  %862 = vmatpush.msra.mxu3 %v11870_v22  ;;  %v389_v18 = vld [vmem:[#allocation11] sm:$0xff]  ;;  %v18359_v32 = vand.u32 4294901760, %v11939_v58  ;;  %v11973_v36 = vsub.f32 %v637_v56, %v11956_v7  ;;  %v738_v38 = vand.u32 4294901760, %v737_v62  ;;  %v11977_v39 = vand.u32 4294901760, %v621_v8 }
  0x4d   : > { %668 = vmatpush.msra.mxu0 %v11882_v28  ;;  %18656 = vst [vmem:[#allocation20_spill] sm:$0xff] %v11969_v31  ;;  %v613_v37 = vld [vmem:[#allocation11 + $0x700] sm:$0xff]  ;;  %816 = vmatpush.msra.mxu2 %v11898_v34  ;;  %v749_v43 = vsub.f32 %v11927_v51, %v18360_v6  ;;  %v11984_v44 = vsub.f32 %v405_v55, %v11953_v2  ;;  %v11986_v45 = vand.u32 4294901760, %v389_v18  ;;  %v18363_v47 = vand.u32 4294901760, %v11951_v1 }
  0x4e   : > { %721 = vmatpush.msra.mxu1 %v720_v57  ;;  %864 = vmatpush.msra.mxu3 %v11882_v28  ;;  %v605_v49 = vld [vmem:[#allocation11 + $0x6c0] sm:$0xff]  ;;  %v744_v50 = vand.u32 4294901760, %v743_v13  ;;  %v11992_v53 = vsub.f32 %v629_v60, %v11963_v29  ;;  %v11994_v56 = vand.u32 4294901760, %v613_v37  ;;  %v755_v55 = vsub.f32 %v11939_v58, %v18359_v32 }
  0x4f   : > { %670 = vmatpush.msra.mxu0 %v11906_v40  ;;  %18657 = vst [vmem:[#allocation21_spill] sm:$0xff] %v11986_v45  ;;  %819 = vmatpush.msra.mxu2 %v11910_v41  ;;  %v12001_v57 = vsub.f32 %v397_v63, %v11969_v31  ;;  %v18367_v62 = vand.u32 4294901760, %v11967_v30  ;;  %v597_v0 = vld [vmem:[#allocation11 + $0x680] sm:$0xff]  ;;  %v12008_v60 = vsub.f32 %v621_v8, %v11977_v39  ;;  %v750_v13 = vand.u32 4294901760, %v749_v43 }
  0x50   : > { %727 = vmatpush.msra.mxu1 %v726_v61  ;;  %866 = vmatpush.msra.mxu3 %v11906_v40  ;;  %18658 = vst [vmem:[#allocation22_spill] sm:$0xff] %v11992_v53  ;;  %v18366_v61 = vand.u32 4294901760, %v11973_v36  ;;  %v761_v63 = vsub.f32 %v11951_v1, %v18363_v47  ;;  %v12017_v32 = vsub.f32 %v389_v18, %v11986_v45  ;;  %v18372_v6 = vand.u32 4294901760, %v11984_v44  ;;  %v589_v54 = vld [vmem:[#allocation11 + $0x640] sm:$0xff] }
  0x51   : > { %672 = vmatpush.msra.mxu0 %v11917_v46  ;;  %822 = vmatpush.msra.mxu2 %v11927_v51  ;;  %18659 = vst [vmem:[#allocation23_spill] sm:$0xff] %v12008_v60  ;;  %v18374_v8 = vand.u32 4294901760, %v11992_v53  ;;  %v12024_v48 = vsub.f32 %v613_v37, %v11994_v56  ;;  %v756_v43 = vand.u32 4294901760, %v755_v55  ;;  %v767_v47 = vsub.f32 %v11967_v30, %v18367_v62  ;;  %v581_v35 = vld [vmem:[#allocation11 + $0x600] sm:$0xff] }
  0x52   : > { %733 = vmatpush.msra.mxu1 %v732_v12  ;;  %868 = vmatpush.msra.mxu3 %v11917_v46  ;;  %v12010_v12 = vand.u32 4294901760, %v605_v49  ;;  %v1036_v18 = vsub.f32 %v11973_v36, %v18366_v61  ;;  %v18375_v42 = vand.u32 4294901760, %v12001_v57  ;;  %v18378_v37 = vand.u32 4294901760, %v12008_v60  ;;  %v573_v26 = vld [vmem:[#allocation11 + $0x5c0] sm:$0xff] }
  0x53   : > { %674 = vmatpush.msra.mxu0 %v11929_v52  ;;  %825 = vmatpush.msra.mxu2 %v11939_v58  ;;  %v12042_v55 = vand.u32 4294901760, %v589_v54  ;;  %v762_v61 = vand.u32 4294901760, %v761_v63  ;;  %v773_v62 = vsub.f32 %v11984_v44, %v18372_v6  ;;  %v12058_v63 = vand.u32 4294901760, %v581_v35  ;;  %v565_v24 = vld [vmem:[#allocation11 + $0x580] sm:$0xff] }
  0x54   : > { %739 = vmatpush.msra.mxu1 %v738_v38  ;;  %870 = vmatpush.msra.mxu3 %v11929_v52  ;;  %v12026_v38 = vand.u32 4294901760, %v597_v0  ;;  %v1037_v6 = vand.u32 4294901760, %v1036_v18  ;;  %v768_v23 = vand.u32 4294901760, %v767_v47  ;;  %v779_v33 = vsub.f32 %v12001_v57, %v18375_v42  ;;  %v557_v47 = vld [vmem:[#allocation11 + $0x540] sm:$0xff] }
  0x55   : > { %676 = vmatpush.msra.mxu0 %v11941_v59  ;;  %828 = vmatpush.msra.mxu2 %v11951_v1  ;;  %v12071_v25 = vsub.f32 %v589_v54, %v12042_v55  ;;  %v774_v18 = vand.u32 4294901760, %v773_v62  ;;  %v18660_v42 = vand.u32 4294901760, %v12017_v32  ;;  %v18661_v54 = vand.u32 4294901760, %v12024_v48 }
  0x56   : > { %745 = vmatpush.msra.mxu1 %v744_v50  ;;  %872 = vmatpush.msra.mxu3 %v11941_v59  ;;  %v12040_v50 = vsub.f32 %v605_v49, %v12010_v12  ;;  %v1042_v49 = vsub.f32 %v11992_v53, %v18374_v8  ;;  %v18662_v62 = vand.u32 4294901760, %v11851_v14  ;;  %v12092_v53 = vand.u32 4294901760, %v557_v47  ;;  %v549_v59 = vld [vmem:[#allocation11 + $0x500] sm:$0xff] }
  0x57   : > { %678 = vmatpush.msra.mxu0 %v11953_v2  ;;  %831 = vmatpush.msra.mxu2 %v11967_v30  ;;  %v1054_v8 = vsub.f32 %v12024_v48, %v18661_v54  ;;  %v18664_v14 = vand.u32 4294901760, %v11854_v15  ;;  %v18666_v15 = vand.u32 4294901760, %v11857_v16  ;;  %v18668_v16 = vand.u32 4294901760, %v11862_v19 }
  0x58   : > { %751 = vmatpush.msra.mxu1 %v750_v13  ;;  %874 = vmatpush.msra.mxu3 %v11953_v2  ;;  %v12056_v13 = vsub.f32 %v597_v0, %v12026_v38  ;;  %v1048_v0 = vsub.f32 %v12008_v60, %v18378_v37  ;;  %v12079_v2 = vand.u32 4294901760, %v565_v24  ;;  %v1043_v37 = vand.u32 4294901760, %v1042_v49 }
  0x59   : > { %680 = vmatpush.msra.mxu0 %v11969_v31  ;;  %834 = vmatpush.msra.mxu2 %v11984_v44  ;;  %v12112_v60 = vand.u32 4294901760, %v549_v59  ;;  %v18669_v19 = vand.u32 4294901760, %v11865_v20  ;;  %v647_v20 = vld.sshfl [vmem:[#allocation1] sm:$0xff pattern:$0x75316420] }
  0x5a   : > { %757 = vmatpush.msra.mxu1 %v756_v43  ;;  %876 = vmatpush.msra.mxu3 %v11969_v31  ;;  %v12073_v43 = vand.u32 4294901760, %v573_v26  ;;  %v785_v31 = vsub.f32 %v12017_v32, %v18660_v42  ;;  %v780_v42 = vand.u32 4294901760, %v779_v33  ;;  %v1049_v49 = vand.u32 4294901760, %v1048_v0 }
  0x5b   : > { %682 = vmatpush.msra.mxu0 %v11986_v45  ;;  %837 = vmatpush.msra.mxu2 %v12001_v57  ;;  %v1055_v0 = vand.u32 4294901760, %v1054_v8 }
  0x5c   : > { %763 = vmatpush.msra.mxu1 %v762_v61  ;;  %878 = vmatpush.msra.mxu3 %v11986_v45  ;;  %v12088_v61 = vsub.f32 %v581_v35, %v12058_v63  ;;  %v18663_v45 = vand.u32 4294901760, %v12040_v50  ;;  %v12100_v35 = vsub.f32 %v573_v26, %v12073_v43  ;;  %v786_v33 = vand.u32 4294901760, %v785_v31  ;;  %v533_v31 = vld [vmem:[#allocation11 + $0x480] sm:$0xff] }
  0x5d   : > { %889 = vmatpush.msrb.mxu0 %v18662_v62  ;;  %840 = vmatpush.msra.mxu2 %v12017_v32 }
  0x5e   : > { %1038 = vmatpush.msrb.mxu3 %v1037_v6  ;;  %769 = vmatpush.msra.mxu1 %v768_v23  ;;  %v1060_v54 = vsub.f32 %v12040_v50, %v18663_v45  ;;  %v12106_v23 = vsub.f32 %v565_v24, %v12079_v2  ;;  %v541_v6 = vld [vmem:[#allocation11 + $0x4c0] sm:$0xff]  ;;  %v18665_v45 = vand.u32 4294901760, %v12056_v13  ;;  %v18386_v26 = vand.u32 4294901760, %v12088_v61 }
  0x5f   : > { %893 = vmatpush.msrb.mxu0 %v18664_v14  ;;  %993 = vmatpush.msrb.mxu2 %v11956_v7  ;;  %v12118_v24 = vsub.f32 %v557_v47, %v12092_v53  ;;  %v18385_v14 = vand.u32 4294901760, %v12100_v35  ;;  %v517_v47 = vld [vmem:[#allocation11 + $0x400] sm:$0xff] }
  0x60   : > { %1044 = vmatpush.msrb.mxu3 %v1043_v37  ;;  %775 = vmatpush.msra.mxu1 %v774_v18  ;;  %v1066_v62 = vsub.f32 %v12056_v13, %v18665_v45  ;;  %v1061_v8 = vand.u32 4294901760, %v1060_v54  ;;  %v18667_v37 = vand.u32 4294901760, %v12071_v25  ;;  %v12124_v45 = vand.u32 4294901760, %v541_v6 }
  0x61   : > { %897 = vmatpush.msrb.mxu0 %v18666_v15  ;;  %995 = vmatpush.msrb.mxu2 %v11963_v29  ;;  %v525_v15 = vld [vmem:[#allocation11 + $0x440] sm:$0xff]  ;;  %v12134_v54 = vsub.f32 %v549_v59, %v12112_v60 }
  0x62   : > { %1050 = vmatpush.msrb.mxu3 %v1049_v49  ;;  %781 = vmatpush.msra.mxu1 %v780_v42  ;;  %v1072_v18 = vsub.f32 %v12071_v25, %v18667_v37  ;;  %v1067_v42 = vand.u32 4294901760, %v1066_v62  ;;  %v1078_v49 = vsub.f32 %v12088_v61, %v18386_v26  ;;  %v12136_v37 = vand.u32 4294901760, %v533_v31 }
  0x63   : > { %901 = vmatpush.msrb.mxu0 %v18668_v16  ;;  %997 = vmatpush.msrb.mxu2 %v11977_v39  ;;  %v1095_v16 = vand.u32 4294901760, %v12118_v24  ;;  %v12147_v59 = vsub.f32 %v541_v6, %v12124_v45  ;;  %v12149_v62 = vand.u32 4294901760, %v525_v15  ;;  %v12162_v26 = vand.u32 4294901760, %v517_v47 }
  0x64   : > { %1056 = vmatpush.msrb.mxu3 %v1055_v0  ;;  %787 = vmatpush.msra.mxu1 %v786_v33  ;;  %v1073_v33 = vand.u32 4294901760, %v1072_v18  ;;  %v1084_v0 = vsub.f32 %v12100_v35, %v18385_v14  ;;  %v1079_v18 = vand.u32 4294901760, %v1078_v49  ;;  %v1101_v14 = vand.u32 4294901760, %v12134_v54 }
  0x65   : > { %905 = vmatpush.msrb.mxu0 %v18669_v19  ;;  %999 = vmatpush.msrb.mxu2 %v11994_v56  ;;  %v18670_v19 = vand.u32 4294901760, %v11868_v21  ;;  %v12160_v6 = vsub.f32 %v533_v31, %v12136_v37  ;;  %v18672_v21 = vand.u32 4294901760, %v11880_v27  ;;  %v1107_v31 = vand.u32 4294901760, %v12147_v59 }
  0x66   : > { %956 = vmatpush.msrb.mxu1 %v11836_v3  ;;  %1062 = vmatpush.msrb.mxu3 %v1061_v8  ;;  %v18671_v3 = vand.u32 4294901760, %v12106_v23  ;;  %v12175_v49 = vsub.f32 %v525_v15, %v12149_v62  ;;  %v18674_v27 = vand.u32 4294901760, %v11898_v34  ;;  %v18675_v15 = vand.u32 4294901760, %v11910_v41 }
  0x67   : > { %909 = vmatpush.msrb.mxu0 %v18670_v19  ;;  %1001 = vmatpush.msrb.mxu2 %v12010_v12  ;;  %v1085_v19 = vand.u32 4294901760, %v1084_v0  ;;  %v1113_v0 = vand.u32 4294901760, %v12160_v6 }
  0x68   : > { %958 = vmatpush.msrb.mxu1 %v11838_v4  ;;  %v1090_v8 = vsub.f32 %v12106_v23, %v18671_v3  ;;  %1068 = vmatpush.msrb.mxu3 %v1067_v42  ;;  %v12167_v4 = vand.u32 4294901760, %v647_v20  ;;  %v1096_v42 = vsub.f32 %v12118_v24, %v1095_v16  ;;  %v12186_v3 = vsub.f32 %v517_v47, %v12162_v26 }
  0x69   : > { %913 = vmatpush.msrb.mxu0 %v18672_v21  ;;  %1003 = vmatpush.msrb.mxu2 %v12026_v38  ;;  %v18677_v47 = vand.u32 4294901760, %v11927_v51  ;;  %v1114_v41 = vsub.f32 %v12160_v6, %v1113_v0  ;;  %v18678_v21 = vand.u32 4294901760, %v11939_v58 }
  0x6a   : > { %960 = vmatpush.msrb.mxu1 %v11840_v5  ;;  %18673 = vst [vmem:[#allocation24_spill] sm:$0xff] %v12167_v4  ;;  %1074 = vmatpush.msrb.mxu3 %v1073_v33  ;;  %v1091_v5 = vand.u32 4294901760, %v1090_v8  ;;  %v1102_v33 = vsub.f32 %v12134_v54, %v1101_v14  ;;  %v1097_v34 = vand.u32 4294901760, %v1096_v42  ;;  %v1108_v8 = vsub.f32 %v12147_v59, %v1107_v31  ;;  %v648_v42 = vld.sshfl [vmem:[#allocation1 + $0x8] sm:$0xff pattern:$0x75316420] }
  0x6b   : > { %917 = vmatpush.msrb.mxu0 %v18674_v27  ;;  %1005 = vmatpush.msrb.mxu2 %v12042_v55  ;;  %v18680_v27 = vand.u32 4294901760, %v11951_v1  ;;  %v12229_v1 = vand.u32 4294901760, %v648_v42 }
  0x6c   : > { %962 = vmatpush.msrb.mxu1 %v11842_v9  ;;  %1080 = vmatpush.msrb.mxu3 %v1079_v18  ;;  %v12192_v9 = vsub.f32 %v647_v20, %v12167_v4  ;;  %v1119_v18 = vand.u32 4294901760, %v12175_v49  ;;  %v1125_v20 = vand.u32 4294901760, %v12186_v3 }
  0x6d   : > { %921 = vmatpush.msrb.mxu0 %v18675_v15  ;;  %1007 = vmatpush.msrb.mxu2 %v12058_v63  ;;  %18682 = vst [vmem:[#allocation27_spill] sm:$0xff] %v12229_v1  ;;  %v18683_v15 = vand.u32 4294901760, %v11984_v44  ;;  %v18687_v44 = vand.u32 4294901760, %v12017_v32  ;;  %v18691_v32 = vand.u32 4294901760, %v11973_v36 }
  0x6e   : > { %964 = vmatpush.msrb.mxu1 %v11844_v10  ;;  %18676 = vst [vmem:[#allocation25_spill] sm:$0xff] %v12192_v9  ;;  %1086 = vmatpush.msrb.mxu3 %v1085_v19  ;;  %v1103_v10 = vand.u32 4294901760, %v1102_v33  ;;  %v12211_v51 = vand.u32 4294901760, %v12192_v9  ;;  %v1120_v19 = vsub.f32 %v12175_v49, %v1119_v18  ;;  %v1126_v58 = vsub.f32 %v12186_v3, %v1125_v20 }
  0x6f   : > { %925 = vmatpush.msrb.mxu0 %v18677_v47  ;;  %1009 = vmatpush.msrb.mxu2 %v12073_v43  ;;  %v18692_v47 = vld [vmem:[#allocation19_spill] sm:$0xff] }
  0x70   : > { %966 = vmatpush.msrb.mxu1 %v11846_v11  ;;  %1092 = vmatpush.msrb.mxu3 %v1091_v5  ;;  %18679 = vst [vmem:[#allocation26_spill] sm:$0xff] %v12211_v51  ;;  %v1109_v11 = vand.u32 4294901760, %v1108_v8  ;;  %v18681_v5 = vand.u32 4294901760, %v11967_v30  ;;  %v686_v33 = vsub.f32 %v12192_v9, %v12211_v51  ;;  %v1127_v30 = vand.u32 4294901760, %v1126_v58 }
  0x71   : > { %929 = vmatpush.msrb.mxu0 %v18678_v21  ;;  %1011 = vmatpush.msrb.mxu2 %v12079_v2  ;;  %v12242_v8 = vsub.f32 %v648_v42, %v12229_v1  ;;  %v18695_v21 = vld [vmem:[#allocation20_spill] sm:$0xff]  ;;  %v18699_v42 = vand.u32 4294901760, %v12024_v48 }
  0x72   : > { %968 = vmatpush.msrb.mxu1 %v11859_v17  ;;  %1098 = vmatpush.msrb.mxu3 %v1097_v34  ;;  %v1115_v17 = vand.u32 4294901760, %v1114_v41  ;;  %v12239_v34 = vand.u32 4294901760, %v686_v33 }
  0x73   : > { %933 = vmatpush.msrb.mxu0 %v18680_v27  ;;  %1013 = vmatpush.msrb.mxu2 %v12092_v53  ;;  %18686 = vst [vmem:[#allocation29_spill] sm:$0xff] %v12242_v8  ;;  %v18700_v27 = vand.u32 4294901760, %v12040_v50 }
  0x74   : > { %970 = vmatpush.msrb.mxu1 %v11870_v22  ;;  %1104 = vmatpush.msrb.mxu3 %v1103_v10  ;;  %v1121_v22 = vand.u32 4294901760, %v1120_v19  ;;  %18685 = vst [vmem:[#allocation28_spill] sm:$0xff] %v12239_v34  ;;  %v18693_v10 = vld [vmem:[#allocation23_spill] sm:$0xff]  ;;  %v18698_v19 = vld [vmem:[#allocation21_spill] sm:$0xff] }
  0x75   : > { %937 = vmatpush.msrb.mxu0 %v18681_v5  ;;  %1015 = vmatpush.msrb.mxu2 %v12112_v60  ;;  %v438_v5 = vld [vmem:[#allocation11 + $0x188] sm:$0xff] }
  0x76   : > { %972 = vmatpush.msrb.mxu1 %v11882_v28  ;;  %1110 = vmatpush.msrb.mxu3 %v1109_v11  ;;  %v18684_v28 = vand.u32 4294901760, %v12001_v57 }
  0x77   : > { %941 = vmatpush.msrb.mxu0 %v18683_v15  ;;  %1017 = vmatpush.msrb.mxu2 %v12124_v45 }
  0x78   : > { %974 = vmatpush.msrb.mxu1 %v11906_v40  ;;  %1116 = vmatpush.msrb.mxu3 %v1115_v17  ;;  %v12252_v40 = vand.u32 4294901760, %v12242_v8 }
  0x79   : > { %945 = vmatpush.msrb.mxu0 %v18684_v28  ;;  %1019 = vmatpush.msrb.mxu2 %v12136_v37  ;;  %v430_v28 = vld [vmem:[#allocation11 + $0x148] sm:$0xff] }
  0x7a   : > { %976 = vmatpush.msrb.mxu1 %v11917_v46  ;;  %1122 = vmatpush.msrb.mxu3 %v1121_v22  ;;  %18688 = vst [vmem:[#allocation30_spill] sm:$0xff] %v12252_v40  ;;  %v18689_v46 = vld [vmem:[#allocation18_spill] sm:$0xff]  ;;  %v1027_v57 = vsub.f32 %v12242_v8, %v12252_v40 }
  0x7b   : > { %949 = vmatpush.msrb.mxu0 %v18687_v44  ;;  %1021 = vmatpush.msrb.mxu2 %v12149_v62 }
  0x7c   : > { %978 = vmatpush.msrb.mxu1 %v11929_v52  ;;  %1128 = vmatpush.msrb.mxu3 %v1127_v30  ;;  %v18690_v52 = vld [vmem:[#allocation22_spill] sm:$0xff]  ;;  %v12275_v11 = vand.u32 4294901760, %v1027_v57 }
  0x7d   : > { %688 = vmatmul.f32.vlgmr.msra.gmra.mxu0 %v12239_v34  ;;  %882 = vmatmul.f32.vlgmr.msra.gmra.mxu3 %v12211_v51  ;;  %v18694_v41 = vand.u32 4294901760, %v18690_v52 }
  0x7e   : > { %1136 = vmatpush.msra.mxu0 %v11973_v36  ;;  %1297 = vmatpush.msra.mxu3 %v11956_v7  ;;  %v18696_v36 = vand.u32 4294901760, %v18693_v10  ;;  %18697 = vst [vmem:[#allocation18_spill] sm:$0xff] %v12275_v11 }
  0x7f   : > { %980 = vmatpush.msrb.mxu1 %v18689_v46  ;;  %1023 = vmatpush.msrb.mxu2 %v12162_v26 }
  0x80   : > { %843 = vmatmul.f32.vlgmr.msra.gmra.mxu2 %v12192_v9  ;;  %1139 = vmatpush.msra.mxu0 %v18690_v52 }
  0x81   : > { %1230 = vmatpush.msra.mxu2 %v18691_v32  ;;  %1299 = vmatpush.msra.mxu3 %v11963_v29 }
  0x82   : > { %982 = vmatpush.msrb.mxu1 %v18692_v47  ;;  %1142 = vmatpush.msra.mxu0 %v18693_v10 }
  0x83   : > { %1234 = vmatpush.msra.mxu2 %v18694_v41  ;;  %1301 = vmatpush.msra.mxu3 %v11977_v39  ;;  %v12435_v41 = vand.u32 4294901760, %v430_v28 }
  0x84   : > { %984 = vmatpush.msrb.mxu1 %v18695_v21  ;;  %1145 = vmatpush.msra.mxu0 %v12024_v48  ;;  %v18701_v48 = vand.u32 4294901760, %v12056_v13 }
  0x85   : > { %789 = vmatmul.f32.vlgmr.msra.gmra.mxu1 %v12167_v4  ;;  %1238 = vmatpush.msra.mxu2 %v18696_v36  ;;  %v638_v36 = vld [vmem:[#allocation11 + $0x7c8] sm:$0xff] }
  0x86   : > { %1303 = vmatpush.msra.mxu3 %v11994_v56  ;;  %986 = vmatpush.msrb.mxu1 %v18698_v19 }
  0x87   : > { %1148 = vmatpush.msra.mxu0 %v12040_v50  ;;  %1242 = vmatpush.msra.mxu2 %v18699_v42  ;;  %v494_v50 = vld [vmem:[#allocation11 + $0x348] sm:$0xff] }
  0x88   : > { %1189 = vmatpush.msra.mxu1 %v11956_v7  ;;  %1305 = vmatpush.msra.mxu3 %v12010_v12  ;;  %v18702_v7 = vand.u32 4294901760, %v12071_v25  ;;  %v414_v42 = vld [vmem:[#allocation11 + $0xc8] sm:$0xff] }
  0x89   : > { %1029 = vmatmul.f32.vlgmr.msrb.gmra.mxu2 %v12275_v11  ;;  %1151 = vmatpush.msra.mxu0 %v12056_v13  ;;  %v486_v13 = vld [vmem:[#allocation11 + $0x308] sm:$0xff] }
  0x8a   : > { %1191 = vmatpush.msra.mxu1 %v11963_v29  ;;  %1246 = vmatpush.msra.mxu2 %v18700_v27  ;;  %v18703_v29 = vand.u32 4294901760, %v12088_v61  ;;  %v574_v11 = vld [vmem:[#allocation11 + $0x5c8] sm:$0xff] }
  0x8b   : > { %1307 = vmatpush.msra.mxu3 %v12026_v38  ;;  %951 = vmatmul.f32.vlgmr.msrb.gmra.mxu0 %v12167_v4 }
  0x8c   : > { %1130 = vmatmul.f32.vlgmr.msrb.gmra.mxu3 %v12229_v1  ;;  %1154 = vmatpush.msra.mxu0 %v12071_v25  ;;  %v510_v25 = vld [vmem:[#allocation11 + $0x3c8] sm:$0xff] }
  0x8d   : > { %1193 = vmatpush.msra.mxu1 %v11977_v39  ;;  %1250 = vmatpush.msra.mxu2 %v18701_v48  ;;  %v18704_v39 = vand.u32 4294901760, %v12100_v35 }
  0x8e   : > { %1309 = vmatpush.msra.mxu3 %v12042_v55  ;;  %988 = vmatmul.f32.vlgmr.msrb.gmra.mxu1 %v12167_v4 }
  0x8f   : > { %1157 = vmatpush.msra.mxu0 %v12088_v61  ;;  %1195 = vmatpush.msra.mxu1 %v11994_v56  ;;  %v18705_v56 = vand.u32 4294901760, %v12106_v23  ;;  %v478_v61 = vld [vmem:[#allocation11 + $0x2c8] sm:$0xff] }
  0x90   : > { %1254 = vmatpush.msra.mxu2 %v18702_v7  ;;  %1311 = vmatpush.msra.mxu3 %v12058_v63 }
  0x91   : > { %1160 = vmatpush.msra.mxu0 %v12100_v35  ;;  %1197 = vmatpush.msra.mxu1 %v12010_v12  ;;  %v502_v12 = vld [vmem:[#allocation11 + $0x388] sm:$0xff]  ;;  %v12350_v35 = vand.u32 4294901760, %v486_v13 }
  0x92   : > { %1258 = vmatpush.msra.mxu2 %v18703_v29  ;;  %1313 = vmatpush.msra.mxu3 %v12073_v43 }
  0x93   : > { %1163 = vmatpush.msra.mxu0 %v12106_v23  ;;  %1199 = vmatpush.msra.mxu1 %v12026_v38  ;;  %v12323_v38 = vand.u32 4294901760, %v510_v25  ;;  %v470_v23 = vld [vmem:[#allocation11 + $0x288] sm:$0xff] }
  0x94   : > { %1262 = vmatpush.msra.mxu2 %v18704_v39  ;;  %1315 = vmatpush.msra.mxu3 %v12079_v2  ;;  %v630_v39 = vld [vmem:[#allocation11 + $0x788] sm:$0xff] }
  0x95   : > { %1166 = vmatpush.msra.mxu0 %v12118_v24  ;;  %1201 = vmatpush.msra.mxu1 %v12042_v55  ;;  %v12330_v55 = vand.u32 4294901760, %v502_v12  ;;  %v12360_v24 = vand.u32 4294901760, %v478_v61 }
  0x96   : > { %1266 = vmatpush.msra.mxu2 %v18705_v56  ;;  %1317 = vmatpush.msra.mxu3 %v12092_v53  ;;  %v406_v56 = vld [vmem:[#allocation11 + $0x88] sm:$0xff] }
  0x97   : > { %1169 = vmatpush.msra.mxu0 %v12134_v54  ;;  %1203 = vmatpush.msra.mxu1 %v12058_v63  ;;  %v12338_v63 = vsub.f32 %v510_v25, %v12323_v38  ;;  %v462_v54 = vld [vmem:[#allocation11 + $0x248] sm:$0xff] }
  0x98   : > { %1270 = vmatpush.msra.mxu2 %v1095_v16  ;;  %1319 = vmatpush.msra.mxu3 %v12112_v60  ;;  %v12370_v16 = vand.u32 4294901760, %v470_v23 }
  0x99   : > { %1172 = vmatpush.msra.mxu0 %v12147_v59  ;;  %1205 = vmatpush.msra.mxu1 %v12073_v43  ;;  %v12340_v43 = vand.u32 4294901760, %v494_v50 }
  0x9a   : > { %1274 = vmatpush.msra.mxu2 %v1101_v14  ;;  %1321 = vmatpush.msra.mxu3 %v12124_v45  ;;  %v18396_v14 = vand.u32 4294901760, %v12338_v63 }
  0x9b   : > { %1175 = vmatpush.msra.mxu0 %v12160_v6  ;;  %1207 = vmatpush.msra.mxu1 %v12079_v2  ;;  %v12348_v2 = vsub.f32 %v502_v12, %v12330_v55  ;;  %v454_v6 = vld [vmem:[#allocation11 + $0x208] sm:$0xff]  ;;  %v12453_v12 = vand.u32 4294901760, %v638_v36 }
  0x9c   : > { %1278 = vmatpush.msra.mxu2 %v1107_v31  ;;  %1323 = vmatpush.msra.mxu3 %v12136_v37  ;;  %v12382_v31 = vsub.f32 %v478_v61, %v12360_v24  ;;  %v12397_v17 = vand.u32 4294901760, %v454_v6  ;;  %v12460_v61 = vsub.f32 %v430_v28, %v12435_v41  ;;  %v614_v28 = vld [vmem:[#allocation11 + $0x708] sm:$0xff] }
  0x9d   : > { %1178 = vmatpush.msra.mxu0 %v12175_v49  ;;  %1209 = vmatpush.msra.mxu1 %v12092_v53  ;;  %v12358_v53 = vsub.f32 %v494_v50, %v12340_v43  ;;  %v18395_v59 = vand.u32 4294901760, %v12348_v2  ;;  %v12384_v49 = vand.u32 4294901760, %v462_v54 }
  0x9e   : > { %1282 = vmatpush.msra.mxu2 %v1113_v0  ;;  %1325 = vmatpush.msra.mxu3 %v12149_v62  ;;  %v18391_v30 = vand.u32 4294901760, %v12382_v31  ;;  %v12423_v52 = vsub.f32 %v454_v6, %v12397_v17 }
  0x9f   : > { %1181 = vmatpush.msra.mxu0 %v12186_v3  ;;  %1211 = vmatpush.msra.mxu1 %v12112_v60  ;;  %v12368_v60 = vsub.f32 %v486_v13, %v12350_v35  ;;  %v18394_v0 = vand.u32 4294901760, %v12358_v53  ;;  %v446_v3 = vld [vmem:[#allocation11 + $0x1c8] sm:$0xff]  ;;  %v12410_v15 = vsub.f32 %v462_v54, %v12384_v49 }
  0xa0   : > { %1286 = vmatpush.msra.mxu2 %v1119_v18  ;;  %1327 = vmatpush.msra.mxu3 %v12162_v26  ;;  %v1383_v18 = vsub.f32 %v12348_v2, %v18395_v59  ;;  %v1401_v10 = vsub.f32 %v12382_v31, %v18391_v30  ;;  %v18387_v29 = vand.u32 4294901760, %v12423_v52  ;;  %v398_v54 = vld [vmem:[#allocation11 + $0x48] sm:$0xff] }
  0xa1   : > { %1184 = vmatmul.f32.vlgmr.msra.gmra.mxu0 %v12242_v8  ;;  %1213 = vmatpush.msra.mxu1 %v12124_v45  ;;  %v1377_v45 = vsub.f32 %v12338_v63, %v18396_v14  ;;  %v18393_v58 = vand.u32 4294901760, %v12368_v60  ;;  %v1389_v22 = vsub.f32 %v12358_v53, %v18394_v0  ;;  %v18389_v21 = vand.u32 4294901760, %v12410_v15 }
  0xa2   : > { %1530 = vmatpush.msrb.mxu3 %v12323_v38  ;;  %1334 = vmatpush.msrb.mxu0 %v12323_v38  ;;  %v1384_v44 = vand.u32 4294901760, %v1383_v18  ;;  %v1402_v50 = vand.u32 4294901760, %v1401_v10  ;;  %v12486_v10 = vsub.f32 %v638_v36, %v12453_v12 }
  0xa3   : > { %1290 = vmatpush.msra.mxu2 %v1125_v20  ;;  %1215 = vmatpush.msra.mxu1 %v12136_v37  ;;  %v12395_v20 = vsub.f32 %v470_v23, %v12370_v16  ;;  %v12402_v37 = vand.u32 4294901760, %v446_v3  ;;  %v1378_v33 = vand.u32 4294901760, %v1377_v45  ;;  %v1395_v46 = vsub.f32 %v12368_v60, %v18393_v58  ;;  %v598_v58 = vld [vmem:[#allocation11 + $0x688] sm:$0xff] }
  0xa4   : > { %1532 = vmatpush.msrb.mxu3 %v12330_v55  ;;  %1336 = vmatpush.msrb.mxu0 %v12330_v55  ;;  %v1390_v47 = vand.u32 4294901760, %v1389_v22  ;;  %v1413_v13 = vsub.f32 %v12410_v15, %v18389_v21  ;;  %v12462_v23 = vand.u32 4294901760, %v414_v42  ;;  %v12467_v45 = vand.u32 4294901760, %v630_v39  ;;  %18709 = vst [vmem:[#allocation20_spill] sm:$0xff] %v12486_v10 }
  0xa5   : > { %1477 = vmatpush.msrb.mxu2 %v12338_v63  ;;  %1217 = vmatpush.msra.mxu1 %v12149_v62  ;;  %v12415_v62 = vand.u32 4294901760, %v438_v5  ;;  %v18390_v32 = vand.u32 4294901760, %v12395_v20  ;;  %v12429_v57 = vsub.f32 %v446_v3, %v12402_v37  ;;  %v1396_v27 = vand.u32 4294901760, %v1395_v46  ;;  %v622_v3 = vld [vmem:[#allocation11 + $0x748] sm:$0xff] }
  0xa6   : > { %1292 = vmatmul.f32.vlgmr.msra.gmra.mxu2 %v12229_v1  ;;  %1338 = vmatpush.msrb.mxu0 %v12340_v43  ;;  %18706 = vst [vmem:[#allocation22_spill] sm:$0xff] %v12462_v23  ;;  %v12476_v22 = vand.u32 4294901760, %v406_v56  ;;  %v12483_v46 = vand.u32 4294901760, %v398_v54 }
  0xa7   : > { %1480 = vmatpush.msrb.mxu2 %v12348_v2  ;;  %1534 = vmatpush.msrb.mxu3 %v12340_v43  ;;  %v12441_v19 = vsub.f32 %v438_v5, %v12415_v62  ;;  %v1407_v48 = vsub.f32 %v12395_v20, %v18390_v32  ;;  %v18388_v25 = vand.u32 4294901760, %v12429_v57  ;;  %v1419_v5 = vsub.f32 %v12423_v52, %v18387_v29 }
  0xa8   : > { %1329 = vmatmul.f32.vlgmr.msra.gmra.mxu3 %v12229_v1  ;;  %1340 = vmatpush.msrb.mxu0 %v12350_v35  ;;  %18707 = vst [vmem:[#allocation19_spill] sm:$0xff] %v12476_v22  ;;  %v12493_v29 = vand.u32 4294901760, %v622_v3  ;;  %v12507_v21 = vsub.f32 %v406_v56, %v12476_v22 }
  0xa9   : > { %1483 = vmatpush.msrb.mxu2 %v12358_v53  ;;  %1536 = vmatpush.msrb.mxu3 %v12350_v35  ;;  %v18392_v6 = vand.u32 4294901760, %v12441_v19  ;;  %v1408_v18 = vand.u32 4294901760, %v1407_v48  ;;  %18708 = vst [vmem:[#allocation23_spill] sm:$0xff] %v12483_v46  ;;  %v18397_v48 = vand.u32 4294901760, %v12460_v61 }
  0xaa   : > { %1219 = vmatpush.msra.mxu1 %v12162_v26  ;;  %1342 = vmatpush.msrb.mxu0 %v12360_v24  ;;  %v422_v26 = vld [vmem:[#allocation11 + $0x108] sm:$0xff]  ;;  %v12524_v0 = vsub.f32 %v622_v3, %v12493_v29 }
  0xab   : > { %1223 = vmatmul.f32.vlgmr.msra.gmra.mxu1 %v12252_v40  ;;  %1486 = vmatpush.msrb.mxu2 %v12368_v60  ;;  %v12447_v7 = vand.u32 4294901760, %v422_v26  ;;  %v1431_v36 = vsub.f32 %v12441_v19, %v18392_v6  ;;  %v12515_v6 = vsub.f32 %v398_v54, %v12483_v46  ;;  %v1437_v56 = vsub.f32 %v12460_v61, %v18397_v48 }
  0xac   : > { %1379 = vmatpush.msrb.mxu1 %v1378_v33  ;;  %1538 = vmatpush.msrb.mxu3 %v12360_v24  ;;  %18712 = vst [vmem:[#allocation32_spill] sm:$0xff] %v12524_v0 }
  0xad   : > { %1344 = vmatpush.msrb.mxu0 %v12370_v16  ;;  %1489 = vmatpush.msrb.mxu2 %v12382_v31  ;;  %v12474_v33 = vsub.f32 %v422_v26, %v12447_v7  ;;  %v1414_v26 = vand.u32 4294901760, %v1413_v13  ;;  %v606_v13 = vld [vmem:[#allocation11 + $0x6c8] sm:$0xff]  ;;  %v1432_v54 = vand.u32 4294901760, %v1431_v36 }
  0xae   : > { %1385 = vmatpush.msrb.mxu1 %v1384_v44  ;;  %1540 = vmatpush.msrb.mxu3 %v12370_v16  ;;  %v1425_v44 = vsub.f32 %v12429_v57, %v18388_v25  ;;  %v12503_v25 = vand.u32 4294901760, %v614_v28  ;;  %v12526_v59 = vand.u32 4294901760, %v606_v13  ;;  %v582_v36 = vld [vmem:[#allocation11 + $0x608] sm:$0xff] }
  0xaf   : > { %1346 = vmatpush.msrb.mxu0 %v12384_v49  ;;  %1492 = vmatpush.msrb.mxu2 %v12395_v20  ;;  %v18400_v30 = vand.u32 4294901760, %v12474_v33 }
  0xb0   : > { %1391 = vmatpush.msrb.mxu1 %v1390_v47  ;;  %1542 = vmatpush.msrb.mxu3 %v12384_v49  ;;  %v390_v47 = vld [vmem:[#allocation11 + $0x8] sm:$0xff]  ;;  %v12532_v14 = vsub.f32 %v614_v28, %v12503_v25  ;;  %v18714_v28 = vand.u32 4294901760, %v12486_v10  ;;  %v12558_v1 = vsub.f32 %v606_v13, %v12526_v59  ;;  %v18717_v13 = vand.u32 4294901760, %v12507_v21 }
  0xb1   : > { %1348 = vmatpush.msrb.mxu0 %v12397_v17  ;;  %1495 = vmatpush.msrb.mxu2 %v12410_v15  ;;  %v12509_v32 = vand.u32 4294901760, %v390_v47  ;;  %v1443_v3 = vsub.f32 %v12474_v33, %v18400_v30 }
  0xb2   : > { %1397 = vmatpush.msrb.mxu1 %v1396_v27  ;;  %1544 = vmatpush.msrb.mxu3 %v12397_v17  ;;  %v12490_v27 = vsub.f32 %v414_v42, %v12462_v23  ;;  %v1420_v42 = vand.u32 4294901760, %v1419_v5  ;;  %18713 = vst [vmem:[#allocation33_spill] sm:$0xff] %v12532_v14  ;;  %v1455_v8 = vsub.f32 %v12507_v21, %v18717_v13 }
  0xb3   : > { %1350 = vmatpush.msrb.mxu0 %v12402_v37  ;;  %1498 = vmatpush.msrb.mxu2 %v12423_v52  ;;  %18711 = vst [vmem:[#allocation31_spill] sm:$0xff] %v12509_v32  ;;  %v12539_v48 = vsub.f32 %v390_v47, %v12509_v32  ;;  %v1438_v47 = vand.u32 4294901760, %v1437_v56  ;;  %v12566_v56 = vand.u32 4294901760, %v582_v36 }
  0xb4   : > { %1403 = vmatpush.msrb.mxu1 %v1402_v50  ;;  %1546 = vmatpush.msrb.mxu3 %v12402_v37  ;;  %v12501_v50 = vsub.f32 %v630_v39, %v12467_v45  ;;  %v1426_v39 = vand.u32 4294901760, %v1425_v44  ;;  %v590_v44 = vld [vmem:[#allocation11 + $0x648] sm:$0xff]  ;;  %v18715_v30 = vand.u32 4294901760, %v12490_v27 }
  0xb5   : > { %1352 = vmatpush.msrb.mxu0 %v12415_v62  ;;  %1501 = vmatpush.msrb.mxu2 %v12429_v57  ;;  %v12550_v40 = vand.u32 4294901760, %v590_v44 }
  0xb6   : > { %18710 = vst [vmem:[#allocation21_spill] sm:$0xff] %v12501_v50  ;;  %1409 = vmatpush.msrb.mxu1 %v1408_v18  ;;  %1548 = vmatpush.msrb.mxu3 %v12415_v62  ;;  %v12542_v18 = vand.u32 4294901760, %v598_v58  ;;  %v1449_v5 = vsub.f32 %v12490_v27, %v18715_v30  ;;  %v1444_v30 = vand.u32 4294901760, %v1443_v3 }
  0xb7   : > { %1354 = vmatpush.msrb.mxu0 %v12435_v41  ;;  %1504 = vmatpush.msrb.mxu2 %v12441_v19  ;;  %v12582_v3 = vsub.f32 %v590_v44, %v12550_v40  ;;  %v18720_v44 = vand.u32 4294901760, %v12532_v14 }
  0xb8   : > { %1415 = vmatpush.msrb.mxu1 %v1414_v26  ;;  %1550 = vmatpush.msrb.mxu3 %v12435_v41  ;;  %v12574_v9 = vsub.f32 %v598_v58, %v12542_v18  ;;  %v18718_v26 = vand.u32 4294901760, %v12515_v6  ;;  %v1450_v13 = vand.u32 4294901760, %v1449_v5  ;;  %v18719_v58 = vand.u32 4294901760, %v12524_v0  ;;  %v558_v5 = vld [vmem:[#allocation11 + $0x548] sm:$0xff] }
  0xb9   : > { %1356 = vmatpush.msrb.mxu0 %v12447_v7  ;;  %1507 = vmatpush.msrb.mxu2 %v12460_v61 }
  0xba   : > { %1421 = vmatpush.msrb.mxu1 %v1420_v42  ;;  %1552 = vmatpush.msrb.mxu3 %v12447_v7  ;;  %v1718_v42 = vsub.f32 %v12486_v10, %v18714_v28  ;;  %v18716_v28 = vand.u32 4294901760, %v12501_v50  ;;  %v1730_v4 = vsub.f32 %v12524_v0, %v18719_v58  ;;  %v1456_v58 = vand.u32 4294901760, %v1455_v8 }
  0xbb   : > { %1358 = vmatpush.msrb.mxu0 %v12462_v23  ;;  %1510 = vmatpush.msrb.mxu2 %v12474_v33 }
  0xbc   : > { %1427 = vmatpush.msrb.mxu1 %v1426_v39  ;;  %1554 = vmatpush.msrb.mxu3 %v12462_v23  ;;  %v1724_v39 = vsub.f32 %v12501_v50, %v18716_v28  ;;  %v1719_v28 = vand.u32 4294901760, %v1718_v42  ;;  %v12589_v23 = vand.u32 4294901760, %v574_v11  ;;  %v1736_v42 = vsub.f32 %v12532_v14, %v18720_v44  ;;  %v550_v14 = vld [vmem:[#allocation11 + $0x508] sm:$0xff] }
  0xbd   : > { %1360 = vmatpush.msrb.mxu0 %v12476_v22  ;;  %1513 = vmatpush.msrb.mxu2 %v12490_v27  ;;  %v18721_v50 = vand.u32 4294901760, %v12539_v48  ;;  %v1731_v8 = vand.u32 4294901760, %v1730_v4 }
  0xbe   : > { %1433 = vmatpush.msrb.mxu1 %v1432_v54  ;;  %1556 = vmatpush.msrb.mxu3 %v12476_v22  ;;  %v1461_v54 = vsub.f32 %v12515_v6, %v18718_v26  ;;  %v566_v22 = vld [vmem:[#allocation11 + $0x588] sm:$0xff]  ;;  %v1725_v26 = vand.u32 4294901760, %v1724_v39  ;;  %v18722_v39 = vand.u32 4294901760, %v12338_v63  ;;  %v12614_v0 = vsub.f32 %v574_v11, %v12589_v23 }
  0xbf   : > { %1362 = vmatpush.msrb.mxu0 %v12483_v46  ;;  %1516 = vmatpush.msrb.mxu2 %v12507_v21  ;;  %v12604_v10 = vand.u32 4294901760, %v566_v22  ;;  %v18724_v63 = vand.u32 4294901760, %v12348_v2  ;;  %v18726_v2 = vand.u32 4294901760, %v12358_v53  ;;  %v18728_v53 = vand.u32 4294901760, %v12368_v60 }
  0xc0   : > { %1439 = vmatpush.msrb.mxu1 %v1438_v47  ;;  %1558 = vmatpush.msrb.mxu3 %v12483_v46  ;;  %v12597_v47 = vsub.f32 %v582_v36, %v12566_v56  ;;  %v1467_v46 = vsub.f32 %v12539_v48, %v18721_v50  ;;  %v1462_v44 = vand.u32 4294901760, %v1461_v54  ;;  %v12628_v36 = vand.u32 4294901760, %v550_v14 }
  0xc1   : > { %1364 = vmatpush.msrb.mxu0 %v12509_v32  ;;  %1519 = vmatpush.msrb.mxu2 %v12515_v6  ;;  %v12626_v11 = vsub.f32 %v566_v22, %v12604_v10  ;;  %v18729_v60 = vand.u32 4294901760, %v12382_v31  ;;  %v18731_v31 = vand.u32 4294901760, %v12395_v20  ;;  %v18732_v20 = vand.u32 4294901760, %v12410_v15 }
  0xc2   : > { %1445 = vmatpush.msrb.mxu1 %v1444_v30  ;;  %1560 = vmatpush.msrb.mxu3 %v12509_v32  ;;  %v18723_v30 = vand.u32 4294901760, %v12558_v1  ;;  %v12616_v32 = vand.u32 4294901760, %v558_v5  ;;  %v18423_v54 = vand.u32 4294901760, %v12597_v47  ;;  %v1468_v4 = vand.u32 4294901760, %v1467_v46 }
  0xc3   : > { %1571 = vmatpush.msra.mxu0 %v18722_v39  ;;  %1522 = vmatpush.msrb.mxu2 %v12539_v48  ;;  %v18725_v39 = vand.u32 4294901760, %v12574_v9 }
  0xc4   : > { %1720 = vmatpush.msra.mxu3 %v1719_v28  ;;  %1451 = vmatpush.msrb.mxu1 %v1450_v13  ;;  %v1742_v50 = vsub.f32 %v12558_v1, %v18723_v30  ;;  %v1737_v28 = vand.u32 4294901760, %v1736_v42  ;;  %v542_v13 = vld [vmem:[#allocation11 + $0x4c8] sm:$0xff]  ;;  %v18727_v42 = vand.u32 4294901760, %v12582_v3  ;;  %v12638_v22 = vsub.f32 %v558_v5, %v12616_v32 }
  0xc5   : > { %1575 = vmatpush.msra.mxu0 %v18724_v63  ;;  %1675 = vmatpush.msra.mxu2 %v12453_v12  ;;  %v1748_v30 = vsub.f32 %v12574_v9, %v18725_v39  ;;  %v12640_v39 = vand.u32 4294901760, %v542_v13  ;;  %v12650_v5 = vsub.f32 %v550_v14, %v12628_v36  ;;  %v518_v63 = vld [vmem:[#allocation11 + $0x408] sm:$0xff] }
  0xc6   : > { %1726 = vmatpush.msra.mxu3 %v1725_v26  ;;  %1457 = vmatpush.msrb.mxu1 %v1456_v58  ;;  %v1754_v26 = vsub.f32 %v12582_v3, %v18727_v42  ;;  %v534_v58 = vld [vmem:[#allocation11 + $0x488] sm:$0xff]  ;;  %v1743_v46 = vand.u32 4294901760, %v1742_v50 }
  0xc7   : > { %1579 = vmatpush.msra.mxu0 %v18726_v2  ;;  %1677 = vmatpush.msra.mxu2 %v12467_v45  ;;  %v1760_v2 = vsub.f32 %v12597_v47, %v18423_v54  ;;  %v526_v42 = vld [vmem:[#allocation11 + $0x448] sm:$0xff]  ;;  %v12652_v50 = vand.u32 4294901760, %v534_v58  ;;  %v12663_v14 = vsub.f32 %v542_v13, %v12640_v39 }
  0xc8   : > { %1732 = vmatpush.msra.mxu3 %v1731_v8  ;;  %1463 = vmatpush.msrb.mxu1 %v1462_v44  ;;  %v1749_v44 = vand.u32 4294901760, %v1748_v30  ;;  %v1771_v8 = vand.u32 4294901760, %v12626_v11  ;;  %v1777_v30 = vand.u32 4294901760, %v12638_v22  ;;  %v12665_v54 = vand.u32 4294901760, %v526_v42 }
  0xc9   : > { %1583 = vmatpush.msra.mxu0 %v18728_v53  ;;  %1679 = vmatpush.msra.mxu2 %v12493_v29  ;;  %v1755_v53 = vand.u32 4294901760, %v1754_v26  ;;  %v12676_v13 = vsub.f32 %v534_v58, %v12652_v50 }
  0xca   : > { %1738 = vmatpush.msra.mxu3 %v1737_v28  ;;  %1469 = vmatpush.msrb.mxu1 %v1468_v4  ;;  %v18730_v28 = vand.u32 4294901760, %v12614_v0  ;;  %v1772_v26 = vsub.f32 %v12626_v11, %v1771_v8  ;;  %v12689_v58 = vsub.f32 %v526_v42, %v12665_v54  ;;  %v18734_v42 = vand.u32 4294901760, %v12429_v57 }
  0xcb   : > { %1587 = vmatpush.msra.mxu0 %v18729_v60  ;;  %1681 = vmatpush.msra.mxu2 %v12503_v25  ;;  %v12678_v60 = vand.u32 4294901760, %v518_v63 }
  0xcc   : > { %1638 = vmatpush.msra.mxu1 %v12323_v38  ;;  %1744 = vmatpush.msra.mxu3 %v1743_v46  ;;  %v1766_v4 = vsub.f32 %v12614_v0, %v18730_v28  ;;  %v1761_v38 = vand.u32 4294901760, %v1760_v2  ;;  %v1783_v46 = vand.u32 4294901760, %v12650_v5  ;;  %v1778_v2 = vsub.f32 %v12638_v22, %v1777_v30 }
  0xcd   : > { %1591 = vmatpush.msra.mxu0 %v18731_v31  ;;  %1683 = vmatpush.msra.mxu2 %v12526_v59  ;;  %v18733_v28 = vand.u32 4294901760, %v12423_v52  ;;  %v1801_v31 = vand.u32 4294901760, %v12689_v58 }
  0xce   : > { %1640 = vmatpush.msra.mxu1 %v12330_v55  ;;  %1750 = vmatpush.msra.mxu3 %v1749_v44  ;;  %v1767_v55 = vand.u32 4294901760, %v1766_v4  ;;  %v1789_v44 = vand.u32 4294901760, %v12663_v14  ;;  %v1784_v15 = vsub.f32 %v12650_v5, %v1783_v46  ;;  %v12700_v4 = vsub.f32 %v518_v63, %v12678_v60 }
  0xcf   : > { %1595 = vmatpush.msra.mxu0 %v18732_v20  ;;  %1685 = vmatpush.msra.mxu2 %v12542_v18  ;;  %v18737_v20 = vand.u32 4294901760, %v12474_v33 }
  0xd0   : > { %1642 = vmatpush.msra.mxu1 %v12340_v43  ;;  %1756 = vmatpush.msra.mxu3 %v1755_v53  ;;  %v1773_v43 = vand.u32 4294901760, %v1772_v26  ;;  %v1795_v53 = vand.u32 4294901760, %v12676_v13  ;;  %v1790_v52 = vsub.f32 %v12663_v14, %v1789_v44  ;;  %v1785_v57 = vand.u32 4294901760, %v1784_v15  ;;  %v18750_v15 = vld [vmem:[#allocation23_spill] sm:$0xff] }
  0xd1   : > { %1599 = vmatpush.msra.mxu0 %v18733_v28  ;;  %1687 = vmatpush.msra.mxu2 %v12550_v40  ;;  %v1807_v63 = vand.u32 4294901760, %v12700_v4  ;;  %v18736_v26 = vand.u32 4294901760, %v12460_v61  ;;  %v18740_v28 = vand.u32 4294901760, %v12515_v6  ;;  %v18745_v6 = vld [vmem:[#allocation21_spill] sm:$0xff] }
  0xd2   : > { %1644 = vmatpush.msra.mxu1 %v12350_v35  ;;  %1762 = vmatpush.msra.mxu3 %v1761_v38  ;;  %v1779_v35 = vand.u32 4294901760, %v1778_v2  ;;  %v18735_v38 = vand.u32 4294901760, %v12441_v19  ;;  %v1791_v19 = vand.u32 4294901760, %v1790_v52  ;;  %v18739_v2 = vand.u32 4294901760, %v12507_v21  ;;  %v18744_v21 = vld [vmem:[#allocation25_spill] sm:$0xff] }
  0xd3   : > { %1603 = vmatpush.msra.mxu0 %v18734_v42  ;;  %1689 = vmatpush.msra.mxu2 %v12566_v56  ;;  %v18751_v42 = vld [vmem:[#allocation33_spill] sm:$0xff] }
  0xd4   : > { %1646 = vmatpush.msra.mxu1 %v12360_v24  ;;  %1768 = vmatpush.msra.mxu3 %v1767_v55  ;;  %v1796_v24 = vsub.f32 %v12676_v13, %v1795_v53  ;;  %v18738_v55 = vand.u32 4294901760, %v12490_v27  ;;  %v18747_v27 = vld [vmem:[#allocation19_spill] sm:$0xff] }
  0xd5   : > { %1607 = vmatpush.msra.mxu0 %v18735_v38  ;;  %1691 = vmatpush.msra.mxu2 %v12589_v23  ;;  %v18754_v38 = vld [vmem:[#allocation31_spill] sm:$0xff] }
  0xd6   : > { %1648 = vmatpush.msra.mxu1 %v12370_v16  ;;  %1774 = vmatpush.msra.mxu3 %v1773_v43  ;;  %v1802_v16 = vsub.f32 %v12689_v58, %v1801_v31  ;;  %v1797_v61 = vand.u32 4294901760, %v1796_v24  ;;  %v18749_v43 = vand.u32 4294901760, %v18745_v6  ;;  %v18756_v24 = vld [vmem:[#allocation18_spill] sm:$0xff] }
  0xd7   : > { %1611 = vmatpush.msra.mxu0 %v18736_v26  ;;  %1693 = vmatpush.msra.mxu2 %v12604_v10  ;;  %v18757_v26 = vand.u32 4294901760, %v12558_v1 }
  0xd8   : > { %1650 = vmatpush.msra.mxu1 %v12384_v49  ;;  %1780 = vmatpush.msra.mxu3 %v1779_v35  ;;  %v1808_v49 = vsub.f32 %v12700_v4, %v1807_v63  ;;  %v1803_v33 = vand.u32 4294901760, %v1802_v16  ;;  %v18752_v35 = vld [vmem:[#allocation24_spill] sm:$0xff] }
  0xd9   : > { %1615 = vmatpush.msra.mxu0 %v18737_v20  ;;  %1695 = vmatpush.msra.mxu2 %v12616_v32 }
  0xda   : > { %1652 = vmatpush.msra.mxu1 %v12397_v17  ;;  %1786 = vmatpush.msra.mxu3 %v1785_v57  ;;  %v1809_v17 = vand.u32 4294901760, %v1808_v49  ;;  %v18755_v57 = vand.u32 4294901760, %v18751_v42 }
  0xdb   : > { %1619 = vmatpush.msra.mxu0 %v18738_v55  ;;  %1697 = vmatpush.msra.mxu2 %v12628_v36 }
  0xdc   : > { %1654 = vmatpush.msra.mxu1 %v12402_v37  ;;  %1792 = vmatpush.msra.mxu3 %v1791_v19  ;;  %v18741_v37 = vand.u32 4294901760, %v12539_v48  ;;  %v18748_v48 = vld [vmem:[#allocation32_spill] sm:$0xff]  ;;  %v18758_v19 = vld [vmem:[#allocation27_spill] sm:$0xff] }
  0xdd   : > { %1623 = vmatpush.msra.mxu0 %v18739_v2  ;;  %1699 = vmatpush.msra.mxu2 %v12640_v39  ;;  %v18753_v52 = vand.u32 4294901760, %v18748_v48 }
  0xde   : > { %1656 = vmatpush.msra.mxu1 %v12415_v62  ;;  %1798 = vmatpush.msra.mxu3 %v1797_v61  ;;  %v18742_v62 = vld [vmem:[#allocation20_spill] sm:$0xff]  ;;  %v439_v61 = vld [vmem:[#allocation11 + $0x190] sm:$0xff] }
  0xdf   : > { %1627 = vmatpush.msra.mxu0 %v18740_v28  ;;  %1701 = vmatpush.msra.mxu2 %v12652_v50 }
  0xe0   : > { %1658 = vmatpush.msra.mxu1 %v12435_v41  ;;  %1804 = vmatpush.msra.mxu3 %v1803_v33  ;;  %v18743_v41 = vld [vmem:[#allocation22_spill] sm:$0xff] }
  0xe1   : > { %1631 = vmatpush.msra.mxu0 %v18741_v37  ;;  %1703 = vmatpush.msra.mxu2 %v12665_v54 }
  0xe2   : > { %1660 = vmatpush.msra.mxu1 %v12447_v7  ;;  %1810 = vmatpush.msra.mxu3 %v1809_v17  ;;  %v18746_v7 = vand.u32 4294901760, %v18742_v62  ;;  %v431_v17 = vld [vmem:[#allocation11 + $0x150] sm:$0xff] }
  0xe3   : > { %1370 = vmatmul.f32.vlgmr.msrb.gmra.mxu0 %v12239_v34  ;;  %1564 = vmatmul.f32.vlgmr.msrb.gmra.mxu3 %v12211_v51  ;;  %v551_v51 = vld [vmem:[#allocation11 + $0x510] sm:$0xff] }
  0xe4   : > { %1818 = vmatpush.msrb.mxu0 %v18742_v62  ;;  %1979 = vmatpush.msrb.mxu3 %v12453_v12 }
  0xe5   : > { %1662 = vmatpush.msra.mxu1 %v18743_v41  ;;  %1705 = vmatpush.msra.mxu2 %v12678_v60 }
  0xe6   : > { %1525 = vmatmul.f32.vlgmr.msrb.gmra.mxu2 %v18744_v21  ;;  %1821 = vmatpush.msrb.mxu0 %v18745_v6  ;;  %v18764_v6 = vld [vmem:[#allocation30_spill] sm:$0xff] }
  0xe7   : > { %1912 = vmatpush.msrb.mxu2 %v18746_v7  ;;  %1981 = vmatpush.msrb.mxu3 %v12467_v45 }
  0xe8   : > { %1664 = vmatpush.msra.mxu1 %v18747_v27  ;;  %1824 = vmatpush.msrb.mxu0 %v18748_v48 }
  0xe9   : > { %1916 = vmatpush.msrb.mxu2 %v18749_v43  ;;  %1983 = vmatpush.msrb.mxu3 %v12493_v29  ;;  %v12927_v43 = vand.u32 4294901760, %v431_v17 }
  0xea   : > { %1666 = vmatpush.msra.mxu1 %v18750_v15  ;;  %1827 = vmatpush.msrb.mxu0 %v18751_v42  ;;  %v639_v42 = vld [vmem:[#allocation11 + $0x7d0] sm:$0xff] }
  0xeb   : > { %1471 = vmatmul.f32.vlgmr.msrb.gmra.mxu1 %v18752_v35  ;;  %1920 = vmatpush.msrb.mxu2 %v18753_v52 }
  0xec   : > { %1985 = vmatpush.msrb.mxu3 %v12503_v25  ;;  %1668 = vmatpush.msra.mxu1 %v18754_v38  ;;  %v415_v38 = vld [vmem:[#allocation11 + $0xd0] sm:$0xff] }
  0xed   : > { %1830 = vmatpush.msrb.mxu0 %v12558_v1  ;;  %1924 = vmatpush.msrb.mxu2 %v18755_v57  ;;  %v18760_v1 = vand.u32 4294901760, %v12582_v3 }
  0xee   : > { %1871 = vmatpush.msrb.mxu1 %v12453_v12  ;;  %1987 = vmatpush.msrb.mxu3 %v12526_v59  ;;  %v18759_v12 = vand.u32 4294901760, %v12574_v9 }
  0xef   : > { %1711 = vmatmul.f32.vlgmr.msra.gmra.mxu2 %v18756_v24  ;;  %1833 = vmatpush.msrb.mxu0 %v12574_v9  ;;  %v18761_v9 = vand.u32 4294901760, %v12597_v47  ;;  %v575_v24 = vld [vmem:[#allocation11 + $0x5d0] sm:$0xff] }
  0xf0   : > { %1873 = vmatpush.msrb.mxu1 %v12467_v45  ;;  %1928 = vmatpush.msrb.mxu2 %v18757_v26 }
  0xf1   : > { %1989 = vmatpush.msrb.mxu3 %v12542_v18  ;;  %1633 = vmatmul.f32.vlgmr.msra.gmra.mxu0 %v18752_v35 }
  0xf2   : > { %1812 = vmatmul.f32.vlgmr.msra.gmra.mxu3 %v18758_v19  ;;  %1836 = vmatpush.msrb.mxu0 %v12582_v3  ;;  %v479_v3 = vld [vmem:[#allocation11 + $0x2d0] sm:$0xff] }
  0xf3   : > { %1875 = vmatpush.msrb.mxu1 %v12493_v29  ;;  %1932 = vmatpush.msrb.mxu2 %v18759_v12  ;;  %v18762_v29 = vand.u32 4294901760, %v12614_v0 }
  0xf4   : > { %1991 = vmatpush.msrb.mxu3 %v12550_v40  ;;  %1670 = vmatmul.f32.vlgmr.msra.gmra.mxu1 %v18752_v35 }
  0xf5   : > { %1839 = vmatpush.msrb.mxu0 %v12597_v47  ;;  %1877 = vmatpush.msrb.mxu1 %v12503_v25  ;;  %v511_v25 = vld [vmem:[#allocation11 + $0x3d0] sm:$0xff] }
  0xf6   : > { %1936 = vmatpush.msrb.mxu2 %v18760_v1  ;;  %1993 = vmatpush.msrb.mxu3 %v12566_v56 }
  0xf7   : > { %1842 = vmatpush.msrb.mxu0 %v12614_v0  ;;  %1879 = vmatpush.msrb.mxu1 %v12526_v59  ;;  %v503_v59 = vld [vmem:[#allocation11 + $0x390] sm:$0xff]  ;;  %v12815_v0 = vand.u32 4294901760, %v511_v25 }
  0xf8   : > { %1940 = vmatpush.msrb.mxu2 %v18761_v9  ;;  %1995 = vmatpush.msrb.mxu3 %v12589_v23  ;;  %v12822_v45 = vand.u32 4294901760, %v503_v59  ;;  %v631_v9 = vld [vmem:[#allocation11 + $0x790] sm:$0xff] }
  0xf9   : > { %1845 = vmatpush.msrb.mxu0 %v12626_v11  ;;  %1881 = vmatpush.msrb.mxu1 %v12542_v18  ;;  %v487_v18 = vld [vmem:[#allocation11 + $0x310] sm:$0xff] }
  0xfa   : > { %1944 = vmatpush.msrb.mxu2 %v18762_v29  ;;  %1997 = vmatpush.msrb.mxu3 %v12604_v10  ;;  %v12842_v47 = vand.u32 4294901760, %v487_v18  ;;  %v471_v11 = vld [vmem:[#allocation11 + $0x290] sm:$0xff] }
  0xfb   : > { %1848 = vmatpush.msrb.mxu0 %v12638_v22  ;;  %1883 = vmatpush.msrb.mxu1 %v12550_v40  ;;  %v495_v40 = vld [vmem:[#allocation11 + $0x350] sm:$0xff]  ;;  %v12852_v22 = vand.u32 4294901760, %v479_v3 }
  0xfc   : > { %1948 = vmatpush.msrb.mxu2 %v1771_v8  ;;  %1999 = vmatpush.msrb.mxu3 %v12616_v32 }
  0xfd   : > { %1851 = vmatpush.msrb.mxu0 %v12650_v5  ;;  %1885 = vmatpush.msrb.mxu1 %v12566_v56  ;;  %v12832_v56 = vand.u32 4294901760, %v495_v40  ;;  %v18763_v5 = vld [vmem:[#allocation29_spill] sm:$0xff] }
  0xfe   : > { %1952 = vmatpush.msrb.mxu2 %v1777_v30  ;;  %2001 = vmatpush.msrb.mxu3 %v12628_v36  ;;  %v463_v30 = vld [vmem:[#allocation11 + $0x250] sm:$0xff] }
  0xff   : > { %1854 = vmatpush.msrb.mxu0 %v12663_v14  ;;  %1887 = vmatpush.msrb.mxu1 %v12589_v23  ;;  %v12830_v23 = vsub.f32 %v511_v25, %v12815_v0  ;;  %v12862_v14 = vand.u32 4294901760, %v471_v11  ;;  %v407_v25 = vld [vmem:[#allocation11 + $0x90] sm:$0xff] }
 0x100   : > { %1956 = vmatpush.msrb.mxu2 %v1783_v46  ;;  %2003 = vmatpush.msrb.mxu3 %v12640_v39 }
 0x101   : > { %1857 = vmatpush.msrb.mxu0 %v12676_v13  ;;  %1889 = vmatpush.msrb.mxu1 %v12604_v10  ;;  %v12840_v10 = vsub.f32 %v503_v59, %v12822_v45  ;;  %v18433_v8 = vand.u32 4294901760, %v12830_v23  ;;  %v455_v13 = vld [vmem:[#allocation11 + $0x210] sm:$0xff]  ;;  %v12945_v59 = vand.u32 4294901760, %v639_v42 }
 0x102   : > { %1960 = vmatpush.msrb.mxu2 %v1789_v44  ;;  %2005 = vmatpush.msrb.mxu3 %v12652_v50  ;;  %v12874_v44 = vsub.f32 %v479_v3, %v12852_v22  ;;  %v12889_v16 = vand.u32 4294901760, %v455_v13  ;;  %v12952_v3 = vsub.f32 %v431_v17, %v12927_v43  ;;  %v391_v17 = vld [vmem:[#allocation11 + $0x10] sm:$0xff] }
 0x103   : > { %1860 = vmatpush.msrb.mxu0 %v12689_v58  ;;  %1891 = vmatpush.msrb.mxu1 %v12616_v32  ;;  %v12850_v32 = vsub.f32 %v495_v40, %v12832_v56  ;;  %v18432_v46 = vand.u32 4294901760, %v12840_v10  ;;  %v12876_v58 = vand.u32 4294901760, %v463_v30 }
 0x104   : > { %1964 = vmatpush.msrb.mxu2 %v1795_v53  ;;  %2007 = vmatpush.msrb.mxu3 %v12665_v54  ;;  %v18428_v2 = vand.u32 4294901760, %v12874_v44  ;;  %v12915_v62 = vsub.f32 %v455_v13, %v12889_v16 }
 0x105   : > { %1863 = vmatpush.msrb.mxu0 %v12700_v4  ;;  %1893 = vmatpush.msrb.mxu1 %v12628_v36  ;;  %v12860_v36 = vsub.f32 %v487_v18, %v12842_v47  ;;  %v18431_v53 = vand.u32 4294901760, %v12850_v32  ;;  %v447_v4 = vld [vmem:[#allocation11 + $0x1d0] sm:$0xff]  ;;  %v12902_v33 = vsub.f32 %v463_v30, %v12876_v58 }
 0x106   : > { %1968 = vmatpush.msrb.mxu2 %v1801_v31  ;;  %2009 = vmatpush.msrb.mxu3 %v12678_v60  ;;  %v2065_v31 = vsub.f32 %v12840_v10, %v18432_v46  ;;  %v2083_v48 = vsub.f32 %v12874_v44, %v18428_v2  ;;  %v18424_v1 = vand.u32 4294901760, %v12915_v62  ;;  %v399_v30 = vld [vmem:[#allocation11 + $0x50] sm:$0xff] }
 0x107   : > { %1866 = vmatmul.f32.vlgmr.msrb.gmra.mxu0 %v18763_v5  ;;  %1895 = vmatpush.msrb.mxu1 %v12640_v39  ;;  %v2059_v39 = vsub.f32 %v12830_v23, %v18433_v8  ;;  %v18430_v20 = vand.u32 4294901760, %v12860_v36  ;;  %v2071_v55 = vsub.f32 %v12850_v32, %v18431_v53  ;;  %v18426_v15 = vand.u32 4294901760, %v12902_v33 }
 0x108   : > { %2212 = vmatpush.msra.mxu3 %v12815_v0  ;;  %2016 = vmatpush.msra.mxu0 %v12815_v0  ;;  %v2066_v28 = vand.u32 4294901760, %v2065_v31  ;;  %v2084_v40 = vand.u32 4294901760, %v2083_v48  ;;  %v615_v48 = vld [vmem:[#allocation11 + $0x710] sm:$0xff] }
 0x109   : > { %1972 = vmatpush.msrb.mxu2 %v1807_v63  ;;  %1897 = vmatpush.msrb.mxu1 %v12652_v50  ;;  %v12887_v63 = vsub.f32 %v471_v11, %v12862_v14  ;;  %v12894_v50 = vand.u32 4294901760, %v447_v4  ;;  %v2060_v49 = vand.u32 4294901760, %v2059_v39  ;;  %v2077_v37 = vsub.f32 %v12860_v36, %v18430_v20  ;;  %v599_v20 = vld [vmem:[#allocation11 + $0x690] sm:$0xff] }
 0x10a   : > { %2214 = vmatpush.msra.mxu3 %v12822_v45  ;;  %2018 = vmatpush.msra.mxu0 %v12822_v45  ;;  %v2072_v27 = vand.u32 4294901760, %v2071_v55  ;;  %v2095_v18 = vsub.f32 %v12902_v33, %v18426_v15  ;;  %v12954_v11 = vand.u32 4294901760, %v415_v38  ;;  %v12959_v39 = vand.u32 4294901760, %v631_v9 }
 0x10b   : > { %2159 = vmatpush.msra.mxu2 %v12830_v23  ;;  %1899 = vmatpush.msrb.mxu1 %v12665_v54  ;;  %v12907_v54 = vand.u32 4294901760, %v439_v61  ;;  %v18427_v41 = vand.u32 4294901760, %v12887_v63  ;;  %v12921_v7 = vsub.f32 %v447_v4, %v12894_v50  ;;  %v2078_v57 = vand.u32 4294901760, %v2077_v37  ;;  %v623_v4 = vld [vmem:[#allocation11 + $0x750] sm:$0xff] }
 0x10c   : > { %1974 = vmatmul.f32.vlgmr.msrb.gmra.mxu2 %v18758_v19  ;;  %2020 = vmatpush.msra.mxu0 %v12832_v56  ;;  %18765 = vst [vmem:[#allocation20_spill] sm:$0xff] %v12954_v11  ;;  %v12968_v55 = vand.u32 4294901760, %v407_v25  ;;  %v12975_v37 = vand.u32 4294901760, %v399_v30  ;;  %v13002_v2 = vand.u32 4294901760, %v615_v48 }
 0x10d   : > { %2162 = vmatpush.msra.mxu2 %v12840_v10  ;;  %2216 = vmatpush.msra.mxu3 %v12832_v56  ;;  %v12933_v52 = vsub.f32 %v439_v61, %v12907_v54  ;;  %v2089_v26 = vsub.f32 %v12887_v63, %v18427_v41  ;;  %v18425_v29 = vand.u32 4294901760, %v12921_v7  ;;  %v2101_v61 = vsub.f32 %v12915_v62, %v18424_v1 }
 0x10e   : > { %2011 = vmatmul.f32.vlgmr.msrb.gmra.mxu3 %v18758_v19  ;;  %2022 = vmatpush.msra.mxu0 %v12842_v47  ;;  %18766 = vst [vmem:[#allocation22_spill] sm:$0xff] %v12968_v55  ;;  %v12985_v1 = vand.u32 4294901760, %v623_v4  ;;  %v12999_v15 = vsub.f32 %v407_v25, %v12968_v55 }
 0x10f   : > { %2165 = vmatpush.msra.mxu2 %v12850_v32  ;;  %2218 = vmatpush.msra.mxu3 %v12842_v47  ;;  %v18429_v13 = vand.u32 4294901760, %v12933_v52  ;;  %v2090_v31 = vand.u32 4294901760, %v2089_v26  ;;  %18767 = vst [vmem:[#allocation21_spill] sm:$0xff] %v12975_v37  ;;  %v18434_v26 = vand.u32 4294901760, %v12952_v3 }
 0x110   : > { %1901 = vmatpush.msrb.mxu1 %v12678_v60  ;;  %2024 = vmatpush.msra.mxu0 %v12852_v22  ;;  %v423_v60 = vld [vmem:[#allocation11 + $0x110] sm:$0xff]  ;;  %v13016_v53 = vsub.f32 %v623_v4, %v12985_v1 }
 0x111   : > { %1905 = vmatmul.f32.vlgmr.msrb.gmra.mxu1 %v18764_v6  ;;  %2168 = vmatpush.msra.mxu2 %v12860_v36  ;;  %v12939_v12 = vand.u32 4294901760, %v423_v60  ;;  %v2119_v25 = vsub.f32 %v12952_v3, %v18434_v26 }
 0x112   : > { %2061 = vmatpush.msra.mxu1 %v2060_v49  ;;  %2220 = vmatpush.msra.mxu3 %v12852_v22  ;;  %18771 = vst [vmem:[#allocation33_spill] sm:$0xff] %v13016_v53 }
 0x113   : > { %2026 = vmatpush.msra.mxu0 %v12862_v14  ;;  %2171 = vmatpush.msra.mxu2 %v12874_v44  ;;  %v12966_v49 = vsub.f32 %v423_v60, %v12939_v12  ;;  %v2096_v60 = vand.u32 4294901760, %v2095_v18  ;;  %v607_v18 = vld [vmem:[#allocation11 + $0x6d0] sm:$0xff] }
 0x114   : > { %2067 = vmatpush.msra.mxu1 %v2066_v28  ;;  %2222 = vmatpush.msra.mxu3 %v12862_v14  ;;  %v2107_v28 = vsub.f32 %v12921_v7, %v18425_v29  ;;  %v12992_v29 = vand.u32 4294901760, %v391_v17  ;;  %v13018_v46 = vand.u32 4294901760, %v607_v18 }
 0x115   : > { %2028 = vmatpush.msra.mxu0 %v12876_v58  ;;  %2174 = vmatpush.msra.mxu2 %v12887_v63  ;;  %v18435_v41 = vand.u32 4294901760, %v12966_v49 }
 0x116   : > { %2073 = vmatpush.msra.mxu1 %v2072_v27  ;;  %2224 = vmatpush.msra.mxu3 %v12876_v58  ;;  %v12978_v27 = vsub.f32 %v639_v42, %v12945_v59  ;;  %v2113_v42 = vsub.f32 %v12933_v52, %v18429_v13  ;;  %18769 = vst [vmem:[#allocation32_spill] sm:$0xff] %v12992_v29  ;;  %v2108_v13 = vand.u32 4294901760, %v2107_v28  ;;  %v591_v28 = vld [vmem:[#allocation11 + $0x650] sm:$0xff] }
 0x117   : > { %2030 = vmatpush.msra.mxu0 %v12889_v16  ;;  %2177 = vmatpush.msra.mxu2 %v12902_v33  ;;  %v2125_v4 = vsub.f32 %v12966_v49, %v18435_v41  ;;  %v13042_v6 = vand.u32 4294901760, %v591_v28  ;;  %v13050_v19 = vsub.f32 %v607_v18, %v13018_v46  ;;  %v18775_v18 = vand.u32 4294901760, %v12999_v15 }
 0x118   : > { %2079 = vmatpush.msra.mxu1 %v2078_v57  ;;  %2226 = vmatpush.msra.mxu3 %v12889_v16  ;;  %18768 = vst [vmem:[#allocation19_spill] sm:$0xff] %v12978_v27  ;;  %v12982_v57 = vsub.f32 %v415_v38, %v12954_v11  ;;  %v2102_v38 = vand.u32 4294901760, %v2101_v61  ;;  %v13032_v61 = vsub.f32 %v615_v48, %v13002_v2  ;;  %v2120_v48 = vand.u32 4294901760, %v2119_v25 }
 0x119   : > { %2032 = vmatpush.msra.mxu0 %v12894_v50  ;;  %2180 = vmatpush.msra.mxu2 %v12915_v62  ;;  %v2137_v5 = vsub.f32 %v12999_v15, %v18775_v18 }
 0x11a   : > { %2085 = vmatpush.msra.mxu1 %v2084_v40  ;;  %2228 = vmatpush.msra.mxu3 %v12894_v50  ;;  %v12995_v40 = vsub.f32 %v631_v9, %v12959_v39  ;;  %v13007_v9 = vsub.f32 %v399_v30, %v12975_v37  ;;  %v2114_v30 = vand.u32 4294901760, %v2113_v42  ;;  %v583_v42 = vld [vmem:[#allocation11 + $0x610] sm:$0xff]  ;;  %v18773_v41 = vand.u32 4294901760, %v12982_v57 }
 0x11b   : > { %2034 = vmatpush.msra.mxu0 %v12907_v54  ;;  %2183 = vmatpush.msra.mxu2 %v12921_v7  ;;  %v13058_v25 = vand.u32 4294901760, %v583_v42 }
 0x11c   : > { %18770 = vst [vmem:[#allocation23_spill] sm:$0xff] %v12995_v40  ;;  %2091 = vmatpush.msra.mxu1 %v2090_v31  ;;  %2230 = vmatpush.msra.mxu3 %v12907_v54  ;;  %v13034_v31 = vand.u32 4294901760, %v599_v20  ;;  %v2131_v26 = vsub.f32 %v12982_v57, %v18773_v41  ;;  %v2126_v41 = vand.u32 4294901760, %v2125_v4  ;;  %v18776_v8 = vand.u32 4294901760, %v13007_v9 }
 0x11d   : > { %2036 = vmatpush.msra.mxu0 %v12927_v43  ;;  %2186 = vmatpush.msra.mxu2 %v12933_v52  ;;  %v13074_v4 = vsub.f32 %v591_v28, %v13042_v6 }
 0x11e   : > { %2097 = vmatpush.msra.mxu1 %v2096_v60  ;;  %2232 = vmatpush.msra.mxu3 %v12927_v43  ;;  %v13023_v60 = vsub.f32 %v391_v17, %v12992_v29  ;;  %v18772_v17 = vand.u32 4294901760, %v12978_v27  ;;  %v13066_v21 = vsub.f32 %v599_v20, %v13034_v31  ;;  %v2132_v18 = vand.u32 4294901760, %v2131_v26  ;;  %v559_v26 = vld [vmem:[#allocation11 + $0x550] sm:$0xff] }
 0x11f   : > { %2038 = vmatpush.msra.mxu0 %v12939_v12  ;;  %2189 = vmatpush.msra.mxu2 %v12952_v3  ;;  %v18777_v20 = vand.u32 4294901760, %v13016_v53 }
 0x120   : > { %2103 = vmatpush.msra.mxu1 %v2102_v38  ;;  %2234 = vmatpush.msra.mxu3 %v12939_v12  ;;  %v2400_v38 = vsub.f32 %v12978_v27, %v18772_v17  ;;  %v18774_v17 = vand.u32 4294901760, %v12995_v40  ;;  %v18778_v28 = vand.u32 4294901760, %v13023_v60 }
 0x121   : > { %2040 = vmatpush.msra.mxu0 %v12954_v11  ;;  %2192 = vmatpush.msra.mxu2 %v12966_v49  ;;  %v2412_v35 = vsub.f32 %v13016_v53, %v18777_v20  ;;  %v2138_v20 = vand.u32 4294901760, %v2137_v5 }
 0x122   : > { %2109 = vmatpush.msra.mxu1 %v2108_v13  ;;  %2236 = vmatpush.msra.mxu3 %v12954_v11  ;;  %v2406_v13 = vsub.f32 %v12995_v40, %v18774_v17  ;;  %v2401_v17 = vand.u32 4294901760, %v2400_v38  ;;  %v13081_v11 = vand.u32 4294901760, %v575_v24  ;;  %v2149_v38 = vsub.f32 %v13023_v60, %v18778_v28 }
 0x123   : > { %2042 = vmatpush.msra.mxu0 %v12968_v55  ;;  %2195 = vmatpush.msra.mxu2 %v12982_v57  ;;  %v18779_v40 = vand.u32 4294901760, %v13032_v61  ;;  %v2413_v5 = vand.u32 4294901760, %v2412_v35 }
 0x124   : > { %2115 = vmatpush.msra.mxu1 %v2114_v30  ;;  %2238 = vmatpush.msra.mxu3 %v12968_v55  ;;  %v2143_v30 = vsub.f32 %v13007_v9, %v18776_v8  ;;  %v567_v55 = vld [vmem:[#allocation11 + $0x590] sm:$0xff]  ;;  %v2407_v8 = vand.u32 4294901760, %v2406_v13  ;;  %v18780_v13 = vand.u32 4294901760, %v12830_v23  ;;  %v13106_v53 = vsub.f32 %v575_v24, %v13081_v11 }
 0x125   : > { %2044 = vmatpush.msra.mxu0 %v12975_v37  ;;  %2198 = vmatpush.msra.mxu2 %v12999_v15  ;;  %v13096_v27 = vand.u32 4294901760, %v567_v55  ;;  %v18782_v23 = vand.u32 4294901760, %v12840_v10  ;;  %v18784_v10 = vand.u32 4294901760, %v12850_v32  ;;  %v18786_v32 = vand.u32 4294901760, %v12860_v36 }
 0x126   : > { %2121 = vmatpush.msra.mxu1 %v2120_v48  ;;  %2240 = vmatpush.msra.mxu3 %v12975_v37  ;;  %v13089_v48 = vsub.f32 %v583_v42, %v13058_v25  ;;  %v2418_v37 = vsub.f32 %v13032_v61, %v18779_v40  ;;  %v2144_v28 = vand.u32 4294901760, %v2143_v30  ;;  %v13120_v42 = vand.u32 4294901760, %v551_v51 }
 0x127   : > { %2046 = vmatpush.msra.mxu0 %v12992_v29  ;;  %2201 = vmatpush.msra.mxu2 %v13007_v9  ;;  %v13118_v24 = vsub.f32 %v567_v55, %v13096_v27  ;;  %v18787_v36 = vand.u32 4294901760, %v12874_v44  ;;  %v18789_v44 = vand.u32 4294901760, %v12887_v63  ;;  %v18790_v63 = vand.u32 4294901760, %v12902_v33 }
 0x128   : > { %2127 = vmatpush.msra.mxu1 %v2126_v41  ;;  %2242 = vmatpush.msra.mxu3 %v12992_v29  ;;  %v18781_v41 = vand.u32 4294901760, %v13050_v19  ;;  %v13108_v29 = vand.u32 4294901760, %v559_v26  ;;  %v18450_v30 = vand.u32 4294901760, %v13089_v48  ;;  %v2419_v35 = vand.u32 4294901760, %v2418_v37 }
 0x129   : > { %2253 = vmatpush.msrb.mxu0 %v18780_v13  ;;  %2204 = vmatpush.msra.mxu2 %v13023_v60  ;;  %v18783_v13 = vand.u32 4294901760, %v13066_v21 }
 0x12a   : > { %2402 = vmatpush.msrb.mxu3 %v2401_v17  ;;  %2133 = vmatpush.msra.mxu1 %v2132_v18  ;;  %v2424_v40 = vsub.f32 %v13050_v19, %v18781_v41  ;;  %v2150_v17 = vand.u32 4294901760, %v2149_v38  ;;  %v543_v18 = vld [vmem:[#allocation11 + $0x4d0] sm:$0xff]  ;;  %v18785_v38 = vand.u32 4294901760, %v13074_v4  ;;  %v13130_v55 = vsub.f32 %v559_v26, %v13108_v29 }
 0x12b   : > { %2257 = vmatpush.msrb.mxu0 %v18782_v23  ;;  %2357 = vmatpush.msrb.mxu2 %v12945_v59  ;;  %v2430_v41 = vsub.f32 %v13066_v21, %v18783_v13  ;;  %v13132_v13 = vand.u32 4294901760, %v543_v18  ;;  %v13142_v26 = vsub.f32 %v551_v51, %v13120_v42  ;;  %v519_v23 = vld [vmem:[#allocation11 + $0x410] sm:$0xff] }
 0x12c   : > { %2408 = vmatpush.msrb.mxu3 %v2407_v8  ;;  %2139 = vmatpush.msra.mxu1 %v2138_v20  ;;  %v2436_v8 = vsub.f32 %v13074_v4, %v18785_v38  ;;  %v535_v20 = vld [vmem:[#allocation11 + $0x490] sm:$0xff]  ;;  %v2425_v37 = vand.u32 4294901760, %v2424_v40 }
 0x12d   : > { %2261 = vmatpush.msrb.mxu0 %v18784_v10  ;;  %2359 = vmatpush.msrb.mxu2 %v12959_v39  ;;  %v2442_v10 = vsub.f32 %v13089_v48, %v18450_v30  ;;  %v527_v38 = vld [vmem:[#allocation11 + $0x450] sm:$0xff]  ;;  %v13144_v40 = vand.u32 4294901760, %v535_v20  ;;  %v13155_v51 = vsub.f32 %v543_v18, %v13132_v13 }
 0x12e   : > { %2414 = vmatpush.msrb.mxu3 %v2413_v5  ;;  %2145 = vmatpush.msra.mxu1 %v2144_v28  ;;  %v2431_v28 = vand.u32 4294901760, %v2430_v41  ;;  %v2453_v5 = vand.u32 4294901760, %v13118_v24  ;;  %v2459_v41 = vand.u32 4294901760, %v13130_v55  ;;  %v13157_v30 = vand.u32 4294901760, %v527_v38 }
 0x12f   : > { %2265 = vmatpush.msrb.mxu0 %v18786_v32  ;;  %2361 = vmatpush.msrb.mxu2 %v12985_v1  ;;  %v2437_v32 = vand.u32 4294901760, %v2436_v8  ;;  %v13168_v18 = vsub.f32 %v535_v20, %v13144_v40 }
 0x130   : > { %2420 = vmatpush.msrb.mxu3 %v2419_v35  ;;  %2151 = vmatpush.msra.mxu1 %v2150_v17  ;;  %v18788_v17 = vand.u32 4294901760, %v13106_v53  ;;  %v2454_v8 = vsub.f32 %v13118_v24, %v2453_v5  ;;  %v13181_v20 = vsub.f32 %v527_v38, %v13157_v30  ;;  %v18792_v38 = vand.u32 4294901760, %v12921_v7 }
 0x131   : > { %2269 = vmatpush.msrb.mxu0 %v18787_v36  ;;  %2363 = vmatpush.msrb.mxu2 %v13002_v2  ;;  %v13170_v36 = vand.u32 4294901760, %v519_v23 }
 0x132   : > { %2320 = vmatpush.msrb.mxu1 %v12815_v0  ;;  %2426 = vmatpush.msrb.mxu3 %v2425_v37  ;;  %v2448_v35 = vsub.f32 %v13106_v53, %v18788_v17  ;;  %v2443_v0 = vand.u32 4294901760, %v2442_v10  ;;  %v2465_v37 = vand.u32 4294901760, %v13142_v26  ;;  %v2460_v10 = vsub.f32 %v13130_v55, %v2459_v41 }
 0x133   : > { %2273 = vmatpush.msrb.mxu0 %v18789_v44  ;;  %2365 = vmatpush.msrb.mxu2 %v13018_v46  ;;  %v18791_v17 = vand.u32 4294901760, %v12915_v62  ;;  %v2483_v44 = vand.u32 4294901760, %v13181_v20 }
 0x134   : > { %2322 = vmatpush.msrb.mxu1 %v12822_v45  ;;  %2432 = vmatpush.msrb.mxu3 %v2431_v28  ;;  %v2449_v45 = vand.u32 4294901760, %v2448_v35  ;;  %v2471_v28 = vand.u32 4294901760, %v13155_v51  ;;  %v2466_v33 = vsub.f32 %v13142_v26, %v2465_v37  ;;  %v13192_v35 = vsub.f32 %v519_v23, %v13170_v36 }
 0x135   : > { %2277 = vmatpush.msrb.mxu0 %v18790_v63  ;;  %2367 = vmatpush.msrb.mxu2 %v13034_v31  ;;  %v18795_v63 = vand.u32 4294901760, %v12966_v49 }
 0x136   : > { %2324 = vmatpush.msrb.mxu1 %v12832_v56  ;;  %2438 = vmatpush.msrb.mxu3 %v2437_v32  ;;  %v2455_v56 = vand.u32 4294901760, %v2454_v8  ;;  %v2477_v32 = vand.u32 4294901760, %v13168_v18  ;;  %v2472_v62 = vsub.f32 %v13155_v51, %v2471_v28  ;;  %v2467_v7 = vand.u32 4294901760, %v2466_v33 }
 0x137   : > { %2281 = vmatpush.msrb.mxu0 %v18791_v17  ;;  %2369 = vmatpush.msrb.mxu2 %v13042_v6  ;;  %v2489_v23 = vand.u32 4294901760, %v13192_v35  ;;  %v18794_v8 = vand.u32 4294901760, %v12952_v3  ;;  %v18798_v17 = vand.u32 4294901760, %v13007_v9  ;;  %v18804_v9 = vld [vmem:[#allocation23_spill] sm:$0xff] }
 0x138   : > { %2326 = vmatpush.msrb.mxu1 %v12842_v47  ;;  %2444 = vmatpush.msrb.mxu3 %v2443_v0  ;;  %v2461_v47 = vand.u32 4294901760, %v2460_v10  ;;  %v18793_v0 = vand.u32 4294901760, %v12933_v52  ;;  %v2473_v52 = vand.u32 4294901760, %v2472_v62  ;;  %v18797_v10 = vand.u32 4294901760, %v12999_v15  ;;  %v18801_v15 = vld [vmem:[#allocation19_spill] sm:$0xff] }
 0x139   : > { %2285 = vmatpush.msrb.mxu0 %v18792_v38  ;;  %2371 = vmatpush.msrb.mxu2 %v13058_v25  ;;  %v18808_v33 = vand.u32 4294901760, %v18804_v9  ;;  %v18809_v38 = vld [vmem:[#allocation21_spill] sm:$0xff] }
 0x13a   : > { %2328 = vmatpush.msrb.mxu1 %v12852_v22  ;;  %2450 = vmatpush.msrb.mxu3 %v2449_v45  ;;  %v2478_v22 = vsub.f32 %v13168_v18, %v2477_v32  ;;  %v18796_v45 = vand.u32 4294901760, %v12982_v57  ;;  %v18803_v57 = vld [vmem:[#allocation25_spill] sm:$0xff] }
 0x13b   : > { %2289 = vmatpush.msrb.mxu0 %v18793_v0  ;;  %2373 = vmatpush.msrb.mxu2 %v13081_v11  ;;  %v18812_v0 = vld [vmem:[#allocation32_spill] sm:$0xff] }
 0x13c   : > { %2330 = vmatpush.msrb.mxu1 %v12862_v14  ;;  %2456 = vmatpush.msrb.mxu3 %v2455_v56  ;;  %v2484_v14 = vsub.f32 %v13181_v20, %v2483_v44  ;;  %v2479_v3 = vand.u32 4294901760, %v2478_v22  ;;  %v18807_v56 = vld [vmem:[#allocation33_spill] sm:$0xff]  ;;  %v18814_v22 = vld [vmem:[#allocation18_spill] sm:$0xff] }
 0x13d   : > { %2293 = vmatpush.msrb.mxu0 %v18794_v8  ;;  %2375 = vmatpush.msrb.mxu2 %v13096_v27  ;;  %v18811_v62 = vand.u32 4294901760, %v18807_v56  ;;  %v790_v8 = vpop.f32.mrf.mxu1 }
 0x13e   : > { %2332 = vmatpush.msrb.mxu1 %v12876_v58  ;;  %2462 = vmatpush.msrb.mxu3 %v2461_v47  ;;  %v2490_v58 = vsub.f32 %v13192_v35, %v2489_v23  ;;  %v2485_v49 = vand.u32 4294901760, %v2484_v14  ;;  %v18810_v47 = vld [vmem:[#allocation24_spill] sm:$0xff]  ;;  %v18816_v14 = vld [vmem:[#allocation27_spill] sm:$0xff] }
 0x13f   : > { %2297 = vmatpush.msrb.mxu0 %v18795_v63  ;;  %2377 = vmatpush.msrb.mxu2 %v13108_v29  ;;  %v844_v63 = vpop.f32.mrf.mxu2 }
 0x140   : > { %2334 = vmatpush.msrb.mxu1 %v12889_v16  ;;  %2468 = vmatpush.msrb.mxu3 %v2467_v7  ;;  %v2491_v16 = vand.u32 4294901760, %v2490_v58  ;;  %v18813_v7 = vand.u32 4294901760, %v13032_v61 }
 0x141   : > { %2301 = vmatpush.msrb.mxu0 %v18796_v45  ;;  %2379 = vmatpush.msrb.mxu2 %v13120_v42 }
 0x142   : > { %2336 = vmatpush.msrb.mxu1 %v12894_v50  ;;  %2474 = vmatpush.msrb.mxu3 %v2473_v52  ;;  %v18799_v50 = vand.u32 4294901760, %v13023_v60  ;;  %v18806_v60 = vld [vmem:[#allocation22_spill] sm:$0xff]  ;;  %v18815_v52 = vand.u32 4294901760, %v13050_v19 }
 0x143   : > { %2305 = vmatpush.msrb.mxu0 %v18797_v10  ;;  %2381 = vmatpush.msrb.mxu2 %v13132_v13  ;;  %v18821_v10 = vld [vmem:[#allocation29_spill] sm:$0xff] }
 0x144   : > { %2338 = vmatpush.msrb.mxu1 %v12907_v54  ;;  %2480 = vmatpush.msrb.mxu3 %v2479_v3  ;;  %v18800_v54 = vld [vmem:[#allocation26_spill] sm:$0xff]  ;;  %v480_v3 = vld [vmem:[#allocation11 + $0x2d8] sm:$0xff] }
 0x145   : > { %2309 = vmatpush.msrb.mxu0 %v18798_v17  ;;  %2383 = vmatpush.msrb.mxu2 %v13144_v40  ;;  %v456_v17 = vld [vmem:[#allocation11 + $0x218] sm:$0xff] }
 0x146   : > { %2340 = vmatpush.msrb.mxu1 %v12927_v43  ;;  %2486 = vmatpush.msrb.mxu3 %v2485_v49  ;;  %v18802_v43 = vld [vmem:[#allocation20_spill] sm:$0xff] }
 0x147   : > { %2313 = vmatpush.msrb.mxu0 %v18799_v50  ;;  %2385 = vmatpush.msrb.mxu2 %v13157_v30 }
 0x148   : > { %2342 = vmatpush.msrb.mxu1 %v12939_v12  ;;  %2492 = vmatpush.msrb.mxu3 %v2491_v16  ;;  %v18805_v12 = vand.u32 4294901760, %v18801_v15  ;;  %v464_v16 = vld [vmem:[#allocation11 + $0x258] sm:$0xff] }
 0x149   : > { %2052 = vmatmul.f32.vlgmr.msra.gmra.mxu0 %v12239_v34  ;;  %2246 = vmatmul.f32.vlgmr.msra.gmra.mxu3 %v18800_v54  ;;  %v576_v34 = vld [vmem:[#allocation11 + $0x5d8] sm:$0xff] }
 0x14a   : > { %2500 = vmatpush.msra.mxu0 %v18801_v15  ;;  %2661 = vmatpush.msra.mxu3 %v12945_v59 }
 0x14b   : > { %2344 = vmatpush.msrb.mxu1 %v18802_v43  ;;  %2387 = vmatpush.msrb.mxu2 %v13170_v36 }
 0x14c   : > { %2207 = vmatmul.f32.vlgmr.msra.gmra.mxu2 %v18803_v57  ;;  %2503 = vmatpush.msra.mxu0 %v18804_v9  ;;  %v13384_v9 = vand.u32 4294901760, %v464_v16 }
 0x14d   : > { %2594 = vmatpush.msra.mxu2 %v18805_v12  ;;  %2663 = vmatpush.msra.mxu3 %v12959_v39 }
 0x14e   : > { %2346 = vmatpush.msrb.mxu1 %v18806_v60  ;;  %2506 = vmatpush.msra.mxu0 %v18807_v56 }
 0x14f   : > { %2598 = vmatpush.msra.mxu2 %v18808_v33  ;;  %2665 = vmatpush.msra.mxu3 %v12985_v1 }
 0x150   : > { %2348 = vmatpush.msrb.mxu1 %v18809_v38  ;;  %2509 = vmatpush.msra.mxu0 %v13032_v61  ;;  %v18817_v61 = vand.u32 4294901760, %v13066_v21 }
 0x151   : > { %2153 = vmatmul.f32.vlgmr.msra.gmra.mxu1 %v18810_v47  ;;  %2602 = vmatpush.msra.mxu2 %v18811_v62  ;;  %v13399_v62 = vand.u32 4294901760, %v456_v17 }
 0x152   : > { %2667 = vmatpush.msra.mxu3 %v13002_v2  ;;  %2350 = vmatpush.msrb.mxu1 %v18812_v0 }
 0x153   : > { %2512 = vmatpush.msra.mxu0 %v13050_v19  ;;  %2606 = vmatpush.msra.mxu2 %v18813_v7  ;;  %v18818_v19 = vand.u32 4294901760, %v13074_v4  ;;  %v440_v7 = vld [vmem:[#allocation11 + $0x198] sm:$0xff] }
 0x154   : > { %2553 = vmatpush.msra.mxu1 %v12945_v59  ;;  %2669 = vmatpush.msra.mxu3 %v13018_v46  ;;  %v689_v59 = vpop.f32.mrf.mxu0 }
 0x155   : > { %2393 = vmatmul.f32.vlgmr.msrb.gmra.mxu2 %v18814_v22  ;;  %2515 = vmatpush.msra.mxu0 %v13066_v21  ;;  %v883_v21 = vpop.f32.mrf.mxu3 }
 0x156   : > { %2555 = vmatpush.msra.mxu1 %v12959_v39  ;;  %2610 = vmatpush.msra.mxu2 %v18815_v52  ;;  %v18820_v39 = vand.u32 4294901760, %v13106_v53 }
 0x157   : > { %2671 = vmatpush.msra.mxu3 %v13034_v31  ;;  %2315 = vmatmul.f32.vlgmr.msrb.gmra.mxu0 %v18810_v47 }
 0x158   : > { %2494 = vmatmul.f32.vlgmr.msrb.gmra.mxu3 %v18816_v14  ;;  %2518 = vmatpush.msra.mxu0 %v13074_v4 }
 0x159   : > { %2557 = vmatpush.msra.mxu1 %v12985_v1  ;;  %2614 = vmatpush.msra.mxu2 %v18817_v61  ;;  %v18819_v1 = vand.u32 4294901760, %v13089_v48  ;;  %v13411_v61 = vsub.f32 %v464_v16, %v13384_v9 }
 0x15a   : > { %2673 = vmatpush.msra.mxu3 %v13042_v6  ;;  %2352 = vmatmul.f32.vlgmr.msrb.gmra.mxu1 %v18810_v47 }
 0x15b   : > { %2521 = vmatpush.msra.mxu0 %v13089_v48  ;;  %2559 = vmatpush.msra.mxu1 %v13002_v2  ;;  %v13294_v2 = vpop.f32.mrf.mxu1  ;;  %v791_v48 = vadd.f32 %v790_v8, %v689_v59 }
 0x15c   : > { %2618 = vmatpush.msra.mxu2 %v18818_v19  ;;  %2675 = vmatpush.msra.mxu3 %v13058_v25  ;;  %v13301_v4 = vpop.f32.mrf.mxu0 }
 0x15d   : > { %2524 = vmatpush.msra.mxu0 %v13106_v53  ;;  %2561 = vmatpush.msra.mxu1 %v13018_v46  ;;  %v512_v46 = vld [vmem:[#allocation11 + $0x3d8] sm:$0xff] }
 0x15e   : > { %2622 = vmatpush.msra.mxu2 %v18819_v1  ;;  %2677 = vmatpush.msra.mxu3 %v13081_v11  ;;  %v504_v53 = vld [vmem:[#allocation11 + $0x398] sm:$0xff] }
 0x15f   : > { %2527 = vmatpush.msra.mxu0 %v13118_v24  ;;  %2563 = vmatpush.msra.mxu1 %v13034_v31  ;;  %v13308_v31 = vpop.f32.mrf.mxu2  ;;  %v496_v24 = vld [vmem:[#allocation11 + $0x358] sm:$0xff] }
 0x160   : > { %2626 = vmatpush.msra.mxu2 %v18820_v39  ;;  %2679 = vmatpush.msra.mxu3 %v13096_v27  ;;  %v13423_v39 = vsub.f32 %v456_v17, %v13399_v62 }
 0x161   : > { %2530 = vmatpush.msra.mxu0 %v13130_v55  ;;  %2565 = vmatpush.msra.mxu1 %v13042_v6  ;;  %v13313_v6 = vand.u32 4294901760, %v512_v46  ;;  %v13324_v55 = vpop.f32.mrf.mxu3 }
 0x162   : > { %2630 = vmatpush.msra.mxu2 %v2453_v5  ;;  %2681 = vmatpush.msra.mxu3 %v13108_v29  ;;  %v488_v5 = vld [vmem:[#allocation11 + $0x318] sm:$0xff] }
 0x163   : > { %2533 = vmatpush.msra.mxu0 %v13142_v26  ;;  %2567 = vmatpush.msra.mxu1 %v13058_v25  ;;  %v13320_v25 = vand.u32 4294901760, %v504_v53  ;;  %v13334_v26 = vand.u32 4294901760, %v496_v24 }
 0x164   : > { %2634 = vmatpush.msra.mxu2 %v2459_v41  ;;  %2683 = vmatpush.msra.mxu3 %v13120_v42  ;;  %v13326_v41 = vpop.f32.mrf.mxu1  ;;  %v13340_v58 = vpop.f32.mrf.mxu0 }
 0x165   : > { %2536 = vmatpush.msra.mxu0 %v13155_v51  ;;  %2569 = vmatpush.msra.mxu1 %v13081_v11  ;;  %v13332_v11 = vsub.f32 %v512_v46, %v13313_v6  ;;  %v13346_v51 = vsub.f32 %v504_v53, %v13320_v25  ;;  %v13425_v46 = vand.u32 4294901760, %v440_v7 }
 0x166   : > { %2638 = vmatpush.msra.mxu2 %v2465_v37  ;;  %2685 = vmatpush.msra.mxu3 %v13132_v13  ;;  %v845_v37 = vadd.f32 %v844_v63, %v791_v48 }
 0x167   : > { %2539 = vmatpush.msra.mxu0 %v13168_v18  ;;  %2571 = vmatpush.msra.mxu1 %v13096_v27  ;;  %v13338_v27 = vand.u32 4294901760, %v488_v5  ;;  %v13350_v45 = vpop.f32.mrf.mxu2  ;;  %v13358_v18 = vand.u32 4294901760, %v480_v3  ;;  %18822 = vst [vmem:[#allocation31_spill] sm:$0xff] %v13425_v46 }
 0x168   : > { %2642 = vmatpush.msra.mxu2 %v2471_v28  ;;  %2687 = vmatpush.msra.mxu3 %v13144_v40  ;;  %v472_v28 = vld [vmem:[#allocation11 + $0x298] sm:$0xff]  ;;  %v884_v49 = vadd.f32 %v883_v21, %v845_v37 }
 0x169   : > { %2542 = vmatpush.msra.mxu0 %v13181_v20  ;;  %2573 = vmatpush.msra.mxu1 %v13108_v29  ;;  %v13356_v29 = vsub.f32 %v496_v24, %v13334_v26  ;;  %v13368_v20 = vand.u32 4294901760, %v472_v28  ;;  %v13374_v50 = vpop.f32.mrf.mxu3  ;;  %v13382_v43 = vsub.f32 %v480_v3, %v13358_v18 }
 0x16a   : > { %2646 = vmatpush.msra.mxu2 %v2477_v32  ;;  %2689 = vmatpush.msra.mxu3 %v13157_v30  ;;  %v18458_v32 = vand.u32 4294901760, %v13332_v11  ;;  %v953_v12 = vadd.f32 %v13301_v4, %v884_v49  ;;  %v18823_v4 = vld [vmem:[#allocation30_spill] sm:$0xff]  ;;  %v640_v49 = vld [vmem:[#allocation11 + $0x7d8] sm:$0xff] }
 0x16b   : > { %2545 = vmatpush.msra.mxu0 %v13192_v35  ;;  %2575 = vmatpush.msra.mxu1 %v13120_v42  ;;  %v13364_v42 = vsub.f32 %v488_v5, %v13338_v27  ;;  %v18455_v35 = vand.u32 4294901760, %v13356_v29  ;;  %v13397_v38 = vsub.f32 %v472_v28, %v13368_v20  ;;  %v18453_v63 = vand.u32 4294901760, %v13382_v43 }
 0x16c   : > { %2650 = vmatpush.msra.mxu2 %v2483_v44  ;;  %2691 = vmatpush.msra.mxu3 %v13170_v36  ;;  %v18457_v44 = vand.u32 4294901760, %v13346_v51  ;;  %v1472_v15 = vpop.f32.mrf.mxu1  ;;  %v1371_v56 = vpop.f32.mrf.mxu0  ;;  %v990_v19 = vadd.f32 %v13294_v2, %v953_v12  ;;  %v18452_v28 = vand.u32 4294901760, %v13411_v61 }
 0x16d   : > { %2548 = vmatmul.f32.vlgmr.msra.gmra.mxu0 %v18821_v10  ;;  %2577 = vmatpush.msra.mxu1 %v13132_v13  ;;  %v2741_v13 = vsub.f32 %v13332_v11, %v18458_v32  ;;  %v18454_v60 = vand.u32 4294901760, %v13364_v42  ;;  %v2753_v59 = vsub.f32 %v13356_v29, %v18455_v35  ;;  %v18451_v2 = vand.u32 4294901760, %v13397_v38 }
 0x16e   : > { %2894 = vmatpush.msrb.mxu3 %v13313_v6  ;;  %2698 = vmatpush.msrb.mxu0 %v13313_v6  ;;  %v2747_v33 = vsub.f32 %v13346_v51, %v18457_v44  ;;  %v2765_v3 = vsub.f32 %v13382_v43, %v18453_v63  ;;  %v1031_v16 = vadd.f32 %v13308_v31, %v990_v19  ;;  %v18456_v31 = vand.u32 4294901760, %v13423_v39  ;;  %v392_v63 = vld [vmem:[#allocation11 + $0x18] sm:$0xff] }
 0x16f   : > { %2654 = vmatpush.msra.mxu2 %v2489_v23  ;;  %v448_v23 = vld [vmem:[#allocation11 + $0x1d8] sm:$0xff]  ;;  %2579 = vmatpush.msra.mxu1 %v13144_v40  ;;  %v1473_v40 = vadd.f32 %v1472_v15, %v1371_v56  ;;  %v2742_v8 = vand.u32 4294901760, %v2741_v13  ;;  %v1526_v52 = vpop.f32.mrf.mxu2  ;;  %v2759_v21 = vsub.f32 %v13364_v42, %v18454_v60  ;;  %v2754_v37 = vand.u32 4294901760, %v2753_v59 }
 0x170   : > { %2896 = vmatpush.msrb.mxu3 %v13320_v25  ;;  %2700 = vmatpush.msrb.mxu0 %v13320_v25  ;;  %v13403_v0 = vand.u32 4294901760, %v448_v23  ;;  %v2748_v1 = vand.u32 4294901760, %v2747_v33  ;;  %v416_v15 = vld [vmem:[#allocation11 + $0xd8] sm:$0xff]  ;;  %v2771_v13 = vsub.f32 %v13397_v38, %v18451_v2  ;;  %v13459_v59 = vand.u32 4294901760, %v640_v49 }
 0x171   : > { %2841 = vmatpush.msrb.mxu2 %v13332_v11  ;;  %2581 = vmatpush.msra.mxu1 %v13157_v30  ;;  %v432_v30 = vld [vmem:[#allocation11 + $0x158] sm:$0xff]  ;;  %v1527_v53 = vadd.f32 %v1526_v52, %v1473_v40  ;;  %v1565_v5 = vpop.f32.mrf.mxu3  ;;  %v2760_v17 = vand.u32 4294901760, %v2759_v21  ;;  %v2766_v19 = vand.u32 4294901760, %v2765_v3  ;;  %v2777_v21 = vsub.f32 %v13411_v61, %v18452_v28 }
 0x172   : > { %2656 = vmatmul.f32.vlgmr.msra.gmra.mxu2 %v18816_v14  ;;  %2702 = vmatpush.msrb.mxu0 %v13334_v26  ;;  %v13431_v48 = vsub.f32 %v448_v23, %v13403_v0  ;;  %v13433_v24 = vand.u32 4294901760, %v432_v30  ;;  %v13448_v23 = vsub.f32 %v440_v7, %v13425_v46  ;;  %v408_v56 = vld [vmem:[#allocation11 + $0x98] sm:$0xff]  ;;  %v2772_v3 = vand.u32 4294901760, %v2771_v13 }
 0x173   : > { %2844 = vmatpush.msrb.mxu2 %v13346_v51  ;;  %2898 = vmatpush.msrb.mxu3 %v13334_v26  ;;  %v632_v33 = vld [vmem:[#allocation11 + $0x798] sm:$0xff]  ;;  %v1566_v40 = vadd.f32 %v1565_v5, %v1527_v53  ;;  %v1132_v53 = vadd.f32 %v13324_v55, %v1031_v16  ;;  %v2783_v28 = vsub.f32 %v13423_v39, %v18456_v31  ;;  %v2778_v44 = vand.u32 4294901760, %v2777_v21 }
 0x174   : > { %2693 = vmatmul.f32.vlgmr.msra.gmra.mxu3 %v18816_v14  ;;  %2704 = vmatpush.msrb.mxu0 %v13338_v27  ;;  %18824 = vst [vmem:[#allocation19_spill] sm:$0xff] %v13433_v24  ;;  %v18459_v52 = vand.u32 4294901760, %v13431_v48  ;;  %v1634_v7 = vpop.f32.mrf.mxu0  ;;  %v400_v5 = vld [vmem:[#allocation11 + $0x58] sm:$0xff]  ;;  %v18461_v16 = vand.u32 4294901760, %v13448_v23  ;;  %v13489_v35 = vsub.f32 %v640_v49, %v13459_v59 }
 0x175   : > { %2847 = vmatpush.msrb.mxu2 %v13356_v29  ;;  %2900 = vmatpush.msrb.mxu3 %v13338_v27  ;;  %v624_v2 = vld [vmem:[#allocation11 + $0x758] sm:$0xff]  ;;  %v1635_v60 = vadd.f32 %v1634_v7, %v1566_v40  ;;  %v13495_v7 = vand.u32 4294901760, %v400_v5  ;;  %v2784_v13 = vand.u32 4294901760, %v2783_v28 }
 0x176   : > { %2583 = vmatpush.msra.mxu1 %v13170_v36  ;;  %2706 = vmatpush.msrb.mxu0 %v13358_v18  ;;  %v424_v36 = vld [vmem:[#allocation11 + $0x118] sm:$0xff]  ;;  %18828 = vst [vmem:[#allocation33_spill] sm:$0xff] %v13489_v35  ;;  %v13497_v32 = vand.u32 4294901760, %v624_v2 }
 0x177   : > { %2587 = vmatmul.f32.vlgmr.msra.gmra.mxu1 %v18823_v4  ;;  %2850 = vmatpush.msrb.mxu2 %v13364_v42  ;;  %v13450_v12 = vand.u32 4294901760, %v424_v36  ;;  %v616_v31 = vld [vmem:[#allocation11 + $0x718] sm:$0xff]  ;;  %18829 = vst [vmem:[#allocation21_spill] sm:$0xff] %v13495_v7  ;;  %v1712_v22 = vpop.f32.mrf.mxu2 }
 0x178   : > { %2743 = vmatpush.msrb.mxu1 %v2742_v8  ;;  %2902 = vmatpush.msrb.mxu3 %v13358_v18  ;;  %v13456_v8 = vsub.f32 %v432_v30, %v13433_v24  ;;  %v13470_v30 = vand.u32 4294901760, %v408_v56  ;;  %v13515_v4 = vand.u32 4294901760, %v616_v31  ;;  %v600_v14 = vld [vmem:[#allocation11 + $0x698] sm:$0xff] }
 0x179   : > { %2708 = vmatpush.msrb.mxu0 %v13368_v20  ;;  %2853 = vmatpush.msrb.mxu2 %v13382_v43  ;;  %18825 = vst [vmem:[#allocation20_spill] sm:$0xff] %v13450_v12  ;;  %v13479_v55 = vsub.f32 %v424_v36, %v13450_v12  ;;  %v1671_v36 = vpop.f32.mrf.mxu1  ;;  %v1813_v54 = vpop.f32.mrf.mxu3 }
 0x17a   : > { %2749 = vmatpush.msrb.mxu1 %v2748_v1  ;;  %2904 = vmatpush.msrb.mxu3 %v13368_v20  ;;  %v13465_v1 = vand.u32 4294901760, %v416_v15  ;;  %18827 = vst [vmem:[#allocation22_spill] sm:$0xff] %v13470_v30  ;;  %v13503_v49 = vsub.f32 %v408_v56, %v13470_v30  ;;  %v1672_v56 = vadd.f32 %v1671_v36, %v1635_v60  ;;  %v18832_v10 = vand.u32 4294901760, %v13456_v8 }
 0x17b   : > { %2710 = vmatpush.msrb.mxu0 %v13384_v9  ;;  %2856 = vmatpush.msrb.mxu2 %v13397_v38  ;;  %v13529_v36 = vsub.f32 %v624_v2, %v13497_v32  ;;  %v18834_v60 = vand.u32 4294901760, %v13479_v55 }
 0x17c   : > { %2755 = vmatpush.msrb.mxu1 %v2754_v37  ;;  %2906 = vmatpush.msrb.mxu3 %v13384_v9  ;;  %18826 = vst [vmem:[#allocation23_spill] sm:$0xff] %v13465_v1  ;;  %v13472_v37 = vand.u32 4294901760, %v632_v33  ;;  %v13493_v40 = vsub.f32 %v416_v15, %v13465_v1  ;;  %v608_v15 = vld [vmem:[#allocation11 + $0x6d8] sm:$0xff]  ;;  %v1713_v57 = vadd.f32 %v1712_v22, %v1672_v56  ;;  %v18839_v56 = vand.u32 4294901760, %v13503_v49 }
 0x17d   : > { %2712 = vmatpush.msrb.mxu0 %v13399_v62  ;;  %2859 = vmatpush.msrb.mxu2 %v13411_v61  ;;  %18833 = vst [vmem:[#allocation35_spill] sm:$0xff] %v13529_v36  ;;  %v2807_v47 = vsub.f32 %v13479_v55, %v18834_v60 }
 0x17e   : > { %2761 = vmatpush.msrb.mxu1 %v2760_v17  ;;  %2908 = vmatpush.msrb.mxu3 %v13399_v62  ;;  %v2789_v17 = vsub.f32 %v13431_v48, %v18459_v52  ;;  %v1186_v52 = vadd.f32 %v13340_v58, %v1132_v53  ;;  %v13508_v21 = vsub.f32 %v632_v33, %v13472_v37  ;;  %v592_v53 = vld [vmem:[#allocation11 + $0x658] sm:$0xff] }
 0x17f   : > { %2714 = vmatpush.msrb.mxu0 %v13403_v0  ;;  %2862 = vmatpush.msrb.mxu2 %v13423_v39  ;;  %v2795_v58 = vsub.f32 %v13448_v23, %v18461_v16  ;;  %v13525_v16 = vsub.f32 %v400_v5, %v13495_v7  ;;  %v584_v5 = vld [vmem:[#allocation11 + $0x618] sm:$0xff]  ;;  %v2819_v60 = vsub.f32 %v13503_v49, %v18839_v56 }
 0x180   : > { %2767 = vmatpush.msrb.mxu1 %v2766_v19  ;;  %2910 = vmatpush.msrb.mxu3 %v13403_v0  ;;  %v13505_v19 = vand.u32 4294901760, %v392_v63  ;;  %18831 = vst [vmem:[#allocation34_spill] sm:$0xff] %v13508_v21  ;;  %v2790_v33 = vand.u32 4294901760, %v2789_v17  ;;  %v13531_v17 = vand.u32 4294901760, %v608_v15 }
 0x181   : > { %2716 = vmatpush.msrb.mxu0 %v13425_v46  ;;  %2865 = vmatpush.msrb.mxu2 %v13431_v48  ;;  %v2796_v2 = vand.u32 4294901760, %v2795_v58  ;;  %v13555_v58 = vand.u32 4294901760, %v592_v53 }
 0x182   : > { %18830 = vst [vmem:[#allocation32_spill] sm:$0xff] %v13505_v19  ;;  %2773 = vmatpush.msrb.mxu1 %v2772_v3  ;;  %2912 = vmatpush.msrb.mxu3 %v13425_v46  ;;  %v2801_v3 = vsub.f32 %v13456_v8, %v18832_v10  ;;  %v1225_v10 = vadd.f32 %v13326_v41, %v1186_v52  ;;  %v13548_v52 = vand.u32 4294901760, %v600_v14 }
 0x183   : > { %2718 = vmatpush.msrb.mxu0 %v13433_v24  ;;  %2868 = vmatpush.msrb.mxu2 %v13448_v23  ;;  %v13546_v41 = vsub.f32 %v616_v31, %v13515_v4  ;;  %v18837_v31 = vand.u32 4294901760, %v13493_v40 }
 0x184   : > { %2779 = vmatpush.msrb.mxu1 %v2778_v44  ;;  %2914 = vmatpush.msrb.mxu3 %v13433_v24  ;;  %v13537_v44 = vsub.f32 %v392_v63, %v13505_v19  ;;  %v2802_v63 = vand.u32 4294901760, %v2801_v3  ;;  %v13564_v3 = vsub.f32 %v608_v15, %v13531_v17  ;;  %v1814_v24 = vadd.f32 %v1813_v54, %v1713_v57 }
 0x185   : > { %2720 = vmatpush.msrb.mxu0 %v13450_v12  ;;  %2871 = vmatpush.msrb.mxu2 %v13456_v8  ;;  %18835 = vst [vmem:[#allocation36_spill] sm:$0xff] %v13546_v41  ;;  %v2813_v22 = vsub.f32 %v13493_v40, %v18837_v31  ;;  %v18841_v54 = vand.u32 4294901760, %v13525_v16 }
 0x186   : > { %2785 = vmatpush.msrb.mxu1 %v2784_v13  ;;  %2916 = vmatpush.msrb.mxu3 %v13450_v12  ;;  %v18836_v13 = vand.u32 4294901760, %v13489_v35  ;;  %v13583_v12 = vand.u32 4294901760, %v584_v5 }
 0x187   : > { %2722 = vmatpush.msrb.mxu0 %v13465_v1  ;;  %2874 = vmatpush.msrb.mxu2 %v13479_v55  ;;  %v2825_v57 = vsub.f32 %v13525_v16, %v18841_v54 }
 0x188   : > { %v3082_v28 = vsub.f32 %v13489_v35, %v18836_v13  ;;  %2791 = vmatpush.msrb.mxu1 %v2790_v33  ;;  %2918 = vmatpush.msrb.mxu3 %v13465_v1  ;;  %v1294_v13 = vadd.f32 %v13350_v45, %v1225_v10  ;;  %v18838_v33 = vand.u32 4294901760, %v13508_v21  ;;  %v2808_v45 = vand.u32 4294901760, %v2807_v47  ;;  %v1867_v10 = vpop.f32.mrf.mxu0  ;;  %v568_v47 = vld [vmem:[#allocation11 + $0x598] sm:$0xff] }
 0x189   : > { %2724 = vmatpush.msrb.mxu0 %v13470_v30  ;;  %2877 = vmatpush.msrb.mxu2 %v13493_v40  ;;  %v13581_v35 = vsub.f32 %v600_v14, %v13548_v52  ;;  %v2814_v1 = vand.u32 4294901760, %v2813_v22  ;;  %v18840_v14 = vand.u32 4294901760, %v13529_v36 }
 0x18a   : > { %v3088_v31 = vsub.f32 %v13508_v21, %v18838_v33  ;;  %2797 = vmatpush.msrb.mxu1 %v2796_v2  ;;  %2920 = vmatpush.msrb.mxu3 %v13470_v30  ;;  %v3083_v56 = vand.u32 4294901760, %v3082_v28  ;;  %v13588_v33 = vsub.f32 %v592_v53, %v13555_v58  ;;  %v13590_v2 = vand.u32 4294901760, %v576_v34  ;;  %v560_v21 = vld [vmem:[#allocation11 + $0x558] sm:$0xff] }
 0x18b   : > { %2726 = vmatpush.msrb.mxu0 %v13495_v7  ;;  %2880 = vmatpush.msrb.mxu2 %v13503_v49  ;;  %v3094_v15 = vsub.f32 %v13529_v36, %v18840_v14  ;;  %v1868_v53 = vadd.f32 %v1867_v10, %v1814_v24  ;;  %v18843_v14 = vand.u32 4294901760, %v13546_v41  ;;  %v13611_v24 = vsub.f32 %v584_v5, %v13583_v12 }
 0x18c   : > { %2803 = vmatpush.msrb.mxu1 %v2802_v63  ;;  %2922 = vmatpush.msrb.mxu3 %v13495_v7  ;;  %v3089_v30 = vand.u32 4294901760, %v3088_v31  ;;  %v2820_v63 = vand.u32 4294901760, %v2819_v60  ;;  %v18842_v7 = vand.u32 4294901760, %v13537_v44  ;;  %v13613_v60 = vand.u32 4294901760, %v568_v47  ;;  %v552_v31 = vld [vmem:[#allocation11 + $0x518] sm:$0xff] }
 0x18d   : > { %2728 = vmatpush.msrb.mxu0 %v13505_v19  ;;  %2883 = vmatpush.msrb.mxu2 %v13525_v16  ;;  %v3100_v54 = vsub.f32 %v13546_v41, %v18843_v14  ;;  %v13622_v36 = vsub.f32 %v576_v34, %v13590_v2  ;;  %v3095_v5 = vand.u32 4294901760, %v3094_v15  ;;  %v18845_v41 = vand.u32 4294901760, %v13564_v3  ;;  %v544_v15 = vld [vmem:[#allocation11 + $0x4d8] sm:$0xff] }
 0x18e   : > { %v2831_v22 = vsub.f32 %v13537_v44, %v18842_v7  ;;  %2809 = vmatpush.msrb.mxu1 %v2808_v45  ;;  %2924 = vmatpush.msrb.mxu3 %v13505_v19  ;;  %v1906_v28 = vpop.f32.mrf.mxu1  ;;  %v13616_v7 = vadd.f32 %v13374_v50, %v1294_v13  ;;  %v18844_v45 = vand.u32 4294901760, %v13332_v11  ;;  %v2826_v19 = vand.u32 4294901760, %v2825_v57 }
 0x18f   : > { %v1975_v46 = vpop.f32.mrf.mxu2  ;;  %v1907_v10 = vadd.f32 %v1906_v28, %v1868_v53  ;;  %2886 = vmatpush.msrb.mxu2 %v13537_v44  ;;  %v3106_v50 = vsub.f32 %v13564_v3, %v18845_v41  ;;  %v13628_v13 = vand.u32 4294901760, %v560_v21  ;;  %v13631_v11 = vstv %s13567_s1  ;;  %s11599_s1 = scalar_lea.hbm %s18358_s9, 64 }
 0x190   : > { %2935 = vmatpush.msra.mxu0 %v18844_v45  ;;  %3084 = vmatpush.msra.mxu3 %v3083_v56  ;;  %18846 = vst [vmem:[#allocation37_spill] sm:$0xff] %v13631_v11  ;;  %v18847_v56 = vand.u32 4294901760, %v13346_v51  ;;  %v2832_v34 = vand.u32 4294901760, %v2831_v22  ;;  %v13636_v53 = vand.u32 4294901760, %v552_v31  ;;  %v3101_v57 = vand.u32 4294901760, %v3100_v54  ;;  %v536_v54 = vld [vmem:[#allocation11 + $0x498] sm:$0xff] }
 0x191   : > { %2815 = vmatpush.msrb.mxu1 %v2814_v1  ;;  %3039 = vmatpush.msra.mxu2 %v13459_v59  ;;  %v1976_v28 = vadd.f32 %v1975_v46, %v1907_v10  ;;  %v2012_v1 = vpop.f32.mrf.mxu3  ;;  %v18848_v41 = vand.u32 4294901760, %v13581_v35  ;;  %v18480_v14 = vand.u32 4294901760, %v13611_v24  ;;  %v13643_v51 = vsub.f32 %v568_v47, %v13613_v60 }
 0x192   : > { %2939 = vmatpush.msra.mxu0 %v18847_v56  ;;  %3090 = vmatpush.msra.mxu3 %v3089_v30  ;;  %v18849_v56 = vand.u32 4294901760, %v13356_v29  ;;  %v18850_v46 = vand.u32 4294901760, %v13588_v33  ;;  %vm6107_vm0 = vcmp.ge.f32.partialorder %v13616_v7, 0.0  ;;  %v3107_v10 = vand.u32 4294901760, %v3106_v50 }
 0x193   : > { %2821 = vmatpush.msrb.mxu1 %v2820_v63  ;;  %v3112_v45 = vsub.f32 %v13581_v35, %v18848_v41  ;;  %3041 = vmatpush.msra.mxu2 %v13472_v37  ;;  %v2013_v63 = vadd.f32 %v2012_v1, %v1976_v28  ;;  %v13654_v47 = vsub.f32 %v560_v21, %v13628_v13  ;;  %v13656_v29 = vand.u32 4294901760, %v544_v15 }
 0x194   : > { %2943 = vmatpush.msra.mxu0 %v18849_v56  ;;  %v3118_v30 = vsub.f32 %v13588_v33, %v18850_v46  ;;  %3096 = vmatpush.msra.mxu3 %v3095_v5  ;;  %v6116_v41 = vmul.f32 %v13631_v11, %v13616_v7  ;;  %v18851_v56 = vand.u32 4294901760, %v13364_v42  ;;  %v13665_v5 = vsub.f32 %v552_v31, %v13636_v53  ;;  %v520_v46 = vld [vmem:[#allocation11 + $0x418] sm:$0xff] }
 0x195   : > { %2827 = vmatpush.msrb.mxu1 %v2826_v19  ;;  %3043 = vmatpush.msra.mxu2 %v13497_v32  ;;  %vm6108_vm1 = vcmp.ge.f32.partialorder %v2013_v63, 0.0  ;;  %v6117_v28 = vmul.f32 %v13631_v11, %v2013_v63  ;;  %v528_v19 = vld [vmem:[#allocation11 + $0x458] sm:$0xff]  ;;  %v3113_v21 = vand.u32 4294901760, %v3112_v45  ;;  %v3124_v50 = vsub.f32 %v13611_v24, %v18480_v14 }
 0x196   : > { %2947 = vmatpush.msra.mxu0 %v18851_v56  ;;  %3102 = vmatpush.msra.mxu3 %v3101_v57  ;;  %v13671_v42 = vand.u32 4294901760, %v536_v54  ;;  %v18852_v56 = vand.u32 4294901760, %v13382_v43  ;;  %v3119_v31 = vand.u32 4294901760, %v3118_v30  ;;  %v3141_v14 = vand.u32 4294901760, %v13654_v47 }
 0x197   : > { %2833 = vmatpush.msrb.mxu1 %v2832_v34  ;;  %v6125_v22 = vsel %vm6108_vm1, %v2013_v63, %v6117_v28  ;;  %v18853_v34 = vand.u32 4294901760, %v13622_v36  ;;  %3045 = vmatpush.msra.mxu2 %v13515_v4  ;;  %v13682_v1 = vsub.f32 %v544_v15, %v13656_v29  ;;  %v13684_v43 = vand.u32 4294901760, %v528_v19 }
 0x198   : > { %2951 = vmatpush.msra.mxu0 %v18852_v56  ;;  %3108 = vmatpush.msra.mxu3 %v3107_v10  ;;  %v6140_v45 = vrot.slane %v6125_v22, 4  ;;  %v18854_v30 = vand.u32 4294901760, %v13397_v38  ;;  %v3147_v63 = vand.u32 4294901760, %v13665_v5  ;;  %v13693_v10 = vand.u32 4294901760, %v520_v46 }
 0x199   : > { %3002 = vmatpush.msra.mxu1 %v13313_v6  ;;  %v3130_v57 = vsub.f32 %v13622_v36, %v18853_v34  ;;  %v6124_v6 = vsel %vm6107_vm0, %v13616_v7, %v6116_v41  ;;  %3047 = vmatpush.msra.mxu2 %v13531_v17  ;;  %v3125_v22 = vand.u32 4294901760, %v3124_v50  ;;  %v18855_v28 = vand.u32 4294901760, %v13643_v51 }
 0x19a   : > { %2955 = vmatpush.msra.mxu0 %v18854_v30  ;;  %3114 = vmatpush.msra.mxu3 %v3113_v21  ;;  %v13697_v15 = vsel %vm6144_vm2, %v6124_v6, %v6140_v45  ;;  %v13703_v38 = vsub.f32 %v536_v54, %v13671_v42  ;;  %v3142_v21 = vsub.f32 %v13654_v47, %v3141_v14  ;;  %v3153_v50 = vand.u32 4294901760, %v13682_v1 }
 0x19b   : > { %3004 = vmatpush.msra.mxu1 %v13320_v25  ;;  %v3136_v7 = vsub.f32 %v13643_v51, %v18855_v28  ;;  %v18856_v25 = vand.u32 4294901760, %v13411_v61  ;;  %6165 = vst [vmem:[#allocation1] ss:$2 sm:$0xff] %v13697_v15  ;;  %3049 = vmatpush.msra.mxu2 %v13548_v52  ;;  %v3131_v41 = vand.u32 4294901760, %v3130_v57  ;;  %v13715_v54 = vsub.f32 %v528_v19, %v13684_v43 }
 0x19c   : > { %3120 = vmatpush.msra.mxu3 %v3119_v31  ;;  %v18857_v61 = vand.u32 4294901760, %v13423_v39  ;;  %v13724_v56 = vsub.f32 %v520_v46, %v13693_v10  ;;  %v3159_v34 = vand.u32 4294901760, %v13703_v38  ;;  %v18858_v19 = vand.u32 4294901760, %v13431_v48 }
 0x19d   : > { %2959 = vmatpush.msra.mxu0 %v18856_v25  ;;  %3006 = vmatpush.msra.mxu1 %v13334_v26  ;;  %v3148_v26 = vsub.f32 %v13665_v5, %v3147_v63  ;;  %v3137_v31 = vand.u32 4294901760, %v3136_v7  ;;  %v3154_v39 = vsub.f32 %v13682_v1, %v3153_v50  ;;  %v3165_v46 = vand.u32 4294901760, %v13715_v54 }
 0x19e   : > { %3051 = vmatpush.msra.mxu2 %v13555_v58  ;;  %3126 = vmatpush.msra.mxu3 %v3125_v22  ;;  %v18859_v57 = vand.u32 4294901760, %v13448_v23  ;;  %v3171_v48 = vand.u32 4294901760, %v13724_v56  ;;  %v3160_v30 = vsub.f32 %v13703_v38, %v3159_v34  ;;  %v18860_v22 = vand.u32 4294901760, %v13456_v8 }
 0x19f   : > { %2963 = vmatpush.msra.mxu0 %v18857_v61  ;;  %3008 = vmatpush.msra.mxu1 %v13338_v27  ;;  %v3143_v27 = vand.u32 4294901760, %v3142_v21  ;;  %v3149_v45 = vand.u32 4294901760, %v3148_v26  ;;  %v3166_v23 = vsub.f32 %v13715_v54, %v3165_v46  ;;  %v18861_v28 = vand.u32 4294901760, %v13479_v55  ;;  %v18868_v26 = vld [vmem:[#allocation20_spill] sm:$0xff] }
 0x1a0   : > { %3053 = vmatpush.msra.mxu2 %v13583_v12  ;;  %3132 = vmatpush.msra.mxu3 %v3131_v41  ;;  %v3172_v8 = vsub.f32 %v13724_v56, %v3171_v48  ;;  %v18862_v7 = vand.u32 4294901760, %v13493_v40  ;;  %v18863_v25 = vand.u32 4294901760, %v13503_v49  ;;  %v18865_v40 = vand.u32 4294901760, %v13525_v16  ;;  %v18869_v16 = vld [vmem:[#allocation28_spill] sm:$0xff] }
 0x1a1   : > { %2967 = vmatpush.msra.mxu0 %v18858_v19  ;;  %3010 = vmatpush.msra.mxu1 %v13358_v18  ;;  %v3167_v55 = vand.u32 4294901760, %v3166_v23  ;;  %v18867_v49 = vand.u32 4294901760, %v13537_v44  ;;  %v18871_v19 = vld [vmem:[#allocation33_spill] sm:$0xff]  ;;  %v18880_v23 = vld [vmem:[#allocation36_spill] sm:$0xff]  ;;  %vm7068_vm1 = vcmask 293888  }
 0x1a2   : > { %v6172_v6 = vld.sshfl [vmem:[#allocation1] sm:$0xff pattern:$0x75316420]  ;;  %v6173_v18 = vld.sshfl [vmem:[#allocation1 + $0x8] sm:$0xff pattern:$0x75316420]  ;;  %3055 = vmatpush.msra.mxu2 %v13590_v2  ;;  %3138 = vmatpush.msra.mxu3 %v3137_v31 }
 0x1a3   : > { %2971 = vmatpush.msra.mxu0 %v18859_v57  ;;  %3012 = vmatpush.msra.mxu1 %v13368_v20  ;;  %6257 = vst [vmem:[#allocation1] ss:$2 sm:$0xff] %v13697_v15  ;;  %v3155_v20 = vand.u32 4294901760, %v3154_v39  ;;  %v3173_v41 = vand.u32 4294901760, %v3172_v8  ;;  %v18870_v31 = vld [vmem:[#allocation26_spill] sm:$0xff]  ;;  %v18872_v39 = vld [vmem:[#allocation23_spill] sm:$0xff] }
 0x1a4   : > { %3057 = vmatpush.msra.mxu2 %v13613_v60  ;;  %3144 = vmatpush.msra.mxu3 %v3143_v27  ;;  %v18873_v57 = vld [vmem:[#allocation25_spill] sm:$0xff] }
 0x1a5   : > { %2975 = vmatpush.msra.mxu0 %v18860_v22  ;;  %3014 = vmatpush.msra.mxu1 %v13384_v9  ;;  %v3161_v9 = vand.u32 4294901760, %v3160_v30  ;;  %v18877_v30 = vld [vmem:[#allocation35_spill] sm:$0xff] }
 0x1a6   : > { %3059 = vmatpush.msra.mxu2 %v13628_v13  ;;  %3150 = vmatpush.msra.mxu3 %v3149_v45  ;;  %v18874_v45 = vld [vmem:[#allocation34_spill] sm:$0xff]  ;;  %v18882_v8 = vand.u32 4294901760, %v18877_v30 }
 0x1a7   : > { %2979 = vmatpush.msra.mxu0 %v18861_v28  ;;  %3016 = vmatpush.msra.mxu1 %v13399_v62  ;;  %v18864_v62 = vld [vmem:[#allocation31_spill] sm:$0xff]  ;;  %v18878_v22 = vand.u32 4294901760, %v18874_v45  ;;  %v18881_v28 = vld [vmem:[#allocation24_spill] sm:$0xff] }
 0x1a8   : > { %3061 = vmatpush.msra.mxu2 %v13636_v53  ;;  %3156 = vmatpush.msra.mxu3 %v3155_v20  ;;  %v18879_v20 = vld [vmem:[#allocation21_spill] sm:$0xff] }
 0x1a9   : > { %2983 = vmatpush.msra.mxu0 %v18862_v7  ;;  %3018 = vmatpush.msra.mxu1 %v13403_v0  ;;  %v18866_v0 = vld [vmem:[#allocation19_spill] sm:$0xff] }
 0x1aa   : > { %v6264_v21 = vld.sshfl [vmem:[#allocation1] sm:$0xff pattern:$0x75316420]  ;;  %v6265_v61 = vld.sshfl [vmem:[#allocation1 + $0x8] sm:$0xff pattern:$0x75316420]  ;;  %3063 = vmatpush.msra.mxu2 %v13656_v29  ;;  %3162 = vmatpush.msra.mxu3 %v3161_v9 }
 0x1ab   : > { %2987 = vmatpush.msra.mxu0 %v18863_v25  ;;  %3020 = vmatpush.msra.mxu1 %v18864_v62  ;;  %6372 = vst [vmem:[#allocation1] ss:$2 sm:$0xff] %v13697_v15  ;;  %v18883_v9 = vld [vmem:[#allocation32_spill] sm:$0xff]  ;;  %v18884_v25 = vand.u32 4294901760, %v18880_v23  ;;  %v18885_v62 = vld [vmem:[#allocation18_spill] sm:$0xff] }
 0x1ac   : > { %3065 = vmatpush.msra.mxu2 %v13671_v42  ;;  %3168 = vmatpush.msra.mxu3 %v3167_v55 }
 0x1ad   : > { %2991 = vmatpush.msra.mxu0 %v18865_v40  ;;  %3022 = vmatpush.msra.mxu1 %v18866_v0 }
 0x1ae   : > { %3067 = vmatpush.msra.mxu2 %v13684_v43  ;;  %3174 = vmatpush.msra.mxu3 %v3173_v41  ;;  %v18886_v41 = vand.u32 4294901760, %v13564_v3 }
 0x1af   : > { %2995 = vmatpush.msra.mxu0 %v18867_v49  ;;  %3024 = vmatpush.msra.mxu1 %v18868_v26 }
 0x1b0   : > { %6190 = vrot.lane.b32.xlu2 %v6173_v18, %s11657_s2  ;;  %6188 = vrot.lane.b32.xlu1 %v6172_v6, %s11657_s2  ;;  %v18875_v6 = vand.u32 4294901760, %v18871_v19  ;;  %v18876_v18 = vld [vmem:[#allocation22_spill] sm:$0xff] }
 0x1b1   : > { %2734 = vmatmul.f32.vlgmr.msrb.gmra.mxu0 %v18869_v16  ;;  %2928 = vmatmul.f32.vlgmr.msrb.gmra.mxu3 %v18870_v31 }
 0x1b2   : > { %3182 = vmatpush.msrb.mxu0 %v18871_v19  ;;  %3343 = vmatpush.msrb.mxu3 %v13459_v59  ;;  %v6379_v44 = vld.sshfl [vmem:[#allocation1] sm:$0xff pattern:$0x75316420]  ;;  %v13782_v27 = vld.sshfl [vmem:[#allocation1 + $0x8] sm:$0xff pattern:$0x75316420] }
 0x1b3   : > { %3026 = vmatpush.msra.mxu1 %v18872_v39  ;;  %3069 = vmatpush.msra.mxu2 %v13693_v10  ;;  %6463 = vst [vmem:[#allocation1] ss:$2 sm:$0xff] %v13697_v15  ;;  %v457_v19 = vld [vmem:[#allocation11 + $0x220] sm:$0xff] }
 0x1b4   : > { %2889 = vmatmul.f32.vlgmr.msrb.gmra.mxu2 %v18873_v57  ;;  %3185 = vmatpush.msrb.mxu0 %v18874_v45 }
 0x1b5   : > { %3276 = vmatpush.msrb.mxu2 %v18875_v6  ;;  %3345 = vmatpush.msrb.mxu3 %v13472_v37  ;;  %v13952_v6 = vand.u32 4294901760, %v457_v19 }
 0x1b6   : > { %3028 = vmatpush.msra.mxu1 %v18876_v18  ;;  %3188 = vmatpush.msrb.mxu0 %v18877_v30 }
 0x1b7   : > { %3280 = vmatpush.msrb.mxu2 %v18878_v22  ;;  %3347 = vmatpush.msrb.mxu3 %v13497_v32 }
 0x1b8   : > { %3030 = vmatpush.msra.mxu1 %v18879_v20  ;;  %3191 = vmatpush.msrb.mxu0 %v18880_v23  ;;  %v441_v20 = vld [vmem:[#allocation11 + $0x1a0] sm:$0xff] }
 0x1b9   : > { %2835 = vmatmul.f32.vlgmr.msrb.gmra.mxu1 %v18881_v28  ;;  %3284 = vmatpush.msrb.mxu2 %v18882_v8 }
 0x1ba   : > { %3349 = vmatpush.msrb.mxu3 %v13515_v4  ;;  %3032 = vmatpush.msra.mxu1 %v18883_v9  ;;  %v6470_v7 = vld.sshfl [vmem:[#allocation1] sm:$0xff pattern:$0x75316420]  ;;  %v13804_v55 = vld.sshfl [vmem:[#allocation1 + $0x8] sm:$0xff pattern:$0x75316420] }
 0x1bb   : > { %6282 = vrot.lane.b32.xlu0 %v6265_v61, %s11658_s19  ;;  %6280 = vrot.lane.b32.xlu2 %v6264_v21, %s11658_s19  ;;  %6578 = vst [vmem:[#allocation1] ss:$2 sm:$0xff] %v13697_v15  ;;  %v18887_v21 = vld [vmem:[#allocation27_spill] sm:$0xff]  ;;  %v433_v9 = vld [vmem:[#allocation11 + $0x160] sm:$0xff] }
 0x1bc   : > { %3194 = vmatpush.msrb.mxu0 %v13564_v3  ;;  %3235 = vmatpush.msrb.mxu1 %v13459_v59  ;;  %v18888_v59 = vand.u32 4294901760, %v13581_v35 }
 0x1bd   : > { %3288 = vmatpush.msrb.mxu2 %v18884_v25  ;;  %3351 = vmatpush.msrb.mxu3 %v13531_v17 }
 0x1be   : > { %3075 = vmatmul.f32.vlgmr.msra.gmra.mxu2 %v18885_v62  ;;  %3197 = vmatpush.msrb.mxu0 %v13581_v35  ;;  %v18891_v35 = vand.u32 4294901760, %v13622_v36 }
 0x1bf   : > { %3237 = vmatpush.msrb.mxu1 %v13472_v37  ;;  %3292 = vmatpush.msrb.mxu2 %v18886_v41  ;;  %v18889_v37 = vand.u32 4294901760, %v13588_v33 }
 0x1c0   : > { %3353 = vmatpush.msrb.mxu3 %v13548_v52  ;;  %2997 = vmatmul.f32.vlgmr.msra.gmra.mxu0 %v18881_v28 }
 0x1c1   : > { %3176 = vmatmul.f32.vlgmr.msra.gmra.mxu3 %v18887_v21  ;;  %3200 = vmatpush.msrb.mxu0 %v13588_v33  ;;  %v497_v33 = vld [vmem:[#allocation11 + $0x360] sm:$0xff] }
 0x1c2   : > { %3239 = vmatpush.msrb.mxu1 %v13497_v32  ;;  %3296 = vmatpush.msrb.mxu2 %v18888_v59  ;;  %v6585_v61 = vld.sshfl [vmem:[#allocation1] sm:$0xff pattern:$0x75316420]  ;;  %v6586_v40 = vld.sshfl [vmem:[#allocation1 + $0x8] sm:$0xff pattern:$0x75316420] }
 0x1c3   : > { %3355 = vmatpush.msrb.mxu3 %v13555_v58  ;;  %3034 = vmatmul.f32.vlgmr.msra.gmra.mxu1 %v18881_v28  ;;  %6617 = vst [vmem:[#allocation1] ss:$2 sm:$0xff] %v13697_v15  ;;  %v18890_v32 = vand.u32 4294901760, %v13611_v24  ;;  %v13982_v59 = vand.u32 4294901760, %v441_v20  ;;  %v577_v28 = vld [vmem:[#allocation11 + $0x5e0] sm:$0xff] }
 0x1c4   : > { %3203 = vmatpush.msrb.mxu0 %v13611_v24  ;;  %3241 = vmatpush.msrb.mxu1 %v13515_v4  ;;  %6601 = vst [vmem:[#allocation3 + $0x128] sm:$0xf] %v6585_v61  ;;  %v18892_v4 = vand.u32 4294901760, %v13643_v51  ;;  %v13876_v24 = vand.u32 4294901760, %v497_v33 }
 0x1c5   : > { %3300 = vmatpush.msrb.mxu2 %v18889_v37  ;;  %3357 = vmatpush.msrb.mxu3 %v13583_v12  ;;  %6602 = vst [vmem:[#allocation3 + $0x110] sm:$0xf] %v6586_v40  ;;  %v13990_v40 = vand.u32 4294901760, %v433_v9 }
 0x1c6   : > { %6395 = vrot.lane.b32.xlu1 %v6379_v44, %s11659_s20  ;;  %3206 = vmatpush.msrb.mxu0 %v13622_v36  ;;  %v505_v36 = vld [vmem:[#allocation11 + $0x3a0] sm:$0xff] }
 0x1c7   : > { %3243 = vmatpush.msrb.mxu1 %v13531_v17  ;;  %3304 = vmatpush.msrb.mxu2 %v18890_v32  ;;  %v449_v44 = vld [vmem:[#allocation11 + $0x1e0] sm:$0xff] }
 0x1c8   : > { %3359 = vmatpush.msrb.mxu3 %v13590_v2  ;;  %3209 = vmatpush.msrb.mxu0 %v13643_v51  ;;  %v13959_v22 = vand.u32 4294901760, %v449_v44  ;;  %v425_v32 = vld [vmem:[#allocation11 + $0x120] sm:$0xff] }
 0x1c9   : > { %3245 = vmatpush.msrb.mxu1 %v13548_v52  ;;  %3308 = vmatpush.msrb.mxu2 %v18891_v35  ;;  %v513_v52 = vld [vmem:[#allocation11 + $0x3e0] sm:$0xff] }
 0x1ca   : > { %3361 = vmatpush.msrb.mxu3 %v13613_v60  ;;  %3212 = vmatpush.msrb.mxu0 %v13654_v47  ;;  %v13849_v17 = vld.sshfl [vmem:[#allocation1] sm:$0xff pattern:$0x75316420]  ;;  %v13851_v3 = vld.sshfl [vmem:[#allocation1 + $0x8] sm:$0xff pattern:$0x75316420]  ;;  %v13985_v61 = vsub.f32 %v449_v44, %v13959_v22 }
 0x1cb   : > { %3247 = vmatpush.msrb.mxu1 %v13555_v58  ;;  %3312 = vmatpush.msrb.mxu2 %v18892_v4  ;;  %6732 = vst [vmem:[#allocation1] ss:$2 sm:$0xff] %v13697_v15  ;;  %v13864_v58 = vand.u32 4294901760, %v513_v52  ;;  %v417_v4 = vld [vmem:[#allocation11 + $0xe0] sm:$0xff] }
 0x1cc   : > { %3363 = vmatpush.msrb.mxu3 %v13628_v13  ;;  %3215 = vmatpush.msrb.mxu0 %v13665_v5 }
 0x1cd   : > { %3249 = vmatpush.msrb.mxu1 %v13583_v12  ;;  %3316 = vmatpush.msrb.mxu2 %v3141_v14  ;;  %v13871_v12 = vand.u32 4294901760, %v505_v36  ;;  %v489_v14 = vld [vmem:[#allocation11 + $0x320] sm:$0xff] }
 0x1ce   : > { %3365 = vmatpush.msrb.mxu3 %v13636_v53  ;;  %6397 = vrot.lane.b32.xlu1 %v13782_v27, %s11659_s20 }
 0x1cf   : > { %6486 = vrot.lane.b32.xlu2 %v6470_v7, %s11660_s30  ;;  %3218 = vmatpush.msrb.mxu0 %v13682_v1  ;;  %v13894_v5 = vsub.f32 %v505_v36, %v13871_v12  ;;  %v13896_v1 = vand.u32 4294901760, %v489_v14  ;;  %v18894_v7 = vld [vmem:[#allocation30_spill] sm:$0xff]  ;;  %v641_v36 = vld [vmem:[#allocation11 + $0x7e0] sm:$0xff] }
 0x1d0   : > { %3251 = vmatpush.msrb.mxu1 %v13590_v2  ;;  %3320 = vmatpush.msrb.mxu2 %v3147_v63  ;;  %v13881_v2 = vsub.f32 %v513_v52, %v13864_v58  ;;  %v13904_v63 = vsub.f32 %v497_v33, %v13876_v24  ;;  %v14018_v44 = vand.u32 4294901760, %v641_v36 }
 0x1d1   : > { %3367 = vmatpush.msrb.mxu3 %v13656_v29  ;;  %3221 = vmatpush.msrb.mxu0 %v13703_v38 }
 0x1d2   : > { %3253 = vmatpush.msrb.mxu1 %v13613_v60  ;;  %3324 = vmatpush.msrb.mxu2 %v3153_v50  ;;  %v13883_v51 = vld.sshfl [vmem:[#allocation1 + $0x8] sm:$0xff pattern:$0x75316420]  ;;  %v13885_v47 = vld.sshfl [vmem:[#allocation1] sm:$0xff pattern:$0x75316420] }
 0x1d3   : > { %3369 = vmatpush.msrb.mxu3 %v13671_v42  ;;  %3224 = vmatpush.msrb.mxu0 %v13715_v54  ;;  %v481_v60 = vld [vmem:[#allocation11 + $0x2e0] sm:$0xff]  ;;  %6823 = vst [vmem:[#allocation1] ss:$2 sm:$0xff] %v13697_v15  ;;  %v18491_v50 = vand.u32 4294901760, %v13881_v2  ;;  %v18490_v54 = vand.u32 4294901760, %v13894_v5  ;;  %v18488_v26 = vand.u32 4294901760, %v13904_v63 }
 0x1d4   : > { %3255 = vmatpush.msrb.mxu1 %v13628_v13  ;;  %3328 = vmatpush.msrb.mxu2 %v3159_v34  ;;  %v18893_v13 = vld [vmem:[#allocation29_spill] sm:$0xff]  ;;  %v13906_v38 = vand.u32 4294901760, %v481_v60 }
 0x1d5   : > { %3371 = vmatpush.msrb.mxu3 %v13684_v43  ;;  %3227 = vmatpush.msrb.mxu0 %v13724_v56  ;;  %v473_v34 = vld [vmem:[#allocation11 + $0x2a0] sm:$0xff]  ;;  %v3429_v39 = vsub.f32 %v13894_v5, %v18490_v54  ;;  %v3435_v30 = vsub.f32 %v13904_v63, %v18488_v26 }
 0x1d6   : > { %3257 = vmatpush.msrb.mxu1 %v13636_v53  ;;  %3332 = vmatpush.msrb.mxu2 %v3165_v46  ;;  %v13915_v53 = vsub.f32 %v489_v14, %v13896_v1  ;;  %v465_v46 = vld [vmem:[#allocation11 + $0x260] sm:$0xff]  ;;  %v13921_v0 = vand.u32 4294901760, %v473_v34  ;;  %v13929_v49 = vsub.f32 %v481_v60, %v13906_v38  ;;  %v14002_v14 = vsub.f32 %v441_v20, %v13982_v59 }
 0x1d7   : > { %3373 = vmatpush.msrb.mxu3 %v13693_v10  ;;  %3230 = vmatmul.f32.vlgmr.msrb.gmra.mxu0 %v18893_v13  ;;  %v3430_v23 = vand.u32 4294901760, %v3429_v39  ;;  %v14004_v60 = vand.u32 4294901760, %v425_v32  ;;  %v633_v39 = vld [vmem:[#allocation11 + $0x7a0] sm:$0xff] }
 0x1d8   : > { %3380 = vmatpush.msra.mxu0 %v13864_v58  ;;  %6488 = vrot.lane.b32.xlu2 %v13804_v55, %s11660_s30  ;;  %v18486_v45 = vand.u32 4294901760, %v13915_v53  ;;  %v13975_v55 = vsub.f32 %v457_v19, %v13952_v6  ;;  %v14015_v19 = vand.u32 4294901760, %v417_v4  ;;  %v409_v20 = vld [vmem:[#allocation11 + $0xa0] sm:$0xff] }
 0x1d9   : > { %3576 = vmatpush.msra.mxu3 %v13864_v58  ;;  %3259 = vmatpush.msrb.mxu1 %v13656_v29  ;;  %v3423_v29 = vsub.f32 %v13881_v2, %v18491_v50 }
 0x1da   : > { %3336 = vmatpush.msrb.mxu2 %v3171_v48  ;;  %3382 = vmatpush.msra.mxu0 %v13871_v12  ;;  %v13932_v56 = vld.sshfl [vmem:[#allocation1] sm:$0xff pattern:$0x75316420]  ;;  %v13936_v48 = vand.u32 4294901760, %v465_v46  ;;  %v3441_v8 = vsub.f32 %v13915_v53, %v18486_v45  ;;  %v18481_v52 = vand.u32 4294901760, %v13975_v55  ;;  %18895 = vst [vmem:[#allocation31_spill] sm:$0xff] %v14015_v19 }
 0x1db   : > { %3578 = vmatpush.msra.mxu3 %v13871_v12  ;;  %3261 = vmatpush.msrb.mxu1 %v13671_v42  ;;  %v13938_v27 = vld.sshfl [vmem:[#allocation1 + $0x8] sm:$0xff pattern:$0x75316420]  ;;  %v13950_v42 = vsub.f32 %v473_v34, %v13921_v0  ;;  %v3424_v18 = vand.u32 4294901760, %v3423_v29  ;;  %v18482_v34 = vand.u32 4294901760, %v13985_v61  ;;  %v14013_v29 = vsub.f32 %v433_v9, %v13990_v40  ;;  %v609_v45 = vld [vmem:[#allocation11 + $0x6e0] sm:$0xff] }
 0x1dc   : > { %3523 = vmatpush.msra.mxu2 %v13881_v2  ;;  %3384 = vmatpush.msra.mxu0 %v13876_v24  ;;  %6938 = vst [vmem:[#allocation1] ss:$2 sm:$0xff] %v13697_v15  ;;  %v18485_v15 = vand.u32 4294901760, %v13929_v49  ;;  %v3442_v35 = vand.u32 4294901760, %v3441_v8  ;;  %v14030_v8 = vsub.f32 %v425_v32, %v14004_v60  ;;  %v18487_v9 = vand.u32 4294901760, %v14002_v14 }
 0x1dd   : > { %3338 = vmatmul.f32.vlgmr.msrb.gmra.mxu2 %v18887_v21  ;;  %3580 = vmatpush.msra.mxu3 %v13876_v24  ;;  %v18484_v25 = vand.u32 4294901760, %v13950_v42  ;;  %v14046_v32 = vand.u32 4294901760, %v409_v20  ;;  %v14092_v26 = vand.u32 4294901760, %v609_v45 }
 0x1de   : > { %3526 = vmatpush.msra.mxu2 %v13894_v5  ;;  %3263 = vmatpush.msrb.mxu1 %v13684_v43  ;;  %v13965_v43 = vsub.f32 %v465_v46, %v13936_v48  ;;  %v3447_v41 = vsub.f32 %v13929_v49, %v18485_v15 }
 0x1df   : > { %3375 = vmatmul.f32.vlgmr.msrb.gmra.mxu3 %v18887_v21  ;;  %3386 = vmatpush.msra.mxu0 %v13896_v1  ;;  %18896 = vst [vmem:[#allocation19_spill] sm:$0xff] %v14046_v32 }
 0x1e0   : > { %3529 = vmatpush.msra.mxu2 %v13904_v63  ;;  %3582 = vmatpush.msra.mxu3 %v13896_v1  ;;  %v18483_v37 = vand.u32 4294901760, %v13965_v43  ;;  %v3448_v33 = vand.u32 4294901760, %v3447_v41 }
 0x1e1   : > { %3265 = vmatpush.msrb.mxu1 %v13693_v10  ;;  %3388 = vmatpush.msra.mxu0 %v13906_v38  ;;  %v3436_v10 = vand.u32 4294901760, %v3435_v30  ;;  %v3465_v30 = vsub.f32 %v13975_v55, %v18481_v52  ;;  %v14040_v52 = vand.u32 4294901760, %v633_v39 }
 0x1e2   : > { %3269 = vmatmul.f32.vlgmr.msrb.gmra.mxu1 %v18894_v7  ;;  %3532 = vmatpush.msra.mxu2 %v13915_v53  ;;  %v3459_v46 = vsub.f32 %v13965_v43, %v18483_v37 }
 0x1e3   : > { %3425 = vmatpush.msra.mxu1 %v3424_v18  ;;  %3584 = vmatpush.msra.mxu3 %v13906_v38  ;;  %v14068_v15 = vsub.f32 %v633_v39, %v14040_v52 }
 0x1e4   : > { %6640 = vrot.lane.b32.xlu2 %v13849_v17, %s11661_s12  ;;  %3390 = vmatpush.msra.mxu0 %v13921_v0  ;;  %v3453_v17 = vsub.f32 %v13950_v42, %v18484_v25  ;;  %v3460_v41 = vand.u32 4294901760, %v3459_v46  ;;  %v617_v46 = vld [vmem:[#allocation11 + $0x720] sm:$0xff] }
 0x1e5   : > { %3431 = vmatpush.msra.mxu1 %v3430_v23  ;;  %3535 = vmatpush.msra.mxu2 %v13929_v49  ;;  %v3471_v23 = vsub.f32 %v13985_v61, %v18482_v34  ;;  %v393_v34 = vld [vmem:[#allocation11 + $0x20] sm:$0xff]  ;;  %18898 = vst [vmem:[#allocation33_spill] sm:$0xff] %v14068_v15  ;;  %v18904_v21 = vand.u32 4294901760, %v14068_v15 }
 0x1e6   : > { %3586 = vmatpush.msra.mxu3 %v13921_v0  ;;  %3392 = vmatpush.msra.mxu0 %v13936_v48  ;;  %v3454_v18 = vand.u32 4294901760, %v3453_v17  ;;  %v401_v17 = vld [vmem:[#allocation11 + $0x60] sm:$0xff] }
 0x1e7   : > { %3437 = vmatpush.msra.mxu1 %v3436_v10  ;;  %3538 = vmatpush.msra.mxu2 %v13950_v42  ;;  %v625_v10 = vld [vmem:[#allocation11 + $0x760] sm:$0xff]  ;;  %v14059_v25 = vand.u32 4294901760, %v401_v17 }
 0x1e8   : > { %3588 = vmatpush.msra.mxu3 %v13936_v48  ;;  %3394 = vmatpush.msra.mxu0 %v13952_v6  ;;  %v14052_v37 = vand.u32 4294901760, %v625_v10 }
 0x1e9   : > { %3443 = vmatpush.msra.mxu1 %v3442_v35  ;;  %3541 = vmatpush.msra.mxu2 %v13965_v43  ;;  %v14037_v35 = vsub.f32 %v417_v4, %v14015_v19  ;;  %v3466_v4 = vand.u32 4294901760, %v3465_v30  ;;  %18897 = vst [vmem:[#allocation20_spill] sm:$0xff] %v14059_v25  ;;  %v14090_v50 = vsub.f32 %v401_v17, %v14059_v25  ;;  %v593_v30 = vld [vmem:[#allocation11 + $0x660] sm:$0xff] }
 0x1ea   : > { %3590 = vmatpush.msra.mxu3 %v13952_v6  ;;  %3396 = vmatpush.msra.mxu0 %v13959_v22  ;;  %v14082_v39 = vsub.f32 %v625_v10, %v14052_v37 }
 0x1eb   : > { %3449 = vmatpush.msra.mxu1 %v3448_v33  ;;  %3544 = vmatpush.msra.mxu2 %v13975_v55  ;;  %v18489_v33 = vand.u32 4294901760, %v14013_v29 }
 0x1ec   : > { %3592 = vmatpush.msra.mxu3 %v13959_v22  ;;  %6642 = vrot.lane.b32.xlu2 %v13851_v3, %s11661_s12  ;;  %v14049_v3 = vsub.f32 %v641_v36, %v14018_v44  ;;  %v18494_v36 = vand.u32 4294901760, %v14030_v8  ;;  %18900 = vst [vmem:[#allocation34_spill] sm:$0xff] %v14082_v39 }
 0x1ed   : > { %6757 = vrot.lane.b32.xlu1 %v13883_v51, %s11662_s10  ;;  %6755 = vrot.lane.b32.xlu0 %v13885_v47, %s11662_s10  ;;  %v3472_v51 = vand.u32 4294901760, %v3471_v23  ;;  %v3477_v47 = vsub.f32 %v14002_v14, %v18487_v9  ;;  %v14070_v23 = vand.u32 4294901760, %v617_v46  ;;  %v14075_v9 = vsub.f32 %v409_v20, %v14046_v32 }
 0x1ee   : > { %3398 = vmatpush.msra.mxu0 %v13982_v59  ;;  %3455 = vmatpush.msra.mxu1 %v3454_v18  ;;  %v3483_v18 = vsub.f32 %v14013_v29, %v18489_v33  ;;  %v601_v33 = vld [vmem:[#allocation11 + $0x6a0] sm:$0xff]  ;;  %v3489_v20 = vsub.f32 %v14030_v8, %v18494_v36  ;;  %v18903_v17 = vand.u32 4294901760, %v14049_v3 }
 0x1ef   : > { %3547 = vmatpush.msra.mxu2 %v13985_v61  ;;  %3594 = vmatpush.msra.mxu3 %v13982_v59  ;;  %v3478_v54 = vand.u32 4294901760, %v3477_v47  ;;  %v14100_v7 = vsub.f32 %v617_v46, %v14070_v23  ;;  %v14111_v13 = vand.u32 4294901760, %v601_v33  ;;  %v14117_v47 = vand.u32 4294901760, %v593_v30 }
 0x1f0   : > { %3400 = vmatpush.msra.mxu0 %v13990_v40  ;;  %3461 = vmatpush.msra.mxu1 %v3460_v41  ;;  %v14077_v41 = vand.u32 4294901760, %v393_v34  ;;  %v3484_v10 = vand.u32 4294901760, %v3483_v18  ;;  %v3764_v36 = vsub.f32 %v14049_v3, %v18903_v17  ;;  %v14122_v18 = vsub.f32 %v609_v45, %v14092_v26 }
 0x1f1   : > { %3550 = vmatpush.msra.mxu2 %v14002_v14  ;;  %3596 = vmatpush.msra.mxu3 %v13990_v40  ;;  %18902 = vst [vmem:[#allocation22_spill] sm:$0xff] %v14100_v7  ;;  %v3770_v46 = vsub.f32 %v14068_v15, %v18904_v21  ;;  %v18905_v45 = vand.u32 4294901760, %v14075_v9  ;;  %v18906_v21 = vand.u32 4294901760, %v14082_v39  ;;  %v14146_v62 = vsub.f32 %v593_v30, %v14117_v47 }
 0x1f2   : > { %18899 = vst [vmem:[#allocation23_spill] sm:$0xff] %v14077_v41  ;;  %3402 = vmatpush.msra.mxu0 %v14004_v60  ;;  %3467 = vmatpush.msra.mxu1 %v3466_v4  ;;  %v18901_v4 = vand.u32 4294901760, %v14037_v35  ;;  %v18908_v15 = vand.u32 4294901760, %v13881_v2 }
 0x1f3   : > { %3553 = vmatpush.msra.mxu2 %v14013_v29  ;;  %3598 = vmatpush.msra.mxu3 %v14004_v60  ;;  %v3501_v17 = vsub.f32 %v14075_v9, %v18905_v45  ;;  %v18907_v45 = vand.u32 4294901760, %v14090_v50  ;;  %v3771_v30 = vand.u32 4294901760, %v3770_v46  ;;  %v553_v46 = vld [vmem:[#allocation11 + $0x520] sm:$0xff] }
 0x1f4   : > { %3404 = vmatpush.msra.mxu0 %v14015_v19  ;;  %3473 = vmatpush.msra.mxu1 %v3472_v51  ;;  %v3495_v11 = vsub.f32 %v14037_v35, %v18901_v4  ;;  %v14108_v51 = vsub.f32 %v393_v34, %v14077_v41  ;;  %v585_v4 = vld [vmem:[#allocation11 + $0x620] sm:$0xff]  ;;  %v3490_v34 = vand.u32 4294901760, %v3489_v20  ;;  %v3765_v20 = vand.u32 4294901760, %v3764_v36 }
 0x1f5   : > { %3556 = vmatpush.msra.mxu2 %v14030_v8  ;;  %3600 = vmatpush.msra.mxu3 %v14015_v19  ;;  %v569_v36 = vld [vmem:[#allocation11 + $0x5a0] sm:$0xff] }
 0x1f6   : > { %6846 = vrot.lane.b32.xlu1 %v13932_v56, %s11663_s7  ;;  %3406 = vmatpush.msra.mxu0 %v14046_v32  ;;  %v3496_v56 = vand.u32 4294901760, %v3495_v11  ;;  %v14138_v11 = vsub.f32 %v601_v33, %v14111_v13  ;;  %v3507_v33 = vsub.f32 %v14090_v50, %v18907_v45  ;;  %v561_v19 = vld [vmem:[#allocation11 + $0x560] sm:$0xff]  ;;  %v3502_v45 = vand.u32 4294901760, %v3501_v17 }
 0x1f7   : > { %3479 = vmatpush.msra.mxu1 %v3478_v54  ;;  %3559 = vmatpush.msra.mxu2 %v14037_v35  ;;  %v14130_v54 = vand.u32 4294901760, %v585_v4  ;;  %v18911_v17 = vand.u32 4294901760, %v13894_v5  ;;  %v18913_v5 = vand.u32 4294901760, %v13904_v63  ;;  %v18916_v63 = vand.u32 4294901760, %v13915_v53 }
 0x1f8   : > { %3602 = vmatpush.msra.mxu3 %v14046_v32  ;;  %3408 = vmatpush.msra.mxu0 %v14059_v25  ;;  %v18910_v32 = vand.u32 4294901760, %v14108_v51  ;;  %v18917_v53 = vand.u32 4294901760, %v13929_v49 }
 0x1f9   : > { %3485 = vmatpush.msra.mxu1 %v3484_v10  ;;  %3562 = vmatpush.msra.mxu2 %v14075_v9  ;;  %v3776_v10 = vsub.f32 %v14082_v39, %v18906_v21  ;;  %v6945_v21 = vld.sshfl [vmem:[#allocation1] sm:$0xff pattern:$0x75316420]  ;;  %v18909_v39 = vand.u32 4294901760, %v14100_v7  ;;  %v14162_v57 = vsub.f32 %v585_v4, %v14130_v54  ;;  %v14195_v4 = vand.u32 4294901760, %v553_v46 }
 0x1fa   : > { %3604 = vmatpush.msra.mxu3 %v14059_v25  ;;  %3410 = vmatpush.msra.mxu0 %v14077_v41  ;;  %v14153_v25 = vand.u32 4294901760, %v577_v28 }
 0x1fb   : > { %3491 = vmatpush.msra.mxu1 %v3490_v34  ;;  %3565 = vmatpush.msra.mxu2 %v14090_v50  ;;  %v3782_v34 = vsub.f32 %v14100_v7, %v18909_v39  ;;  %v3777_v39 = vand.u32 4294901760, %v3776_v10  ;;  %v14183_v7 = vand.u32 4294901760, %v561_v19  ;;  %v18507_v10 = vand.u32 4294901760, %v14162_v57 }
 0x1fc   : > { %3606 = vmatpush.msra.mxu3 %v14077_v41  ;;  %3617 = vmatpush.msrb.mxu0 %v18908_v15  ;;  %v3513_v41 = vsub.f32 %v14108_v51, %v18910_v32  ;;  %v14168_v15 = vand.u32 4294901760, %v569_v36  ;;  %v3508_v32 = vand.u32 4294901760, %v3507_v33  ;;  %v14181_v2 = vsub.f32 %v577_v28, %v14153_v25 }
 0x1fd   : > { %3497 = vmatpush.msra.mxu1 %v3496_v56  ;;  %3568 = vmatpush.msra.mxu2 %v14108_v51  ;;  %v18912_v56 = vand.u32 4294901760, %v14122_v18 }
 0x1fe   : > { %3766 = vmatpush.msrb.mxu3 %v3765_v20  ;;  %6848 = vrot.lane.b32.xlu1 %v13938_v27, %s11663_s7  ;;  %v3783_v27 = vand.u32 4294901760, %v3782_v34  ;;  %v3514_v33 = vand.u32 4294901760, %v3513_v41  ;;  %v14193_v28 = vsub.f32 %v569_v36, %v14168_v15  ;;  %v14205_v36 = vsub.f32 %v561_v19, %v14183_v7 }
 0x1ff   : > { %6961 = vrot.lane.b32.xlu0 %v6945_v21, %s11664_s25  ;;  %3621 = vmatpush.msrb.mxu0 %v18911_v17  ;;  %v3788_v20 = vsub.f32 %v14122_v18, %v18912_v56  ;;  %v545_v21 = vld [vmem:[#allocation11 + $0x4e0] sm:$0xff]  ;;  %v18914_v17 = vand.u32 4294901760, %v14138_v11  ;;  %v14217_v19 = vsub.f32 %v553_v46, %v14195_v4  ;;  %v18918_v49 = vand.u32 4294901760, %v14181_v2 }
 0x200   : > { %3721 = vmatpush.msrb.mxu2 %v14018_v44  ;;  %3772 = vmatpush.msrb.mxu3 %v3771_v30  ;;  %v18915_v30 = vand.u32 4294901760, %v14146_v62 }
 0x201   : > { %3503 = vmatpush.msra.mxu1 %v3502_v45  ;;  %3625 = vmatpush.msrb.mxu0 %v18913_v5  ;;  %v3794_v56 = vsub.f32 %v14138_v11, %v18914_v17  ;;  %v537_v45 = vld [vmem:[#allocation11 + $0x4a0] sm:$0xff]  ;;  %v3789_v41 = vand.u32 4294901760, %v3788_v20  ;;  %v14207_v17 = vand.u32 4294901760, %v545_v21  ;;  %v3817_v20 = vand.u32 4294901760, %v14193_v28 }
 0x202   : > { %3723 = vmatpush.msrb.mxu2 %v14040_v52  ;;  %3778 = vmatpush.msrb.mxu3 %v3777_v39  ;;  %v3800_v34 = vsub.f32 %v14146_v62, %v18915_v30  ;;  %v3806_v39 = vsub.f32 %v14162_v57, %v18507_v10  ;;  %v529_v30 = vld [vmem:[#allocation11 + $0x460] sm:$0xff] }
 0x203   : > { %3509 = vmatpush.msra.mxu1 %v3508_v32  ;;  %3629 = vmatpush.msrb.mxu0 %v18916_v63  ;;  %v3795_v32 = vand.u32 4294901760, %v3794_v56  ;;  %v14219_v63 = vand.u32 4294901760, %v537_v45  ;;  %v521_v10 = vld [vmem:[#allocation11 + $0x420] sm:$0xff]  ;;  %v3823_v56 = vand.u32 4294901760, %v14205_v36  ;;  %v14229_v46 = vsub.f32 %v545_v21, %v14207_v17 }
 0x204   : > { %3725 = vmatpush.msrb.mxu2 %v14052_v37  ;;  %3784 = vmatpush.msrb.mxu3 %v3783_v27  ;;  %v6946_v27 = vld.sshfl [vmem:[#allocation1 + $0x8] sm:$0xff pattern:$0x75316420]  ;;  %v3801_v5 = vand.u32 4294901760, %v3800_v34  ;;  %v3807_v34 = vand.u32 4294901760, %v3806_v39 }
 0x205   : > { %3515 = vmatpush.msra.mxu1 %v3514_v33  ;;  %3633 = vmatpush.msrb.mxu0 %v18917_v53  ;;  %v3812_v33 = vsub.f32 %v14181_v2, %v18918_v49  ;;  %v14231_v53 = vand.u32 4294901760, %v529_v30  ;;  %v14242_v21 = vsub.f32 %v537_v45, %v14219_v63  ;;  %v14244_v49 = vand.u32 4294901760, %v521_v10 }
 0x206   : > { %3727 = vmatpush.msrb.mxu2 %v14070_v23  ;;  %3790 = vmatpush.msrb.mxu3 %v3789_v41  ;;  %v3818_v41 = vsub.f32 %v14193_v28, %v3817_v20  ;;  %v3824_v39 = vsub.f32 %v14205_v36, %v3823_v56 }
 0x207   : > { %3684 = vmatpush.msrb.mxu1 %v13864_v58  ;;  %6963 = vrot.lane.b32.xlu0 %v6946_v27, %s11664_s25  ;;  %v18919_v58 = vand.u32 4294901760, %v13950_v42  ;;  %v3829_v27 = vand.u32 4294901760, %v14217_v19  ;;  %v18920_v42 = vand.u32 4294901760, %v13965_v43  ;;  %v14255_v45 = vsub.f32 %v529_v30, %v14231_v53 }
 0x208   : > { %3729 = vmatpush.msrb.mxu2 %v14092_v26  ;;  %3796 = vmatpush.msrb.mxu3 %v3795_v32  ;;  %v3835_v32 = vand.u32 4294901760, %v14229_v46  ;;  %v18922_v30 = vand.u32 4294901760, %v13985_v61 }
 0x209   : > { %3637 = vmatpush.msrb.mxu0 %v18919_v58  ;;  %3686 = vmatpush.msrb.mxu1 %v13871_v12  ;;  %v3813_v12 = vand.u32 4294901760, %v3812_v33  ;;  %v18921_v58 = vand.u32 4294901760, %v13975_v55  ;;  %v3830_v43 = vsub.f32 %v14217_v19, %v3829_v27  ;;  %v14266_v33 = vsub.f32 %v521_v10, %v14244_v49 }
 0x20a   : > { %3731 = vmatpush.msrb.mxu2 %v14111_v13  ;;  %3802 = vmatpush.msrb.mxu3 %v3801_v5  ;;  %v3841_v5 = vand.u32 4294901760, %v14242_v21  ;;  %v3836_v55 = vsub.f32 %v14229_v46, %v3835_v32 }
 0x20b   : > { %3641 = vmatpush.msrb.mxu0 %v18920_v42  ;;  %3688 = vmatpush.msrb.mxu1 %v13876_v24  ;;  %v3819_v24 = vand.u32 4294901760, %v3818_v41  ;;  %v18923_v41 = vand.u32 4294901760, %v14002_v14  ;;  %v3831_v61 = vand.u32 4294901760, %v3830_v43  ;;  %v3853_v10 = vand.u32 4294901760, %v14266_v33 }
 0x20c   : > { %3733 = vmatpush.msrb.mxu2 %v14117_v47  ;;  %3808 = vmatpush.msrb.mxu3 %v3807_v34  ;;  %v3847_v34 = vand.u32 4294901760, %v14255_v45  ;;  %v18924_v42 = vand.u32 4294901760, %v14013_v29  ;;  %v3837_v14 = vand.u32 4294901760, %v3836_v55 }
 0x20d   : > { %3645 = vmatpush.msrb.mxu0 %v18921_v58  ;;  %3690 = vmatpush.msrb.mxu1 %v13896_v1  ;;  %v3825_v1 = vand.u32 4294901760, %v3824_v39  ;;  %v18926_v39 = vand.u32 4294901760, %v14037_v35  ;;  %v18929_v35 = vand.u32 4294901760, %v14090_v50  ;;  %v18932_v50 = vld [vmem:[#allocation31_spill] sm:$0xff] }
 0x20e   : > { %3735 = vmatpush.msrb.mxu2 %v14130_v54  ;;  %3814 = vmatpush.msrb.mxu3 %v3813_v12  ;;  %v18925_v12 = vand.u32 4294901760, %v14030_v8  ;;  %v14302_v8 = vpop.permute.xlu2 %6190 }
 0x20f   : > { %3649 = vmatpush.msrb.mxu0 %v18922_v30  ;;  %3692 = vmatpush.msrb.mxu1 %v13906_v38  ;;  %v3842_v38 = vsub.f32 %v14242_v21, %v3841_v5  ;;  %18927 = vst [vmem:[#allocation35_spill] sm:$0xff] %v14302_v8 }
 0x210   : > { %3737 = vmatpush.msrb.mxu2 %v14153_v25  ;;  %3820 = vmatpush.msrb.mxu3 %v3819_v24  ;;  %v6204_v24 = vlaneseq }
 0x211   : > { %3653 = vmatpush.msrb.mxu0 %v18923_v41  ;;  %3694 = vmatpush.msrb.mxu1 %v13921_v0  ;;  %v3848_v0 = vsub.f32 %v14255_v45, %v3847_v34  ;;  %v3843_v29 = vand.u32 4294901760, %v3842_v38  ;;  %v18938_v41 = vld [vmem:[#allocation19_spill] sm:$0xff] }
 0x212   : > { %3739 = vmatpush.msrb.mxu2 %v14168_v15  ;;  %3826 = vmatpush.msrb.mxu3 %v3825_v1  ;;  %v18936_v1 = vand.u32 4294901760, %v14049_v3 }
 0x213   : > { %3657 = vmatpush.msrb.mxu0 %v18924_v42  ;;  %3696 = vmatpush.msrb.mxu1 %v13936_v48  ;;  %v3854_v48 = vsub.f32 %v14266_v33, %v3853_v10  ;;  %v3849_v58 = vand.u32 4294901760, %v3848_v0  ;;  %v18942_v0 = vld [vmem:[#allocation22_spill] sm:$0xff] }
 0x214   : > { %3741 = vmatpush.msrb.mxu2 %v14183_v7  ;;  %3832 = vmatpush.msrb.mxu3 %v3831_v61  ;;  %v18939_v61 = vld [vmem:[#allocation34_spill] sm:$0xff] }
 0x215   : > { %3661 = vmatpush.msrb.mxu0 %v18925_v12  ;;  %3698 = vmatpush.msrb.mxu1 %v13952_v6  ;;  %v18928_v6 = vand.u32 4294901760, %v14075_v9  ;;  %v3855_v43 = vand.u32 4294901760, %v3854_v48  ;;  %v14315_v9 = vand.u32 127, %v6204_v24  ;;  %v18943_v12 = vld [vmem:[#allocation24_spill] sm:$0xff]  ;;  %v18945_v48 = vld [vmem:[#allocation23_spill] sm:$0xff] }
 0x216   : > { %3743 = vmatpush.msrb.mxu2 %v14195_v4  ;;  %3838 = vmatpush.msrb.mxu3 %v3837_v14  ;;  %v14327_v30 = vpop.permute.xlu2 %6280  ;;  %v18941_v14 = vld [vmem:[#allocation20_spill] sm:$0xff] }
 0x217   : > { %3665 = vmatpush.msrb.mxu0 %v18926_v39  ;;  %3700 = vmatpush.msrb.mxu1 %v13959_v22  ;;  %v18930_v22 = vand.u32 4294901760, %v14108_v51  ;;  %18931 = vst [vmem:[#allocation21_spill] sm:$0xff] %v14315_v9  ;;  %vm6206_vm3 = vcmp.lt.s32.totalorder %v14315_v9, 33  ;;  %v18934_v51 = vld [vmem:[#allocation33_spill] sm:$0xff]  ;;  %v2154_v39 = vpop.f32.mrf.mxu1  ;;  %vm6296_vm4 = vcmp.lt.s32.totalorder %v14315_v9, 32  ;;  %vm6502_vm5 = vcmp.lt.s32.totalorder %v14315_v9, 1 }
 0x218   : > { %3745 = vmatpush.msrb.mxu2 %v14207_v17  ;;  %3844 = vmatpush.msrb.mxu3 %v3843_v29  ;;  %18935 = vst [vmem:[#allocation36_spill] sm:$0xff] %v14327_v30  ;;  %v18940_v42 = vand.u32 4294901760, %v18934_v51  ;;  %v18944_v29 = vand.u32 4294901760, %v18939_v61  ;;  %vm6411_vm6 = vcmp.lt.s32.totalorder %v14315_v9, 31  ;;  %vm6656_vm7 = vcmp.lt.s32.totalorder %v14315_v9, 127 }
 0x219   : > { %3669 = vmatpush.msrb.mxu0 %v18928_v6  ;;  %3702 = vmatpush.msrb.mxu1 %v13982_v59  ;;  %v6215_v59 = vld [vmem:[#allocation13] sm:$0xff]  ;;  %v18946_v6 = vand.u32 4294901760, %v18942_v0  ;;  %vm6771_vm8 = vcmp.lt.s32.totalorder %v14315_v9, 97  ;;  %vm6862_vm11 = vcmp.lt.s32.totalorder %v14315_v9, 96  ;;  %vm6977_vm12 = vcmp.lt.s32.totalorder %v14315_v9, 95 }
 0x21a   : > { %3747 = vmatpush.msrb.mxu2 %v14219_v63  ;;  %3850 = vmatpush.msrb.mxu3 %v3849_v58  ;;  %v6306_v58 = vld [vmem:[#allocation13 + $0x8] sm:$0xff] }
 0x21b   : > { %3673 = vmatpush.msrb.mxu0 %v18929_v35  ;;  %3704 = vmatpush.msrb.mxu1 %v13990_v40  ;;  %v6218_v40 = vperm.slane %v6215_v59, 1  ;;  %v18948_v35 = vld [vmem:[#allocation18_spill] sm:$0xff]  ;;  %v2208_v59 = vpop.f32.mrf.mxu2 }
 0x21c   : > { %3749 = vmatpush.msrb.mxu2 %v14231_v53  ;;  %3856 = vmatpush.msrb.mxu3 %v3855_v43  ;;  %v2053_v43 = vpop.f32.mrf.mxu0 }
 0x21d   : > { %3677 = vmatpush.msrb.mxu0 %v18930_v22  ;;  %3706 = vmatpush.msrb.mxu1 %v14004_v60  ;;  %v18933_v60 = vld [vmem:[#allocation25_spill] sm:$0xff]  ;;  %v18949_v22 = vand.u32 4294901760, %v14122_v18 }
 0x21e   : > { %3416 = vmatmul.f32.vlgmr.msra.gmra.mxu0 %v18869_v16  ;;  %3610 = vmatmul.f32.vlgmr.msra.gmra.mxu3 %v18870_v31  ;;  %v578_v16 = vld [vmem:[#allocation11 + $0x5e8] sm:$0xff] }
 0x21f   : > { %3864 = vmatpush.msra.mxu0 %v14049_v3  ;;  %4025 = vmatpush.msra.mxu3 %v14018_v44 }
 0x220   : > { %3708 = vmatpush.msrb.mxu1 %v18932_v50  ;;  %3751 = vmatpush.msrb.mxu2 %v14244_v49  ;;  %v18950_v50 = vld [vmem:[#allocation27_spill] sm:$0xff] }
 0x221   : > { %3571 = vmatmul.f32.vlgmr.msra.gmra.mxu2 %v18933_v60  ;;  %3867 = vmatpush.msra.mxu0 %v18934_v51  ;;  %v6512_v51 = vld [vmem:[#allocation13 + $0x18] sm:$0xff] }
 0x222   : > { %3958 = vmatpush.msra.mxu2 %v18936_v1  ;;  %4027 = vmatpush.msra.mxu3 %v14040_v52  ;;  %v14332_v55 = vpop.permute.xlu1 %6188 }
 0x223   : > { %18937 = vst [vmem:[#allocation32_spill] sm:$0xff] %v14332_v55  ;;  %3710 = vmatpush.msrb.mxu1 %v18938_v41  ;;  %3870 = vmatpush.msra.mxu0 %v18939_v61  ;;  %v6213_v38 = vsel %vm6206_vm3, %v14332_v55, %v14302_v8  ;;  %v2247_v41 = vpop.f32.mrf.mxu3  ;;  %v6515_v61 = vperm.slane %v6512_v51, 1 }
 0x224   : > { %3962 = vmatpush.msra.mxu2 %v18940_v42  ;;  %4029 = vmatpush.msra.mxu3 %v14052_v37  ;;  %v6234_v3 = vmul.f32 %v6218_v40, %v6213_v38  ;;  %v2155_v38 = vadd.f32 %v2154_v39, %v2053_v43  ;;  %v14384_v42 = vpop.f32.mrf.mxu1 }
 0x225   : > { %3712 = vmatpush.msrb.mxu1 %v18941_v14  ;;  %3873 = vmatpush.msra.mxu0 %v18942_v0  ;;  %v514_v0 = vld [vmem:[#allocation11 + $0x3e8] sm:$0xff] }
 0x226   : > { %3517 = vmatmul.f32.vlgmr.msra.gmra.mxu1 %v18943_v12  ;;  %3966 = vmatpush.msra.mxu2 %v18944_v29  ;;  %6242 = vst [vmem:[#allocation3 + $0xd0] sm:$0xf] %v6234_v3  ;;  %v18954_v3 = vand.u32 4294901760, %v14162_v57  ;;  %v2209_v29 = vadd.f32 %v2208_v59, %v2155_v38  ;;  %v14409_v39 = vand.u32 4294901760, %v514_v0 }
 0x227   : > { %4031 = vmatpush.msra.mxu3 %v14070_v23  ;;  %3714 = vmatpush.msrb.mxu1 %v18945_v48  ;;  %v14402_v48 = vpop.f32.mrf.mxu2 }
 0x228   : > { %3876 = vmatpush.msra.mxu0 %v14122_v18  ;;  %3970 = vmatpush.msra.mxu2 %v18946_v6 }
 0x229   : > { %3917 = vmatpush.msra.mxu1 %v14018_v44  ;;  %4033 = vmatpush.msra.mxu3 %v14092_v26  ;;  %v14355_v24 = vpop.permute.xlu2 %6486  ;;  %v6309_v44 = vperm.slane %v6306_v58, 1 }
 0x22a   : > { %18947 = vst [vmem:[#allocation31_spill] sm:$0xff] %v14355_v24  ;;  %3757 = vmatmul.f32.vlgmr.msrb.gmra.mxu2 %v18948_v35  ;;  %3879 = vmatpush.msra.mxu0 %v14138_v11 }
 0x22b   : > { %3919 = vmatpush.msra.mxu1 %v14040_v52  ;;  %3974 = vmatpush.msra.mxu2 %v18949_v22  ;;  %v18952_v52 = vand.u32 4294901760, %v14138_v11 }
 0x22c   : > { %4035 = vmatpush.msra.mxu3 %v14111_v13  ;;  %3679 = vmatmul.f32.vlgmr.msrb.gmra.mxu0 %v18943_v12  ;;  %v14420_v6 = vpop.f32.mrf.mxu1 }
 0x22d   : > { %3858 = vmatmul.f32.vlgmr.msrb.gmra.mxu3 %v18950_v50  ;;  %3882 = vmatpush.msra.mxu0 %v14146_v62  ;;  %v14367_v40 = vpop.permute.xlu0 %6282 }
 0x22e   : > { %18951 = vst [vmem:[#allocation33_spill] sm:$0xff] %v14367_v40  ;;  %3921 = vmatpush.msra.mxu1 %v14052_v37  ;;  %3978 = vmatpush.msra.mxu2 %v18952_v52  ;;  %v6303_v18 = vsel %vm6296_vm4, %v14327_v30, %v14367_v40  ;;  %v18953_v37 = vand.u32 4294901760, %v14146_v62 }
 0x22f   : > { %4037 = vmatpush.msra.mxu3 %v14117_v47  ;;  %3716 = vmatmul.f32.vlgmr.msrb.gmra.mxu1 %v18943_v12  ;;  %v6325_v1 = vmul.f32 %v6309_v44, %v6303_v18  ;;  %v14441_v44 = vpop.f32.mrf.mxu2  ;;  %v474_v18 = vld [vmem:[#allocation11 + $0x2a8] sm:$0xff] }
 0x230   : > { %3885 = vmatpush.msra.mxu0 %v14162_v57  ;;  %3923 = vmatpush.msra.mxu1 %v14070_v23  ;;  %v2316_v23 = vpop.f32.mrf.mxu0 }
 0x231   : > { %3982 = vmatpush.msra.mxu2 %v18953_v37  ;;  %4039 = vmatpush.msra.mxu3 %v14130_v54  ;;  %v6341_v11 = vrot.slane %v6325_v1, 4  ;;  %v6666_v1 = vld [vmem:[#allocation13 + $0x28] sm:$0xff]  ;;  %v18960_v37 = vld [vmem:[#allocation29_spill] sm:$0xff] }
 0x232   : > { %3888 = vmatpush.msra.mxu0 %v14181_v2  ;;  %3925 = vmatpush.msra.mxu1 %v14092_v26  ;;  %v14391_v62 = vpop.permute.xlu2 %6488  ;;  %v18956_v26 = vand.u32 4294901760, %v14181_v2  ;;  %v506_v2 = vld [vmem:[#allocation11 + $0x3a8] sm:$0xff] }
 0x233   : > { %3986 = vmatpush.msra.mxu2 %v18954_v3  ;;  %4041 = vmatpush.msra.mxu3 %v14153_v25  ;;  %6357 = vst [vmem:[#allocation3 + $0xd0] sm:$0xf0] %v6341_v11  ;;  %v6509_v14 = vsel %vm6502_vm5, %v14355_v24, %v14391_v62 }
 0x234   : > { %18955 = vst [vmem:[#allocation19_spill] sm:$0xff] %v14391_v62  ;;  %3891 = vmatpush.msra.mxu0 %v14193_v28  ;;  %3927 = vmatpush.msra.mxu1 %v14111_v13  ;;  %v6531_v57 = vmul.f32 %v6515_v61, %v6509_v14  ;;  %v2248_v28 = vadd.f32 %v2247_v41, %v2209_v29  ;;  %v14478_v61 = vand.u32 4294901760, %v474_v18 }
 0x235   : > { %3990 = vmatpush.msra.mxu2 %v18956_v26  ;;  %4043 = vmatpush.msra.mxu3 %v14168_v15  ;;  %v458_v26 = vld [vmem:[#allocation11 + $0x228] sm:$0xff] }
 0x236   : > { %3894 = vmatpush.msra.mxu0 %v14205_v36  ;;  %3929 = vmatpush.msra.mxu1 %v14117_v47  ;;  %v6547_v13 = vrot.slane %v6531_v57, 4  ;;  %v498_v47 = vld [vmem:[#allocation11 + $0x368] sm:$0xff]  ;;  %v14430_v36 = vsub.f32 %v514_v0, %v14409_v39  ;;  %v2836_v11 = vpop.f32.mrf.mxu1  ;;  %v6668_v0 = vperm.slane %v6666_v1, 0 }
 0x237   : > { %3994 = vmatpush.msra.mxu2 %v3817_v20  ;;  %4045 = vmatpush.msra.mxu3 %v14183_v7  ;;  %v14418_v20 = vpop.f32.mrf.mxu3  ;;  %v14436_v22 = vand.u32 4294901760, %v498_v47  ;;  %v2890_v29 = vpop.f32.mrf.mxu2  ;;  %v426_v1 = vld [vmem:[#allocation11 + $0x128] sm:$0xff] }
 0x238   : > { %3897 = vmatpush.msra.mxu0 %v14217_v19  ;;  %3931 = vmatpush.msra.mxu1 %v14130_v54  ;;  %v14413_v58 = vpop.permute.xlu1 %6395  ;;  %6563 = vst [vmem:[#allocation3 + $0x108] sm:$0xf0] %v6547_v13  ;;  %v14427_v54 = vand.u32 4294901760, %v506_v2  ;;  %v14432_v43 = vpop.f32.mrf.mxu0  ;;  %v482_v19 = vld [vmem:[#allocation11 + $0x2e8] sm:$0xff]  ;;  %v18510_v52 = vand.u32 4294901760, %v14430_v36  ;;  %v14507_v13 = vsub.f32 %v474_v18, %v14478_v61 }
 0x239   : > { %18957 = vst [vmem:[#allocation34_spill] sm:$0xff] %v14413_v58  ;;  %3998 = vmatpush.msra.mxu2 %v3823_v56  ;;  %4047 = vmatpush.msra.mxu3 %v14195_v4  ;;  %v6421_v56 = vld [vmem:[#allocation13 + $0x10] sm:$0xff]  ;;  %v14462_v51 = vand.u32 4294901760, %v482_v19 }
 0x23a   : > { %3900 = vmatpush.msra.mxu0 %v14229_v46  ;;  %3933 = vmatpush.msra.mxu1 %v14153_v25  ;;  %v490_v25 = vld [vmem:[#allocation11 + $0x328] sm:$0xff]  ;;  %v14452_v46 = vsub.f32 %v506_v2, %v14427_v54  ;;  %v14485_v38 = vsub.f32 %v14430_v36, %v18510_v52 }
 0x23b   : > { %4002 = vmatpush.msra.mxu2 %v3829_v27  ;;  %4049 = vmatpush.msra.mxu3 %v14207_v17  ;;  %v2317_v27 = vadd.f32 %v2316_v23, %v2248_v28  ;;  %v14495_v14 = vsub.f32 %v482_v19, %v14462_v51  ;;  %v442_v28 = vld [vmem:[#allocation11 + $0x1a8] sm:$0xff] }
 0x23c   : > { %3903 = vmatpush.msra.mxu0 %v14242_v21  ;;  %3935 = vmatpush.msra.mxu1 %v14168_v15  ;;  %v6424_v15 = vperm.slane %v6421_v56, 1  ;;  %v18509_v3 = vand.u32 4294901760, %v14452_v46  ;;  %v14520_v56 = vand.u32 4294901760, %v458_v26  ;;  %v434_v19 = vld [vmem:[#allocation11 + $0x168] sm:$0xff] }
 0x23d   : > { %4006 = vmatpush.msra.mxu2 %v3835_v32  ;;  %4051 = vmatpush.msra.mxu3 %v14219_v63  ;;  %v14454_v32 = vand.u32 4294901760, %v490_v25  ;;  %v18966_v52 = vld [vmem:[#allocation30_spill] sm:$0xff] }
 0x23e   : > { %3906 = vmatpush.msra.mxu0 %v14255_v45  ;;  %3937 = vmatpush.msra.mxu1 %v14183_v7  ;;  %v14445_v59 = vpop.permute.xlu2 %6640  ;;  %v14460_v7 = vsub.f32 %v498_v47, %v14436_v22  ;;  %v466_v45 = vld [vmem:[#allocation11 + $0x268] sm:$0xff] }
 0x23f   : > { %18958 = vst [vmem:[#allocation20_spill] sm:$0xff] %v14445_v59  ;;  %4010 = vmatpush.msra.mxu2 %v3841_v5  ;;  %4053 = vmatpush.msra.mxu3 %v14231_v53  ;;  %v14474_v41 = vpop.f32.mrf.mxu3  ;;  %v450_v47 = vld [vmem:[#allocation11 + $0x1e8] sm:$0xff] }
 0x240   : > { %3909 = vmatpush.msra.mxu0 %v14266_v33  ;;  %3939 = vmatpush.msra.mxu1 %v14195_v4  ;;  %v14464_v21 = vpop.permute.xlu1 %6397  ;;  %v2354_v4 = vadd.f32 %v14384_v42, %v2317_v27  ;;  %v14488_v42 = vsub.f32 %v490_v25, %v14454_v32  ;;  %v2735_v23 = vpop.f32.mrf.mxu0  ;;  %v14501_v33 = vand.u32 4294901760, %v466_v45  ;;  %v4106_v27 = vand.u32 4294901760, %v14485_v38  ;;  %v642_v38 = vld [vmem:[#allocation11 + $0x7e8] sm:$0xff] }
 0x241   : > { %18959 = vst [vmem:[#allocation22_spill] sm:$0xff] %v14464_v21  ;;  %4014 = vmatpush.msra.mxu2 %v3847_v34  ;;  %4055 = vmatpush.msra.mxu3 %v14244_v49  ;;  %v6418_v5 = vsel %vm6411_vm6, %v14413_v58, %v14464_v21  ;;  %v2837_v57 = vadd.f32 %v2836_v11, %v2735_v23  ;;  %v3035_v30 = vpop.f32.mrf.mxu1  ;;  %v3076_v8 = vpop.f32.mrf.mxu2 }
 0x242   : > { %3912 = vmatmul.f32.vlgmr.msra.gmra.mxu0 %v18960_v37  ;;  %v6440_v34 = vmul.f32 %v6424_v15, %v6418_v5  ;;  %3941 = vmatpush.msra.mxu1 %v14207_v17  ;;  %v18508_v17 = vand.u32 4294901760, %v14460_v7  ;;  %v18511_v25 = vand.u32 4294901760, %v14488_v42  ;;  %v18512_v5 = vand.u32 4294901760, %v14495_v14 }
 0x243   : > { %4258 = vmatpush.msrb.mxu3 %v14409_v39  ;;  %4062 = vmatpush.msrb.mxu0 %v14409_v39  ;;  %v14533_v11 = vsub.f32 %v466_v45, %v14501_v33 }
 0x244   : > { %4018 = vmatpush.msra.mxu2 %v3853_v10  ;;  %6448 = vst [vmem:[#allocation3 + $0x108] sm:$0xf] %v6440_v34  ;;  %v2395_v10 = vadd.f32 %v14402_v48, %v2354_v4  ;;  %3943 = vmatpush.msra.mxu1 %v14219_v63  ;;  %v4111_v48 = vsub.f32 %v14452_v46, %v18509_v3  ;;  %v14535_v34 = vand.u32 4294901760, %v450_v47  ;;  %v14552_v3 = vand.u32 4294901760, %v426_v1 }
 0x245   : > { %4260 = vmatpush.msrb.mxu3 %v14427_v54  ;;  %4064 = vmatpush.msrb.mxu0 %v14427_v54  ;;  %v4117_v15 = vsub.f32 %v14460_v7, %v18508_v17  ;;  %v2891_v4 = vadd.f32 %v2890_v29, %v2837_v57  ;;  %v14542_v17 = vand.u32 4294901760, %v434_v19  ;;  %v4123_v57 = vsub.f32 %v14488_v42, %v18511_v25 }
 0x246   : > { %4205 = vmatpush.msrb.mxu2 %v14430_v36  ;;  %v14509_v2 = vpop.permute.xlu2 %6642  ;;  %3945 = vmatpush.msra.mxu1 %v14231_v53  ;;  %18962 = vst [vmem:[#allocation38_spill] sm:$0xff] %v14535_v34  ;;  %v14537_v53 = vand.u32 4294901760, %v442_v28  ;;  %v4112_v45 = vand.u32 4294901760, %v4111_v48  ;;  %v14550_v29 = vsub.f32 %v458_v26, %v14520_v56  ;;  %v14560_v48 = vand.u32 4294901760, %v642_v38 }
 0x247   : > { %4020 = vmatmul.f32.vlgmr.msra.gmra.mxu2 %v18950_v50  ;;  %18961 = vst [vmem:[#allocation23_spill] sm:$0xff] %v14509_v2  ;;  %4066 = vmatpush.msrb.mxu0 %v14436_v22  ;;  %v6663_v63 = vsel %vm6656_vm7, %v14445_v59, %v14509_v2  ;;  %v2929_v23 = vpop.f32.mrf.mxu3  ;;  %v14564_v25 = vsub.f32 %v450_v47, %v14535_v34  ;;  %v618_v2 = vld [vmem:[#allocation11 + $0x728] sm:$0xff] }
 0x248   : > { %4208 = vmatpush.msrb.mxu2 %v14452_v46  ;;  %4262 = vmatpush.msrb.mxu3 %v14436_v22  ;;  %v6684_v18 = vmul.f32 %v6668_v0, %v6663_v63  ;;  %18963 = vst [vmem:[#allocation39_spill] sm:$0xff] %v14537_v53  ;;  %v4118_v63 = vand.u32 4294901760, %v4117_v15  ;;  %v2930_v26 = vadd.f32 %v2929_v23, %v2891_v4  ;;  %v418_v15 = vld [vmem:[#allocation11 + $0xe8] sm:$0xff] }
 0x249   : > { %4057 = vmatmul.f32.vlgmr.msra.gmra.mxu3 %v18950_v50  ;;  %4068 = vmatpush.msrb.mxu0 %v14454_v32  ;;  %18964 = vst [vmem:[#allocation40_spill] sm:$0xff] %v14542_v17  ;;  %v14577_v47 = vsub.f32 %v434_v19, %v14542_v17  ;;  %v14587_v59 = vand.u32 4294901760, %v418_v15  ;;  %v410_v19 = vld [vmem:[#allocation11 + $0xa8] sm:$0xff]  ;;  %v14590_v24 = vsub.f32 %v642_v38, %v14560_v48  ;;  %v18974_v55 = vand.u32 4294901760, %v14564_v25 }
 0x24a   : > { %4211 = vmatpush.msrb.mxu2 %v14460_v7  ;;  %4264 = vmatpush.msrb.mxu3 %v14454_v32  ;;  %v6700_v0 = vrot.slane %v6684_v18, 4  ;;  %18965 = vst [vmem:[#allocation41_spill] sm:$0xff] %v14552_v3  ;;  %v2496_v18 = vadd.f32 %v14418_v20, %v2395_v10  ;;  %v14568_v10 = vsub.f32 %v442_v28, %v14537_v53  ;;  %v4124_v28 = vand.u32 4294901760, %v4123_v57  ;;  %v602_v50 = vld [vmem:[#allocation11 + $0x6a8] sm:$0xff] }
 0x24b   : > { %3947 = vmatpush.msra.mxu1 %v14244_v49  ;;  %4070 = vmatpush.msrb.mxu0 %v14462_v51  ;;  %v4129_v49 = vsub.f32 %v14495_v14, %v18512_v5  ;;  %v2998_v5 = vpop.f32.mrf.mxu0  ;;  %18968 = vst [vmem:[#allocation42_spill] sm:$0xff] %v14587_v59  ;;  %v18970_v57 = vand.u32 4294901760, %v14533_v11 }
 0x24c   : > { %3951 = vmatmul.f32.vlgmr.msra.gmra.mxu1 %v18966_v52  ;;  %4214 = vmatpush.msrb.mxu2 %v14488_v42  ;;  %6716 = vst [vmem:[#allocation3 + $0x128] sm:$0xf0] %v6700_v0  ;;  %v2550_v0 = vadd.f32 %v14432_v43, %v2496_v18  ;;  %v14582_v43 = vsub.f32 %v426_v1, %v14552_v3  ;;  %v634_v18 = vld [vmem:[#allocation11 + $0x7a8] sm:$0xff] }
 0x24d   : > { %4107 = vmatpush.msrb.mxu1 %v4106_v27  ;;  %4266 = vmatpush.msrb.mxu3 %v14462_v51  ;;  %v18967_v27 = vand.u32 4294901760, %v14507_v13  ;;  %18969 = vst [vmem:[#allocation43_spill] sm:$0xff] %v14590_v24  ;;  %v2999_v1 = vadd.f32 %v2998_v5, %v2930_v26  ;;  %v14601_v58 = vand.u32 4294901760, %v634_v18  ;;  %v18971_v5 = vand.u32 4294901760, %v14550_v29 }
 0x24e   : > { %4072 = vmatpush.msrb.mxu0 %v14478_v61  ;;  %4217 = vmatpush.msrb.mxu2 %v14495_v14  ;;  %v2589_v20 = vadd.f32 %v14420_v6, %v2550_v0  ;;  %v4141_v6 = vsub.f32 %v14533_v11, %v18970_v57  ;;  %v14607_v57 = vand.u32 4294901760, %v410_v19  ;;  %v394_v0 = vld [vmem:[#allocation11 + $0x28] sm:$0xff]  ;;  %v18980_v52 = vand.u32 4294901760, %v14582_v43 }
 0x24f   : > { %v4135_v4 = vsub.f32 %v14507_v13, %v18967_v27  ;;  %4113 = vmatpush.msrb.mxu1 %v4112_v45  ;;  %4268 = vmatpush.msrb.mxu3 %v14478_v61  ;;  %v4130_v27 = vand.u32 4294901760, %v4129_v49  ;;  %v402_v45 = vld [vmem:[#allocation11 + $0x68] sm:$0xff]  ;;  %v4147_v26 = vsub.f32 %v14550_v29, %v18971_v5  ;;  %v3036_v62 = vadd.f32 %v3035_v30, %v2999_v1  ;;  %v3177_v31 = vpop.f32.mrf.mxu3 }
 0x250   : > { %4074 = vmatpush.msrb.mxu0 %v14501_v33  ;;  %4220 = vmatpush.msrb.mxu2 %v14507_v13  ;;  %v626_v49 = vld [vmem:[#allocation11 + $0x768] sm:$0xff]  ;;  %18972 = vst [vmem:[#allocation44_spill] sm:$0xff] %v14607_v57  ;;  %v14609_v23 = vand.u32 4294901760, %v402_v45  ;;  %v4142_v21 = vand.u32 4294901760, %v4141_v6  ;;  %v18976_v30 = vand.u32 4294901760, %v14577_v47  ;;  %v14637_v1 = vand.u32 4294901760, %v394_v0 }
 0x251   : > { %4119 = vmatpush.msrb.mxu1 %v4118_v63  ;;  %4270 = vmatpush.msrb.mxu3 %v14501_v33  ;;  %v4136_v38 = vand.u32 4294901760, %v4135_v4  ;;  %v2658_v4 = vadd.f32 %v14441_v44, %v2589_v20  ;;  %v14619_v5 = vand.u32 4294901760, %v626_v49  ;;  %v4153_v44 = vsub.f32 %v14564_v25, %v18974_v55 }
 0x252   : > { %4076 = vmatpush.msrb.mxu0 %v14520_v56  ;;  %4223 = vmatpush.msrb.mxu2 %v14533_v11  ;;  %18973 = vst [vmem:[#allocation45_spill] sm:$0xff] %v14609_v23  ;;  %v18975_v20 = vand.u32 4294901760, %v14568_v10  ;;  %v14640_v55 = vsub.f32 %v634_v18, %v14601_v58  ;;  %v14642_v6 = vand.u32 4294901760, %v618_v2  ;;  %v14646_v63 = vsub.f32 %v410_v19, %v14607_v57 }
 0x253   : > { %4125 = vmatpush.msrb.mxu1 %v4124_v28  ;;  %4272 = vmatpush.msrb.mxu3 %v14520_v56  ;;  %v14616_v28 = vsub.f32 %v418_v15, %v14587_v59  ;;  %v610_v15 = vld [vmem:[#allocation11 + $0x6e8] sm:$0xff]  ;;  %18977 = vst [vmem:[#allocation46_spill] sm:$0xff] %v14637_v1  ;;  %v14651_v37 = vsub.f32 %v14582_v43, %v18980_v52  ;;  %v18981_v18 = vand.u32 4294901760, %v14590_v24  ;;  %v4154_v12 = vand.u32 4294901760, %v4153_v44 }
 0x254   : > { %4078 = vmatpush.msrb.mxu0 %v14535_v34  ;;  %4226 = vmatpush.msrb.mxu2 %v14550_v29  ;;  %v14628_v40 = vsub.f32 %v14568_v10, %v18975_v20  ;;  %18978 = vst [vmem:[#allocation47_spill] sm:$0xff] %v14640_v55  ;;  %v4148_v20 = vand.u32 4294901760, %v4147_v26  ;;  %v14665_v26 = vsub.f32 %v626_v49, %v14619_v5  ;;  %v14667_v52 = vand.u32 4294901760, %v610_v15  ;;  %v586_v44 = vld [vmem:[#allocation11 + $0x628] sm:$0xff] }
 0x255   : > { %4131 = vmatpush.msrb.mxu1 %v4130_v27  ;;  %4274 = vmatpush.msrb.mxu3 %v14535_v34  ;;  %v14635_v27 = vsub.f32 %v14577_v47, %v18976_v30  ;;  %18979 = vst [vmem:[#allocation48_spill] sm:$0xff] %v14646_v63  ;;  %v14654_v30 = vsub.f32 %v402_v45, %v14609_v23  ;;  %v18529_v19 = vand.u32 4294901760, %v14616_v28 }
 0x256   : > { %4080 = vmatpush.msrb.mxu0 %v14537_v53  ;;  %4229 = vmatpush.msrb.mxu2 %v14564_v25  ;;  %18982 = vst [vmem:[#allocation49_spill] sm:$0xff] %v14665_v26  ;;  %v14670_v45 = vadd.f32 %v14474_v41, %v2658_v4  ;;  %v3077_v35 = vadd.f32 %v3076_v8, %v3036_v62  ;;  %v4160_v60 = vand.u32 4294901760, %v14628_v40  ;;  %v6781_v8 = vld [vmem:[#allocation13 + $0x30] sm:$0xff]  ;;  %v14683_v62 = vand.u32 4294901760, %v602_v50 }
 0x257   : > { %4137 = vmatpush.msrb.mxu1 %v4136_v38  ;;  %4276 = vmatpush.msrb.mxu3 %v14537_v53  ;;  %v14661_v38 = vsub.f32 %v14590_v24, %v18981_v18  ;;  %v14677_v49 = vsub.f32 %v394_v0, %v14637_v1  ;;  %v14681_v41 = vsub.f32 %v618_v2, %v14642_v6  ;;  %v4166_v40 = vand.u32 4294901760, %v14635_v27  ;;  %v3231_v18 = vpop.f32.mrf.mxu0 }
 0x258   : > { %4082 = vmatpush.msrb.mxu0 %v14542_v17  ;;  %4232 = vmatpush.msrb.mxu2 %v14568_v10  ;;  %v4172_v4 = vand.u32 4294901760, %v14651_v37  ;;  %v14700_v37 = vsub.f32 %v610_v15, %v14667_v52  ;;  %v3178_v24 = vadd.f32 %v3177_v31, %v3077_v35  ;;  %v6783_v0 = vperm.slane %v6781_v8, 0 }
 0x259   : > { %4143 = vmatpush.msrb.mxu1 %v4142_v21  ;;  %4278 = vmatpush.msrb.mxu3 %v14542_v17  ;;  %18983 = vst [vmem:[#allocation50_spill] sm:$0xff] %v14681_v41  ;;  %v594_v21 = vld [vmem:[#allocation11 + $0x668] sm:$0xff]  ;;  %v4447_v2 = vand.u32 4294901760, %v14661_v38  ;;  %v14716_v35 = vsub.f32 %v602_v50, %v14683_v62  ;;  %vm6109_vm9 = vcmp.ge.f32.partialorder %v14670_v45, 0.0  ;;  %v18985_v27 = vand.u32 4294901760, %v14646_v63 }
 0x25a   : > { %4084 = vmatpush.msrb.mxu0 %v14552_v3  ;;  %4235 = vmatpush.msrb.mxu2 %v14577_v47  ;;  %v14704_v38 = vand.u32 4294901760, %v594_v21  ;;  %v3232_v8 = vadd.f32 %v3231_v18, %v3178_v24  ;;  %v14732_v50 = vand.u32 4294901760, %v586_v44  ;;  %v570_v17 = vld [vmem:[#allocation11 + $0x5a8] sm:$0xff] }
 0x25b   : > { %4149 = vmatpush.msrb.mxu1 %v4148_v20  ;;  %4280 = vmatpush.msrb.mxu3 %v14552_v3  ;;  %v14696_v20 = vsub.f32 %v14616_v28, %v18529_v19  ;;  %v18984_v19 = vand.u32 4294901760, %v14640_v55  ;;  %v14744_v3 = vand.u32 4294901760, %v578_v16 }
 0x25c   : > { %4086 = vmatpush.msrb.mxu0 %v14587_v59  ;;  %4238 = vmatpush.msrb.mxu2 %v14582_v43 }
 0x25d   : > { %4155 = vmatpush.msrb.mxu1 %v4154_v12  ;;  %4282 = vmatpush.msrb.mxu3 %v14587_v59  ;;  %v14711_v15 = vsub.f32 %v14640_v55, %v18984_v19  ;;  %v4183_v59 = vsub.f32 %v14646_v63, %v18985_v27  ;;  %v18986_v19 = vand.u32 4294901760, %v14654_v30  ;;  %v4178_v53 = vand.u32 4294901760, %v14696_v20 }
 0x25e   : > { %4088 = vmatpush.msrb.mxu0 %v14607_v57  ;;  %4241 = vmatpush.msrb.mxu2 %v14616_v28 }
 0x25f   : > { %4161 = vmatpush.msrb.mxu1 %v4160_v60  ;;  %4284 = vmatpush.msrb.mxu3 %v14607_v57  ;;  %v14726_v55 = vsub.f32 %v14654_v30, %v18986_v19  ;;  %v14728_v31 = vpop.permute.xlu1 %6757  ;;  %v14730_v12 = vpop.permute.xlu0 %6755  ;;  %v18989_v60 = vand.u32 4294901760, %v14665_v26  ;;  %v4453_v27 = vand.u32 4294901760, %v14711_v15  ;;  %v14763_v15 = vsub.f32 %v586_v44, %v14732_v50 }
 0x260   : > { %18987 = vst [vmem:[#allocation51_spill] sm:$0xff] %v14728_v31  ;;  %4090 = vmatpush.msrb.mxu0 %v14609_v23  ;;  %4244 = vmatpush.msrb.mxu2 %v14646_v63  ;;  %v6778_v18 = vsel %vm6771_vm8, %v14730_v12, %v14728_v31  ;;  %v3270_v19 = vpop.f32.mrf.mxu1  ;;  %v3339_v57 = vpop.f32.mrf.mxu2 }
 0x261   : > { %18988 = vst [vmem:[#allocation52_spill] sm:$0xff] %v14730_v12  ;;  %v4458_v24 = vsub.f32 %v14665_v26, %v18989_v60  ;;  %4167 = vmatpush.msrb.mxu1 %v4166_v40  ;;  %4286 = vmatpush.msrb.mxu3 %v14609_v23  ;;  %v6799_v63 = vmul.f32 %v6783_v0, %v6778_v18  ;;  %v18990_v12 = vand.u32 4294901760, %v14681_v41  ;;  %v18991_v40 = vand.u32 4294901760, %v14677_v49 }
 0x262   : > { %v3271_v34 = vadd.f32 %v3270_v19, %v3232_v8  ;;  %v14749_v60 = vsub.f32 %v594_v21, %v14704_v38  ;;  %4092 = vmatpush.msrb.mxu0 %v14637_v1  ;;  %4247 = vmatpush.msrb.mxu2 %v14654_v30  ;;  %v3376_v20 = vpop.f32.mrf.mxu3  ;;  %v562_v8 = vld [vmem:[#allocation11 + $0x568] sm:$0xff]  ;;  %v4184_v21 = vand.u32 4294901760, %v4183_v59  ;;  %v14765_v19 = vand.u32 4294901760, %v570_v17 }
 0x263   : > { %v4464_v31 = vsub.f32 %v14681_v41, %v18990_v12  ;;  %v4195_v23 = vsub.f32 %v14677_v49, %v18991_v40  ;;  %4173 = vmatpush.msrb.mxu1 %v4172_v4  ;;  %4288 = vmatpush.msrb.mxu3 %v14637_v1  ;;  %6807 = vst [vmem:[#allocation3 + $0xc0] sm:$0xf] %v6799_v63  ;;  %v554_v12 = vld [vmem:[#allocation11 + $0x528] sm:$0xff]  ;;  %v18992_v41 = vld [vmem:[#allocation37_spill] sm:$0xff]  ;;  %v18993_v40 = vand.u32 4294901760, %v14430_v36  ;;  %v4190_v4 = vand.u32 4294901760, %v14726_v55 }
 0x264   : > { %v3340_v18 = vadd.f32 %v3339_v57, %v3271_v34  ;;  %v6118_v26 = vmul.f32 %v18992_v41, %v14670_v45  ;;  %v18994_v0 = vand.u32 4294901760, %v14700_v37  ;;  %v14776_v34 = vsub.f32 %v578_v16, %v14744_v3  ;;  %4250 = vmatpush.msrb.mxu2 %v14677_v49 }
 0x265   : > { %4299 = vmatpush.msra.mxu0 %v18993_v40  ;;  %4448 = vmatpush.msra.mxu3 %v4447_v2  ;;  %v4459_v63 = vand.u32 4294901760, %v4458_v24  ;;  %v18547_v57 = vand.u32 4294901760, %v14749_v60  ;;  %v14780_v1 = vand.u32 4294901760, %v562_v8  ;;  %v18995_v36 = vand.u32 4294901760, %v14452_v46  ;;  %v546_v40 = vld [vmem:[#allocation11 + $0x4e8] sm:$0xff] }
 0x266   : > { %v4470_v59 = vsub.f32 %v14700_v37, %v18994_v0  ;;  %4179 = vmatpush.msrb.mxu1 %v4178_v53  ;;  %v3377_v44 = vadd.f32 %v3376_v20, %v3340_v18  ;;  %4403 = vmatpush.msra.mxu2 %v14560_v48  ;;  %v4465_v55 = vand.u32 4294901760, %v4464_v31  ;;  %v4196_v2 = vand.u32 4294901760, %v4195_v23 }
 0x267   : > { %4303 = vmatpush.msra.mxu0 %v18995_v36  ;;  %v18996_v0 = vand.u32 4294901760, %v14716_v35  ;;  %v14788_v53 = vand.u32 4294901760, %v554_v12  ;;  %4454 = vmatpush.msra.mxu3 %v4453_v27  ;;  %v4487_v20 = vand.u32 4294901760, %v14763_v15  ;;  %v14793_v46 = vsub.f32 %v570_v17, %v14765_v19  ;;  %v538_v27 = vld [vmem:[#allocation11 + $0x4a8] sm:$0xff] }
 0x268   : > { %4185 = vmatpush.msrb.mxu1 %v4184_v21  ;;  %vm6110_vm10 = vcmp.ge.f32.partialorder %v3377_v44, 0.0  ;;  %v6119_v24 = vmul.f32 %v18992_v41, %v3377_v44  ;;  %v18997_v31 = vand.u32 4294901760, %v14460_v7  ;;  %4405 = vmatpush.msra.mxu2 %v14601_v58  ;;  %v4471_v23 = vand.u32 4294901760, %v4470_v59  ;;  %v14798_v18 = vpop.permute.xlu1 %6846 }
 0x269   : > { %v4476_v16 = vsub.f32 %v14716_v35, %v18996_v0  ;;  %18998 = vst [vmem:[#allocation53_spill] sm:$0xff] %v14798_v18  ;;  %v18550_v36 = vand.u32 4294901760, %v14776_v34  ;;  %4460 = vmatpush.msra.mxu3 %v4459_v63  ;;  %v4482_v21 = vsub.f32 %v14749_v60, %v18547_v57  ;;  %v14805_v17 = vsub.f32 %v562_v8, %v14780_v1  ;;  %v530_v57 = vld [vmem:[#allocation11 + $0x468] sm:$0xff] }
 0x26a   : > { %4307 = vmatpush.msra.mxu0 %v18997_v31  ;;  %4191 = vmatpush.msrb.mxu1 %v4190_v4  ;;  %v6127_v0 = vsel %vm6110_vm10, %v3377_v44, %v6119_v24  ;;  %v14807_v7 = vand.u32 4294901760, %v546_v40  ;;  %v6126_v59 = vsel %vm6109_vm9, %v14670_v45, %v6118_v26  ;;  %v18999_v31 = vand.u32 4294901760, %v14488_v42  ;;  %v6872_v26 = vld [vmem:[#allocation13 + $0x38] sm:$0xff] }
 0x26b   : > { %4407 = vmatpush.msra.mxu2 %v14619_v5  ;;  %v6141_v4 = vrot.slane %v6127_v0, 4  ;;  %v14816_v63 = vsub.f32 %v554_v12, %v14788_v53  ;;  %4466 = vmatpush.msra.mxu3 %v4465_v55  ;;  %v4477_v8 = vand.u32 4294901760, %v4476_v16  ;;  %v4488_v44 = vsub.f32 %v14763_v15, %v4487_v20 }
 0x26c   : > { %4311 = vmatpush.msra.mxu0 %v18999_v31  ;;  %4197 = vmatpush.msrb.mxu1 %v4196_v2  ;;  %v18549_v24 = vand.u32 4294901760, %v14793_v46  ;;  %v14822_v45 = vand.u32 4294901760, %v538_v27  ;;  %v19000_v42 = vand.u32 4294901760, %v14495_v14  ;;  %v4494_v55 = vsub.f32 %v14776_v34, %v18550_v36  ;;  %v522_v2 = vld [vmem:[#allocation11 + $0x428] sm:$0xff] }
 0x26d   : > { %v14828_v12 = vsel %vm6144_vm2, %v6126_v59, %v6141_v4  ;;  %4409 = vmatpush.msra.mxu2 %v14642_v6  ;;  %4472 = vmatpush.msra.mxu3 %v4471_v23  ;;  %v4483_v16 = vand.u32 4294901760, %v4482_v21  ;;  %v18548_v0 = vand.u32 4294901760, %v14805_v17  ;;  %v14837_v14 = vsub.f32 %v546_v40, %v14807_v7 }
 0x26e   : > { %4315 = vmatpush.msra.mxu0 %v19000_v42  ;;  %4366 = vmatpush.msra.mxu1 %v14409_v39  ;;  %6167 = vst [vmem:[#allocation1 + $0x10] ss:$2 sm:$0xff] %v14828_v12  ;;  %v14839_v39 = vand.u32 4294901760, %v530_v57  ;;  %v19001_v59 = vand.u32 4294901760, %v14507_v13  ;;  %v4511_v31 = vand.u32 4294901760, %v14816_v63  ;;  %v6874_v23 = vperm.slane %v6872_v26, 0 }
 0x26f   : > { %4411 = vmatpush.msra.mxu2 %v14667_v52  ;;  %4478 = vmatpush.msra.mxu3 %v4477_v8  ;;  %v4489_v21 = vand.u32 4294901760, %v4488_v44  ;;  %v4500_v40 = vsub.f32 %v14793_v46, %v18549_v24  ;;  %v14851_v4 = vsub.f32 %v538_v27, %v14822_v45  ;;  %v14853_v13 = vand.u32 4294901760, %v522_v2 }
 0x270   : > { %4319 = vmatpush.msra.mxu0 %v19001_v59  ;;  %4368 = vmatpush.msra.mxu1 %v14427_v54  ;;  %v19002_v54 = vand.u32 4294901760, %v14533_v11  ;;  %v4495_v42 = vand.u32 4294901760, %v4494_v55  ;;  %v14858_v26 = vpop.permute.xlu1 %6848  ;;  %v4506_v8 = vsub.f32 %v14805_v17, %v18548_v0  ;;  %v4517_v11 = vand.u32 4294901760, %v14837_v14 }
 0x271   : > { %19003 = vst [vmem:[#allocation54_spill] sm:$0xff] %v14858_v26  ;;  %4413 = vmatpush.msra.mxu2 %v14683_v62  ;;  %4484 = vmatpush.msra.mxu3 %v4483_v16  ;;  %v6869_v27 = vsel %vm6862_vm11, %v14798_v18, %v14858_v26  ;;  %v14868_v44 = vpop.permute.xlu0 %6961  ;;  %v19005_v55 = vand.u32 4294901760, %v14550_v29  ;;  %v4512_v16 = vsub.f32 %v14816_v63, %v4511_v31  ;;  %v4523_v0 = vand.u32 4294901760, %v14851_v4 }
 0x272   : > { %4323 = vmatpush.msra.mxu0 %v19002_v54  ;;  %4370 = vmatpush.msra.mxu1 %v14436_v22  ;;  %19004 = vst [vmem:[#allocation55_spill] sm:$0xff] %v14868_v44  ;;  %v14872_v22 = vsub.f32 %v530_v57, %v14839_v39  ;;  %v6890_v59 = vmul.f32 %v6874_v23, %v6869_v27  ;;  %v4501_v54 = vand.u32 4294901760, %v4500_v40  ;;  %v6987_v57 = vld [vmem:[#allocation13 + $0x40] sm:$0xff]  ;;  %v4507_v23 = vand.u32 4294901760, %v4506_v8 }
 0x273   : > { %4415 = vmatpush.msra.mxu2 %v14704_v38  ;;  %4490 = vmatpush.msra.mxu3 %v4489_v21  ;;  %v14883_v24 = vsub.f32 %v522_v2, %v14853_v13  ;;  %v4518_v2 = vsub.f32 %v14837_v14, %v4517_v11  ;;  %v19008_v27 = vand.u32 4294901760, %v14568_v10  ;;  %v6989_v8 = vperm.slane %v6987_v57, 0 }
 0x274   : > { %4327 = vmatpush.msra.mxu0 %v19005_v55  ;;  %4372 = vmatpush.msra.mxu1 %v14454_v32  ;;  %v19007_v32 = vand.u32 4294901760, %v14564_v25  ;;  %v6906_v21 = vrot.slane %v6890_v59, 4  ;;  %v4529_v40 = vand.u32 4294901760, %v14872_v22  ;;  %v4513_v25 = vand.u32 4294901760, %v4512_v16 }
 0x275   : > { %v6174_v36 = vld.sshfl [vmem:[#allocation1 + $0x10] sm:$0xff pattern:$0x75316420]  ;;  %v14885_v29 = vld.sshfl [vmem:[#allocation1 + $0x18] sm:$0xff pattern:$0x75316420]  ;;  %4417 = vmatpush.msra.mxu2 %v14732_v50  ;;  %4496 = vmatpush.msra.mxu3 %v4495_v42 }
 0x276   : > { %19006 = vst [vmem:[#allocation56_spill] sm:$0xff] %v14885_v29  ;;  %4331 = vmatpush.msra.mxu0 %v19007_v32  ;;  %4374 = vmatpush.msra.mxu1 %v14462_v51  ;;  %v4524_v51 = vsub.f32 %v14851_v4, %v4523_v0  ;;  %v4535_v42 = vand.u32 4294901760, %v14883_v24  ;;  %v19009_v55 = vand.u32 4294901760, %v14577_v47  ;;  %v4530_v10 = vsub.f32 %v14872_v22, %v4529_v40 }
 0x277   : > { %6259 = vst [vmem:[#allocation1 + $0x10] ss:$2 sm:$0xff] %v14828_v12  ;;  %4419 = vmatpush.msra.mxu2 %v14744_v3  ;;  %4502 = vmatpush.msra.mxu3 %v4501_v54  ;;  %v19011_v59 = vand.u32 4294901760, %v14582_v43  ;;  %v19013_v43 = vand.u32 4294901760, %v14616_v28  ;;  %v19018_v28 = vand.u32 4294901760, %v14654_v30  ;;  %v19023_v30 = vld [vmem:[#allocation28_spill] sm:$0xff] }
 0x278   : > { %4335 = vmatpush.msra.mxu0 %v19008_v27  ;;  %4376 = vmatpush.msra.mxu1 %v14478_v61  ;;  %6922 = vst [vmem:[#allocation3 + $0xc0] sm:$0xf0] %v6906_v21  ;;  %v4519_v61 = vand.u32 4294901760, %v4518_v2  ;;  %v4525_v47 = vand.u32 4294901760, %v4524_v51  ;;  %v4536_v54 = vsub.f32 %v14883_v24, %v4535_v42  ;;  %v4531_v21 = vand.u32 4294901760, %v4530_v10  ;;  %v19015_v2 = vld [vmem:[#allocation48_spill] sm:$0xff] }
 0x279   : > { %4421 = vmatpush.msra.mxu2 %v14765_v19  ;;  %4508 = vmatpush.msra.mxu3 %v4507_v23  ;;  %v14912_v16 = vpop.permute.xlu0 %6963  ;;  %v19016_v27 = vand.u32 4294901760, %v19015_v2  ;;  %v19033_v2 = vld [vmem:[#allocation45_spill] sm:$0xff] }
 0x27a   : > { %4339 = vmatpush.msra.mxu0 %v19009_v55  ;;  %4378 = vmatpush.msra.mxu1 %v14501_v33  ;;  %19010 = vst [vmem:[#allocation57_spill] sm:$0xff] %v14912_v16  ;;  %v6984_v33 = vsel %vm6977_vm12, %v14868_v44, %v14912_v16  ;;  %v4537_v51 = vand.u32 4294901760, %v4536_v54  ;;  %v19020_v55 = vand.u32 4294901760, %v14677_v49  ;;  %v19026_v49 = vld [vmem:[#allocation42_spill] sm:$0xff]  ;;  %v19027_v54 = vld [vmem:[#allocation47_spill] sm:$0xff] }
 0x27b   : > { %4423 = vmatpush.msra.mxu2 %v14780_v1  ;;  %4514 = vmatpush.msra.mxu3 %v4513_v25  ;;  %v7005_v57 = vmul.f32 %v6989_v8, %v6984_v33  ;;  %v19017_v25 = vld [vmem:[#allocation39_spill] sm:$0xff]  ;;  %v19019_v8 = vld [vmem:[#allocation40_spill] sm:$0xff]  ;;  %v19024_v33 = vld [vmem:[#allocation26_spill] sm:$0xff] }
 0x27c   : > { %4343 = vmatpush.msra.mxu0 %v19011_v59  ;;  %4380 = vmatpush.msra.mxu1 %v14520_v56  ;;  %v19014_v56 = vld [vmem:[#allocation38_spill] sm:$0xff]  ;;  %v619_v44 = vld [vmem:[#allocation11 + $0x730] sm:$0xff] }
 0x27d   : > { %4425 = vmatpush.msra.mxu2 %v14788_v53  ;;  %4520 = vmatpush.msra.mxu3 %v4519_v61  ;;  %7013 = vst [vmem:[#allocation3 + $0x58] sm:$0xf] %v7005_v57  ;;  %v19021_v61 = vld [vmem:[#allocation41_spill] sm:$0xff] }
 0x27e   : > { %v6266_v32 = vld.sshfl [vmem:[#allocation1 + $0x10] sm:$0xff pattern:$0x75316420]  ;;  %v14925_v23 = vld.sshfl [vmem:[#allocation1 + $0x18] sm:$0xff pattern:$0x75316420]  ;;  %4347 = vmatpush.msra.mxu0 %v19013_v43  ;;  %4382 = vmatpush.msra.mxu1 %v19014_v56 }
 0x27f   : > { %19012 = vst [vmem:[#allocation58_spill] sm:$0xff] %v14925_v23  ;;  %4427 = vmatpush.msra.mxu2 %v14807_v7  ;;  %4526 = vmatpush.msra.mxu3 %v4525_v47  ;;  %v19025_v47 = vld [vmem:[#allocation43_spill] sm:$0xff]  ;;  %v19028_v57 = vld [vmem:[#allocation25_spill] sm:$0xff]  ;;  %v19030_v43 = vld [vmem:[#allocation44_spill] sm:$0xff] }
 0x280   : > { %6374 = vst [vmem:[#allocation1 + $0x10] ss:$2 sm:$0xff] %v14828_v12  ;;  %4351 = vmatpush.msra.mxu0 %v19016_v27  ;;  %4384 = vmatpush.msra.mxu1 %v19017_v25  ;;  %v19031_v56 = vld [vmem:[#allocation49_spill] sm:$0xff]  ;;  %v611_v23 = vld [vmem:[#allocation11 + $0x6f0] sm:$0xff] }
 0x281   : > { %4429 = vmatpush.msra.mxu2 %v14822_v45  ;;  %4532 = vmatpush.msra.mxu3 %v4531_v21  ;;  %v19032_v21 = vand.u32 4294901760, %v19027_v54  ;;  %v15254_v41 = vand.u32 4294901760, %v611_v23 }
 0x282   : > { %4355 = vmatpush.msra.mxu0 %v19018_v28  ;;  %4386 = vmatpush.msra.mxu1 %v19019_v8  ;;  %v19036_v28 = vld [vmem:[#allocation50_spill] sm:$0xff]  ;;  %v19037_v8 = vand.u32 4294901760, %v19031_v56 }
 0x283   : > { %4431 = vmatpush.msra.mxu2 %v14839_v39  ;;  %4538 = vmatpush.msra.mxu3 %v4537_v51  ;;  %v19035_v51 = vld [vmem:[#allocation24_spill] sm:$0xff] }
 0x284   : > { %4359 = vmatpush.msra.mxu0 %v19020_v55  ;;  %4388 = vmatpush.msra.mxu1 %v19021_v61  ;;  %v19038_v55 = vld [vmem:[#allocation46_spill] sm:$0xff]  ;;  %v19039_v61 = vand.u32 4294901760, %v19036_v28 }
 0x285   : > { %6192 = vrot.lane.b32.xlu0 %v6174_v36, %s11657_s2  ;;  %4098 = vmatmul.f32.vlgmr.msrb.gmra.mxu0 %v19023_v30  ;;  %v19029_v36 = vand.u32 4294901760, %v19025_v47 }
 0x286   : > { %4292 = vmatmul.f32.vlgmr.msrb.gmra.mxu3 %v19024_v33  ;;  %4546 = vmatpush.msrb.mxu0 %v19025_v47  ;;  %v19040_v47 = vld [vmem:[#allocation18_spill] sm:$0xff]  ;;  %v555_v33 = vld [vmem:[#allocation11 + $0x530] sm:$0xff] }
 0x287   : > { %v6381_v10 = vld.sshfl [vmem:[#allocation1 + $0x10] sm:$0xff pattern:$0x75316420]  ;;  %v14944_v59 = vld.sshfl [vmem:[#allocation1 + $0x18] sm:$0xff pattern:$0x75316420]  ;;  %4707 = vmatpush.msrb.mxu3 %v14560_v48  ;;  %4390 = vmatpush.msra.mxu1 %v19026_v49 }
 0x288   : > { %19022 = vst [vmem:[#allocation38_spill] sm:$0xff] %v14944_v59  ;;  %4433 = vmatpush.msra.mxu2 %v14853_v13  ;;  %4549 = vmatpush.msrb.mxu0 %v19027_v54  ;;  %v19041_v49 = vand.u32 4294901760, %v14700_v37  ;;  %v19042_v54 = vld [vmem:[#allocation27_spill] sm:$0xff] }
 0x289   : > { %6465 = vst [vmem:[#allocation1 + $0x10] ss:$2 sm:$0xff] %v14828_v12  ;;  %4253 = vmatmul.f32.vlgmr.msrb.gmra.mxu2 %v19028_v57  ;;  %4709 = vmatpush.msrb.mxu3 %v14601_v58 }
 0x28a   : > { %4640 = vmatpush.msrb.mxu2 %v19029_v36  ;;  %4392 = vmatpush.msra.mxu1 %v19030_v43  ;;  %v19043_v36 = vand.u32 4294901760, %v14716_v35 }
 0x28b   : > { %4552 = vmatpush.msrb.mxu0 %v19031_v56  ;;  %4711 = vmatpush.msrb.mxu3 %v14619_v5 }
 0x28c   : > { %4644 = vmatpush.msrb.mxu2 %v19032_v21  ;;  %4394 = vmatpush.msra.mxu1 %v19033_v2 }
 0x28d   : > { %4199 = vmatmul.f32.vlgmr.msrb.gmra.mxu1 %v19035_v51  ;;  %4555 = vmatpush.msrb.mxu0 %v19036_v28 }
 0x28e   : > { %4648 = vmatpush.msrb.mxu2 %v19037_v8  ;;  %4713 = vmatpush.msrb.mxu3 %v14642_v6  ;;  %v451_v8 = vld [vmem:[#allocation11 + $0x1f0] sm:$0xff] }
 0x28f   : > { %4396 = vmatpush.msra.mxu1 %v19038_v55  ;;  %6284 = vrot.lane.b32.xlu0 %v6266_v32, %s11658_s19 }
 0x290   : > { %v6472_v27 = vld.sshfl [vmem:[#allocation1 + $0x10] sm:$0xff pattern:$0x75316420]  ;;  %v14965_v25 = vld.sshfl [vmem:[#allocation1 + $0x18] sm:$0xff pattern:$0x75316420]  ;;  %4558 = vmatpush.msrb.mxu0 %v14700_v37  ;;  %4652 = vmatpush.msrb.mxu2 %v19039_v61 }
 0x291   : > { %19034 = vst [vmem:[#allocation48_spill] sm:$0xff] %v14965_v25  ;;  %4599 = vmatpush.msrb.mxu1 %v14560_v48  ;;  %4715 = vmatpush.msrb.mxu3 %v14667_v52 }
 0x292   : > { %6580 = vst [vmem:[#allocation1 + $0x10] ss:$2 sm:$0xff] %v14828_v12  ;;  %4439 = vmatmul.f32.vlgmr.msra.gmra.mxu2 %v19040_v47  ;;  %4561 = vmatpush.msrb.mxu0 %v14716_v35  ;;  %v515_v35 = vld [vmem:[#allocation11 + $0x3f0] sm:$0xff] }
 0x293   : > { %4601 = vmatpush.msrb.mxu1 %v14601_v58  ;;  %4656 = vmatpush.msrb.mxu2 %v19041_v49  ;;  %v19044_v58 = vand.u32 4294901760, %v14749_v60 }
 0x294   : > { %4717 = vmatpush.msrb.mxu3 %v14683_v62  ;;  %4361 = vmatmul.f32.vlgmr.msra.gmra.mxu0 %v19035_v51 }
 0x295   : > { %4540 = vmatmul.f32.vlgmr.msra.gmra.mxu3 %v19042_v54  ;;  %4564 = vmatpush.msrb.mxu0 %v14749_v60  ;;  %v507_v60 = vld [vmem:[#allocation11 + $0x3b0] sm:$0xff] }
 0x296   : > { %4603 = vmatpush.msrb.mxu1 %v14619_v5  ;;  %4660 = vmatpush.msrb.mxu2 %v19043_v36  ;;  %v19045_v5 = vand.u32 4294901760, %v14776_v34 }
 0x297   : > { %4719 = vmatpush.msrb.mxu3 %v14704_v38  ;;  %4398 = vmatmul.f32.vlgmr.msra.gmra.mxu1 %v19035_v51 }
 0x298   : > { %4567 = vmatpush.msrb.mxu0 %v14763_v15  ;;  %4605 = vmatpush.msrb.mxu1 %v14642_v6  ;;  %v15027_v15 = vand.u32 4294901760, %v515_v35 }
 0x299   : > { %v6587_v32 = vld.sshfl [vmem:[#allocation1 + $0x10] sm:$0xff pattern:$0x75316420]  ;;  %v6588_v48 = vld.sshfl [vmem:[#allocation1 + $0x18] sm:$0xff pattern:$0x75316420]  ;;  %4664 = vmatpush.msrb.mxu2 %v19044_v58  ;;  %4721 = vmatpush.msrb.mxu3 %v14732_v50 }
 0x29a   : > { %6619 = vst [vmem:[#allocation1 + $0x10] ss:$2 sm:$0xff] %v14828_v12  ;;  %6399 = vrot.lane.b32.xlu1 %v6381_v10, %s11659_s20  ;;  %4570 = vmatpush.msrb.mxu0 %v14776_v34  ;;  %v491_v34 = vld [vmem:[#allocation11 + $0x330] sm:$0xff] }
 0x29b   : > { %6603 = vst [vmem:[#allocation3 + $0x8] sm:$0xf] %v6587_v32  ;;  %4607 = vmatpush.msrb.mxu1 %v14667_v52  ;;  %4668 = vmatpush.msrb.mxu2 %v4487_v20  ;;  %v19046_v52 = vand.u32 4294901760, %v14793_v46  ;;  %v467_v10 = vld [vmem:[#allocation11 + $0x270] sm:$0xff]  ;;  %v15127_v32 = vand.u32 4294901760, %v451_v8 }
 0x29c   : > { %6604 = vst [vmem:[#allocation3 + $0x98] sm:$0xf] %v6588_v48  ;;  %4723 = vmatpush.msrb.mxu3 %v14744_v3  ;;  %4573 = vmatpush.msrb.mxu0 %v14793_v46  ;;  %v15101_v2 = vand.u32 4294901760, %v467_v10  ;;  %v443_v48 = vld [vmem:[#allocation11 + $0x1b0] sm:$0xff] }
 0x29d   : > { %4609 = vmatpush.msrb.mxu1 %v14683_v62  ;;  %4672 = vmatpush.msrb.mxu2 %v19045_v5  ;;  %v19047_v62 = vand.u32 4294901760, %v14805_v17  ;;  %v435_v5 = vld [vmem:[#allocation11 + $0x170] sm:$0xff] }
 0x29e   : > { %4725 = vmatpush.msrb.mxu3 %v14765_v19  ;;  %4576 = vmatpush.msrb.mxu0 %v14805_v17 }
 0x29f   : > { %4611 = vmatpush.msrb.mxu1 %v14704_v38  ;;  %4676 = vmatpush.msrb.mxu2 %v19046_v52  ;;  %v499_v38 = vld [vmem:[#allocation11 + $0x370] sm:$0xff]  ;;  %v19049_v52 = vld [vmem:[#allocation30_spill] sm:$0xff] }
 0x2a0   : > { %4727 = vmatpush.msrb.mxu3 %v14780_v1  ;;  %4579 = vmatpush.msrb.mxu0 %v14816_v63  ;;  %v15048_v17 = vand.u32 4294901760, %v499_v38 }
 0x2a1   : > { %v15010_v6 = vld.sshfl [vmem:[#allocation1 + $0x18] sm:$0xff pattern:$0x75316420]  ;;  %v15012_v37 = vld.sshfl [vmem:[#allocation1 + $0x10] sm:$0xff pattern:$0x75316420]  ;;  %4613 = vmatpush.msrb.mxu1 %v14732_v50  ;;  %4680 = vmatpush.msrb.mxu2 %v19047_v62 }
 0x2a2   : > { %6734 = vst [vmem:[#allocation1 + $0x10] ss:$2 sm:$0xff] %v14828_v12  ;;  %4729 = vmatpush.msrb.mxu3 %v14788_v53  ;;  %6490 = vrot.lane.b32.xlu1 %v6472_v27, %s11660_s30  ;;  %v15034_v50 = vand.u32 4294901760, %v507_v60 }
 0x2a3   : > { %4582 = vmatpush.msrb.mxu0 %v14837_v14  ;;  %4615 = vmatpush.msrb.mxu1 %v14744_v3  ;;  %v15046_v3 = vsub.f32 %v515_v35, %v15027_v15  ;;  %v15059_v14 = vand.u32 4294901760, %v491_v34 }
 0x2a4   : > { %4684 = vmatpush.msrb.mxu2 %v4511_v31  ;;  %4731 = vmatpush.msrb.mxu3 %v14807_v7  ;;  %v15057_v63 = vsub.f32 %v507_v60, %v15034_v50  ;;  %v475_v31 = vld [vmem:[#allocation11 + $0x2b0] sm:$0xff] }
 0x2a5   : > { %4585 = vmatpush.msrb.mxu0 %v14851_v4  ;;  %4617 = vmatpush.msrb.mxu1 %v14765_v19  ;;  %v483_v19 = vld [vmem:[#allocation11 + $0x2f0] sm:$0xff]  ;;  %v18558_v4 = vand.u32 4294901760, %v15046_v3 }
 0x2a6   : > { %4688 = vmatpush.msrb.mxu2 %v4517_v11  ;;  %4733 = vmatpush.msrb.mxu3 %v14822_v45  ;;  %v19048_v11 = vld [vmem:[#allocation29_spill] sm:$0xff] }
 0x2a7   : > { %4588 = vmatpush.msrb.mxu0 %v14872_v22  ;;  %4619 = vmatpush.msrb.mxu1 %v14780_v1  ;;  %v15067_v1 = vsub.f32 %v499_v38, %v15048_v17  ;;  %v15079_v22 = vand.u32 4294901760, %v475_v31  ;;  %v15144_v38 = vand.u32 4294901760, %v443_v48 }
 0x2a8   : > { %4692 = vmatpush.msrb.mxu2 %v4523_v0  ;;  %4735 = vmatpush.msrb.mxu3 %v14839_v39  ;;  %v15069_v0 = vand.u32 4294901760, %v483_v19 }
 0x2a9   : > { %v15038_v20 = vld.sshfl [vmem:[#allocation1 + $0x10] sm:$0xff pattern:$0x75316420]  ;;  %v15040_v46 = vld.sshfl [vmem:[#allocation1 + $0x18] sm:$0xff pattern:$0x75316420]  ;;  %4591 = vmatpush.msrb.mxu0 %v14883_v24  ;;  %4621 = vmatpush.msrb.mxu1 %v14788_v53  ;;  %v15077_v53 = vsub.f32 %v491_v34, %v15059_v14  ;;  %v15151_v34 = vsub.f32 %v451_v8, %v15127_v32  ;;  %v15165_v8 = vsub.f32 %v443_v48, %v15144_v38 }
 0x2aa   : > { %6825 = vst [vmem:[#allocation1 + $0x10] ss:$2 sm:$0xff] %v14828_v12  ;;  %4696 = vmatpush.msrb.mxu2 %v4529_v40  ;;  %4737 = vmatpush.msrb.mxu3 %v14853_v13  ;;  %v18557_v40 = vand.u32 4294901760, %v15057_v63  ;;  %v15095_v21 = vsub.f32 %v483_v19, %v15069_v0  ;;  %v18555_v24 = vand.u32 4294901760, %v15067_v1  ;;  %v15153_v19 = vand.u32 4294901760, %v435_v5 }
 0x2ab   : > { %4594 = vmatmul.f32.vlgmr.msrb.gmra.mxu0 %v19048_v11  ;;  %4623 = vmatpush.msrb.mxu1 %v14807_v7  ;;  %v4787_v7 = vsub.f32 %v15046_v3, %v18558_v4  ;;  %v18554_v28 = vand.u32 4294901760, %v15077_v53 }
 0x2ac   : > { %4940 = vmatpush.msra.mxu3 %v15027_v15  ;;  %4744 = vmatpush.msra.mxu0 %v15027_v15  ;;  %v4793_v27 = vsub.f32 %v15057_v63, %v18557_v40  ;;  %v4799_v61 = vsub.f32 %v15067_v1, %v18555_v24  ;;  %v18553_v49 = vand.u32 4294901760, %v15095_v21  ;;  %v403_v24 = vld [vmem:[#allocation11 + $0x70] sm:$0xff] }
 0x2ad   : > { %4700 = vmatpush.msrb.mxu2 %v4535_v42  ;;  %v459_v42 = vld [vmem:[#allocation11 + $0x230] sm:$0xff]  ;;  %4625 = vmatpush.msrb.mxu1 %v14822_v45  ;;  %v15112_v45 = vsub.f32 %v475_v31, %v15079_v22  ;;  %v4788_v55 = vand.u32 4294901760, %v4787_v7  ;;  %v4805_v58 = vsub.f32 %v15077_v53, %v18554_v28  ;;  %v15214_v18 = vand.u32 4294901760, %v403_v24 }
 0x2ae   : > { %4942 = vmatpush.msra.mxu3 %v15034_v50  ;;  %4746 = vmatpush.msra.mxu0 %v15034_v50  ;;  %v4794_v36 = vand.u32 4294901760, %v4793_v27  ;;  %v4811_v60 = vsub.f32 %v15095_v21, %v18553_v49  ;;  %v395_v28 = vld [vmem:[#allocation11 + $0x30] sm:$0xff] }
 0x2af   : > { %4887 = vmatpush.msra.mxu2 %v15046_v3  ;;  %4627 = vmatpush.msrb.mxu1 %v14839_v39  ;;  %v15125_v39 = vsub.f32 %v467_v10, %v15101_v2  ;;  %v18551_v62 = vand.u32 4294901760, %v15112_v45  ;;  %v427_v10 = vld [vmem:[#allocation11 + $0x130] sm:$0xff]  ;;  %v4806_v7 = vand.u32 4294901760, %v4805_v58  ;;  %v15175_v58 = vsub.f32 %v435_v5, %v15153_v19  ;;  %19053 = vst [vmem:[#allocation43_spill] sm:$0xff] %v15214_v18 }
 0x2b0   : > { %4702 = vmatmul.f32.vlgmr.msrb.gmra.mxu2 %v19042_v54  ;;  %4748 = vmatpush.msra.mxu0 %v15048_v17  ;;  %v4812_v27 = vand.u32 4294901760, %v4811_v60  ;;  %v635_v60 = vld [vmem:[#allocation11 + $0x7b0] sm:$0xff]  ;;  %v15228_v25 = vand.u32 4294901760, %v395_v28 }
 0x2b1   : > { %v15085_v43 = vld.sshfl [vmem:[#allocation1 + $0x18] sm:$0xff pattern:$0x75316420]  ;;  %v15087_v56 = vld.sshfl [vmem:[#allocation1 + $0x10] sm:$0xff pattern:$0x75316420]  ;;  %4890 = vmatpush.msra.mxu2 %v15057_v63  ;;  %4944 = vmatpush.msra.mxu3 %v15048_v17 }
 0x2b2   : > { %6940 = vst [vmem:[#allocation1 + $0x10] ss:$2 sm:$0xff] %v14828_v12  ;;  %v15114_v12 = vand.u32 4294901760, %v459_v42  ;;  %4739 = vmatmul.f32.vlgmr.msrb.gmra.mxu3 %v19042_v54  ;;  %4750 = vmatpush.msra.mxu0 %v15059_v14  ;;  %v18552_v31 = vand.u32 4294901760, %v15125_v39  ;;  %v411_v5 = vld [vmem:[#allocation11 + $0xb0] sm:$0xff]  ;;  %v15199_v4 = vand.u32 4294901760, %v635_v60  ;;  %v15283_v54 = vsub.f32 %v611_v23, %v15254_v41 }
 0x2b3   : > { %4893 = vmatpush.msra.mxu2 %v15067_v1  ;;  %4946 = vmatpush.msra.mxu3 %v15059_v14  ;;  %19056 = vst [vmem:[#allocation42_spill] sm:$0xff] %v15228_v25 }
 0x2b4   : > { %4629 = vmatpush.msrb.mxu1 %v14853_v13  ;;  %4752 = vmatpush.msra.mxu0 %v15069_v0  ;;  %v15137_v35 = vsub.f32 %v459_v42, %v15114_v12  ;;  %v4800_v13 = vand.u32 4294901760, %v4799_v61  ;;  %v643_v42 = vld [vmem:[#allocation11 + $0x7f0] sm:$0xff]  ;;  %v15231_v59 = vsub.f32 %v635_v60, %v15199_v4 }
 0x2b5   : > { %4633 = vmatmul.f32.vlgmr.msrb.gmra.mxu1 %v19049_v52  ;;  %4896 = vmatpush.msra.mxu2 %v15077_v53  ;;  %v419_v61 = vld [vmem:[#allocation11 + $0xf0] sm:$0xff]  ;;  %v15179_v48 = vand.u32 4294901760, %v643_v42 }
 0x2b6   : > { %4789 = vmatpush.msra.mxu1 %v4788_v55  ;;  %4948 = vmatpush.msra.mxu3 %v15069_v0  ;;  %v15167_v55 = vand.u32 4294901760, %v427_v10  ;;  %v15186_v49 = vand.u32 4294901760, %v419_v61  ;;  %19057 = vst [vmem:[#allocation47_spill] sm:$0xff] %v15231_v59  ;;  %v595_v52 = vld [vmem:[#allocation11 + $0x670] sm:$0xff] }
 0x2b7   : > { %6646 = vrot.lane.b32.xlu2 %v15010_v6, %s11661_s12  ;;  %6644 = vrot.lane.b32.xlu0 %v15012_v37, %s11661_s12  ;;  %v4817_v6 = vsub.f32 %v15112_v45, %v18551_v62  ;;  %v18556_v37 = vand.u32 4294901760, %v15137_v35  ;;  %v15285_v47 = vand.u32 4294901760, %v595_v52 }
 0x2b8   : > { %4754 = vmatpush.msra.mxu0 %v15079_v22  ;;  %4795 = vmatpush.msra.mxu1 %v4794_v36  ;;  %v4823_v36 = vsub.f32 %v15125_v39, %v18552_v31  ;;  %19050 = vst [vmem:[#allocation39_spill] sm:$0xff] %v15186_v49  ;;  %v15212_v40 = vsub.f32 %v419_v61, %v15186_v49 }
 0x2b9   : > { %4899 = vmatpush.msra.mxu2 %v15095_v21  ;;  %4950 = vmatpush.msra.mxu3 %v15079_v22  ;;  %v4818_v62 = vand.u32 4294901760, %v4817_v6  ;;  %v4829_v31 = vsub.f32 %v15137_v35, %v18556_v37 }
 0x2ba   : > { %4756 = vmatpush.msra.mxu0 %v15101_v2  ;;  %4801 = vmatpush.msra.mxu1 %v4800_v13  ;;  %v18559_v13 = vand.u32 4294901760, %v15151_v34  ;;  %v4824_v6 = vand.u32 4294901760, %v4823_v36  ;;  %v15208_v36 = vsub.f32 %v643_v42, %v15179_v48  ;;  %v603_v42 = vld [vmem:[#allocation11 + $0x6b0] sm:$0xff] }
 0x2bb   : > { %4902 = vmatpush.msra.mxu2 %v15112_v45  ;;  %4952 = vmatpush.msra.mxu3 %v15101_v2 }
 0x2bc   : > { %4758 = vmatpush.msra.mxu0 %v15114_v12  ;;  %4807 = vmatpush.msra.mxu1 %v4806_v7  ;;  %v15190_v7 = vsub.f32 %v427_v10, %v15167_v55  ;;  %v4835_v37 = vsub.f32 %v15151_v34, %v18559_v13  ;;  %v15205_v10 = vand.u32 4294901760, %v411_v5  ;;  %19052 = vst [vmem:[#allocation41_spill] sm:$0xff] %v15208_v36  ;;  %v4830_v13 = vand.u32 4294901760, %v4829_v31 }
 0x2bd   : > { %4905 = vmatpush.msra.mxu2 %v15125_v39  ;;  %4954 = vmatpush.msra.mxu3 %v15114_v12  ;;  %v19055_v31 = vand.u32 4294901760, %v15175_v58 }
 0x2be   : > { %4760 = vmatpush.msra.mxu0 %v15127_v32  ;;  %4813 = vmatpush.msra.mxu1 %v4812_v27  ;;  %v627_v27 = vld [vmem:[#allocation11 + $0x770] sm:$0xff]  ;;  %19051 = vst [vmem:[#allocation40_spill] sm:$0xff] %v15205_v10 }
 0x2bf   : > { %4908 = vmatpush.msra.mxu2 %v15137_v35  ;;  %4956 = vmatpush.msra.mxu3 %v15127_v32  ;;  %v15222_v29 = vand.u32 4294901760, %v627_v27  ;;  %v4847_v61 = vsub.f32 %v15175_v58, %v19055_v31  ;;  %v15243_v31 = vsub.f32 %v403_v24, %v15214_v18 }
 0x2c0   : > { %6759 = vrot.lane.b32.xlu1 %v15038_v20, %s11662_s10  ;;  %6761 = vrot.lane.b32.xlu0 %v15040_v46, %s11662_s10  ;;  %v19054_v20 = vand.u32 4294901760, %v15165_v8 }
 0x2c1   : > { %4762 = vmatpush.msra.mxu0 %v15144_v38  ;;  %4819 = vmatpush.msra.mxu1 %v4818_v62  ;;  %v4836_v62 = vand.u32 4294901760, %v4835_v37  ;;  %v15239_v37 = vand.u32 4294901760, %v619_v44  ;;  %v15252_v26 = vsub.f32 %v627_v27, %v15222_v29  ;;  %v4848_v24 = vand.u32 4294901760, %v4847_v61 }
 0x2c2   : > { %4911 = vmatpush.msra.mxu2 %v15151_v34  ;;  %4958 = vmatpush.msra.mxu3 %v15144_v38  ;;  %v4841_v46 = vsub.f32 %v15165_v8, %v19054_v20  ;;  %v15236_v20 = vsub.f32 %v411_v5, %v15205_v10  ;;  %v19058_v5 = vand.u32 4294901760, %v15190_v7  ;;  %v19061_v61 = vand.u32 4294901760, %v15212_v40 }
 0x2c3   : > { %4764 = vmatpush.msra.mxu0 %v15153_v19  ;;  %4825 = vmatpush.msra.mxu1 %v4824_v6  ;;  %19059 = vst [vmem:[#allocation44_spill] sm:$0xff] %v15252_v26  ;;  %v15268_v11 = vsub.f32 %v619_v44, %v15239_v37  ;;  %v19065_v51 = vand.u32 4294901760, %v15252_v26 }
 0x2c4   : > { %4914 = vmatpush.msra.mxu2 %v15165_v8  ;;  %4960 = vmatpush.msra.mxu3 %v15153_v19  ;;  %v4842_v16 = vand.u32 4294901760, %v4841_v46  ;;  %v4853_v6 = vsub.f32 %v15190_v7, %v19058_v5  ;;  %v19060_v46 = vand.u32 4294901760, %v15208_v36  ;;  %v4859_v60 = vsub.f32 %v15212_v40, %v19061_v61 }
 0x2c5   : > { %4766 = vmatpush.msra.mxu0 %v15167_v55  ;;  %4831 = vmatpush.msra.mxu1 %v4830_v13  ;;  %v15258_v13 = vsub.f32 %v395_v28, %v15228_v25  ;;  %v587_v28 = vld [vmem:[#allocation11 + $0x630] sm:$0xff] }
 0x2c6   : > { %4917 = vmatpush.msra.mxu2 %v15175_v58  ;;  %4962 = vmatpush.msra.mxu3 %v15167_v55  ;;  %v5128_v27 = vsub.f32 %v15208_v36, %v19060_v46  ;;  %v4854_v44 = vand.u32 4294901760, %v4853_v6  ;;  %v19063_v6 = vand.u32 4294901760, %v15236_v20  ;;  %v19064_v46 = vand.u32 4294901760, %v15243_v31  ;;  %v563_v36 = vld [vmem:[#allocation11 + $0x570] sm:$0xff] }
 0x2c7   : > { %4768 = vmatpush.msra.mxu0 %v15186_v49  ;;  %4837 = vmatpush.msra.mxu1 %v4836_v62  ;;  %v15270_v62 = vand.u32 4294901760, %v603_v42  ;;  %v19066_v57 = vand.u32 4294901760, %v15258_v13 }
 0x2c8   : > { %4920 = vmatpush.msra.mxu2 %v15190_v7  ;;  %4964 = vmatpush.msra.mxu3 %v15186_v49  ;;  %v5129_v23 = vand.u32 4294901760, %v5128_v27  ;;  %v4865_v5 = vsub.f32 %v15236_v20, %v19063_v6  ;;  %v571_v27 = vld [vmem:[#allocation11 + $0x5b0] sm:$0xff]  ;;  %v6947_v6 = vld.sshfl [vmem:[#allocation1 + $0x10] sm:$0xff pattern:$0x75316420] }
 0x2c9   : > { %6852 = vrot.lane.b32.xlu1 %v15085_v43, %s11663_s7  ;;  %6850 = vrot.lane.b32.xlu0 %v15087_v56, %s11663_s7  ;;  %v579_v43 = vld [vmem:[#allocation11 + $0x5f0] sm:$0xff]  ;;  %v19062_v56 = vand.u32 4294901760, %v15231_v59  ;;  %v15301_v9 = vsub.f32 %v603_v42, %v15270_v62  ;;  %v5140_v42 = vsub.f32 %v15252_v26, %v19065_v51  ;;  %v19067_v51 = vand.u32 4294901760, %v15046_v3 }
 0x2ca   : > { %4770 = vmatpush.msra.mxu0 %v15205_v10  ;;  %4843 = vmatpush.msra.mxu1 %v4842_v16  ;;  %v15293_v16 = vand.u32 4294901760, %v587_v28 }
 0x2cb   : > { %4923 = vmatpush.msra.mxu2 %v15212_v40  ;;  %4966 = vmatpush.msra.mxu3 %v15205_v10  ;;  %v5134_v61 = vsub.f32 %v15231_v59, %v19062_v56  ;;  %v4860_v56 = vand.u32 4294901760, %v4859_v60  ;;  %v4871_v10 = vsub.f32 %v15243_v31, %v19064_v46  ;;  %v6948_v60 = vld.sshfl [vmem:[#allocation1 + $0x18] sm:$0xff pattern:$0x75316420]  ;;  %v19068_v59 = vand.u32 4294901760, %v15268_v11 }
 0x2cc   : > { %4772 = vmatpush.msra.mxu0 %v15214_v18  ;;  %4849 = vmatpush.msra.mxu1 %v4848_v24  ;;  %v15308_v24 = vand.u32 4294901760, %v579_v43  ;;  %v15324_v49 = vsub.f32 %v587_v28, %v15293_v16  ;;  %v5141_v3 = vand.u32 4294901760, %v5140_v42 }
 0x2cd   : > { %4926 = vmatpush.msra.mxu2 %v15236_v20  ;;  %4968 = vmatpush.msra.mxu3 %v15214_v18  ;;  %v15316_v18 = vsub.f32 %v595_v52, %v15285_v47  ;;  %v5135_v46 = vand.u32 4294901760, %v5134_v61  ;;  %v4866_v52 = vand.u32 4294901760, %v4865_v5  ;;  %v5146_v26 = vsub.f32 %v15268_v11, %v19068_v59 }
 0x2ce   : > { %4774 = vmatpush.msra.mxu0 %v15228_v25  ;;  %4855 = vmatpush.msra.mxu1 %v4854_v44  ;;  %v4877_v44 = vsub.f32 %v15258_v13, %v19066_v57  ;;  %v15332_v61 = vand.u32 4294901760, %v571_v27  ;;  %v4872_v57 = vand.u32 4294901760, %v4871_v10  ;;  %v15336_v28 = vsub.f32 %v579_v43, %v15308_v24 }
 0x2cf   : > { %4929 = vmatpush.msra.mxu2 %v15243_v31  ;;  %4970 = vmatpush.msra.mxu3 %v15228_v25  ;;  %v18579_v25 = vand.u32 4294901760, %v15301_v9  ;;  %v19069_v5 = vand.u32 4294901760, %v15283_v54  ;;  %v18580_v43 = vand.u32 4294901760, %v15324_v49  ;;  %v5147_v42 = vand.u32 4294901760, %v5146_v26 }
 0x2d0   : > { %4981 = vmatpush.msrb.mxu0 %v19067_v51  ;;  %4861 = vmatpush.msra.mxu1 %v4860_v56  ;;  %v15344_v51 = vand.u32 4294901760, %v563_v36  ;;  %v19070_v56 = vand.u32 4294901760, %v15057_v63  ;;  %v4878_v10 = vand.u32 4294901760, %v4877_v44  ;;  %v19071_v63 = vand.u32 4294901760, %v15067_v1 }
 0x2d1   : > { %5130 = vmatpush.msrb.mxu3 %v5129_v23  ;;  %4932 = vmatpush.msra.mxu2 %v15258_v13  ;;  %v5152_v59 = vsub.f32 %v15283_v54, %v19069_v5  ;;  %v15354_v5 = vsub.f32 %v571_v27, %v15332_v61  ;;  %v15356_v23 = vand.u32 4294901760, %v555_v33  ;;  %v5175_v44 = vand.u32 4294901760, %v15336_v28 }
 0x2d2   : > { %6965 = vrot.lane.b32.xlu1 %v6947_v6, %s11664_s25  ;;  %6967 = vrot.lane.b32.xlu0 %v6948_v60, %s11664_s25  ;;  %v547_v6 = vld [vmem:[#allocation11 + $0x4f0] sm:$0xff]  ;;  %v5158_v60 = vsub.f32 %v15301_v9, %v18579_v25  ;;  %v15366_v27 = vsub.f32 %v563_v36, %v15344_v51  ;;  %v19073_v1 = vand.u32 4294901760, %v15077_v53  ;;  %v19074_v53 = vand.u32 4294901760, %v15095_v21 }
 0x2d3   : > { %4985 = vmatpush.msrb.mxu0 %v19070_v56  ;;  %5085 = vmatpush.msrb.mxu2 %v15179_v48  ;;  %v539_v56 = vld [vmem:[#allocation11 + $0x4b0] sm:$0xff]  ;;  %v5153_v26 = vand.u32 4294901760, %v5152_v59  ;;  %v15368_v25 = vand.u32 4294901760, %v547_v6  ;;  %v15378_v36 = vsub.f32 %v555_v33, %v15356_v23  ;;  %v19075_v21 = vand.u32 4294901760, %v15112_v45 }
 0x2d4   : > { %5136 = vmatpush.msrb.mxu3 %v5135_v46  ;;  %4867 = vmatpush.msra.mxu1 %v4866_v52  ;;  %v19072_v46 = vand.u32 4294901760, %v15316_v18  ;;  %v5159_v59 = vand.u32 4294901760, %v5158_v60  ;;  %v19076_v45 = vand.u32 4294901760, %v15125_v39 }
 0x2d5   : > { %4989 = vmatpush.msrb.mxu0 %v19071_v63  ;;  %5087 = vmatpush.msrb.mxu2 %v15199_v4  ;;  %v5181_v63 = vand.u32 4294901760, %v15354_v5  ;;  %v15391_v33 = vsub.f32 %v547_v6, %v15368_v25 }
 0x2d6   : > { %5142 = vmatpush.msrb.mxu3 %v5141_v3  ;;  %4873 = vmatpush.msra.mxu1 %v4872_v57  ;;  %v5164_v52 = vsub.f32 %v15316_v18, %v19072_v46  ;;  %v5170_v3 = vsub.f32 %v15324_v49, %v18580_v43  ;;  %v531_v57 = vld [vmem:[#allocation11 + $0x470] sm:$0xff]  ;;  %v15380_v46 = vand.u32 4294901760, %v539_v56 }
 0x2d7   : > { %4993 = vmatpush.msrb.mxu0 %v19073_v1  ;;  %5089 = vmatpush.msrb.mxu2 %v15222_v29  ;;  %v5176_v1 = vsub.f32 %v15336_v28, %v5175_v44  ;;  %v523_v43 = vld [vmem:[#allocation11 + $0x430] sm:$0xff]  ;;  %v15393_v60 = vand.u32 4294901760, %v531_v57 }
 0x2d8   : > { %5148 = vmatpush.msrb.mxu3 %v5147_v42  ;;  %4879 = vmatpush.msra.mxu1 %v4878_v10  ;;  %v5165_v10 = vand.u32 4294901760, %v5164_v52  ;;  %v5187_v42 = vand.u32 4294901760, %v15366_v27  ;;  %v5193_v52 = vand.u32 4294901760, %v15378_v36  ;;  %v15404_v6 = vsub.f32 %v539_v56, %v15380_v46 }
 0x2d9   : > { %4997 = vmatpush.msrb.mxu0 %v19074_v53  ;;  %5091 = vmatpush.msrb.mxu2 %v15239_v37  ;;  %v15406_v53 = vand.u32 4294901760, %v523_v43  ;;  %v15417_v56 = vsub.f32 %v531_v57, %v15393_v60  ;;  %v19078_v57 = vand.u32 4294901760, %v15151_v34 }
 0x2da   : > { %5048 = vmatpush.msrb.mxu1 %v15027_v15  ;;  %5154 = vmatpush.msrb.mxu3 %v5153_v26  ;;  %v5171_v15 = vand.u32 4294901760, %v5170_v3  ;;  %v5182_v26 = vsub.f32 %v15354_v5, %v5181_v63  ;;  %v5188_v3 = vsub.f32 %v15366_v27, %v5187_v42  ;;  %v5194_v39 = vsub.f32 %v15378_v36, %v5193_v52 }
 0x2db   : > { %5001 = vmatpush.msrb.mxu0 %v19075_v21  ;;  %5093 = vmatpush.msrb.mxu2 %v15254_v41  ;;  %v19077_v21 = vand.u32 4294901760, %v15137_v35 }
 0x2dc   : > { %5050 = vmatpush.msrb.mxu1 %v15034_v50  ;;  %5160 = vmatpush.msrb.mxu3 %v5159_v59  ;;  %v5177_v50 = vand.u32 4294901760, %v5176_v1  ;;  %v5199_v59 = vand.u32 4294901760, %v15391_v33  ;;  %v5205_v1 = vand.u32 4294901760, %v15404_v6  ;;  %v5195_v34 = vand.u32 4294901760, %v5194_v39 }
 0x2dd   : > { %5005 = vmatpush.msrb.mxu0 %v19076_v45  ;;  %5095 = vmatpush.msrb.mxu2 %v15270_v62  ;;  %v19080_v45 = vand.u32 4294901760, %v15175_v58 }
 0x2de   : > { %5052 = vmatpush.msrb.mxu1 %v15048_v17  ;;  %5166 = vmatpush.msrb.mxu3 %v5165_v10  ;;  %v5183_v17 = vand.u32 4294901760, %v5182_v26  ;;  %v15428_v10 = vsub.f32 %v523_v43, %v15406_v53  ;;  %v5200_v35 = vsub.f32 %v15391_v33, %v5199_v59  ;;  %v19079_v26 = vand.u32 4294901760, %v15165_v8 }
 0x2df   : > { %5009 = vmatpush.msrb.mxu0 %v19077_v21  ;;  %5097 = vmatpush.msrb.mxu2 %v15285_v47  ;;  %v19083_v21 = vand.u32 4294901760, %v15236_v20  ;;  %v19089_v20 = vld [vmem:[#allocation25_spill] sm:$0xff] }
 0x2e0   : > { %5054 = vmatpush.msrb.mxu1 %v15059_v14  ;;  %5172 = vmatpush.msrb.mxu3 %v5171_v15  ;;  %v5189_v14 = vand.u32 4294901760, %v5188_v3  ;;  %v5211_v15 = vand.u32 4294901760, %v15417_v56  ;;  %v5217_v43 = vand.u32 4294901760, %v15428_v10  ;;  %v5201_v8 = vand.u32 4294901760, %v5200_v35  ;;  %v19093_v35 = vld [vmem:[#allocation44_spill] sm:$0xff] }
 0x2e1   : > { %5013 = vmatpush.msrb.mxu0 %v19078_v57  ;;  %5099 = vmatpush.msrb.mxu2 %v15293_v16  ;;  %v19082_v3 = vand.u32 4294901760, %v15212_v40  ;;  %v19085_v40 = vand.u32 4294901760, %v15258_v13  ;;  %v11466_v13 = vld [vmem:[#allocation13] sm:$0xff]  ;;  %v3518_v57 = vpop.f32.mrf.mxu1 }
 0x2e2   : > { %5056 = vmatpush.msrb.mxu1 %v15069_v0  ;;  %5178 = vmatpush.msrb.mxu3 %v5177_v50  ;;  %v5206_v0 = vsub.f32 %v15404_v6, %v5205_v1  ;;  %v19081_v50 = vand.u32 4294901760, %v15190_v7  ;;  %v6219_v39 = vperm.slane %v11466_v13, 2 }
 0x2e3   : > { %5017 = vmatpush.msrb.mxu0 %v19079_v26  ;;  %5101 = vmatpush.msrb.mxu2 %v15308_v24 }
 0x2e4   : > { %5058 = vmatpush.msrb.mxu1 %v15079_v22  ;;  %5184 = vmatpush.msrb.mxu3 %v5183_v17  ;;  %v5212_v22 = vsub.f32 %v15417_v56, %v5211_v15  ;;  %v5207_v58 = vand.u32 4294901760, %v5206_v0  ;;  %v19084_v17 = vand.u32 4294901760, %v15243_v31  ;;  %v19090_v31 = vld [vmem:[#allocation47_spill] sm:$0xff]  ;;  %v3417_v0 = vpop.f32.mrf.mxu0 }
 0x2e5   : > { %5021 = vmatpush.msrb.mxu0 %v19080_v45  ;;  %5103 = vmatpush.msrb.mxu2 %v15332_v61  ;;  %v19094_v26 = vand.u32 4294901760, %v19090_v31  ;;  %v19096_v45 = vld [vmem:[#allocation43_spill] sm:$0xff] }
 0x2e6   : > { %5060 = vmatpush.msrb.mxu1 %v15101_v2  ;;  %5190 = vmatpush.msrb.mxu3 %v5189_v14  ;;  %v5218_v2 = vsub.f32 %v15428_v10, %v5217_v43  ;;  %v5213_v7 = vand.u32 4294901760, %v5212_v22  ;;  %v19092_v14 = vld [vmem:[#allocation40_spill] sm:$0xff] }
 0x2e7   : > { %5025 = vmatpush.msrb.mxu0 %v19081_v50  ;;  %5105 = vmatpush.msrb.mxu2 %v15344_v51 }
 0x2e8   : > { %5062 = vmatpush.msrb.mxu1 %v15114_v12  ;;  %5196 = vmatpush.msrb.mxu3 %v5195_v34  ;;  %v5219_v12 = vand.u32 4294901760, %v5218_v2  ;;  %v19099_v2 = vld [vmem:[#allocation24_spill] sm:$0xff] }
 0x2e9   : > { %5029 = vmatpush.msrb.mxu0 %v19082_v3  ;;  %5107 = vmatpush.msrb.mxu2 %v15356_v23  ;;  %v19100_v3 = vand.u32 4294901760, %v19093_v35 }
 0x2ea   : > { %5064 = vmatpush.msrb.mxu1 %v15127_v32  ;;  %5202 = vmatpush.msrb.mxu3 %v5201_v8  ;;  %v19086_v32 = vld [vmem:[#allocation26_spill] sm:$0xff]  ;;  %v19097_v8 = vld [vmem:[#allocation35_spill] sm:$0xff] }
 0x2eb   : > { %5033 = vmatpush.msrb.mxu0 %v19083_v21  ;;  %5109 = vmatpush.msrb.mxu2 %v15368_v25  ;;  %v3572_v21 = vpop.f32.mrf.mxu2 }
 0x2ec   : > { %5066 = vmatpush.msrb.mxu1 %v15144_v38  ;;  %5208 = vmatpush.msrb.mxu3 %v5207_v58  ;;  %v19087_v38 = vld [vmem:[#allocation41_spill] sm:$0xff]  ;;  %v3519_v58 = vadd.f32 %v3518_v57, %v3417_v0 }
 0x2ed   : > { %5037 = vmatpush.msrb.mxu0 %v19084_v17  ;;  %5111 = vmatpush.msrb.mxu2 %v15380_v46  ;;  %v19102_v17 = vand.u32 4294901760, %v15268_v11  ;;  %v19108_v57 = vld [vmem:[#allocation33_spill] sm:$0xff] }
 0x2ee   : > { %5068 = vmatpush.msrb.mxu1 %v15153_v19  ;;  %5214 = vmatpush.msrb.mxu3 %v5213_v7  ;;  %v19088_v19 = vld [vmem:[#allocation39_spill] sm:$0xff] }
 0x2ef   : > { %5041 = vmatpush.msrb.mxu0 %v19085_v40  ;;  %5113 = vmatpush.msrb.mxu2 %v15393_v60  ;;  %v3573_v40 = vadd.f32 %v3572_v21, %v3519_v58  ;;  %v500_v58 = vld [vmem:[#allocation11 + $0x378] sm:$0xff] }
 0x2f0   : > { %5070 = vmatpush.msrb.mxu1 %v15167_v55  ;;  %5220 = vmatpush.msrb.mxu3 %v5219_v12  ;;  %v19091_v55 = vand.u32 4294901760, %v19087_v38  ;;  %v19101_v12 = vld [vmem:[#allocation42_spill] sm:$0xff]  ;;  %v484_v21 = vld [vmem:[#allocation11 + $0x2f8] sm:$0xff] }
 0x2f1   : > { %4780 = vmatmul.f32.vlgmr.msra.gmra.mxu0 %v19023_v30  ;;  %4974 = vmatmul.f32.vlgmr.msra.gmra.mxu3 %v19086_v32  ;;  %v19140_v32 = vld [vmem:[#allocation23_spill] sm:$0xff] }
 0x2f2   : > { %5228 = vmatpush.msra.mxu0 %v19087_v38  ;;  %5389 = vmatpush.msra.mxu3 %v15179_v48  ;;  %v19103_v38 = vld [vmem:[#allocation18_spill] sm:$0xff] }
 0x2f3   : > { %5072 = vmatpush.msrb.mxu1 %v19088_v19  ;;  %5115 = vmatpush.msrb.mxu2 %v15406_v53  ;;  %v3611_v19 = vpop.f32.mrf.mxu3 }
 0x2f4   : > { %4935 = vmatmul.f32.vlgmr.msra.gmra.mxu2 %v19089_v20  ;;  %5231 = vmatpush.msra.mxu0 %v19090_v31  ;;  %v19104_v31 = vand.u32 4294901760, %v15283_v54  ;;  %v3612_v13 = vadd.f32 %v3611_v19, %v3573_v40  ;;  %v468_v40 = vld [vmem:[#allocation11 + $0x278] sm:$0xff] }
 0x2f5   : > { %5322 = vmatpush.msra.mxu2 %v19091_v55  ;;  %5391 = vmatpush.msra.mxu3 %v15199_v4  ;;  %v19105_v55 = vld [vmem:[#allocation27_spill] sm:$0xff] }
 0x2f6   : > { %5074 = vmatpush.msrb.mxu1 %v19092_v14  ;;  %5234 = vmatpush.msra.mxu0 %v19093_v35  ;;  %v3717_v35 = vpop.f32.mrf.mxu1 }
 0x2f7   : > { %5326 = vmatpush.msra.mxu2 %v19094_v26  ;;  %5393 = vmatpush.msra.mxu3 %v15222_v29  ;;  %v15492_v34 = vpop.permute.xlu0 %6192 }
 0x2f8   : > { %19095 = vst [vmem:[#allocation49_spill] sm:$0xff] %v15492_v34  ;;  %5076 = vmatpush.msrb.mxu1 %v19096_v45  ;;  %5237 = vmatpush.msra.mxu0 %v15268_v11  ;;  %v6212_v50 = vsel %vm6206_vm3, %v19097_v8, %v15492_v34  ;;  %v19110_v45 = vand.u32 4294901760, %v15324_v49 }
 0x2f9   : > { %4881 = vmatmul.f32.vlgmr.msra.gmra.mxu1 %v19099_v2  ;;  %5330 = vmatpush.msra.mxu2 %v19100_v3  ;;  %v6235_v7 = vmul.f32 %v6219_v39, %v6212_v50  ;;  %v19106_v39 = vand.u32 4294901760, %v15301_v9 }
 0x2fa   : > { %5395 = vmatpush.msra.mxu3 %v15239_v37  ;;  %5078 = vmatpush.msrb.mxu1 %v19101_v12  ;;  %v476_v12 = vld [vmem:[#allocation11 + $0x2b8] sm:$0xff] }
 0x2fb   : > { %5240 = vmatpush.msra.mxu0 %v15283_v54  ;;  %6243 = vst [vmem:[#allocation3 + $0x10] sm:$0xf] %v6235_v7  ;;  %5334 = vmatpush.msra.mxu2 %v19102_v17  ;;  %v3680_v54 = vpop.f32.mrf.mxu0  ;;  %v3859_v50 = vpop.f32.mrf.mxu3  ;;  %v492_v7 = vld [vmem:[#allocation11 + $0x338] sm:$0xff] }
 0x2fc   : > { %5281 = vmatpush.msra.mxu1 %v15179_v48  ;;  %5397 = vmatpush.msra.mxu3 %v15254_v41  ;;  %v11467_v48 = vld [vmem:[#allocation13 + $0x8] sm:$0xff]  ;;  %v3681_v26 = vadd.f32 %v3680_v54, %v3612_v13  ;;  %v460_v54 = vld [vmem:[#allocation11 + $0x238] sm:$0xff] }
 0x2fd   : > { %5121 = vmatmul.f32.vlgmr.msrb.gmra.mxu2 %v19103_v38  ;;  %5243 = vmatpush.msra.mxu0 %v15301_v9  ;;  %v6310_v11 = vperm.slane %v11467_v48, 2  ;;  %v19109_v9 = vand.u32 4294901760, %v15316_v18 }
 0x2fe   : > { %5283 = vmatpush.msra.mxu1 %v15199_v4  ;;  %5338 = vmatpush.msra.mxu2 %v19104_v31  ;;  %v3718_v8 = vadd.f32 %v3717_v35, %v3681_v26  ;;  %v15589_v31 = vand.u32 4294901760, %v484_v21  ;;  %v19115_v35 = vld [vmem:[#allocation29_spill] sm:$0xff] }
 0x2ff   : > { %5399 = vmatpush.msra.mxu3 %v15270_v62  ;;  %5043 = vmatmul.f32.vlgmr.msrb.gmra.mxu0 %v19099_v2 }
 0x300   : > { %5222 = vmatmul.f32.vlgmr.msrb.gmra.mxu3 %v19105_v55  ;;  %5246 = vmatpush.msra.mxu0 %v15316_v18  ;;  %v3758_v18 = vpop.f32.mrf.mxu2 }
 0x301   : > { %5285 = vmatpush.msra.mxu1 %v15222_v29  ;;  %5342 = vmatpush.msra.mxu2 %v19106_v39  ;;  %v15522_v4 = vpop.permute.xlu0 %6284  ;;  %v15601_v39 = vand.u32 4294901760, %v468_v40 }
 0x302   : > { %19107 = vst [vmem:[#allocation45_spill] sm:$0xff] %v15522_v4  ;;  %5401 = vmatpush.msra.mxu3 %v15285_v47  ;;  %5080 = vmatmul.f32.vlgmr.msrb.gmra.mxu1 %v19099_v2  ;;  %v6302_v14 = vsel %vm6296_vm4, %v19108_v57, %v15522_v4 }
 0x303   : > { %5249 = vmatpush.msra.mxu0 %v15324_v49  ;;  %5287 = vmatpush.msra.mxu1 %v15239_v37  ;;  %v6326_v29 = vmul.f32 %v6310_v11, %v6302_v14  ;;  %v516_v37 = vld [vmem:[#allocation11 + $0x3f8] sm:$0xff]  ;;  %v11468_v49 = vld [vmem:[#allocation13 + $0x10] sm:$0xff]  ;;  %v15596_v13 = vpop.f32.mrf.mxu3  ;;  %19113 = vst [vmem:[#allocation46_spill] sm:$0xff] %v15601_v39 }
 0x304   : > { %5346 = vmatpush.msra.mxu2 %v19109_v9  ;;  %5403 = vmatpush.msra.mxu3 %v15293_v16 }
 0x305   : > { %5252 = vmatpush.msra.mxu0 %v15336_v28  ;;  %5289 = vmatpush.msra.mxu1 %v15254_v41  ;;  %v6342_v0 = vrot.slane %v6326_v29, 4  ;;  %v508_v41 = vld [vmem:[#allocation11 + $0x3b8] sm:$0xff]  ;;  %v15552_v28 = vand.u32 4294901760, %v516_v37 }
 0x306   : > { %5350 = vmatpush.msra.mxu2 %v19110_v45  ;;  %5405 = vmatpush.msra.mxu3 %v15308_v24 }
 0x307   : > { %5255 = vmatpush.msra.mxu0 %v15354_v5  ;;  %5291 = vmatpush.msra.mxu1 %v15270_v62  ;;  %6358 = vst [vmem:[#allocation3 + $0x10] sm:$0xf0] %v6342_v0  ;;  %v6425_v62 = vperm.slane %v11468_v49, 2  ;;  %v3759_v5 = vadd.f32 %v3758_v18, %v3718_v8  ;;  %v444_v0 = vld [vmem:[#allocation11 + $0x1b8] sm:$0xff]  ;;  %v15629_v8 = vand.u32 4294901760, %v460_v54 }
 0x308   : > { %5354 = vmatpush.msra.mxu2 %v5175_v44  ;;  %5407 = vmatpush.msra.mxu3 %v15332_v61  ;;  %v3952_v44 = vpop.f32.mrf.mxu1  ;;  %v15575_v17 = vpop.f32.mrf.mxu2  ;;  %v436_v49 = vld [vmem:[#allocation11 + $0x178] sm:$0xff] }
 0x309   : > { %5258 = vmatpush.msra.mxu0 %v15366_v27  ;;  %5293 = vmatpush.msra.mxu1 %v15285_v47  ;;  %v3913_v27 = vpop.f32.mrf.mxu0  ;;  %v3860_v19 = vadd.f32 %v3859_v50, %v3759_v5  ;;  %19117 = vst [vmem:[#allocation39_spill] sm:$0xff] %v15629_v8  ;;  %v15640_v50 = vsub.f32 %v468_v40, %v15601_v39 }
 0x30a   : > { %5358 = vmatpush.msra.mxu2 %v5181_v63  ;;  %5409 = vmatpush.msra.mxu3 %v15344_v51  ;;  %v15561_v63 = vand.u32 4294901760, %v508_v41 }
 0x30b   : > { %5261 = vmatpush.msra.mxu0 %v15378_v36  ;;  %5295 = vmatpush.msra.mxu1 %v15293_v16  ;;  %v19112_v16 = vld [vmem:[#allocation22_spill] sm:$0xff]  ;;  %v15580_v36 = vand.u32 4294901760, %v500_v58  ;;  %v3914_v11 = vadd.f32 %v3913_v27, %v3860_v19  ;;  %v15654_v27 = vand.u32 4294901760, %v436_v49 }
 0x30c   : > { %5362 = vmatpush.msra.mxu2 %v5187_v42  ;;  %5411 = vmatpush.msra.mxu3 %v15356_v23  ;;  %v15557_v47 = vpop.permute.xlu1 %6399 }
 0x30d   : > { %19111 = vst [vmem:[#allocation50_spill] sm:$0xff] %v15557_v47  ;;  %5264 = vmatpush.msra.mxu0 %v15391_v33  ;;  %5297 = vmatpush.msra.mxu1 %v15308_v24  ;;  %v6417_v3 = vsel %vm6411_vm6, %v19112_v16, %v15557_v47  ;;  %v15573_v24 = vsub.f32 %v516_v37, %v15552_v28  ;;  %v15594_v33 = vand.u32 4294901760, %v476_v12  ;;  %v428_v16 = vld [vmem:[#allocation11 + $0x138] sm:$0xff] }
 0x30e   : > { %5366 = vmatpush.msra.mxu2 %v5193_v52  ;;  %5413 = vmatpush.msra.mxu3 %v15368_v25  ;;  %v6441_v42 = vmul.f32 %v6425_v62, %v6417_v3  ;;  %v15582_v52 = vand.u32 4294901760, %v492_v7  ;;  %19120 = vst [vmem:[#allocation44_spill] sm:$0xff] %v15654_v27 }
 0x30f   : > { %5267 = vmatpush.msra.mxu0 %v15404_v6  ;;  %5299 = vmatpush.msra.mxu1 %v15332_v61  ;;  %v15587_v61 = vsub.f32 %v508_v41, %v15561_v63  ;;  %v452_v6 = vld [vmem:[#allocation11 + $0x1f8] sm:$0xff]  ;;  %v15627_v18 = vsub.f32 %v476_v12, %v15594_v33 }
 0x310   : > { %5370 = vmatpush.msra.mxu2 %v5199_v59  ;;  %5415 = vmatpush.msra.mxu3 %v15380_v46  ;;  %6449 = vst [vmem:[#allocation3 + $0x138] sm:$0xf] %v6441_v42  ;;  %v11469_v59 = vld [vmem:[#allocation13 + $0x18] sm:$0xff]  ;;  %v4200_v57 = vpop.f32.mrf.mxu1  ;;  %v15610_v14 = vsub.f32 %v492_v7, %v15582_v52  ;;  %v15631_v41 = vand.u32 4294901760, %v452_v6  ;;  %v15659_v42 = vsub.f32 %v460_v54, %v15629_v8  ;;  %v4293_v54 = vpop.f32.mrf.mxu3 }
 0x311   : > { %5270 = vmatpush.msra.mxu0 %v15417_v56  ;;  %5301 = vmatpush.msra.mxu1 %v15344_v51  ;;  %v6516_v48 = vperm.slane %v11469_v59, 2  ;;  %v18587_v51 = vand.u32 4294901760, %v15573_v24  ;;  %v18586_v9 = vand.u32 4294901760, %v15587_v61  ;;  %v15618_v56 = vsub.f32 %v484_v21, %v15589_v31  ;;  %v4099_v45 = vpop.f32.mrf.mxu0  ;;  %v644_v12 = vld [vmem:[#allocation11 + $0x7f8] sm:$0xff]  ;;  %v15806_v2 = vpop.permute.xlu2 %6646 }
 0x312   : > { %5374 = vmatpush.msra.mxu2 %v5205_v1  ;;  %5417 = vmatpush.msra.mxu3 %v15393_v60  ;;  %v15607_v1 = vsub.f32 %v500_v58, %v15580_v36  ;;  %19118 = vst [vmem:[#allocation47_spill] sm:$0xff] %v15631_v41  ;;  %v4201_v62 = vadd.f32 %v4200_v57, %v4099_v45  ;;  %v18584_v59 = vand.u32 4294901760, %v15640_v50  ;;  %v18588_v45 = vand.u32 4294901760, %v15659_v42 }
 0x313   : > { %5273 = vmatpush.msra.mxu0 %v15428_v10  ;;  %5303 = vmatpush.msra.mxu1 %v15356_v23  ;;  %v3953_v23 = vadd.f32 %v3952_v44, %v3914_v11  ;;  %v4254_v44 = vpop.f32.mrf.mxu2  ;;  %v18583_v10 = vand.u32 4294901760, %v15610_v14  ;;  %v5475_v3 = vsub.f32 %v15587_v61, %v18586_v9  ;;  %v18582_v7 = vand.u32 4294901760, %v15618_v56  ;;  %19137 = vst [vmem:[#allocation64_spill] sm:$0xff] %v15806_v2 }
 0x314   : > { %5378 = vmatpush.msra.mxu2 %v5211_v15  ;;  %5419 = vmatpush.msra.mxu3 %v15406_v53  ;;  %v15612_v29 = vpop.permute.xlu1 %6490  ;;  %v19116_v15 = vld [vmem:[#allocation19_spill] sm:$0xff]  ;;  %v18585_v5 = vand.u32 4294901760, %v15607_v1  ;;  %v15663_v21 = vsub.f32 %v452_v6, %v15631_v41  ;;  %v4255_v19 = vadd.f32 %v4254_v44, %v4201_v62 }
 0x315   : > { %19114 = vst [vmem:[#allocation41_spill] sm:$0xff] %v15612_v29  ;;  %5276 = vmatmul.f32.vlgmr.msra.gmra.mxu0 %v19115_v35  ;;  %v6508_v26 = vsel %vm6502_vm5, %v19116_v15, %v15612_v29  ;;  %5305 = vmatpush.msra.mxu1 %v15368_v25  ;;  %v5469_v25 = vsub.f32 %v15573_v24, %v18587_v51  ;;  %v15694_v15 = vand.u32 4294901760, %v644_v12 }
 0x316   : > { %5622 = vmatpush.msrb.mxu3 %v15552_v28  ;;  %5426 = vmatpush.msrb.mxu0 %v15552_v28  ;;  %v6532_v37 = vmul.f32 %v6516_v48, %v6508_v26  ;;  %v4022_v40 = vadd.f32 %v15575_v17, %v3953_v23  ;;  %v15669_v48 = vand.u32 4294901760, %v428_v16  ;;  %v5481_v6 = vsub.f32 %v15607_v1, %v18585_v5  ;;  %v404_v5 = vld [vmem:[#allocation11 + $0x78] sm:$0xff] }
 0x317   : > { %5382 = vmatpush.msra.mxu2 %v5217_v43  ;;  %v15646_v43 = vand.u32 4294901760, %v444_v0  ;;  %5307 = vmatpush.msra.mxu1 %v15380_v46  ;;  %v18581_v46 = vand.u32 4294901760, %v15627_v18  ;;  %v5470_v11 = vand.u32 4294901760, %v5469_v25  ;;  %v15679_v17 = vsub.f32 %v15610_v14, %v18583_v10  ;;  %v19123_v25 = vld [vmem:[#allocation30_spill] sm:$0xff] }
 0x318   : > { %5624 = vmatpush.msrb.mxu3 %v15561_v63  ;;  %5428 = vmatpush.msrb.mxu0 %v15561_v63  ;;  %v6548_v58 = vrot.slane %v6532_v37, 4  ;;  %19121 = vst [vmem:[#allocation43_spill] sm:$0xff] %v15669_v48  ;;  %v15689_v57 = vsub.f32 %v15618_v56, %v18582_v7  ;;  %v15692_v23 = vsub.f32 %v436_v49, %v15654_v27  ;;  %v5476_v26 = vand.u32 4294901760, %v5475_v3  ;;  %v420_v37 = vld [vmem:[#allocation11 + $0xf8] sm:$0xff] }
 0x319   : > { %5569 = vmatpush.msrb.mxu2 %v15573_v24  ;;  %19119 = vst [vmem:[#allocation40_spill] sm:$0xff] %v15646_v43  ;;  %5309 = vmatpush.msra.mxu1 %v15393_v60  ;;  %v15682_v60 = vsub.f32 %v444_v0, %v15646_v43  ;;  %v15701_v0 = vsub.f32 %v15627_v18, %v18581_v46  ;;  %v18589_v62 = vand.u32 4294901760, %v15663_v21  ;;  %v636_v3 = vld [vmem:[#allocation11 + $0x7b8] sm:$0xff]  ;;  %v5482_v7 = vand.u32 4294901760, %v5481_v6  ;;  %v4362_v10 = vpop.f32.mrf.mxu0 }
 0x31a   : > { %5384 = vmatmul.f32.vlgmr.msra.gmra.mxu2 %v19105_v55  ;;  %5430 = vmatpush.msrb.mxu0 %v15580_v36  ;;  %6564 = vst [vmem:[#allocation3 + $0x138] sm:$0xf0] %v6548_v58  ;;  %v4294_v49 = vadd.f32 %v4293_v54, %v4255_v19  ;;  %v15713_v44 = vsub.f32 %v428_v16, %v15669_v48  ;;  %v412_v58 = vld [vmem:[#allocation11 + $0xb8] sm:$0xff]  ;;  %v5488_v19 = vand.u32 4294901760, %v15679_v17  ;;  %v5494_v16 = vand.u32 4294901760, %v15689_v57 }
 0x31b   : > { %5572 = vmatpush.msrb.mxu2 %v15587_v61  ;;  %5626 = vmatpush.msrb.mxu3 %v15580_v36  ;;  %19122 = vst [vmem:[#allocation35_spill] sm:$0xff] %v15692_v23  ;;  %v15716_v46 = vadd.f32 %v15596_v13, %v4022_v40  ;;  %v396_v40 = vld [vmem:[#allocation11 + $0x38] sm:$0xff]  ;;  %v15734_v17 = vsub.f32 %v15659_v42, %v18588_v45  ;;  %v15741_v9 = vand.u32 4294901760, %v412_v58  ;;  %v15743_v51 = vand.u32 4294901760, %v636_v3 }
 0x31c   : > { %5421 = vmatmul.f32.vlgmr.msra.gmra.mxu3 %v19105_v55  ;;  %5432 = vmatpush.msrb.mxu0 %v15582_v52  ;;  %19124 = vst [vmem:[#allocation21_spill] sm:$0xff] %v15713_v44  ;;  %v628_v6 = vld [vmem:[#allocation11 + $0x778] sm:$0xff]  ;;  %v15739_v57 = vsub.f32 %v15663_v21, %v18589_v62  ;;  %v5500_v13 = vand.u32 4294901760, %v15701_v0  ;;  %v4399_v62 = vpop.f32.mrf.mxu1  ;;  %v19128_v34 = vand.u32 4294901760, %v15682_v60  ;;  %v15756_v47 = vand.u32 4294901760, %v404_v5 }
 0x31d   : > { %5575 = vmatpush.msrb.mxu2 %v15607_v1  ;;  %5628 = vmatpush.msrb.mxu3 %v15582_v52  ;;  %19127 = vst [vmem:[#allocation22_spill] sm:$0xff] %v15741_v9  ;;  %v15758_v4 = vand.u32 4294901760, %v396_v40  ;;  %v19131_v0 = vand.u32 4294901760, %v15692_v23  ;;  %v5512_v54 = vand.u32 4294901760, %v15734_v17  ;;  %v15779_v35 = vsub.f32 %v412_v58, %v15741_v9  ;;  %v612_v58 = vld [vmem:[#allocation11 + $0x6f8] sm:$0xff] }
 0x31e   : > { %5311 = vmatpush.msra.mxu1 %v15406_v53  ;;  %5434 = vmatpush.msrb.mxu0 %v15589_v31  ;;  %v15710_v53 = vsub.f32 %v15640_v50, %v18584_v59  ;;  %v15724_v59 = vand.u32 4294901760, %v420_v37  ;;  %v15754_v29 = vsub.f32 %v15682_v60, %v19128_v34  ;;  %19129 = vst [vmem:[#allocation19_spill] sm:$0xff] %v15756_v47  ;;  %v19135_v17 = vand.u32 4294901760, %v15713_v44 }
 0x31f   : > { %5315 = vmatmul.f32.vlgmr.msra.gmra.mxu1 %v19123_v25  ;;  %5578 = vmatpush.msrb.mxu2 %v15610_v14  ;;  %19132 = vst [vmem:[#allocation60_spill] sm:$0xff] %v15779_v35  ;;  %v15801_v38 = vsub.f32 %v396_v40, %v15758_v4  ;;  %vm6111_vm13 = vcmp.ge.f32.partialorder %v15716_v46, 0.0 }
 0x320   : > { %5471 = vmatpush.msrb.mxu1 %v5470_v11  ;;  %5630 = vmatpush.msrb.mxu3 %v15589_v31  ;;  %19125 = vst [vmem:[#allocation42_spill] sm:$0xff] %v15724_v59  ;;  %v15728_v11 = vsub.f32 %v644_v12, %v15694_v15  ;;  %v620_v12 = vld [vmem:[#allocation11 + $0x738] sm:$0xff]  ;;  %v5506_v45 = vand.u32 4294901760, %v15710_v53  ;;  %v15793_v25 = vsub.f32 %v15713_v44, %v19135_v17 }
 0x321   : > { %5436 = vmatpush.msrb.mxu0 %v15594_v33  ;;  %5581 = vmatpush.msrb.mxu2 %v15618_v56  ;;  %v15773_v53 = vand.u32 4294901760, %v620_v12 }
 0x322   : > { %19126 = vst [vmem:[#allocation33_spill] sm:$0xff] %v15728_v11  ;;  %5477 = vmatpush.msrb.mxu1 %v5476_v26  ;;  %5632 = vmatpush.msrb.mxu3 %v15594_v33  ;;  %v4363_v26 = vadd.f32 %v4362_v10, %v4294_v49  ;;  %v15760_v10 = vand.u32 4294901760, %v628_v6  ;;  %v15770_v49 = vsub.f32 %v15692_v23, %v19131_v0  ;;  %v15786_v0 = vld [vmem:[#allocation13 + $0x28] sm:$0xff] }
 0x323   : > { %5438 = vmatpush.msrb.mxu0 %v15601_v39  ;;  %5584 = vmatpush.msrb.mxu2 %v15627_v18  ;;  %19134 = vst [vmem:[#allocation62_spill] sm:$0xff] %v15786_v0  ;;  %v6670_v34 = vperm.slane %v15786_v0, 2  ;;  %v15818_v20 = vsub.f32 %v620_v12, %v15773_v53 }
 0x324   : > { %5483 = vmatpush.msrb.mxu1 %v5482_v7  ;;  %5634 = vmatpush.msrb.mxu3 %v15601_v39  ;;  %v15765_v7 = vsub.f32 %v420_v37, %v15724_v59  ;;  %v15782_v37 = vsub.f32 %v636_v3, %v15743_v51  ;;  %v4400_v55 = vadd.f32 %v4399_v62, %v4363_v26  ;;  %v4440_v62 = vpop.f32.mrf.mxu2  ;;  %v19138_v3 = vand.u32 4294901760, %v15728_v11  ;;  %v564_v39 = vld [vmem:[#allocation11 + $0x578] sm:$0xff] }
 0x325   : > { %5440 = vmatpush.msrb.mxu0 %v15629_v8  ;;  %5587 = vmatpush.msrb.mxu2 %v15640_v50  ;;  %v15798_v26 = vsub.f32 %v404_v5, %v15756_v47  ;;  %19139 = vst [vmem:[#allocation65_spill] sm:$0xff] %v15818_v20 }
 0x326   : > { %19130 = vst [vmem:[#allocation59_spill] sm:$0xff] %v15765_v7  ;;  %5489 = vmatpush.msrb.mxu1 %v5488_v19  ;;  %5636 = vmatpush.msrb.mxu3 %v15629_v8  ;;  %v6669_v19 = vperm.slane %v15786_v0, 1  ;;  %v15804_v0 = vsub.f32 %v628_v6, %v15760_v10  ;;  %v15814_v5 = vsub.f32 %v15728_v11, %v19138_v3  ;;  %v18604_v30 = vand.u32 4294901760, %v15782_v37  ;;  %v604_v11 = vld [vmem:[#allocation11 + $0x6b8] sm:$0xff]  ;;  %v4541_v8 = vpop.f32.mrf.mxu3 }
 0x327   : > { %19133 = vst [vmem:[#allocation61_spill] sm:$0xff] %v15782_v37  ;;  %5442 = vmatpush.msrb.mxu0 %v15631_v41  ;;  %5590 = vmatpush.msrb.mxu2 %v15659_v42  ;;  %v15828_v3 = vand.u32 4294901760, %v612_v58  ;;  %v4441_v40 = vadd.f32 %v4440_v62, %v4400_v55 }
 0x328   : > { %5495 = vmatpush.msrb.mxu1 %v5494_v16  ;;  %5638 = vmatpush.msrb.mxu3 %v15631_v41  ;;  %19136 = vst [vmem:[#allocation63_spill] sm:$0xff] %v15804_v0  ;;  %v596_v41 = vld [vmem:[#allocation11 + $0x678] sm:$0xff] }
 0x329   : > { %5444 = vmatpush.msrb.mxu0 %v15646_v43  ;;  %5593 = vmatpush.msrb.mxu2 %v15663_v21  ;;  %v6645_v17 = vpop.permute.xlu0 %6644  ;;  %v15852_v62 = vand.u32 4294901760, %v596_v41 }
 0x32a   : > { %5501 = vmatpush.msrb.mxu1 %v5500_v13  ;;  %5640 = vmatpush.msrb.mxu3 %v15646_v43  ;;  %v6661_v6 = vsel %vm6656_vm7, %v6645_v17, %v15806_v2  ;;  %v6662_v16 = vsel %vm6656_vm7, %v19140_v32, %v6645_v17  ;;  %v18605_v43 = vand.u32 4294901760, %v15779_v35  ;;  %v588_v2 = vld [vmem:[#allocation11 + $0x638] sm:$0xff]  ;;  %v15850_v17 = vsub.f32 %v612_v58, %v15828_v3 }
 0x32b   : > { %5446 = vmatpush.msrb.mxu0 %v15654_v27  ;;  %5596 = vmatpush.msrb.mxu2 %v15682_v60  ;;  %v6685_v13 = vmul.f32 %v6669_v19, %v6662_v16  ;;  %v6686_v12 = vmul.f32 %v6670_v34, %v6661_v6  ;;  %v15841_v6 = vand.u32 4294901760, %v604_v11  ;;  %v15854_v55 = vand.u32 4294901760, %v588_v2 }
 0x32c   : > { %5507 = vmatpush.msrb.mxu1 %v5506_v45  ;;  %5642 = vmatpush.msrb.mxu3 %v15654_v27  ;;  %v19141_v45 = vand.u32 4294901760, %v15765_v7  ;;  %v15866_v58 = vsub.f32 %v15779_v35, %v18605_v43  ;;  %v19145_v43 = vand.u32 4294901760, %v15801_v38  ;;  %v19148_v27 = vand.u32 4294901760, %v15754_v29  ;;  %v19150_v29 = vld [vmem:[#allocation51_spill] sm:$0xff] }
 0x32d   : > { %5448 = vmatpush.msrb.mxu0 %v15669_v48  ;;  %5599 = vmatpush.msrb.mxu2 %v15692_v23  ;;  %v6701_v34 = vrot.slane %v6685_v13, 4  ;;  %v6702_v19 = vrot.slane %v6686_v12, 4  ;;  %v4542_v13 = vadd.f32 %v4541_v8, %v4441_v40  ;;  %v15861_v12 = vsub.f32 %v15782_v37, %v18604_v30  ;;  %v19152_v23 = vld [vmem:[#allocation37_spill] sm:$0xff] }
 0x32e   : > { %5513 = vmatpush.msrb.mxu1 %v5512_v54  ;;  %5644 = vmatpush.msrb.mxu3 %v15669_v48  ;;  %v15847_v32 = vsub.f32 %v15765_v7, %v19141_v45  ;;  %v4595_v54 = vpop.f32.mrf.mxu0  ;;  %v19142_v45 = vand.u32 4294901760, %v15739_v57  ;;  %v19143_v8 = vand.u32 4294901760, %v15798_v26  ;;  %v15883_v37 = vsub.f32 %v15801_v38, %v19145_v43  ;;  %v580_v57 = vld [vmem:[#allocation11 + $0x5f8] sm:$0xff] }
 0x32f   : > { %5450 = vmatpush.msrb.mxu0 %v15724_v59  ;;  %5602 = vmatpush.msrb.mxu2 %v15713_v44  ;;  %6717 = vst [vmem:[#allocation3 + $0x110] sm:$0xf0] %v6701_v34  ;;  %v15876_v34 = vld [vmem:[#allocation13 + $0x30] sm:$0xff]  ;;  %v15899_v43 = vsub.f32 %v604_v11, %v15841_v6 }
 0x330   : > { %5519 = vmatpush.msrb.mxu1 %v19142_v45  ;;  %5646 = vmatpush.msrb.mxu3 %v15724_v59  ;;  %6718 = vst [vmem:[#allocation3 + $0x8] sm:$0xf0] %v6702_v19  ;;  %v15874_v40 = vsub.f32 %v15798_v26, %v19143_v8  ;;  %v6784_v30 = vperm.slane %v15876_v34, 1  ;;  %v6785_v16 = vperm.slane %v15876_v34, 2  ;;  %v572_v45 = vld [vmem:[#allocation11 + $0x5b8] sm:$0xff]  ;;  %v5811_v19 = vand.u32 4294901760, %v15814_v5 }
 0x331   : > { %19144 = vst [vmem:[#allocation23_spill] sm:$0xff] %v15876_v34  ;;  %5452 = vmatpush.msrb.mxu0 %v15741_v9  ;;  %5605 = vmatpush.msrb.mxu2 %v15765_v7  ;;  %v19146_v8 = vand.u32 4294901760, %v15804_v0  ;;  %v19147_v34 = vand.u32 4294901760, %v15818_v20  ;;  %v4596_v7 = vadd.f32 %v4595_v54, %v4542_v13  ;;  %v15922_v54 = vand.u32 4294901760, %v580_v57 }
 0x332   : > { %5525 = vmatpush.msrb.mxu1 %v19148_v27  ;;  %5648 = vmatpush.msrb.mxu3 %v15741_v9  ;;  %v6760_v5 = vpop.permute.xlu1 %6759  ;;  %v15904_v44 = vpop.permute.xlu0 %6761 }
 0x333   : > { %v15891_v59 = vsub.f32 %v15804_v0, %v19146_v8  ;;  %v15896_v48 = vsub.f32 %v15818_v20, %v19147_v34  ;;  %19149 = vst [vmem:[#allocation66_spill] sm:$0xff] %v15904_v44  ;;  %v15908_v0 = vsub.f32 %v596_v41, %v15852_v62  ;;  %v15911_v34 = vsub.f32 %v588_v2, %v15854_v55  ;;  %v4634_v13 = vpop.f32.mrf.mxu1  ;;  %v4703_v41 = vpop.f32.mrf.mxu2 }
 0x334   : > { %5454 = vmatpush.msrb.mxu0 %v15756_v47  ;;  %5608 = vmatpush.msrb.mxu2 %v15779_v35  ;;  %v6777_v27 = vsel %vm6771_vm8, %v19150_v29, %v6760_v5  ;;  %v6776_v11 = vsel %vm6771_vm8, %v6760_v5, %v15904_v44  ;;  %v15924_v2 = vand.u32 4294901760, %v572_v45  ;;  %v19151_v8 = vand.u32 4294901760, %v15770_v49 }
 0x335   : > { %5650 = vmatpush.msrb.mxu3 %v15756_v47  ;;  %v5542_v20 = vand.u32 4294901760, %v15847_v32  ;;  %v6800_v9 = vmul.f32 %v6784_v30, %v6777_v27  ;;  %v6801_v35 = vmul.f32 %v6785_v16, %v6776_v11  ;;  %v4635_v29 = vadd.f32 %v4634_v13, %v4596_v7  ;;  %v4740_v47 = vpop.f32.mrf.mxu3 }
 0x336   : > { %5531 = vmatpush.msrb.mxu1 %v19151_v8  ;;  %v15932_v5 = vmul.f32 %v19152_v23, %v15716_v46  ;;  %5456 = vmatpush.msrb.mxu0 %v15758_v4  ;;  %v5817_v44 = vand.u32 4294901760, %v15861_v12  ;;  %v5548_v49 = vand.u32 4294901760, %v15866_v58  ;;  %v18627_v8 = vand.u32 4294901760, %v15899_v43  ;;  %v556_v58 = vld [vmem:[#allocation11 + $0x538] sm:$0xff] }
 0x337   : > { %5611 = vmatpush.msrb.mxu2 %v15798_v26  ;;  %v19153_v30 = vand.u32 4294901760, %v15793_v25  ;;  %5652 = vmatpush.msrb.mxu3 %v15758_v4  ;;  %v5554_v7 = vand.u32 4294901760, %v15874_v40  ;;  %6808 = vst [vmem:[#allocation3 + $0x118] sm:$0xf] %v6800_v9  ;;  %v19154_v32 = vand.u32 4294901760, %v15850_v17  ;;  %v4704_v27 = vadd.f32 %v4703_v41, %v4635_v29 }
 0x338   : > { %v18625_v12 = vand.u32 4294901760, %v15908_v0  ;;  %v19155_v11 = vand.u32 4294901760, %v15573_v24  ;;  %6809 = vst [vmem:[#allocation3 + $0xd8] sm:$0xf] %v6801_v35  ;;  %v18626_v25 = vand.u32 4294901760, %v15911_v34  ;;  %v15953_v13 = vsub.f32 %v580_v57, %v15922_v54 }
 0x339   : > { %5537 = vmatpush.msrb.mxu1 %v19153_v30  ;;  %v15946_v16 = vsub.f32 %v15850_v17, %v19154_v32  ;;  %5812 = vmatpush.msra.mxu3 %v5811_v19  ;;  %v15956_v9 = vsub.f32 %v572_v45, %v15924_v2  ;;  %v15958_v40 = vand.u32 4294901760, %v564_v39  ;;  %v5823_v41 = vand.u32 4294901760, %v15891_v59  ;;  %v15970_v45 = vld [vmem:[#allocation13 + $0x38] sm:$0xff] }
 0x33a   : > { %5663 = vmatpush.msra.mxu0 %v19155_v11  ;;  %5614 = vmatpush.msrb.mxu2 %v15801_v38  ;;  %v5829_v24 = vand.u32 4294901760, %v15896_v48  ;;  %v5560_v19 = vand.u32 4294901760, %v15883_v37  ;;  %v4741_v35 = vadd.f32 %v4740_v47, %v4704_v27  ;;  %v19156_v29 = vand.u32 4294901760, %v15587_v61  ;;  %v548_v48 = vld [vmem:[#allocation11 + $0x4f8] sm:$0xff] }
 0x33b   : > { %5543 = vmatpush.msrb.mxu1 %v5542_v20  ;;  %v5840_v57 = vsub.f32 %v15899_v43, %v18627_v8  ;;  %v6875_v20 = vperm.slane %v15970_v45, 1  ;;  %v6876_v59 = vperm.slane %v15970_v45, 2  ;;  %v15974_v30 = vand.u32 4294901760, %v556_v58  ;;  %5818 = vmatpush.msra.mxu3 %v5817_v44  ;;  %v15989_v44 = vpop.permute.xlu1 %6852 }
 0x33c   : > { %5667 = vmatpush.msra.mxu0 %v19156_v29  ;;  %5767 = vmatpush.msra.mxu2 %v15694_v15  ;;  %v5835_v47 = vand.u32 4294901760, %v15946_v16  ;;  %v5846_v61 = vsub.f32 %v15908_v0, %v18625_v12  ;;  %vm6112_vm14 = vcmp.ge.f32.partialorder %v4741_v35, 0.0  ;;  %v6121_v37 = vmul.f32 %v19152_v23, %v4741_v35  ;;  %v540_v12 = vld [vmem:[#allocation11 + $0x4b8] sm:$0xff] }
 0x33d   : > { %5549 = vmatpush.msrb.mxu1 %v5548_v49  ;;  %v19157_v32 = vand.u32 4294901760, %v15607_v1  ;;  %v15987_v27 = vsub.f32 %v15911_v34, %v18626_v25  ;;  %v6851_v49 = vpop.permute.xlu0 %6850  ;;  %v15994_v29 = vsub.f32 %v564_v39, %v15958_v40  ;;  %5824 = vmatpush.msra.mxu3 %v5823_v41  ;;  %v19158_v25 = vld [vmem:[#allocation54_spill] sm:$0xff]  ;;  %v16002_v23 = vand.u32 4294901760, %v548_v48 }
 0x33e   : > { %5769 = vmatpush.msra.mxu2 %v15743_v51  ;;  %v6129_v1 = vsel %vm6112_vm14, %v4741_v35, %v6121_v37  ;;  %v6868_v8 = vsel %vm6862_vm11, %v19158_v25, %v6851_v49  ;;  %v19159_v16 = vand.u32 4294901760, %v15610_v14  ;;  %v532_v35 = vld [vmem:[#allocation11 + $0x478] sm:$0xff]  ;;  %v6128_v37 = vsel %vm6111_vm13, %v15716_v46, %v15932_v5 }
 0x33f   : > { %5671 = vmatpush.msra.mxu0 %v19157_v32  ;;  %5555 = vmatpush.msrb.mxu1 %v5554_v7  ;;  %v6867_v32 = vsel %vm6862_vm11, %v6851_v49, %v15989_v44  ;;  %v6142_v39 = vrot.slane %v6129_v1, 4  ;;  %v6891_v11 = vmul.f32 %v6875_v20, %v6868_v8  ;;  %v16008_v7 = vsub.f32 %v556_v58, %v15974_v30 }
 0x340   : > { %5771 = vmatpush.msra.mxu2 %v15760_v10  ;;  %v6892_v41 = vmul.f32 %v6876_v59, %v6867_v32  ;;  %5830 = vmatpush.msra.mxu3 %v5829_v24  ;;  %v5841_v25 = vand.u32 4294901760, %v5840_v57  ;;  %v16014_v49 = vand.u32 4294901760, %v540_v12  ;;  %v19160_v14 = vand.u32 4294901760, %v15618_v56 }
 0x341   : > { %5675 = vmatpush.msra.mxu0 %v19159_v16  ;;  %5561 = vmatpush.msrb.mxu1 %v5560_v19  ;;  %v5847_v8 = vand.u32 4294901760, %v5846_v61  ;;  %v16020_v58 = vsel %vm6144_vm2, %v6128_v37, %v6142_v39  ;;  %v6907_v20 = vrot.slane %v6891_v11, 4  ;;  %v524_v16 = vld [vmem:[#allocation11 + $0x438] sm:$0xff]  ;;  %v19161_v46 = vand.u32 4294901760, %v15953_v13 }
 0x342   : > { %v6908_v59 = vrot.slane %v6892_v41, 4  ;;  %5773 = vmatpush.msra.mxu2 %v15773_v53  ;;  %5836 = vmatpush.msra.mxu3 %v5835_v47  ;;  %6169 = vst [vmem:[#allocation1 + $0x20] ss:$2 sm:$0xff] %v16020_v58  ;;  %v5869_v56 = vand.u32 4294901760, %v15994_v29  ;;  %v16031_v24 = vand.u32 4294901760, %v532_v35  ;;  %v19162_v19 = vand.u32 4294901760, %v15627_v18 }
 0x343   : > { %5679 = vmatpush.msra.mxu0 %v19160_v14  ;;  %5730 = vmatpush.msra.mxu1 %v15552_v28  ;;  %v5858_v5 = vsub.f32 %v15953_v13, %v19161_v46  ;;  %v16029_v28 = vsub.f32 %v548_v48, %v16002_v23  ;;  %v5853_v57 = vand.u32 4294901760, %v15987_v27  ;;  %6923 = vst [vmem:[#allocation3 + $0x118] sm:$0xf0] %v6907_v20  ;;  %v19163_v47 = vand.u32 4294901760, %v15956_v9  ;;  %v16042_v48 = vld [vmem:[#allocation13 + $0x40] sm:$0xff] }
 0x344   : > { %v5875_v11 = vand.u32 4294901760, %v16008_v7  ;;  %5775 = vmatpush.msra.mxu2 %v15828_v3  ;;  %5842 = vmatpush.msra.mxu3 %v5841_v25  ;;  %6924 = vst [vmem:[#allocation3 + $0xd8] sm:$0xf0] %v6908_v59  ;;  %v6990_v18 = vperm.slane %v16042_v48, 1  ;;  %v6991_v1 = vperm.slane %v16042_v48, 2  ;;  %v16049_v27 = vand.u32 4294901760, %v524_v16  ;;  %v6966_v37 = vpop.permute.xlu1 %6965 }
 0x345   : > { %5683 = vmatpush.msra.mxu0 %v19162_v19  ;;  %5732 = vmatpush.msra.mxu1 %v15561_v63  ;;  %v5864_v61 = vsub.f32 %v15956_v9, %v19163_v47  ;;  %v16047_v63 = vsub.f32 %v540_v12, %v16014_v49  ;;  %v19164_v32 = vand.u32 4294901760, %v15640_v50  ;;  %v5859_v39 = vand.u32 4294901760, %v5858_v5  ;;  %v16058_v25 = vpop.permute.xlu0 %6967  ;;  %v19166_v20 = vld [vmem:[#allocation57_spill] sm:$0xff] }
 0x346   : > { %5777 = vmatpush.msra.mxu2 %v15841_v6  ;;  %5848 = vmatpush.msra.mxu3 %v5847_v8  ;;  %v5870_v41 = vsub.f32 %v15994_v29, %v5869_v56  ;;  %v5881_v12 = vand.u32 4294901760, %v16029_v28  ;;  %v16062_v14 = vsub.f32 %v532_v35, %v16031_v24  ;;  %v19165_v50 = vand.u32 4294901760, %v15659_v42 }
 0x347   : > { %5687 = vmatpush.msra.mxu0 %v19164_v32  ;;  %5734 = vmatpush.msra.mxu1 %v15580_v36  ;;  %v5865_v36 = vand.u32 4294901760, %v5864_v61  ;;  %v5876_v8 = vsub.f32 %v16008_v7, %v5875_v11  ;;  %v6983_v59 = vsel %vm6977_vm12, %v19166_v20, %v6966_v37  ;;  %v6982_v46 = vsel %vm6977_vm12, %v6966_v37, %v16058_v25  ;;  %v19171_v37 = vld [vmem:[#allocation46_spill] sm:$0xff] }
 0x348   : > { %5779 = vmatpush.msra.mxu2 %v15852_v62  ;;  %5854 = vmatpush.msra.mxu3 %v5853_v57  ;;  %v7006_v42 = vmul.f32 %v6990_v18, %v6983_v59  ;;  %v7007_v35 = vmul.f32 %v6991_v1, %v6982_v46  ;;  %v16079_v5 = vsub.f32 %v524_v16, %v16049_v27  ;;  %v19167_v61 = vand.u32 4294901760, %v15663_v21 }
 0x349   : > { %5691 = vmatpush.msra.mxu0 %v19165_v50  ;;  %5736 = vmatpush.msra.mxu1 %v15582_v52  ;;  %v5887_v52 = vand.u32 4294901760, %v16047_v63  ;;  %v16081_v19 = vld.sshfl [vmem:[#allocation1 + $0x20] sm:$0xff pattern:$0x75316420]  ;;  %v5871_v57 = vand.u32 4294901760, %v5870_v41  ;;  %v5882_v16 = vsub.f32 %v16029_v28, %v5881_v12  ;;  %v5893_v18 = vand.u32 4294901760, %v16062_v14 }
 0x34a   : > { %v16083_v47 = vld.sshfl [vmem:[#allocation1 + $0x28] sm:$0xff pattern:$0x75316420]  ;;  %5781 = vmatpush.msra.mxu2 %v15854_v55  ;;  %5860 = vmatpush.msra.mxu3 %v5859_v39  ;;  %v19168_v1 = vand.u32 4294901760, %v15682_v60  ;;  %7014 = vst [vmem:[#allocation3 + $0x78] sm:$0xf] %v7006_v42 }
 0x34b   : > { %5695 = vmatpush.msra.mxu0 %v19167_v61  ;;  %5738 = vmatpush.msra.mxu1 %v15589_v31  ;;  %6261 = vst [vmem:[#allocation1 + $0x20] ss:$2 sm:$0xff] %v16020_v58  ;;  %v5877_v31 = vand.u32 4294901760, %v5876_v8  ;;  %v5888_v21 = vsub.f32 %v16047_v63, %v5887_v52  ;;  %v5899_v32 = vand.u32 4294901760, %v16079_v5  ;;  %v19169_v39 = vld [vmem:[#allocation35_spill] sm:$0xff]  ;;  %v5894_v60 = vsub.f32 %v16062_v14, %v5893_v18  ;;  %v19172_v50 = vld [vmem:[#allocation21_spill] sm:$0xff] }
 0x34c   : > { %5783 = vmatpush.msra.mxu2 %v15922_v54  ;;  %5866 = vmatpush.msra.mxu3 %v5865_v36  ;;  %7015 = vst [vmem:[#allocation3 + $0x30] sm:$0xf] %v7007_v35  ;;  %v19170_v41 = vand.u32 4294901760, %v19169_v39  ;;  %v19173_v36 = vand.u32 4294901760, %v19172_v50  ;;  %v19174_v8 = vld [vmem:[#allocation39_spill] sm:$0xff] }
 0x34d   : > { %5699 = vmatpush.msra.mxu0 %v19168_v1  ;;  %5740 = vmatpush.msra.mxu1 %v15594_v33  ;;  %v5883_v33 = vand.u32 4294901760, %v5882_v16  ;;  %v5889_v20 = vand.u32 4294901760, %v5888_v21  ;;  %v5900_v59 = vsub.f32 %v16079_v5, %v5899_v32  ;;  %v19175_v35 = vld [vmem:[#allocation59_spill] sm:$0xff]  ;;  %v5895_v16 = vand.u32 4294901760, %v5894_v60  ;;  %v19178_v1 = vld [vmem:[#allocation60_spill] sm:$0xff] }
 0x34e   : > { %5785 = vmatpush.msra.mxu2 %v15924_v2  ;;  %5872 = vmatpush.msra.mxu3 %v5871_v57  ;;  %v19176_v61 = vand.u32 4294901760, %v19175_v35  ;;  %v19177_v57 = vld [vmem:[#allocation47_spill] sm:$0xff]  ;;  %v19180_v21 = vld [vmem:[#allocation40_spill] sm:$0xff]  ;;  %v19190_v35 = vld [vmem:[#allocation61_spill] sm:$0xff] }
 0x34f   : > { %5703 = vmatpush.msra.mxu0 %v19170_v41  ;;  %5742 = vmatpush.msra.mxu1 %v19171_v37  ;;  %v5901_v39 = vand.u32 4294901760, %v5900_v59  ;;  %v19181_v41 = vand.u32 4294901760, %v15798_v26  ;;  %v19182_v37 = vld [vmem:[#allocation44_spill] sm:$0xff]  ;;  %v19184_v60 = vld [vmem:[#allocation43_spill] sm:$0xff]  ;;  %v19186_v26 = vld [vmem:[#allocation26_spill] sm:$0xff] }
 0x350   : > { %5787 = vmatpush.msra.mxu2 %v15958_v40  ;;  %5878 = vmatpush.msra.mxu3 %v5877_v31  ;;  %v19179_v31 = vand.u32 4294901760, %v19178_v1  ;;  %v19189_v59 = vld [vmem:[#allocation25_spill] sm:$0xff]  ;;  %v19194_v1 = vand.u32 4294901760, %v19190_v35 }
 0x351   : > { %5707 = vmatpush.msra.mxu0 %v19173_v36  ;;  %5744 = vmatpush.msra.mxu1 %v19174_v8  ;;  %v19185_v8 = vld [vmem:[#allocation28_spill] sm:$0xff] }
 0x352   : > { %v16116_v46 = vld.sshfl [vmem:[#allocation1 + $0x20] sm:$0xff pattern:$0x75316420]  ;;  %v16118_v42 = vld.sshfl [vmem:[#allocation1 + $0x28] sm:$0xff pattern:$0x75316420]  ;;  %5789 = vmatpush.msra.mxu2 %v15974_v30  ;;  %5884 = vmatpush.msra.mxu3 %v5883_v33 }
 0x353   : > { %5711 = vmatpush.msra.mxu0 %v19176_v61  ;;  %5746 = vmatpush.msra.mxu1 %v19177_v57  ;;  %6376 = vst [vmem:[#allocation1 + $0x20] ss:$2 sm:$0xff] %v16020_v58  ;;  %v19183_v33 = vand.u32 4294901760, %v15801_v38  ;;  %v19188_v38 = vld [vmem:[#allocation42_spill] sm:$0xff] }
 0x354   : > { %5791 = vmatpush.msra.mxu2 %v16002_v23  ;;  %5890 = vmatpush.msra.mxu3 %v5889_v20  ;;  %v19187_v20 = vld [vmem:[#allocation33_spill] sm:$0xff]  ;;  %v19192_v57 = vld [vmem:[#allocation22_spill] sm:$0xff] }
 0x355   : > { %5715 = vmatpush.msra.mxu0 %v19179_v31  ;;  %5748 = vmatpush.msra.mxu1 %v19180_v21  ;;  %v19191_v61 = vand.u32 4294901760, %v19187_v20  ;;  %v19195_v31 = vld [vmem:[#allocation19_spill] sm:$0xff]  ;;  %v19196_v21 = vld [vmem:[#allocation65_spill] sm:$0xff] }
 0x356   : > { %5793 = vmatpush.msra.mxu2 %v16014_v49  ;;  %5896 = vmatpush.msra.mxu3 %v5895_v16  ;;  %v19193_v16 = vld [vmem:[#allocation63_spill] sm:$0xff] }
 0x357   : > { %5719 = vmatpush.msra.mxu0 %v19181_v41  ;;  %5750 = vmatpush.msra.mxu1 %v19182_v37  ;;  %v19197_v37 = vld [vmem:[#allocation24_spill] sm:$0xff] }
 0x358   : > { %5795 = vmatpush.msra.mxu2 %v16031_v24  ;;  %5902 = vmatpush.msra.mxu3 %v5901_v39 }
 0x359   : > { %5723 = vmatpush.msra.mxu0 %v19183_v33  ;;  %5752 = vmatpush.msra.mxu1 %v19184_v60  ;;  %v19198_v33 = vand.u32 4294901760, %v19193_v16  ;;  %v19199_v60 = vand.u32 4294901760, %v19196_v21 }
 0x35a   : > { %v16137_v50 = vld.sshfl [vmem:[#allocation1 + $0x20] sm:$0xff pattern:$0x75316420]  ;;  %v16139_v36 = vld.sshfl [vmem:[#allocation1 + $0x28] sm:$0xff pattern:$0x75316420]  ;;  %5462 = vmatmul.f32.vlgmr.msrb.gmra.mxu0 %v19185_v8  ;;  %5656 = vmatmul.f32.vlgmr.msrb.gmra.mxu3 %v19186_v26 }
 0x35b   : > { %6467 = vst [vmem:[#allocation1 + $0x20] ss:$2 sm:$0xff] %v16020_v58  ;;  %5910 = vmatpush.msrb.mxu0 %v19187_v20  ;;  %6071 = vmatpush.msrb.mxu3 %v15694_v15  ;;  %v19200_v8 = vld [vmem:[#allocation18_spill] sm:$0xff]  ;;  %v19201_v26 = vand.u32 4294901760, %v15850_v17 }
 0x35c   : > { %5754 = vmatpush.msra.mxu1 %v19188_v38  ;;  %5797 = vmatpush.msra.mxu2 %v16049_v27  ;;  %v19203_v38 = vand.u32 4294901760, %v15899_v43 }
 0x35d   : > { %5617 = vmatmul.f32.vlgmr.msrb.gmra.mxu2 %v19189_v59  ;;  %5913 = vmatpush.msrb.mxu0 %v19190_v35 }
 0x35e   : > { %6004 = vmatpush.msrb.mxu2 %v19191_v61  ;;  %6073 = vmatpush.msrb.mxu3 %v15743_v51 }
 0x35f   : > { %5756 = vmatpush.msra.mxu1 %v19192_v57  ;;  %5916 = vmatpush.msrb.mxu0 %v19193_v16 }
 0x360   : > { %6008 = vmatpush.msrb.mxu2 %v19194_v1  ;;  %6075 = vmatpush.msrb.mxu3 %v15760_v10 }
 0x361   : > { %5758 = vmatpush.msra.mxu1 %v19195_v31  ;;  %5919 = vmatpush.msrb.mxu0 %v19196_v21 }
 0x362   : > { %v16160_v39 = vld.sshfl [vmem:[#allocation1 + $0x20] sm:$0xff pattern:$0x75316420]  ;;  %v16162_v41 = vld.sshfl [vmem:[#allocation1 + $0x28] sm:$0xff pattern:$0x75316420]  ;;  %5563 = vmatmul.f32.vlgmr.msrb.gmra.mxu1 %v19197_v37  ;;  %6012 = vmatpush.msrb.mxu2 %v19198_v33 }
 0x363   : > { %6582 = vst [vmem:[#allocation1 + $0x20] ss:$2 sm:$0xff] %v16020_v58  ;;  %6077 = vmatpush.msrb.mxu3 %v15773_v53  ;;  %5760 = vmatpush.msra.mxu1 %v15758_v4  ;;  %v19202_v4 = vld [vmem:[#allocation27_spill] sm:$0xff] }
 0x364   : > { %5922 = vmatpush.msrb.mxu0 %v15850_v17  ;;  %6016 = vmatpush.msrb.mxu2 %v19199_v60  ;;  %v19206_v17 = vand.u32 4294901760, %v15953_v13  ;;  %v19211_v33 = vld [vmem:[#allocation23_spill] sm:$0xff] }
 0x365   : > { %5963 = vmatpush.msrb.mxu1 %v15694_v15  ;;  %6079 = vmatpush.msrb.mxu3 %v15828_v3 }
 0x366   : > { %5803 = vmatmul.f32.vlgmr.msra.gmra.mxu2 %v19200_v8  ;;  %5925 = vmatpush.msrb.mxu0 %v15899_v43  ;;  %v19207_v43 = vand.u32 4294901760, %v15956_v9 }
 0x367   : > { %5965 = vmatpush.msrb.mxu1 %v15743_v51  ;;  %6020 = vmatpush.msrb.mxu2 %v19201_v26  ;;  %v19204_v51 = vand.u32 4294901760, %v15908_v0 }
 0x368   : > { %6081 = vmatpush.msrb.mxu3 %v15841_v6  ;;  %5725 = vmatmul.f32.vlgmr.msra.gmra.mxu0 %v19197_v37 }
 0x369   : > { %5904 = vmatmul.f32.vlgmr.msra.gmra.mxu3 %v19202_v4  ;;  %5928 = vmatpush.msrb.mxu0 %v15908_v0 }
 0x36a   : > { %v6589_v15 = vld.sshfl [vmem:[#allocation1 + $0x20] sm:$0xff pattern:$0x75316420]  ;;  %v6590_v20 = vld.sshfl [vmem:[#allocation1 + $0x28] sm:$0xff pattern:$0x75316420]  ;;  %5967 = vmatpush.msrb.mxu1 %v15760_v10  ;;  %6024 = vmatpush.msrb.mxu2 %v19203_v38 }
 0x36b   : > { %6621 = vst [vmem:[#allocation1 + $0x20] ss:$2 sm:$0xff] %v16020_v58  ;;  %6083 = vmatpush.msrb.mxu3 %v15852_v62  ;;  %5762 = vmatmul.f32.vlgmr.msra.gmra.mxu1 %v19197_v37  ;;  %v19205_v10 = vand.u32 4294901760, %v15911_v34 }
 0x36c   : > { %6605 = vst [vmem:[#allocation3 + $0xa8] sm:$0xf] %v6589_v15  ;;  %5931 = vmatpush.msrb.mxu0 %v15911_v34  ;;  %5969 = vmatpush.msrb.mxu1 %v15773_v53  ;;  %v7054_v53 = vld [vmem:[#allocation3 + $0x58] sm:$0xf] }
 0x36d   : > { %6606 = vst [vmem:[#allocation3 + $0x90] sm:$0xf] %v6590_v20  ;;  %6028 = vmatpush.msrb.mxu2 %v19204_v51  ;;  %6085 = vmatpush.msrb.mxu3 %v15854_v55  ;;  %v6877_v51 = vperm.slane %v15970_v45, 3 }
 0x36e   : > { %5934 = vmatpush.msrb.mxu0 %v15953_v13  ;;  %5971 = vmatpush.msrb.mxu1 %v15828_v3  ;;  %v7038_v13 = vld [vmem:[#allocation3 + $0x128] sm:$0xff]  ;;  %v4781_v35 = vpop.f32.mrf.mxu0 }
 0x36f   : > { %6032 = vmatpush.msrb.mxu2 %v19205_v10  ;;  %6087 = vmatpush.msrb.mxu3 %v15922_v54 }
 0x370   : > { %5937 = vmatpush.msrb.mxu0 %v15956_v9  ;;  %5973 = vmatpush.msrb.mxu1 %v15841_v6  ;;  %v7073_v6 = vsel %vm6144_vm2, %v7054_v53, 0 }
 0x371   : > { %6036 = vmatpush.msrb.mxu2 %v19206_v17  ;;  %6089 = vmatpush.msrb.mxu3 %v15924_v2  ;;  %v16221_v34 = vand.u32 4294901760, %v7073_v6 }
 0x372   : > { %v16205_v0 = vld.sshfl [vmem:[#allocation1 + $0x28] sm:$0xff pattern:$0x75316420]  ;;  %5940 = vmatpush.msrb.mxu0 %v15994_v29  ;;  %5975 = vmatpush.msrb.mxu1 %v15852_v62  ;;  %v6628_v3 = vld.sshfl [vmem:[#allocation1 + $0x20] sm:$0xff pattern:$0x75316420] }
 0x373   : > { %6040 = vmatpush.msrb.mxu2 %v19207_v43  ;;  %6091 = vmatpush.msrb.mxu3 %v15958_v40  ;;  %6736 = vst [vmem:[#allocation1 + $0x20] ss:$2 sm:$0xff] %v16020_v58  ;;  %v7046_v62 = vld [vmem:[#allocation3 + $0xc0] sm:$0xff]  ;;  %v16238_v9 = vsub.f32 %v7073_v6, %v16221_v34 }
 0x374   : > { %5943 = vmatpush.msrb.mxu0 %v16008_v7  ;;  %5977 = vmatpush.msrb.mxu1 %v15854_v55  ;;  %v16228_v55 = vand.u32 4294901760, %v7046_v62  ;;  %v4975_v57 = vpop.f32.mrf.mxu3 }
 0x375   : > { %6044 = vmatpush.msrb.mxu2 %v5869_v56  ;;  %6093 = vmatpush.msrb.mxu3 %v15974_v30  ;;  %v19208_v56 = vld [vmem:[#allocation29_spill] sm:$0xff] }
 0x376   : > { %5946 = vmatpush.msrb.mxu0 %v16029_v28  ;;  %5979 = vmatpush.msrb.mxu1 %v15922_v54  ;;  %v16233_v54 = vand.u32 4294901760, %v7038_v13  ;;  %v18633_v28 = vand.u32 4294901760, %v16238_v9  ;;  %v4882_v59 = vpop.f32.mrf.mxu1 }
 0x377   : > { %6048 = vmatpush.msrb.mxu2 %v5875_v11  ;;  %6095 = vmatpush.msrb.mxu3 %v16002_v23  ;;  %v4936_v61 = vpop.f32.mrf.mxu2  ;;  %v4883_v26 = vadd.f32 %v4882_v59, %v4781_v35 }
 0x378   : > { %5949 = vmatpush.msrb.mxu0 %v16047_v63  ;;  %5981 = vmatpush.msrb.mxu1 %v15924_v2  ;;  %v16247_v2 = vsub.f32 %v7046_v62, %v16228_v55 }
 0x379   : > { %6052 = vmatpush.msrb.mxu2 %v5881_v12  ;;  %6097 = vmatpush.msrb.mxu3 %v16014_v49  ;;  %v4937_v38 = vadd.f32 %v4936_v61, %v4883_v26  ;;  %v19214_v61 = vld [vmem:[#allocation64_spill] sm:$0xff] }
 0x37a   : > { %5952 = vmatpush.msrb.mxu0 %v16062_v14  ;;  %5983 = vmatpush.msrb.mxu1 %v15958_v40  ;;  %v6743_v29 = vld.sshfl [vmem:[#allocation1 + $0x20] sm:$0xff pattern:$0x75316420]  ;;  %v6744_v7 = vld.sshfl [vmem:[#allocation1 + $0x28] sm:$0xff pattern:$0x75316420]  ;;  %v16253_v40 = vsub.f32 %v7038_v13, %v16233_v54 }
 0x37b   : > { %6056 = vmatpush.msrb.mxu2 %v5887_v52  ;;  %6099 = vmatpush.msrb.mxu3 %v16031_v24  ;;  %6827 = vst [vmem:[#allocation1 + $0x20] ss:$2 sm:$0xff] %v16020_v58  ;;  %v19209_v52 = vld [vmem:[#allocation30_spill] sm:$0xff]  ;;  %v4976_v6 = vadd.f32 %v4975_v57, %v4937_v38 }
 0x37c   : > { %5955 = vmatpush.msrb.mxu0 %v16079_v5  ;;  %5985 = vmatpush.msrb.mxu1 %v15974_v30  ;;  %v18631_v30 = vand.u32 4294901760, %v16247_v2  ;;  %v18630_v11 = vand.u32 4294901760, %v16253_v40  ;;  %v5044_v1 = vpop.f32.mrf.mxu0 }
 0x37d   : > { %6060 = vmatpush.msrb.mxu2 %v5893_v18  ;;  %6101 = vmatpush.msrb.mxu3 %v16049_v27  ;;  %v19210_v18 = vld [vmem:[#allocation58_spill] sm:$0xff] }
 0x37e   : > { %5958 = vmatmul.f32.vlgmr.msrb.gmra.mxu0 %v19208_v56  ;;  %5987 = vmatpush.msrb.mxu1 %v16002_v23  ;;  %v7140_v23 = vsub.f32 %v16238_v9, %v18633_v28  ;;  %v5045_v56 = vadd.f32 %v5044_v1, %v4976_v6 }
 0x37f   : > { %7216 = vmatpush.msra.mxu3 %v16221_v34  ;;  %7108 = vmatpush.msra.mxu0 %v16221_v34  ;;  %v5081_v16 = vpop.f32.mrf.mxu1 }
 0x380   : > { %6064 = vmatpush.msrb.mxu2 %v5899_v32  ;;  %5989 = vmatpush.msrb.mxu1 %v16014_v49  ;;  %v7146_v49 = vsub.f32 %v16247_v2, %v18631_v30  ;;  %v7141_v14 = vand.u32 4294901760, %v7140_v23  ;;  %v5122_v31 = vpop.f32.mrf.mxu2  ;;  %v6992_v23 = vperm.slane %v16042_v48, 3 }
 0x381   : > { %7218 = vmatpush.msra.mxu3 %v16228_v55  ;;  %7110 = vmatpush.msra.mxu0 %v16228_v55 }
 0x382   : > { %7185 = vmatpush.msra.mxu2 %v16238_v9  ;;  %v6834_v63 = vld.sshfl [vmem:[#allocation1 + $0x20] sm:$0xff pattern:$0x75316420]  ;;  %v16272_v12 = vld.sshfl [vmem:[#allocation1 + $0x28] sm:$0xff pattern:$0x75316420]  ;;  %5991 = vmatpush.msrb.mxu1 %v16031_v24 }
 0x383   : > { %6066 = vmatmul.f32.vlgmr.msrb.gmra.mxu2 %v19202_v4  ;;  %7112 = vmatpush.msra.mxu0 %v16233_v54  ;;  %6942 = vst [vmem:[#allocation1 + $0x20] ss:$2 sm:$0xff] %v16020_v58  ;;  %v7152_v58 = vsub.f32 %v16253_v40, %v18630_v11  ;;  %v7147_v24 = vand.u32 4294901760, %v7146_v49  ;;  %v5223_v21 = vpop.f32.mrf.mxu3 }
 0x384   : > { %7188 = vmatpush.msra.mxu2 %v16247_v2  ;;  %7220 = vmatpush.msra.mxu3 %v16233_v54 }
 0x385   : > { %6103 = vmatmul.f32.vlgmr.msrb.gmra.mxu3 %v19202_v4  ;;  %5993 = vmatpush.msrb.mxu1 %v16049_v27  ;;  %v7153_v5 = vand.u32 4294901760, %v7152_v58 }
 0x386   : > { %7191 = vmatpush.msra.mxu2 %v16253_v40  ;;  %6648 = vrot.lane.b32.xlu1 %v6628_v3, %s11661_s12 }
 0x387   : > { %5997 = vmatmul.f32.vlgmr.msrb.gmra.mxu1 %v19209_v52  ;;  %6763 = vrot.lane.b32.xlu2 %v6743_v29, %s11662_s10  ;;  %v5082_v52 = vadd.f32 %v5081_v16, %v5045_v56 }
 0x388   : > { %7142 = vmatpush.msra.mxu1 %v7141_v14 }
 0x38a   : > { %7148 = vmatpush.msra.mxu1 %v7147_v24  ;;  %v6950_v27 = vld.sshfl [vmem:[#allocation1 + $0x28] sm:$0xff pattern:$0x75316420]  ;;  %v6949_v32 = vld.sshfl [vmem:[#allocation1 + $0x20] sm:$0xff pattern:$0x75316420] }
 0x38c   : > { %7154 = vmatpush.msra.mxu1 %v7153_v5 }
 0x38e   : > { %6286 = vrot.lane.b32.xlu1 %v19210_v18, %s11658_s19  ;;  %v19213_v18 = vld [vmem:[#allocation62_spill] sm:$0xff] }
 0x38f   : > { %6854 = vrot.lane.b32.xlu2 %v6834_v63, %s11663_s7 }
 0x392   : > { %v5277_v60 = vpop.f32.mrf.mxu0 }
 0x396   : > { %6971 = vrot.lane.b32.xlu1 %v6950_v27, %s11664_s25  ;;  %v6671_v27 = vperm.slane %v19213_v18, 3 }
 0x397   : > { %6969 = vrot.lane.b32.xlu2 %v6949_v32, %s11664_s25  ;;  %v5123_v32 = vadd.f32 %v5122_v31, %v5082_v52 }
 0x39c   : > { %v5316_v37 = vpop.f32.mrf.mxu1 }
 0x39e   : > { %6765 = vrot.lane.b32.xlu1 %v6744_v7, %s11662_s10 }
 0x39f   : > { %v5422_v15 = vpop.f32.mrf.mxu3 }
 0x3a6   : > { %6288 = vrot.lane.b32.xlu1 %v16116_v46, %s11658_s19  ;;  %v6786_v46 = vperm.slane %v19211_v33, 3 }
 0x3ae   : > { %6196 = vrot.lane.b32.xlu1 %v16081_v19, %s11657_s2  ;;  %v5385_v19 = vpop.f32.mrf.mxu2 }
 0x3b6   : > { %6496 = vrot.lane.b32.xlu1 %v16162_v41, %s11660_s30  ;;  %v19212_v41 = vld [vmem:[#allocation66_spill] sm:$0xff] }
 0x3be   : > { %6198 = vrot.lane.b32.xlu1 %v16083_v47, %s11657_s2 }
 0x3d7   : > { %v5463_v10 = vpop.f32.mrf.mxu0 }
 0x3dd   : > { %v5657_v7 = vpop.f32.mrf.mxu3 }
 0x3df   : > { %v5564_v20 = vpop.f32.mrf.mxu1 }
 0x3e0   : > { %v5565_v53 = vadd.f32 %v5564_v20, %v5463_v10  ;;  %v5618_v3 = vpop.f32.mrf.mxu2 }
 0x3e1   : > { %v16306_v8 = vpop.permute.xlu2 %6763 }
 0x3e2   : > { %v6775_v47 = vsel %vm6771_vm8, %v19212_v41, %v16306_v8  ;;  %v5619_v13 = vadd.f32 %v5618_v3, %v5565_v53  ;;  %v5224_v41 = vadd.f32 %v5223_v21, %v5123_v32  ;;  %v19215_v53 = vld [vmem:[#allocation45_spill] sm:$0xff] }
 0x3e3   : > { %v6802_v4 = vmul.f32 %v6786_v46, %v6775_v47 }
 0x3e4   : > { %v5658_v63 = vadd.f32 %v5657_v7, %v5619_v13  ;;  %v5278_v16 = vadd.f32 %v5277_v60, %v5224_v41  ;;  %v6993_v7 = vperm.slane %v16042_v48, 4 }
 0x3e5   : > { %6810 = vst [vmem:[#allocation3 + $0xa0] sm:$0xf] %v6802_v4  ;;  %v5726_v14 = vpop.f32.mrf.mxu0  ;;  %v16330_v4 = vld [vmem:[#allocation13 + $0x8] sm:$0xff] }
 0x3e6   : > { %v5727_v5 = vadd.f32 %v5726_v14, %v5658_v63  ;;  %v6311_v31 = vperm.slane %v16330_v4, 3  ;;  %v5317_v20 = vadd.f32 %v5316_v37, %v5278_v16 }
 0x3e8   : > { %v5386_v6 = vadd.f32 %v5385_v19, %v5317_v20  ;;  %v19216_v19 = vld [vmem:[#allocation37_spill] sm:$0xff] }
 0x3e9   : > { %v16313_v17 = vpop.permute.xlu2 %6854  ;;  %v5804_v1 = vpop.f32.mrf.mxu2 }
 0x3ea   : > { %v6866_v43 = vsel %vm6862_vm11, %v15989_v44, %v16313_v17  ;;  %v5763_v44 = vpop.f32.mrf.mxu1  ;;  %v5423_v56 = vadd.f32 %v5422_v15, %v5386_v6  ;;  %v6787_v15 = vperm.slane %v19211_v33, 4 }
 0x3eb   : > { %v6893_v62 = vmul.f32 %v6877_v51, %v6866_v43  ;;  %v5764_v35 = vadd.f32 %v5763_v44, %v5727_v5 }
 0x3ec   : > { %v5905_v26 = vpop.f32.mrf.mxu3  ;;  %vm6113_vm0 = vcmp.ge.f32.partialorder %v5423_v56, 0.0 }
 0x3ed   : > { %v6909_v29 = vrot.slane %v6893_v62, 4  ;;  %v5805_v47 = vadd.f32 %v5804_v1, %v5764_v35 }
 0x3ef   : > { %6925 = vst [vmem:[#allocation3 + $0xa0] sm:$0xf0] %v6909_v29  ;;  %v5906_v10 = vadd.f32 %v5905_v26, %v5805_v47 }
 0x3f1   : > { %v6970_v49 = vpop.permute.xlu2 %6969 }
 0x3f2   : > { %v6981_v58 = vsel %vm6977_vm12, %v16058_v25, %v6970_v49 }
 0x3f3   : > { %v7008_v24 = vmul.f32 %v6992_v23, %v6981_v58 }
 0x3f5   : > { %7016 = vst [vmem:[#allocation3 + $0x40] sm:$0xf] %v7008_v24  ;;  %v6122_v24 = vmul.f32 %v19216_v19, %v5423_v56 }
 0x3f7   : > { %v6130_v18 = vsel %vm6113_vm0, %v5423_v56, %v6122_v24  ;;  %v19219_v56 = vld [vmem:[#allocation56_spill] sm:$0xff]  ;;  %v16413_v24 = vld [vmem:[#allocation13 + $0x10] sm:$0xff] }
 0x3f8   : > { %v16324_v59 = vpop.permute.xlu1 %6648 }
 0x3f9   : > { %v6660_v57 = vsel %vm6656_vm7, %v19214_v61, %v16324_v59  ;;  %v6312_v61 = vperm.slane %v16330_v4, 4 }
 0x3fa   : > { %v6687_v46 = vmul.f32 %v6671_v27, %v6660_v57 }
 0x3fb   : > { %v5959_v38 = vpop.f32.mrf.mxu0 }
 0x3fc   : > { %v6703_v25 = vrot.slane %v6687_v46, 4  ;;  %v5960_v21 = vadd.f32 %v5959_v38, %v5906_v10  ;;  %v16367_v38 = vld [vmem:[#allocation13] sm:$0xff] }
 0x3fe   : > { %6719 = vst [vmem:[#allocation3 + $0x98] sm:$0xf0] %v6703_v25 }
 0x400   : > { %v6287_v51 = vpop.permute.xlu1 %6286 }
 0x401   : > { %v6301_v3 = vsel %vm6296_vm4, %v19215_v53, %v6287_v51 }
 0x402   : > { %v6327_v43 = vmul.f32 %v6311_v31, %v6301_v3 }
 0x404   : > { %v6343_v62 = vrot.slane %v6327_v43, 4  ;;  %v5998_v60 = vpop.f32.mrf.mxu1  ;;  %v19217_v43 = vld [vmem:[#allocation38_spill] sm:$0xff] }
 0x405   : > { %v5999_v13 = vadd.f32 %v5998_v60, %v5960_v21 }
 0x406   : > { %v6067_v29 = vpop.f32.mrf.mxu2  ;;  %6359 = vst [vmem:[#allocation3 + $0x48] sm:$0xf0] %v6343_v62 }
 0x407   : > { %v6068_v23 = vadd.f32 %v6067_v29, %v5999_v13  ;;  %v19218_v13 = vld [vmem:[#allocation48_spill] sm:$0xff] }
 0x408   : > { %v6104_v37 = vpop.f32.mrf.mxu3  ;;  %v16337_v63 = vpop.permute.xlu1 %6971 }
 0x409   : > { %v6105_v14 = vadd.f32 %v6104_v37, %v6068_v23  ;;  %v6980_v58 = vsel %vm6977_vm12, %v6970_v49, %v16337_v63 }
 0x40a   : > { %v7009_v52 = vmul.f32 %v6993_v7, %v6980_v58  ;;  %v19220_v58 = vld [vmem:[#allocation32_spill] sm:$0xff] }
 0x40b   : > { %vm6114_vm15 = vcmp.ge.f32.partialorder %v6105_v14, 0.0  ;;  %v6123_v5 = vmul.f32 %v19216_v19, %v6105_v14 }
 0x40c   : > { %7017 = vst [vmem:[#allocation3 + $0x28] sm:$0xf] %v7009_v52 }
 0x40d   : > { %v6131_v44 = vsel %vm6114_vm15, %v6105_v14, %v6123_v5 }
 0x40e   : > { %v6143_v48 = vrot.slane %v6131_v44, 4  ;;  %v19221_v44 = vld [vmem:[#allocation34_spill] sm:$0xff] }
 0x410   : > { %v6148_v27 = vsel %vm6144_vm2, %v6130_v18, %v6143_v48  ;;  %v16346_v32 = vpop.permute.xlu1 %6765  ;;  %v6426_v18 = vperm.slane %v16413_v24, 3 }
 0x411   : > { %6171 = vst [vmem:[#allocation1 + $0x30] ss:$2 sm:$0xff] %v6148_v27  ;;  %v6774_v49 = vsel %vm6771_vm8, %v16306_v8, %v16346_v32 }
 0x412   : > { %v6803_v35 = vmul.f32 %v6787_v15, %v6774_v49  ;;  %v19222_v49 = vld [vmem:[#allocation50_spill] sm:$0xff] }
 0x414   : > { %6811 = vst [vmem:[#allocation3 + $0x68] sm:$0xf] %v6803_v35 }
 0x418   : > { %v16353_v57 = vld.sshfl [vmem:[#allocation1 + $0x30] sm:$0xff pattern:$0x75316420]  ;;  %v6179_v1 = vld.sshfl [vmem:[#allocation1 + $0x38] sm:$0xff pattern:$0x75316420]  ;;  %v16355_v46 = vpop.permute.xlu1 %6288 }
 0x419   : > { %6263 = vst [vmem:[#allocation1 + $0x30] ss:$2 sm:$0xff] %v6148_v27  ;;  %6202 = vrot.lane.b32.xlu2 %v6179_v1, %s11657_s2  ;;  %v6300_v33 = vsel %vm6296_vm4, %v6287_v51, %v16355_v46  ;;  %v6222_v51 = vperm.slane %v16367_v38, 5  ;;  %v6308_v1 = vperm.slane %v16330_v4, 0 }
 0x41a   : > { %v6328_v41 = vmul.f32 %v6312_v61, %v6300_v33 }
 0x41c   : > { %v6344_v25 = vrot.slane %v6328_v41, 4 }
 0x41e   : > { %6360 = vst [vmem:[#allocation3 + $0x120] sm:$0xf0] %v6344_v25 }
 0x420   : > { %v6270_v8 = vld.sshfl [vmem:[#allocation1 + $0x30] sm:$0xff pattern:$0x75316420]  ;;  %v6271_v16 = vld.sshfl [vmem:[#allocation1 + $0x38] sm:$0xff pattern:$0x75316420]  ;;  %v16361_v47 = vpop.permute.xlu1 %6196 }
 0x421   : > { %6378 = vst [vmem:[#allocation1 + $0x30] ss:$2 sm:$0xff] %v6148_v27  ;;  %6294 = vrot.lane.b32.xlu0 %v6271_v16, %s11658_s19 }
 0x428   : > { %v6385_v26 = vld.sshfl [vmem:[#allocation1 + $0x30] sm:$0xff pattern:$0x75316420]  ;;  %v6386_v31 = vld.sshfl [vmem:[#allocation1 + $0x38] sm:$0xff pattern:$0x75316420]  ;;  %v16364_v20 = vpop.permute.xlu1 %6496 }
 0x429   : > { %6469 = vst [vmem:[#allocation1 + $0x30] ss:$2 sm:$0xff] %v6148_v27  ;;  %6409 = vrot.lane.b32.xlu2 %v6386_v31, %s11659_s20 }
 0x430   : > { %v6476_v10 = vld.sshfl [vmem:[#allocation1 + $0x30] sm:$0xff pattern:$0x75316420]  ;;  %v6477_v53 = vld.sshfl [vmem:[#allocation1 + $0x38] sm:$0xff pattern:$0x75316420]  ;;  %v16370_v3 = vpop.permute.xlu1 %6198 }
 0x431   : > { %6584 = vst [vmem:[#allocation1 + $0x30] ss:$2 sm:$0xff] %v6148_v27  ;;  %6401 = vrot.lane.b32.xlu2 %v19217_v43, %s11659_s20  ;;  %6500 = vrot.lane.b32.xlu0 %v6477_v53, %s11660_s30  ;;  %v6209_v6 = vsel %vm6206_vm3, %v16361_v47, %v16370_v3 }
 0x432   : > { %v6238_v21 = vmul.f32 %v6222_v51, %v6209_v6 }
 0x434   : > { %6246 = vst [vmem:[#allocation3 + $0x38] sm:$0xf] %v6238_v21  ;;  %v7055_v21 = vld [vmem:[#allocation3 + $0x78] sm:$0xf] }
 0x438   : > { %v6591_v62 = vld.sshfl [vmem:[#allocation1 + $0x30] sm:$0xff pattern:$0x75316420]  ;;  %v6592_v60 = vld.sshfl [vmem:[#allocation1 + $0x38] sm:$0xff pattern:$0x75316420] }
 0x439   : > { %6623 = vst [vmem:[#allocation1 + $0x30] ss:$2 sm:$0xff] %v6148_v27  ;;  %6856 = vrot.lane.b32.xlu2 %v16272_v12, %s11663_s7  ;;  %6492 = vrot.lane.b32.xlu0 %v19218_v13, %s11660_s30  ;;  %v7076_v13 = vsel %vm6144_vm2, %v7055_v21, 0 }
 0x43a   : > { %6607 = vst [vmem:[#allocation3 + $0xe0] sm:$0xf] %v6591_v62  ;;  %v7021_v62 = vld [vmem:[%s18352_s3] sm:$0xf] }
 0x43b   : > { %6608 = vst [vmem:[#allocation3 + $0x88] sm:$0xf] %v6592_v60 }
 0x440   : > { %v6630_v29 = vld.sshfl [vmem:[#allocation1 + $0x30] sm:$0xff pattern:$0x75316420]  ;;  %v6631_v7 = vld.sshfl [vmem:[#allocation1 + $0x38] sm:$0xff pattern:$0x75316420] }
 0x441   : > { %6494 = vrot.lane.b32.xlu2 %v16160_v39, %s11660_s30  ;;  %6654 = vrot.lane.b32.xlu1 %v6631_v7, %s11661_s12  ;;  %6738 = vst [vmem:[#allocation1 + $0x30] ss:$2 sm:$0xff] %v6148_v27  ;;  %v6427_v7 = vperm.slane %v16413_v24, 4 }
 0x442   : > { %6194 = vrot.lane.b32.xlu0 %v19219_v56, %s11657_s2 }
 0x448   : > { %v6745_v23 = vld.sshfl [vmem:[#allocation1 + $0x30] sm:$0xff pattern:$0x75316420]  ;;  %v6746_v37 = vld.sshfl [vmem:[#allocation1 + $0x38] sm:$0xff pattern:$0x75316420] }
 0x449   : > { %6403 = vrot.lane.b32.xlu2 %v16137_v50, %s11659_s20  ;;  %6292 = vrot.lane.b32.xlu1 %v6270_v8, %s11658_s19  ;;  %6829 = vst [vmem:[#allocation1 + $0x30] ss:$2 sm:$0xff] %v6148_v27  ;;  %v19223_v8 = vld [vmem:[#allocation36_spill] sm:$0xff] }
 0x44a   : > { %6650 = vrot.lane.b32.xlu0 %v16205_v0, %s11661_s12 }
 0x450   : > { %v6836_v12 = vld.sshfl [vmem:[#allocation1 + $0x30] sm:$0xff pattern:$0x75316420]  ;;  %v6837_v14 = vld.sshfl [vmem:[#allocation1 + $0x38] sm:$0xff pattern:$0x75316420] }
 0x451   : > { %6290 = vrot.lane.b32.xlu2 %v16118_v42, %s11658_s19  ;;  %6944 = vst [vmem:[#allocation1 + $0x30] ss:$2 sm:$0xff] %v6148_v27  ;;  %v6217_v42 = vperm.slane %v16367_v38, 0 }
 0x452   : > { %6767 = vrot.lane.b32.xlu0 %v6745_v23, %s11662_s10 }
 0x458   : > { %v6951_v50 = vld.sshfl [vmem:[#allocation1 + $0x30] sm:$0xff pattern:$0x75316420]  ;;  %v6952_v39 = vld.sshfl [vmem:[#allocation1 + $0x38] sm:$0xff pattern:$0x75316420] }
 0x459   : > { %6652 = vrot.lane.b32.xlu2 %v6630_v29, %s11661_s12  ;;  %v7070_v29 = vsel %vm7068_vm1, %v7021_v62, 0 }
 0x45a   : > { %6858 = vrot.lane.b32.xlu0 %v6836_v12, %s11663_s7  ;;  %v16459_v12 = vand.u32 4294901760, %v7076_v13 }
 0x461   : > { %6769 = vrot.lane.b32.xlu2 %v6746_v37, %s11662_s10 }
 0x462   : > { %6973 = vrot.lane.b32.xlu0 %v6951_v50, %s11664_s25  ;;  %v16461_v50 = vand.u32 4294901760, %v7070_v29 }
 0x469   : > { %6975 = vrot.lane.b32.xlu2 %v6952_v39, %s11664_s25 }
 0x46a   : > { %6405 = vrot.lane.b32.xlu0 %v16139_v36, %s11659_s20  ;;  %v6423_v36 = vperm.slane %v16413_v24, 0 }
 0x471   : > { %6407 = vrot.lane.b32.xlu2 %v6385_v26, %s11659_s20 }
 0x472   : > { %6860 = vrot.lane.b32.xlu0 %v6837_v14, %s11663_s7  ;;  %v7047_v14 = vld [vmem:[#allocation3 + $0x118] sm:$0xff] }
 0x473   : > { %v16406_v0 = vpop.permute.xlu2 %6202 }
 0x474   : > { %v6214_v52 = vsel %vm6206_vm3, %v16406_v0, %v19220_v58 }
 0x475   : > { %v6233_v19 = vmul.f32 %v6217_v42, %v6214_v52  ;;  %v19224_v42 = vld [vmem:[#allocation31_spill] sm:$0xff] }
 0x477   : > { %6241 = vst [vmem:[#allocation3 + $0xb0] sm:$0xf] %v6233_v19 }
 0x47a   : > { %6498 = vrot.lane.b32.xlu0 %v6476_v10, %s11660_s30  ;;  %v16442_v10 = vld [vmem:[#allocation13 + $0x18] sm:$0xff] }
 0x47b   : > { %v6519_v53 = vperm.slane %v16442_v10, 5  ;;  %v6514_v56 = vperm.slane %v16442_v10, 0 }
 0x482   : > { %6200 = vrot.lane.b32.xlu0 %v16353_v57, %s11657_s2  ;;  %v6878_v57 = vperm.slane %v15970_v45, 4 }
 0x483   : > { %v16418_v5 = vpop.permute.xlu2 %6409 }
 0x484   : > { %v6419_v48 = vsel %vm6411_vm6, %v16418_v5, %v19221_v44 }
 0x485   : > { %v6439_v15 = vmul.f32 %v6423_v36, %v6419_v48  ;;  %v16470_v36 = vand.u32 4294901760, %v7047_v14  ;;  %v16473_v48 = vsub.f32 %v7076_v13, %v16459_v12 }
 0x487   : > { %6447 = vst [vmem:[#allocation3 + $0x80] sm:$0xf] %v6439_v15  ;;  %v7039_v15 = vld [vmem:[#allocation3 + $0x110] sm:$0xff] }
 0x48b   : > { %v6402_v27 = vpop.permute.xlu2 %6401 }
 0x48c   : > { %v6416_v35 = vsel %vm6411_vm6, %v19222_v49, %v6402_v27  ;;  %v7031_v49 = vld [vmem:[#allocation3 + $0x108] sm:$0xff] }
 0x48d   : > { %v6442_v61 = vmul.f32 %v6426_v18, %v6416_v35  ;;  %v16476_v18 = vsub.f32 %v7070_v29, %v16461_v50  ;;  %v6517_v35 = vperm.slane %v16442_v10, 3 }
 0x48f   : > { %6450 = vst [vmem:[#allocation3 + $0xf0] sm:$0xf] %v6442_v61  ;;  %v6518_v61 = vperm.slane %v16442_v10, 4 }
 0x493   : > { %v16430_v33 = vpop.permute.xlu2 %6856  ;;  %v16432_v41 = vpop.permute.xlu0 %6294 }
 0x494   : > { %v6865_v25 = vsel %vm6862_vm11, %v16313_v17, %v16430_v33  ;;  %v6304_v16 = vsel %vm6296_vm4, %v16432_v41, %v19223_v8  ;;  %v16486_v8 = vand.u32 4294901760, %v7031_v49 }
 0x495   : > { %v6894_v26 = vmul.f32 %v6878_v57, %v6865_v25  ;;  %v6324_v31 = vmul.f32 %v6308_v1, %v6304_v16  ;;  %v16482_v1 = vsub.f32 %v7047_v14, %v16470_v36  ;;  %v16484_v25 = vand.u32 4294901760, %v7039_v15 }
 0x496   : > { %v16510_v14 = vsub.f32 %v7031_v49, %v16486_v8 }
 0x497   : > { %v6910_v51 = vrot.slane %v6894_v26, 4  ;;  %v6340_v45 = vrot.slane %v6324_v31, 4  ;;  %v18629_v31 = vand.u32 4294901760, %v16473_v48 }
 0x499   : > { %6926 = vst [vmem:[#allocation3 + $0x68] sm:$0xf0] %v6910_v51  ;;  %v16492_v51 = vand.u32 4294901760, %v16476_v18 }
 0x49a   : > { %6356 = vst [vmem:[#allocation3 + $0xb0] sm:$0xf0] %v6340_v45  ;;  %v7023_v45 = vld [vmem:[#allocation3 + $0xd0] sm:$0xff] }
 0x49b   : > { %v6495_v43 = vpop.permute.xlu2 %6494 }
 0x49c   : > { %v6505_v17 = vsel %vm6502_vm5, %v6495_v43, %v16364_v20 }
 0x49d   : > { %v6535_v6 = vmul.f32 %v6519_v53, %v6505_v17 }
 0x49f   : > { %v6551_v60 = vrot.slane %v6535_v6, 4  ;;  %v19225_v6 = vld [vmem:[#allocation41_spill] sm:$0xff] }
 0x4a1   : > { %6567 = vst [vmem:[#allocation3 + $0xc8] sm:$0xf0] %v6551_v60  ;;  %v7022_v57 = vld [vmem:[#allocation3 + $0xb0] sm:$0xff] }
 0x4a2   : > { %v16503_v62 = vand.u32 4294901760, %v7022_v57 }
 0x4a3   : > { %v16455_v23 = vpop.permute.xlu2 %6403  ;;  %v16457_v37 = vpop.permute.xlu0 %6500 }
 0x4a4   : > { %v6415_v39 = vsel %vm6411_vm6, %v6402_v27, %v16455_v23  ;;  %v6510_v58 = vsel %vm6502_vm5, %v16457_v37, %v19224_v42  ;;  %v6313_v27 = vperm.slane %v16330_v4, 5 }
 0x4a5   : > { %v6443_v52 = vmul.f32 %v6427_v7, %v6415_v39  ;;  %v6530_v19 = vmul.f32 %v6514_v56, %v6510_v58  ;;  %v18632_v7 = vand.u32 4294901760, %v16482_v1  ;;  %v16507_v56 = vsub.f32 %v7039_v15, %v16484_v25  ;;  %v16522_v15 = vld [vmem:[#allocation13 + $0x28] sm:$0xff] }
 0x4a6   : > { %v7338_v58 = vsub.f32 %v16473_v48, %v18629_v31  ;;  %v6674_v49 = vperm.slane %v16522_v15, 6 }
 0x4a7   : > { %6451 = vst [vmem:[#allocation3 + $0x18] sm:$0xf] %v6443_v52  ;;  %v6546_v44 = vrot.slane %v6530_v19, 4  ;;  %v16518_v19 = vsub.f32 %v7022_v57, %v16503_v62 }
 0x4a9   : > { %6562 = vst [vmem:[#allocation3 + $0x80] sm:$0xf0] %v6546_v44  ;;  %v7120_v44 = vsub.f32 %v16476_v18, %v16492_v51  ;;  %v7163_v11 = vand.u32 4294901760, %v16518_v19 }
 0x4ab   : > { %v16488_v16 = vpop.permute.xlu2 %6290  ;;  %v6493_v26 = vpop.permute.xlu0 %6492  ;;  %v16551_v31 = vand.u32 4294901760, %v7120_v44 }
 0x4ac   : > { %v6299_v53 = vsel %vm6296_vm4, %v16355_v46, %v16488_v16  ;;  %v6506_v17 = vsel %vm6502_vm5, %v6493_v26, %v6495_v43  ;;  %v6507_v21 = vsel %vm6502_vm5, %v19225_v6, %v6493_v26  ;;  %v16512_v46 = vand.u32 4294901760, %v7023_v45 }
 0x4ad   : > { %v6329_v60 = vmul.f32 %v6313_v27, %v6299_v53  ;;  %v6533_v13 = vmul.f32 %v6517_v35, %v6507_v21  ;;  %v6534_v29 = vmul.f32 %v6518_v61, %v6506_v17  ;;  %v6675_v27 = vperm.slane %v16522_v15, 7 }
 0x4ae   : > { %v6220_v61 = vperm.slane %v16367_v38, 3  ;;  %v7349_v26 = vand.u32 4294901760, %v16507_v56  ;;  %v16532_v53 = vsub.f32 %v7023_v45, %v16512_v46  ;;  %v6221_v21 = vperm.slane %v16367_v38, 4 }
 0x4af   : > { %v6345_v43 = vrot.slane %v6329_v60, 4  ;;  %v6549_v39 = vrot.slane %v6533_v13, 4  ;;  %v6550_v42 = vrot.slane %v6534_v29, 4  ;;  %v7339_v13 = vand.u32 4294901760, %v7338_v58 }
 0x4b0   : > { %v7030_v52 = vld [vmem:[#allocation3 + $0x80] sm:$0xff]  ;;  %v7344_v29 = vsub.f32 %v16482_v1, %v18632_v7  ;;  %v19227_v7 = vld [vmem:[#allocation49_spill] sm:$0xff]  ;;  %v7350_v44 = vsub.f32 %v16507_v56, %v7349_v26 }
 0x4b1   : > { %6361 = vst [vmem:[#allocation3 + $0x38] sm:$0xf0] %v6345_v43  ;;  %v16526_v35 = vand.u32 4294901760, %v7030_v52  ;;  %v19226_v43 = vld [vmem:[#allocation20_spill] sm:$0xff] }
 0x4b2   : > { %6565 = vst [vmem:[#allocation3 + $0xf0] sm:$0xf0] %v6549_v39 }
 0x4b3   : > { %6566 = vst [vmem:[#allocation3 + $0x18] sm:$0xf0] %v6550_v42  ;;  %v16534_v17 = vpop.permute.xlu2 %6652  ;;  %v6655_v6 = vpop.permute.xlu1 %6654  ;;  %7114 = vmatpush.msra.mxu0 %v16526_v35  ;;  %7222 = vmatpush.msra.mxu3 %v16526_v35  ;;  %v16540_v60 = vsub.f32 %v7030_v52, %v16526_v35 }
 0x4b4   : > { %v6657_v45 = vsel %vm6656_vm7, %v16534_v17, %v6655_v6  ;;  %v6664_v39 = vsel %vm6656_vm7, %v6655_v6, %v19226_v43  ;;  %v6195_v42 = vpop.permute.xlu0 %6194  ;;  %v7345_v43 = vand.u32 4294901760, %v7344_v29  ;;  %v7351_v29 = vand.u32 4294901760, %v7350_v44  ;;  %v19232_v44 = vld [vmem:[#allocation52_spill] sm:$0xff] }
 0x4b5   : > { %v6690_v52 = vmul.f32 %v6674_v49, %v6657_v45  ;;  %v6691_v30 = vmul.f32 %v6675_v27, %v6664_v39  ;;  %v6210_v58 = vsel %vm6206_vm3, %v6195_v42, %v16361_v47  ;;  %v6211_v57 = vsel %vm6206_vm3, %v19227_v7, %v6195_v42  ;;  %7116 = vmatpush.msra.mxu0 %v16503_v62 }
 0x4b6   : > { %v6236_v28 = vmul.f32 %v6220_v61, %v6211_v57  ;;  %7194 = vmatpush.msra.mxu2 %v16540_v60  ;;  %7224 = vmatpush.msra.mxu3 %v16503_v62  ;;  %v7157_v49 = vand.u32 4294901760, %v16540_v60  ;;  %v7361_v27 = vand.u32 4294901760, %v16532_v53  ;;  %v6237_v45 = vmul.f32 %v6221_v21, %v6210_v58  ;;  %v16582_v21 = vld [vmem:[#allocation13 + $0x30] sm:$0xff] }
 0x4b7   : > { %v6706_v47 = vrot.slane %v6690_v52, 4  ;;  %v6707_v6 = vrot.slane %v6691_v30, 4  ;;  %v19228_v7 = vand.u32 4294901760, %v16238_v9  ;;  %v19229_v61 = vand.u32 4294901760, %v16510_v14  ;;  %7122 = vmatmul.f32.vlgmr.msra.gmra.mxu0 %v16551_v31  ;;  %7228 = vmatmul.f32.vlgmr.msra.gmra.mxu3 %v16492_v51 }
 0x4b8   : > { %7340 = vmatpush.msrb.mxu3 %v7339_v13  ;;  %6244 = vst [vmem:[#allocation3 + $0x48] sm:$0xf] %v6236_v28  ;;  %7197 = vmatpush.msra.mxu2 %v16518_v19  ;;  %v7158_v39 = vsub.f32 %v16540_v60, %v7157_v49  ;;  %v7164_v30 = vsub.f32 %v16518_v19, %v7163_v11  ;;  %v19230_v9 = vand.u32 4294901760, %v16247_v2  ;;  %v6790_v28 = vperm.slane %v16582_v21, 7  ;;  %v7056_v19 = vld [vmem:[#allocation3 + $0x30] sm:$0xf] }
 0x4b9   : > { %7246 = vmatpush.msrb.mxu0 %v19228_v7  ;;  %v7356_v57 = vsub.f32 %v16510_v14, %v19229_v61  ;;  %6722 = vst [vmem:[#allocation3 + $0xe0] sm:$0xf0] %v6706_v47  ;;  %v6314_v13 = vperm.slane %v16330_v4, 6  ;;  %v6315_v60 = vperm.slane %v16330_v4, 7  ;;  %v6673_v42 = vperm.slane %v16522_v15, 5  ;;  %7200 = vmatmul.f32.vlgmr.msra.gmra.mxu2 %v16476_v18 }
 0x4ba   : > { %7306 = vmatpush.msrb.mxu2 %v16459_v12  ;;  %6723 = vst [vmem:[#allocation3 + $0x88] sm:$0xf0] %v6707_v6  ;;  %7346 = vmatpush.msrb.mxu3 %v7345_v43  ;;  %v7159_v52 = vand.u32 4294901760, %v7158_v39  ;;  %v19231_v2 = vand.u32 4294901760, %v16253_v40  ;;  %v6672_v7 = vperm.slane %v16522_v15, 4  ;;  %v7362_v4 = vsub.f32 %v16532_v53, %v7361_v27 }
 0x4bb   : > { %7250 = vmatpush.msrb.mxu0 %v19230_v9  ;;  %6245 = vst [vmem:[#allocation3 + $0x120] sm:$0xf] %v6237_v45  ;;  %v6770_v58 = vpop.permute.xlu2 %6769  ;;  %v6293_v47 = vpop.permute.xlu1 %6292  ;;  %v7357_v61 = vand.u32 4294901760, %v7356_v57  ;;  %v7165_v15 = vand.u32 4294901760, %v7164_v30 }
 0x4bc   : > { %7308 = vmatpush.msrb.mxu2 %v16470_v36  ;;  %7352 = vmatpush.msrb.mxu3 %v7351_v29  ;;  %v6779_v6 = vsel %vm6771_vm8, %v6770_v58, %v19232_v44  ;;  %v6297_v40 = vsel %vm6296_vm4, %v6293_v47, %v16432_v41  ;;  %v6298_v45 = vsel %vm6296_vm4, %v16488_v16, %v6293_v47  ;;  %v6651_v43 = vpop.permute.xlu0 %6650  ;;  %v19233_v47 = vld [vmem:[#allocation55_spill] sm:$0xff] }
 0x4bd   : > { %7254 = vmatpush.msrb.mxu0 %v19231_v2  ;;  %7160 = vmatpush.msra.mxu1 %v7159_v52  ;;  %v6806_v57 = vmul.f32 %v6790_v28, %v6779_v6  ;;  %v6330_v39 = vmul.f32 %v6314_v13, %v6298_v45  ;;  %v6331_v9 = vmul.f32 %v6315_v60, %v6297_v40  ;;  %v7363_v28 = vand.u32 4294901760, %v7362_v4  ;;  %v7048_v40 = vld [vmem:[#allocation3 + $0xd8] sm:$0xff] }
 0x4be   : > { %v6658_v29 = vsel %vm6656_vm7, %v6651_v43, %v16534_v17  ;;  %v6659_v2 = vsel %vm6656_vm7, %v16324_v59, %v6651_v43  ;;  %7310 = vmatpush.msrb.mxu2 %v16484_v25  ;;  %7358 = vmatpush.msrb.mxu3 %v7357_v61  ;;  %v16617_v17 = vld [vmem:[#allocation13 + $0x40] sm:$0xff]  ;;  %v6788_v60 = vperm.slane %v16582_v21, 5  ;;  %v19234_v61 = vand.u32 4294901760, %v16473_v48 }
 0x4bf   : > { %7258 = vmatpush.msrb.mxu0 %v7157_v49  ;;  %v6689_v41 = vmul.f32 %v6673_v42, %v6658_v29  ;;  %6814 = vst [vmem:[#allocation3 + $0xe8] sm:$0xf] %v6806_v57  ;;  %v6346_v16 = vrot.slane %v6330_v39, 4  ;;  %v6347_v52 = vrot.slane %v6331_v9, 4  ;;  %v6688_v30 = vmul.f32 %v6672_v7, %v6659_v2  ;;  %7166 = vmatpush.msra.mxu1 %v7165_v15  ;;  %v7057_v42 = vld [vmem:[#allocation3 + $0x40] sm:$0xf] }
 0x4c0   : > { %7312 = vmatpush.msrb.mxu2 %v16486_v8  ;;  %7364 = vmatpush.msrb.mxu3 %v7363_v28  ;;  %v6996_v49 = vperm.slane %v16617_v17, 7  ;;  %v7079_v6 = vsel %vm6144_vm2, %v7056_v19, 0  ;;  %v19235_v15 = vand.u32 4294901760, %v16482_v1  ;;  %v7049_v57 = vld [vmem:[#allocation3 + $0xa0] sm:$0xff]  ;;  %v7040_v9 = vld [vmem:[#allocation3 + $0x8] sm:$0xff] }
 0x4c1   : > { %v6705_v13 = vrot.slane %v6689_v41, 4  ;;  %7262 = vmatpush.msrb.mxu0 %v7163_v11  ;;  %7280 = vmatpush.msrb.mxu1 %v16221_v34  ;;  %6362 = vst [vmem:[#allocation3 + $0xf8] sm:$0xf0] %v6346_v16  ;;  %v6704_v59 = vrot.slane %v6688_v30, 4  ;;  %v6789_v11 = vperm.slane %v16582_v21, 6  ;;  %v7032_v41 = vld [vmem:[#allocation3 + $0x138] sm:$0xff] }
 0x4c2   : > { %6363 = vst [vmem:[#allocation3 + $0x100] sm:$0xf0] %v6347_v52  ;;  %7478 = vmatpush.msra.mxu3 %v16459_v12  ;;  %7168 = vmatmul.f32.vlgmr.msra.gmra.mxu1 %v16461_v50  ;;  %v7024_v16 = vld [vmem:[#allocation3 + $0x10] sm:$0xff]  ;;  %v16684_v52 = vand.u32 4294901760, %v7049_v57  ;;  %v7041_v30 = vld [vmem:[#allocation3 + $0x98] sm:$0xff] }
 0x4c3   : > { %7383 = vmatpush.msra.mxu0 %v16473_v48  ;;  %6720 = vst [vmem:[#allocation3 + $0xa8] sm:$0xf0] %v6704_v59  ;;  %7314 = vmatpush.msrb.mxu2 %v16512_v46  ;;  %v16626_v34 = vpop.permute.xlu2 %6975  ;;  %v7082_v48 = vsel %vm6144_vm2, %v7057_v42, 0 }
 0x4c4   : > { %6721 = vst [vmem:[#allocation3 + $0x90] sm:$0xf0] %v6705_v13  ;;  %7282 = vmatpush.msrb.mxu1 %v16228_v55  ;;  %v6985_v7 = vsel %vm6977_vm12, %v16626_v34, %v19233_v47  ;;  %v6768_v21 = vpop.permute.xlu0 %6767  ;;  %7480 = vmatpush.msra.mxu3 %v16470_v36  ;;  %v16693_v13 = vand.u32 4294901760, %v7040_v9 }
 0x4c5   : > { %7386 = vmatpush.msra.mxu0 %v16482_v1  ;;  %7444 = vmatpush.msra.mxu2 %v19234_v61  ;;  %v7012_v4 = vmul.f32 %v6996_v49, %v6985_v7  ;;  %v6772_v44 = vsel %vm6771_vm8, %v6768_v21, %v6770_v58  ;;  %v6773_v55 = vsel %vm6771_vm8, %v16346_v32, %v6768_v21  ;;  %v16651_v32 = vand.u32 4294901760, %v7079_v6 }
 0x4c6   : > { %7284 = vmatpush.msrb.mxu1 %v16233_v54  ;;  %v6804_v45 = vmul.f32 %v6788_v60, %v6773_v55  ;;  %v6805_v43 = vmul.f32 %v6789_v11, %v6772_v44  ;;  %7482 = vmatpush.msra.mxu3 %v16484_v25  ;;  %v16653_v54 = vand.u32 4294901760, %v7048_v40  ;;  %v6430_v58 = vperm.slane %v16413_v24, 7  ;;  %v7033_v11 = vld [vmem:[#allocation3 + $0xf0] sm:$0xff]  ;;  %v7062_v44 = vld [vmem:[%s18353_s4] sm:$0xf] }
 0x4c7   : > { %7389 = vmatpush.msra.mxu0 %v16507_v56  ;;  %7020 = vst [vmem:[#allocation3 + $0x60] sm:$0xf] %v7012_v4  ;;  %7448 = vmatpush.msra.mxu2 %v19235_v15  ;;  %v16658_v1 = vand.u32 4294901760, %v7082_v48  ;;  %v16673_v56 = vsub.f32 %v7079_v6, %v16651_v32  ;;  %v16704_v60 = vand.u32 4294901760, %v7024_v16  ;;  %v16719_v7 = vsub.f32 %v7040_v9, %v16693_v13 }
 0x4c8   : > { %6812 = vst [vmem:[#allocation3 + $0x130] sm:$0xf] %v6804_v45  ;;  %7264 = vmatmul.f32.vlgmr.msrb.gmra.mxu0 %v16461_v50  ;;  %7286 = vmatpush.msrb.mxu1 %v16526_v35  ;;  %v16663_v35 = vld [vmem:[#allocation13 + $0x38] sm:$0xff]  ;;  %v6994_v21 = vperm.slane %v16617_v17, 5  ;;  %v6995_v61 = vperm.slane %v16617_v17, 6  ;;  %v16726_v4 = vand.u32 4294901760, %v7033_v11 }
 0x4c9   : > { %6813 = vst [vmem:[#allocation3 + $0x50] sm:$0xf] %v6805_v43  ;;  %7320 = vmatmul.f32.vlgmr.msrb.gmra.mxu2 %v16551_v31  ;;  %7392 = vmatpush.msra.mxu0 %v16510_v14  ;;  %v6879_v39 = vperm.slane %v16663_v35, 5  ;;  %v16696_v59 = vsub.f32 %v7082_v48, %v16658_v1  ;;  %v7535_v42 = vand.u32 4294901760, %v16673_v56  ;;  %v11665_v15 = vmov 0  }
 0x4ca   : > { %7452 = vmatpush.msra.mxu2 %v7349_v26  ;;  %7484 = vmatpush.msra.mxu3 %v16486_v8  ;;  %v7547_v9 = vand.u32 4294901760, %v16719_v7 }
 0x4cb   : > { %7288 = vmatpush.msrb.mxu1 %v16503_v62  ;;  %7366 = vmatmul.f32.vlgmr.msrb.gmra.mxu3 %v16461_v50  ;;  %v16668_v29 = vpop.permute.xlu2 %6407  ;;  %v16682_v62 = vsub.f32 %v7048_v40, %v16653_v54  ;;  %v7536_v17 = vsub.f32 %v16673_v56, %v7535_v42 }
 0x4cc   : > { %7395 = vmatpush.msra.mxu0 %v16532_v53  ;;  %v6412_v26 = vsel %vm6411_vm6, %v16668_v29, %v16418_v5  ;;  %v16679_v2 = vpop.permute.xlu0 %6858  ;;  %7486 = vmatpush.msra.mxu3 %v16512_v46  ;;  %v7733_v53 = vand.u32 4294901760, %v16696_v59 }
 0x4cd   : > { %7414 = vmatpush.msra.mxu1 %v16459_v12  ;;  %v19236_v12 = vand.u32 4294901760, %v16510_v14  ;;  %v6446_v28 = vmul.f32 %v6430_v58, %v6412_v26  ;;  %v6864_v5 = vsel %vm6862_vm11, %v16430_v33, %v16679_v2  ;;  %v16702_v14 = vand.u32 4294901760, %v7032_v41  ;;  %11464 = vset.pattern.permute.xlu1 %v11665_v15 }
 0x4ce   : > { %7290 = vmatmul.f32.vlgmr.msrb.gmra.mxu1 %v16461_v50  ;;  %7504 = vmatpush.msrb.mxu0 %v16651_v32  ;;  %v6895_v49 = vmul.f32 %v6879_v39, %v6864_v5  ;;  %v16706_v33 = vand.u32 4294901760, %v7041_v30  ;;  %v7541_v47 = vand.u32 4294901760, %v16682_v62  ;;  %v7734_v58 = vsub.f32 %v16696_v59, %v7733_v53 }
 0x4cf   : > { %7456 = vmatpush.msra.mxu2 %v19236_v12  ;;  %7612 = vmatpush.msrb.mxu3 %v16651_v32  ;;  %6454 = vst [vmem:[#allocation3 + $0x20] sm:$0xf] %v6446_v28  ;;  %v16734_v55 = vsub.f32 %v7032_v41, %v16702_v14  ;;  %v7548_v28 = vsub.f32 %v16719_v7, %v7547_v9 }
 0x4d0   : > { %7416 = vmatpush.msra.mxu1 %v16470_v36  ;;  %7506 = vmatpush.msrb.mxu0 %v16653_v54  ;;  %v6911_v19 = vrot.slane %v6895_v49, 4  ;;  %v16714_v36 = vsub.f32 %v7049_v57, %v16684_v52  ;;  %v16740_v6 = vsub.f32 %v7041_v30, %v16706_v33  ;;  %v7542_v40 = vsub.f32 %v16682_v62, %v7541_v47 }
 0x4d1   : > { %7460 = vmatpush.msra.mxu2 %v7361_v27  ;;  %7614 = vmatpush.msrb.mxu3 %v16653_v54  ;;  %v7025_v27 = vld [vmem:[#allocation3 + $0x48] sm:$0xff]  ;;  %v7735_v5 = vand.u32 4294901760, %v7734_v58 }
 0x4d2   : > { %6927 = vst [vmem:[#allocation3 + $0x130] sm:$0xf0] %v6911_v19  ;;  %7418 = vmatpush.msra.mxu1 %v16484_v25  ;;  %7398 = vmatmul.f32.vlgmr.msra.gmra.mxu0 %v16476_v18  ;;  %v16737_v25 = vsub.f32 %v7024_v16, %v16704_v60  ;;  %v7739_v43 = vand.u32 4294901760, %v16714_v36  ;;  %v16749_v48 = vand.u32 4294901760, %v7025_v27  ;;  %v7553_v16 = vand.u32 4294901760, %v16734_v55 }
 0x4d3   : > { %7581 = vmatpush.msrb.mxu2 %v16673_v56  ;;  %7508 = vmatpush.msrb.mxu0 %v16693_v13  ;;  %v7543_v12 = vand.u32 4294901760, %v7542_v40  ;;  %v6429_v19 = vperm.slane %v16413_v24, 6 }
 0x4d4   : > { %7462 = vmatmul.f32.vlgmr.msra.gmra.mxu2 %v16461_v50  ;;  %7616 = vmatpush.msrb.mxu3 %v16693_v13  ;;  %v6974_v45 = vpop.permute.xlu0 %6973  ;;  %v7740_v41 = vsub.f32 %v16714_v36, %v7739_v43  ;;  %v16777_v30 = vsub.f32 %v7025_v27, %v16749_v48 }
 0x4d5   : > { %7584 = vmatpush.msrb.mxu2 %v16682_v62  ;;  %7420 = vmatpush.msra.mxu1 %v16486_v8  ;;  %v6978_v57 = vsel %vm6977_vm12, %v6974_v45, %v16626_v34  ;;  %v6979_v39 = vsel %vm6977_vm12, %v16337_v63, %v6974_v45  ;;  %v16765_v8 = vsub.f32 %v7033_v11, %v16726_v4  ;;  %v7745_v34 = vand.u32 4294901760, %v16740_v6 }
 0x4d6   : > { %7065 = vperm.xlu1 %11464, %v7062_v44   ;;  %7488 = vmatmul.f32.vlgmr.msra.gmra.mxu3 %v16461_v50  ;;  %v7010_v56 = vmul.f32 %v6994_v21, %v6979_v39  ;;  %v7011_v26 = vmul.f32 %v6995_v61, %v6978_v57  ;;  %v7537_v63 = vand.u32 4294901760, %v7536_v17  ;;  %v6428_v11 = vperm.slane %v16413_v24, 5 }
 0x4d7   : > { %7510 = vmatpush.msrb.mxu0 %v16702_v14  ;;  %7587 = vmatpush.msrb.mxu2 %v16719_v7  ;;  %v7751_v49 = vand.u32 4294901760, %v16765_v8  ;;  %v7746_v27 = vsub.f32 %v16740_v6, %v7745_v34  ;;  %v7741_v7 = vand.u32 4294901760, %v7740_v41  ;;  %v7554_v21 = vsub.f32 %v16734_v55, %v7553_v16 }
 0x4d8   : > { %7618 = vmatpush.msrb.mxu3 %v16702_v14  ;;  %7422 = vmatpush.msra.mxu1 %v16512_v46  ;;  %7018 = vst [vmem:[#allocation3] sm:$0xf] %v7010_v56  ;;  %v7559_v46 = vand.u32 4294901760, %v16737_v25  ;;  %v7757_v61 = vand.u32 4294901760, %v16777_v30  ;;  %v7549_v24 = vand.u32 4294901760, %v7548_v28  ;;  %v6880_v57 = vperm.slane %v16663_v35, 6 }
 0x4d9   : > { %7426 = vmatmul.f32.vlgmr.msra.gmra.mxu1 %v16492_v51  ;;  %7512 = vmatpush.msrb.mxu0 %v16704_v60  ;;  %7019 = vst [vmem:[#allocation3 + $0xb8] sm:$0xf] %v7011_v26  ;;  %v6881_v39 = vperm.slane %v16663_v35, 7 }
 0x4da   : > { %7538 = vmatpush.msrb.mxu1 %v7537_v63  ;;  %7590 = vmatpush.msrb.mxu2 %v16734_v55  ;;  %v7752_v55 = vsub.f32 %v16765_v8, %v7751_v49  ;;  %v19237_v63 = vld [vmem:[#allocation53_spill] sm:$0xff] }
 0x4db   : > { %7620 = vmatpush.msrb.mxu3 %v16704_v60  ;;  %7642 = vmatpush.msra.mxu0 %v7535_v42  ;;  %v7560_v42 = vsub.f32 %v16737_v25, %v7559_v46 }
 0x4dc   : > { %7544 = vmatpush.msrb.mxu1 %v7543_v12  ;;  %v6406_v44 = vpop.permute.xlu0 %6405  ;;  %7593 = vmatpush.msrb.mxu2 %v16737_v25  ;;  %v7747_v25 = vand.u32 4294901760, %v7746_v27  ;;  %v7753_v45 = vand.u32 4294901760, %v7752_v55  ;;  %v7058_v12 = vld [vmem:[#allocation3 + $0x28] sm:$0xf]  ;;  %v6224_v55 = vperm.slane %v16367_v38, 7 }
 0x4dd   : > { %7736 = vmatpush.msra.mxu3 %v7735_v5  ;;  %7646 = vmatpush.msra.mxu0 %v7541_v47  ;;  %v6413_v17 = vsel %vm6411_vm6, %v6406_v44, %v16668_v29  ;;  %v6414_v40 = vsel %vm6411_vm6, %v16455_v23, %v6406_v44  ;;  %v7555_v29 = vand.u32 4294901760, %v7554_v21  ;;  %v7758_v23 = vsub.f32 %v16777_v30, %v7757_v61  ;;  %v7050_v27 = vld [vmem:[#allocation3 + $0x68] sm:$0xff] }
 0x4de   : > { %7702 = vmatpush.msra.mxu2 %v16658_v1  ;;  %v6444_v62 = vmul.f32 %v6428_v11, %v6414_v40  ;;  %v6445_v47 = vmul.f32 %v6429_v19, %v6413_v17  ;;  %7518 = vmatmul.f32.vlgmr.msrb.gmra.mxu0 %v16551_v31  ;;  %v7561_v58 = vand.u32 4294901760, %v7560_v42  ;;  %v6520_v5 = vperm.slane %v16442_v10, 6  ;;  %v7043_v42 = vld [vmem:[#allocation3 + $0x90] sm:$0xff] }
 0x4df   : > { %7742 = vmatpush.msra.mxu3 %v7741_v7  ;;  %7550 = vmatpush.msrb.mxu1 %v7549_v24  ;;  %v7059_v28 = vld [vmem:[#allocation3] sm:$0xf]  ;;  %v6521_v11 = vperm.slane %v16442_v10, 7  ;;  %v7042_v10 = vld [vmem:[#allocation3 + $0xa8] sm:$0xff]  ;;  %v7051_v24 = vld [vmem:[#allocation3 + $0x130] sm:$0xff]  ;;  %v6223_v40 = vperm.slane %v16367_v38, 6 }
 0x4e0   : > { %7596 = vmatmul.f32.vlgmr.msrb.gmra.mxu2 %v16476_v18  ;;  %7650 = vmatpush.msra.mxu0 %v7547_v9  ;;  %6452 = vst [vmem:[#allocation3 + $0xc8] sm:$0xf] %v6444_v62  ;;  %v7759_v9 = vand.u32 4294901760, %v7758_v23 }
 0x4e1   : > { %7704 = vmatpush.msra.mxu2 %v16684_v52  ;;  %7748 = vmatpush.msra.mxu3 %v7747_v25  ;;  %6453 = vst [vmem:[#allocation3 + $0x70] sm:$0xf] %v6445_v47  ;;  %v16886_v47 = vand.u32 4294901760, %v7043_v42 }
 0x4e2   : > { %7556 = vmatpush.msrb.mxu1 %v7555_v29  ;;  %7624 = vmatmul.f32.vlgmr.msrb.gmra.mxu3 %v16492_v51 }
 0x4e3   : > { %7654 = vmatpush.msra.mxu0 %v7553_v16  ;;  %7706 = vmatpush.msra.mxu2 %v16706_v33 }
 0x4e4   : > { %7754 = vmatpush.msra.mxu3 %v7753_v45  ;;  %7562 = vmatpush.msrb.mxu1 %v7561_v58  ;;  %v6861_v56 = vpop.permute.xlu0 %6860 }
 0x4e5   : > { %7658 = vmatpush.msra.mxu0 %v7559_v46  ;;  %v6863_v26 = vsel %vm6862_vm11, %v16679_v2, %v6861_v56  ;;  %v6870_v41 = vsel %vm6862_vm11, %v6861_v56, %v19237_v63  ;;  %7708 = vmatpush.msra.mxu2 %v16726_v4  ;;  %v7085_v46 = vsel %vm6144_vm2, %v7058_v12, 0 }
 0x4e6   : > { %7676 = vmatpush.msra.mxu1 %v16651_v32  ;;  %7760 = vmatpush.msra.mxu3 %v7759_v9  ;;  %v6896_v35 = vmul.f32 %v6880_v57, %v6863_v26  ;;  %v6897_v16 = vmul.f32 %v6881_v39, %v6870_v41  ;;  %v16842_v19 = vand.u32 4294901760, %v7085_v46  ;;  %v7027_v39 = vld [vmem:[#allocation3 + $0x38] sm:$0xff]  ;;  %v16919_v9 = vsub.f32 %v7043_v42, %v16886_v47 }
 0x4e7   : > { %7564 = vmatmul.f32.vlgmr.msrb.gmra.mxu1 %v16461_v50  ;;  %7779 = vmatpush.msrb.mxu0 %v16696_v59  ;;  %v7035_v17 = vld [vmem:[#allocation3 + $0xc8] sm:$0xff]  ;;  %v16932_v41 = vand.u32 4294901760, %v7027_v39 }
 0x4e8   : > { %7874 = vmatpush.msrb.mxu3 %v16658_v1  ;;  %7678 = vmatpush.msra.mxu1 %v16653_v54  ;;  %v6912_v32 = vrot.slane %v6896_v35, 4  ;;  %v6913_v2 = vrot.slane %v6897_v16, 4  ;;  %v7088_v54 = vsel %vm6144_vm2, %v7059_v28, 0  ;;  %v16896_v25 = vand.u32 4294901760, %v7035_v17 }
 0x4e9   : > { %7710 = vmatpush.msra.mxu2 %v16749_v48  ;;  %7660 = vmatmul.f32.vlgmr.msra.gmra.mxu0 %v16461_v50  ;;  %v16855_v44 = vand.u32 4294901760, %v7088_v54 }
 0x4ea   : > { %7716 = vmatmul.f32.vlgmr.msra.gmra.mxu2 %v16551_v31  ;;  %7782 = vmatpush.msrb.mxu0 %v16714_v36  ;;  %6928 = vst [vmem:[#allocation3 + $0x50] sm:$0xf0] %v6912_v32  ;;  %v16860_v36 = vand.u32 4294901760, %v7050_v27  ;;  %v16926_v26 = vsub.f32 %v7035_v17, %v16896_v25  ;;  %v8141_v32 = vand.u32 4294901760, %v16919_v9 }
 0x4eb   : > { %7840 = vmatpush.msrb.mxu2 %v7733_v53  ;;  %7876 = vmatpush.msrb.mxu3 %v16684_v52  ;;  %6929 = vst [vmem:[#allocation3 + $0xe8] sm:$0xf0] %v6913_v2 }
 0x4ec   : > { %7680 = vmatpush.msra.mxu1 %v16693_v13  ;;  %7762 = vmatmul.f32.vlgmr.msra.gmra.mxu3 %v16461_v50  ;;  %v6499_v7 = vpop.permute.xlu0 %6498  ;;  %v16884_v62 = vsub.f32 %v7050_v27, %v16860_v36  ;;  %v8147_v28 = vand.u32 4294901760, %v16926_v26 }
 0x4ed   : > { %7785 = vmatpush.msrb.mxu0 %v16740_v6  ;;  %7844 = vmatpush.msrb.mxu2 %v7739_v43  ;;  %v6503_v59 = vsel %vm6502_vm5, %v6499_v7, %v16457_v37  ;;  %v6504_v13 = vsel %vm6502_vm5, %v16364_v20, %v6499_v7  ;;  %v16865_v20 = vsub.f32 %v7085_v46, %v16842_v19  ;;  %v16867_v37 = vand.u32 4294901760, %v7042_v10  ;;  %v7034_v6 = vld [vmem:[#allocation3 + $0x18] sm:$0xff] }
 0x4ee   : > { %7878 = vmatpush.msrb.mxu3 %v16706_v33  ;;  %7682 = vmatpush.msra.mxu1 %v16702_v14  ;;  %v6536_v53 = vmul.f32 %v6520_v5, %v6504_v13  ;;  %v6537_v21 = vmul.f32 %v6521_v11, %v6503_v59  ;;  %v16954_v11 = vsub.f32 %v7027_v39, %v16932_v41 }
 0x4ef   : > { %7788 = vmatpush.msrb.mxu0 %v16765_v8  ;;  %7848 = vmatpush.msrb.mxu2 %v7745_v34  ;;  %v16871_v34 = vand.u32 4294901760, %v7051_v24  ;;  %v16890_v8 = vand.u32 4294901760, %v7034_v6  ;;  %v7931_v38 = vand.u32 4294901760, %v16865_v20  ;;  %v8142_v7 = vsub.f32 %v16919_v9, %v8141_v32 }
 0x4f0   : > { %7880 = vmatpush.msrb.mxu3 %v16726_v4  ;;  %7684 = vmatpush.msra.mxu1 %v16704_v60  ;;  %v6552_v14 = vrot.slane %v6536_v53, 4  ;;  %v6553_v43 = vrot.slane %v6537_v21, 4  ;;  %v16877_v60 = vsub.f32 %v7088_v54, %v16855_v44  ;;  %v8148_v59 = vsub.f32 %v16926_v26, %v8147_v28 }
 0x4f1   : > { %7686 = vmatmul.f32.vlgmr.msra.gmra.mxu1 %v16461_v50  ;;  %7791 = vmatpush.msrb.mxu0 %v16777_v30  ;;  %v16902_v23 = vsub.f32 %v7051_v24, %v16871_v34  ;;  %v7948_v56 = vsub.f32 %v7034_v6, %v16890_v8  ;;  %v8153_v21 = vand.u32 4294901760, %v16954_v11 }
 0x4f2   : > { %7810 = vmatpush.msrb.mxu1 %v16658_v1  ;;  %7852 = vmatpush.msrb.mxu2 %v7751_v49  ;;  %6568 = vst [vmem:[#allocation3 + $0x70] sm:$0xf0] %v6552_v14  ;;  %v7026_v1 = vld [vmem:[#allocation3 + $0x120] sm:$0xff]  ;;  %v16893_v49 = vsub.f32 %v7042_v10, %v16867_v37 }
 0x4f3   : > { %7882 = vmatpush.msrb.mxu3 %v16749_v48  ;;  %7900 = vmatpush.msra.mxu0 %v16842_v19  ;;  %6569 = vst [vmem:[#allocation3 + $0x20] sm:$0xf0] %v6553_v43  ;;  %v16912_v57 = vand.u32 4294901760, %v7026_v1  ;;  %v7949_v2 = vand.u32 4294901760, %v7948_v56  ;;  %v8149_v43 = vand.u32 4294901760, %v8148_v59  ;;  %v8154_v42 = vsub.f32 %v16954_v11, %v8153_v21 }
 0x4f4   : > { %7794 = vmatmul.f32.vlgmr.msrb.gmra.mxu0 %v16476_v18  ;;  %v6201_v29 = vpop.permute.xlu0 %6200  ;;  %7812 = vmatpush.msrb.mxu1 %v16684_v52  ;;  %v8129_v52 = vand.u32 4294901760, %v16877_v60  ;;  %v7943_v63 = vand.u32 4294901760, %v16893_v49 }
 0x4f5   : > { %8008 = vmatpush.msra.mxu3 %v16842_v19  ;;  %7856 = vmatpush.msrb.mxu2 %v7757_v61  ;;  %v6207_v45 = vsel %vm6206_vm3, %v6201_v29, %v16406_v0  ;;  %v6208_v58 = vsel %vm6206_vm3, %v16370_v3, %v6201_v29  ;;  %v7937_v0 = vand.u32 4294901760, %v16884_v62  ;;  %v7932_v3 = vsub.f32 %v16865_v20, %v7931_v38 }
 0x4f6   : > { %7902 = vmatpush.msra.mxu0 %v16860_v36  ;;  %v6239_v30 = vmul.f32 %v6223_v40, %v6208_v58  ;;  %v6240_v61 = vmul.f32 %v6224_v55, %v6207_v45  ;;  %7814 = vmatpush.msrb.mxu1 %v16706_v33  ;;  %v8135_v33 = vand.u32 4294901760, %v16902_v23  ;;  %v8130_v35 = vsub.f32 %v16877_v60, %v8129_v52  ;;  %v7060_v40 = vld [vmem:[#allocation3 + $0xb8] sm:$0xf]  ;;  %v7061_v55 = vld [vmem:[#allocation3 + $0x60] sm:$0xf] }
 0x4f7   : > { %7977 = vmatpush.msra.mxu2 %v16865_v20  ;;  %8010 = vmatpush.msra.mxu3 %v16860_v36  ;;  %v7954_v16 = vsub.f32 %v7026_v1, %v16912_v57  ;;  %v7938_v12 = vsub.f32 %v16884_v62, %v7937_v0  ;;  %v7944_v5 = vsub.f32 %v16893_v49, %v7943_v63  ;;  %v8143_v20 = vand.u32 4294901760, %v8142_v7  ;;  %v7052_v1 = vld [vmem:[#allocation3 + $0x50] sm:$0xff] }
 0x4f8   : > { %7858 = vmatmul.f32.vlgmr.msrb.gmra.mxu2 %v16461_v50  ;;  %7904 = vmatpush.msra.mxu0 %v16867_v37  ;;  %6247 = vst [vmem:[#allocation3 + $0xf8] sm:$0xf] %v6239_v30  ;;  %v8136_v46 = vsub.f32 %v16902_v23, %v8135_v33  ;;  %v7950_v10 = vsub.f32 %v7948_v56, %v7949_v2  ;;  %v8155_v17 = vand.u32 4294901760, %v8154_v42 }
 0x4f9   : > { %7980 = vmatpush.msra.mxu2 %v16884_v62  ;;  %8012 = vmatpush.msra.mxu3 %v16867_v37  ;;  %6248 = vst [vmem:[#allocation3 + $0x100] sm:$0xf] %v6240_v61  ;;  %v7955_v54 = vand.u32 4294901760, %v7954_v16  ;;  %v7939_v27 = vand.u32 4294901760, %v7938_v12  ;;  %v7945_v53 = vand.u32 4294901760, %v7944_v5  ;;  %v7091_v62 = vsel %vm6144_vm2, %v7060_v40, 0 }
 0x4fa   : > { %7816 = vmatpush.msrb.mxu1 %v16726_v4  ;;  %7884 = vmatmul.f32.vlgmr.msrb.gmra.mxu3 %v16461_v50  ;;  %v7933_v4 = vand.u32 4294901760, %v7932_v3  ;;  %v8137_v13 = vand.u32 4294901760, %v8136_v46  ;;  %v7951_v14 = vand.u32 4294901760, %v7950_v10  ;;  %v7036_v45 = vld [vmem:[#allocation3 + $0x70] sm:$0xff]  ;;  %v7037_v39 = vld [vmem:[#allocation3 + $0x20] sm:$0xff] }
 0x4fb   : > { %7906 = vmatpush.msra.mxu0 %v16890_v8  ;;  %7983 = vmatpush.msra.mxu2 %v16893_v49  ;;  %v7956_v24 = vsub.f32 %v7954_v16, %v7955_v54 }
 0x4fc   : > { %8014 = vmatpush.msra.mxu3 %v16890_v8  ;;  %7818 = vmatpush.msrb.mxu1 %v16749_v48  ;;  %v8131_v48 = vand.u32 4294901760, %v8130_v35 }
 0x4fd   : > { %7822 = vmatmul.f32.vlgmr.msrb.gmra.mxu1 %v16492_v51  ;;  %7908 = vmatpush.msra.mxu0 %v16912_v57  ;;  %v7957_v6 = vand.u32 4294901760, %v7956_v24 }
 0x4fe   : > { %7934 = vmatpush.msra.mxu1 %v7933_v4  ;;  %7986 = vmatpush.msra.mxu2 %v7948_v56 }
 0x4ff   : > { %8016 = vmatpush.msra.mxu3 %v16912_v57  ;;  %7914 = vmatmul.f32.vlgmr.msra.gmra.mxu0 %v16551_v31  ;;  %v7028_v30 = vld [vmem:[#allocation3 + $0xf8] sm:$0xff] }
 0x500   : > { %8038 = vmatpush.msrb.mxu0 %v7931_v38  ;;  %7940 = vmatpush.msra.mxu1 %v7939_v27  ;;  %v7053_v38 = vld [vmem:[#allocation3 + $0xe8] sm:$0xff]  ;;  %v17044_v56 = vand.u32 4294901760, %v7028_v30 }
 0x501   : > { %8132 = vmatpush.msrb.mxu3 %v8131_v48  ;;  %7989 = vmatpush.msra.mxu2 %v7954_v16  ;;  %v17013_v58 = vand.u32 4294901760, %v7053_v38 }
 0x502   : > { %8042 = vmatpush.msrb.mxu0 %v7937_v0  ;;  %7946 = vmatpush.msra.mxu1 %v7945_v53 }
 0x503   : > { %8098 = vmatpush.msrb.mxu2 %v16855_v44  ;;  %8138 = vmatpush.msrb.mxu3 %v8137_v13  ;;  %v17040_v3 = vsub.f32 %v7053_v38, %v17013_v58 }
 0x504   : > { %7992 = vmatmul.f32.vlgmr.msra.gmra.mxu2 %v16476_v18  ;;  %8046 = vmatpush.msrb.mxu0 %v7943_v63 }
 0x505   : > { %8100 = vmatpush.msrb.mxu2 %v16871_v34  ;;  %8144 = vmatpush.msrb.mxu3 %v8143_v20 }
 0x506   : > { %7952 = vmatpush.msra.mxu1 %v7951_v14  ;;  %8020 = vmatmul.f32.vlgmr.msra.gmra.mxu3 %v16492_v51 }
 0x507   : > { %8050 = vmatpush.msrb.mxu0 %v7949_v2  ;;  %8102 = vmatpush.msrb.mxu2 %v16886_v47 }
 0x508   : > { %8150 = vmatpush.msrb.mxu3 %v8149_v43  ;;  %7958 = vmatpush.msra.mxu1 %v7957_v6 }
 0x509   : > { %7960 = vmatmul.f32.vlgmr.msra.gmra.mxu1 %v16461_v50  ;;  %8054 = vmatpush.msrb.mxu0 %v7955_v54 }
 0x50a   : > { %8072 = vmatpush.msrb.mxu1 %v16842_v19  ;;  %8104 = vmatpush.msrb.mxu2 %v16896_v25  ;;  %v7094_v19 = vsel %vm6144_vm2, %v7061_v55, 0 }
 0x50b   : > { %8156 = vmatpush.msrb.mxu3 %v8155_v17  ;;  %8175 = vmatpush.msra.mxu0 %v16877_v60  ;;  %v7044_v60 = vld [vmem:[#allocation3 + $0xe0] sm:$0xff]  ;;  %v16997_v49 = vand.u32 4294901760, %v7094_v19 }
 0x50c   : > { %8074 = vmatpush.msrb.mxu1 %v16860_v36  ;;  %8106 = vmatpush.msrb.mxu2 %v16932_v41  ;;  %v16990_v36 = vand.u32 4294901760, %v7091_v62 }
 0x50d   : > { %8270 = vmatpush.msra.mxu3 %v16855_v44  ;;  %8056 = vmatmul.f32.vlgmr.msrb.gmra.mxu0 %v16461_v50 }
 0x50e   : > { %8112 = vmatmul.f32.vlgmr.msrb.gmra.mxu2 %v16551_v31  ;;  %8178 = vmatpush.msra.mxu0 %v16902_v23  ;;  %v17007_v29 = vsub.f32 %v7091_v62, %v16990_v36  ;;  %v7045_v23 = vld [vmem:[#allocation3 + $0x88] sm:$0xff] }
 0x50f   : > { %8236 = vmatpush.msra.mxu2 %v8129_v52  ;;  %8272 = vmatpush.msra.mxu3 %v16871_v34  ;;  %v17026_v61 = vand.u32 4294901760, %v7045_v23 }
 0x510   : > { %8076 = vmatpush.msrb.mxu1 %v16867_v37  ;;  %8158 = vmatmul.f32.vlgmr.msrb.gmra.mxu3 %v16461_v50  ;;  %v17002_v37 = vand.u32 4294901760, %v7052_v1  ;;  %v8327_v0 = vand.u32 4294901760, %v17007_v29 }
 0x511   : > { %8181 = vmatpush.msra.mxu0 %v16919_v9  ;;  %8240 = vmatpush.msra.mxu2 %v8135_v33  ;;  %v17047_v33 = vand.u32 4294901760, %v7037_v39  ;;  %v17053_v35 = vsub.f32 %v7045_v23, %v17026_v61 }
 0x512   : > { %8274 = vmatpush.msra.mxu3 %v16886_v47  ;;  %8078 = vmatpush.msrb.mxu1 %v16890_v8  ;;  %v17011_v8 = vand.u32 4294901760, %v7044_v60  ;;  %v17024_v52 = vsub.f32 %v7052_v1, %v17002_v37  ;;  %v8328_v16 = vsub.f32 %v17007_v29, %v8327_v0 }
 0x513   : > { %8184 = vmatpush.msra.mxu0 %v16926_v26  ;;  %8244 = vmatpush.msra.mxu2 %v8141_v32  ;;  %v8531_v32 = vand.u32 4294901760, %v17040_v3  ;;  %v17072_v46 = vsub.f32 %v7037_v39, %v17047_v33 }
 0x514   : > { %8276 = vmatpush.msra.mxu3 %v16896_v25  ;;  %8080 = vmatpush.msrb.mxu1 %v16912_v57  ;;  %v17019_v57 = vsub.f32 %v7094_v19, %v16997_v49  ;;  %v17037_v9 = vsub.f32 %v7044_v60, %v17011_v8  ;;  %v8333_v63 = vand.u32 4294901760, %v17024_v52 }
 0x515   : > { %8082 = vmatmul.f32.vlgmr.msrb.gmra.mxu1 %v16461_v50  ;;  %8187 = vmatpush.msra.mxu0 %v16954_v11  ;;  %v8537_v11 = vand.u32 4294901760, %v17053_v35  ;;  %v8532_v54 = vsub.f32 %v17040_v3, %v8531_v32 }
 0x516   : > { %8206 = vmatpush.msra.mxu1 %v16855_v44  ;;  %8248 = vmatpush.msra.mxu2 %v8147_v28  ;;  %v17030_v44 = vand.u32 4294901760, %v7036_v45  ;;  %v8525_v26 = vand.u32 4294901760, %v17019_v57  ;;  %v8350_v28 = vsub.f32 %v7028_v30, %v17044_v56  ;;  %v8334_v5 = vsub.f32 %v17024_v52, %v8333_v63 }
 0x517   : > { %8278 = vmatpush.msra.mxu3 %v16932_v41  ;;  %8296 = vmatpush.msrb.mxu0 %v16990_v36  ;;  %v8538_v53 = vsub.f32 %v17053_v35, %v8537_v11  ;;  %v8533_v24 = vand.u32 4294901760, %v8532_v54 }
 0x518   : > { %8190 = vmatmul.f32.vlgmr.msra.gmra.mxu0 %v16476_v18  ;;  %8208 = vmatpush.msra.mxu1 %v16871_v34  ;;  %v7029_v34 = vld [vmem:[#allocation3 + $0x100] sm:$0xff]  ;;  %v8344_v12 = vsub.f32 %v7036_v45, %v17030_v44  ;;  %v8526_v2 = vsub.f32 %v17019_v57, %v8525_v26  ;;  %v8351_v59 = vand.u32 4294901760, %v8350_v28  ;;  %v8335_v13 = vand.u32 4294901760, %v8334_v5 }
 0x519   : > { %8404 = vmatpush.msrb.mxu3 %v16990_v36  ;;  %8252 = vmatpush.msra.mxu2 %v8153_v21  ;;  %v17063_v4 = vand.u32 4294901760, %v7029_v34  ;;  %v8539_v6 = vand.u32 4294901760, %v8538_v53 }
 0x51a   : > { %8298 = vmatpush.msrb.mxu0 %v17002_v37  ;;  %8210 = vmatpush.msra.mxu1 %v16886_v47  ;;  %v8339_v47 = vand.u32 4294901760, %v17037_v9  ;;  %v8345_v48 = vand.u32 4294901760, %v8344_v12  ;;  %v8527_v10 = vand.u32 4294901760, %v8526_v2  ;;  %v8352_v42 = vsub.f32 %v8350_v28, %v8351_v59 }
 0x51b   : > { %8373 = vmatpush.msrb.mxu2 %v17007_v29  ;;  %8406 = vmatpush.msrb.mxu3 %v17002_v37  ;;  %v17087_v7 = vsub.f32 %v7029_v34, %v17063_v4 }
 0x51c   : > { %8254 = vmatmul.f32.vlgmr.msra.gmra.mxu2 %v16461_v50  ;;  %8300 = vmatpush.msrb.mxu0 %v17011_v8  ;;  %v8340_v27 = vsub.f32 %v17037_v9, %v8339_v47  ;;  %v8346_v21 = vsub.f32 %v8344_v12, %v8345_v48  ;;  %v8353_v62 = vand.u32 4294901760, %v8352_v42 }
 0x51d   : > { %8376 = vmatpush.msrb.mxu2 %v17024_v52  ;;  %8408 = vmatpush.msrb.mxu3 %v17011_v8  ;;  %v8549_v14 = vand.u32 4294901760, %v17087_v7 }
 0x51e   : > { %8212 = vmatpush.msra.mxu1 %v16896_v25  ;;  %8280 = vmatmul.f32.vlgmr.msra.gmra.mxu3 %v16461_v50  ;;  %v8329_v25 = vand.u32 4294901760, %v8328_v16  ;;  %v8341_v20 = vand.u32 4294901760, %v8340_v27  ;;  %v8347_v17 = vand.u32 4294901760, %v8346_v21 }
 0x51f   : > { %8302 = vmatpush.msrb.mxu0 %v17030_v44  ;;  %8379 = vmatpush.msrb.mxu2 %v17037_v9  ;;  %v8550_v40 = vsub.f32 %v17087_v7, %v8549_v14 }
 0x520   : > { %8410 = vmatpush.msrb.mxu3 %v17030_v44  ;;  %8214 = vmatpush.msra.mxu1 %v16932_v41  ;;  %v8543_v41 = vand.u32 4294901760, %v17072_v46 }
 0x521   : > { %8218 = vmatmul.f32.vlgmr.msra.gmra.mxu1 %v16492_v51  ;;  %8304 = vmatpush.msrb.mxu0 %v17044_v56  ;;  %v8551_v19 = vand.u32 4294901760, %v8550_v40 }
 0x522   : > { %8330 = vmatpush.msrb.mxu1 %v8329_v25  ;;  %8382 = vmatpush.msrb.mxu2 %v8344_v12  ;;  %v8544_v43 = vsub.f32 %v17072_v46, %v8543_v41 }
 0x523   : > { %8412 = vmatpush.msrb.mxu3 %v17044_v56  ;;  %8310 = vmatmul.f32.vlgmr.msrb.gmra.mxu0 %v16551_v31 }
 0x524   : > { %8434 = vmatpush.msra.mxu0 %v8327_v0  ;;  %8336 = vmatpush.msrb.mxu1 %v8335_v13  ;;  %v8545_v55 = vand.u32 4294901760, %v8544_v43 }
 0x525   : > { %8528 = vmatpush.msra.mxu3 %v8527_v10  ;;  %8385 = vmatpush.msrb.mxu2 %v8350_v28 }
 0x526   : > { %8438 = vmatpush.msra.mxu0 %v8333_v63  ;;  %8342 = vmatpush.msrb.mxu1 %v8341_v20 }
 0x527   : > { %8494 = vmatpush.msra.mxu2 %v16997_v49  ;;  %8534 = vmatpush.msra.mxu3 %v8533_v24 }
 0x528   : > { %8388 = vmatmul.f32.vlgmr.msrb.gmra.mxu2 %v16476_v18  ;;  %8442 = vmatpush.msra.mxu0 %v8339_v47 }
 0x529   : > { %8496 = vmatpush.msra.mxu2 %v17013_v58  ;;  %8540 = vmatpush.msra.mxu3 %v8539_v6 }
 0x52a   : > { %8348 = vmatpush.msrb.mxu1 %v8347_v17  ;;  %8416 = vmatmul.f32.vlgmr.msrb.gmra.mxu3 %v16492_v51 }
 0x52b   : > { %8446 = vmatpush.msra.mxu0 %v8345_v48  ;;  %8498 = vmatpush.msra.mxu2 %v17026_v61 }
 0x52c   : > { %8546 = vmatpush.msra.mxu3 %v8545_v55  ;;  %8354 = vmatpush.msrb.mxu1 %v8353_v62 }
 0x52d   : > { %8356 = vmatmul.f32.vlgmr.msrb.gmra.mxu1 %v16461_v50  ;;  %8450 = vmatpush.msra.mxu0 %v8351_v59 }
 0x52e   : > { %8468 = vmatpush.msra.mxu1 %v16990_v36  ;;  %8500 = vmatpush.msra.mxu2 %v17047_v33 }
 0x52f   : > { %8552 = vmatpush.msra.mxu3 %v8551_v19  ;;  %8571 = vmatpush.msrb.mxu0 %v17019_v57 }
 0x530   : > { %8470 = vmatpush.msra.mxu1 %v17002_v37  ;;  %8502 = vmatpush.msra.mxu2 %v17063_v4 }
 0x531   : > { %8666 = vmatpush.msrb.mxu3 %v16997_v49  ;;  %8574 = vmatpush.msrb.mxu0 %v17040_v3  ;;  %v17145_v3 = vstv %s387_s29 }
 0x532   : > { %8508 = vmatmul.f32.vlgmr.msra.gmra.mxu2 %v16551_v31  ;;  %8472 = vmatpush.msra.mxu1 %v17011_v8 }
 0x533   : > { %8668 = vmatpush.msrb.mxu3 %v17013_v58  ;;  %8632 = vmatpush.msrb.mxu2 %v8525_v26 }
 0x534   : > { %8452 = vmatmul.f32.vlgmr.msra.gmra.mxu0 %v16461_v50  ;;  %8554 = vmatmul.f32.vlgmr.msra.gmra.mxu3 %v16461_v50  ;;  %v7123_v31 = vpop.f32.mrf.mxu0 }
 0x535   : > { %8577 = vmatpush.msrb.mxu0 %v17053_v35  ;;  %8636 = vmatpush.msrb.mxu2 %v8531_v32 }
 0x536   : > { %8670 = vmatpush.msrb.mxu3 %v17026_v61  ;;  %8474 = vmatpush.msra.mxu1 %v17030_v44 }
 0x537   : > { %8580 = vmatpush.msrb.mxu0 %v17072_v46  ;;  %8640 = vmatpush.msrb.mxu2 %v8537_v11 }
 0x538   : > { %8672 = vmatpush.msrb.mxu3 %v17047_v33  ;;  %8476 = vmatpush.msra.mxu1 %v17044_v56 }
 0x539   : > { %8478 = vmatmul.f32.vlgmr.msra.gmra.mxu1 %v16461_v50  ;;  %8583 = vmatpush.msrb.mxu0 %v17087_v7 }
 0x53a   : > { %8602 = vmatpush.msrb.mxu1 %v16997_v49  ;;  %8644 = vmatpush.msrb.mxu2 %v8543_v41 }
 0x53b   : > { %8674 = vmatpush.msrb.mxu3 %v17063_v4  ;;  %11465 = vset.pattern.permute.xlu0 %v11665_v15  ;;  %v7229_v15 = vpop.f32.mrf.mxu3 }
 0x53c   : > { %8604 = vmatpush.msrb.mxu1 %v17013_v58  ;;  %8648 = vmatpush.msrb.mxu2 %v8549_v14  ;;  %v7201_v1 = vpop.f32.mrf.mxu2 }
 0x53d   : > { %8586 = vmatmul.f32.vlgmr.msrb.gmra.mxu0 %v16476_v18  ;;  %8650 = vmatmul.f32.vlgmr.msrb.gmra.mxu2 %v16461_v50 }
 0x53e   : > { %8606 = vmatpush.msrb.mxu1 %v17026_v61  ;;  %8676 = vmatmul.f32.vlgmr.msrb.gmra.mxu3 %v16461_v50 }
 0x53f   : > { %v7169_v36 = vpop.f32.mrf.mxu1 }
 0x540   : > { %8608 = vmatpush.msrb.mxu1 %v17047_v33 }
 0x542   : > { %8610 = vmatpush.msrb.mxu1 %v17063_v4 }
 0x543   : > { %8614 = vmatmul.f32.vlgmr.msrb.gmra.mxu1 %v16492_v51 }
 0x545   : > { %v7265_v49 = vpop.f32.mrf.mxu0 }
 0x548   : > { %v17141_v60 = vpop.permute.xlu1 %7065 }
 0x549   : > { %v7124_v18 = vadd.f32 %v7123_v31, %v17141_v60 }
 0x54b   : > { %v7170_v38 = vadd.f32 %v7169_v36, %v7124_v18  ;;  %v7291_v37 = vpop.f32.mrf.mxu1 }
 0x54c   : > { %v7321_v29 = vpop.f32.mrf.mxu2 }
 0x54d   : > { %v7202_v23 = vadd.f32 %v7201_v1, %v7170_v38  ;;  %v7322_v50 = vadd.f32 %v7321_v29, %v17141_v60 }
 0x54e   : > { %v7367_v8 = vpop.f32.mrf.mxu3 }
 0x54f   : > { %v7368_v45 = vadd.f32 %v7367_v8, %v7322_v50  ;;  %v7230_v58 = vadd.f32 %v7229_v15, %v7202_v23  ;;  %v7399_v57 = vpop.f32.mrf.mxu0 }
 0x551   : > { %v7400_v52 = vadd.f32 %v7399_v57, %v7368_v45  ;;  %v7266_v30 = vadd.f32 %v7265_v49, %v7230_v58 }
 0x553   : > { %v7292_v44 = vadd.f32 %v7291_v37, %v7266_v30 }
 0x555   : > { %v8689_v26 = vmul.f32 %v17145_v3, %v7292_v44  ;;  %vm8680_vm10 = vcmp.ge.f32.partialorder %v7292_v44, 0.0 }
 0x556   : > { %v7427_v51 = vpop.f32.mrf.mxu1 }
 0x557   : > { %v7463_v61 = vpop.f32.mrf.mxu2  ;;  %v7428_v39 = vadd.f32 %v7427_v51, %v7400_v52  ;;  %v8697_v35 = vsel %vm8680_vm10, %v7292_v44, %v8689_v26 }
 0x559   : > { %v7464_v0 = vadd.f32 %v7463_v61, %v7428_v39  ;;  %v7489_v9 = vpop.f32.mrf.mxu3 }
 0x55b   : > { %v7490_v56 = vadd.f32 %v7489_v9, %v7464_v0  ;;  %v7519_v12 = vpop.f32.mrf.mxu0 }
 0x55c   : > { %v7520_v2 = vadd.f32 %v7519_v12, %v17141_v60 }
 0x55d   : > { %vm8681_vm9 = vcmp.ge.f32.partialorder %v7490_v56, 0.0  ;;  %v8690_v33 = vmul.f32 %v17145_v3, %v7490_v56 }
 0x55f   : > { %v8698_v34 = vsel %vm8681_vm9, %v7490_v56, %v8690_v33 }
 0x560   : > { %v8713_v63 = vrot.slane %v8698_v34, 4 }
 0x562   : > { %v17150_v16 = vsel %vm6144_vm2, %v8697_v35, %v8713_v63 }
 0x563   : > { %8737 = vst [vmem:[#allocation1] ss:$2 sm:$0xff] %v17150_v16  ;;  %v7597_v32 = vpop.f32.mrf.mxu2 }
 0x564   : > { %v7565_v47 = vpop.f32.mrf.mxu1 }
 0x565   : > { %v7625_v4 = vpop.f32.mrf.mxu3  ;;  %v7566_v5 = vadd.f32 %v7565_v47, %v7520_v2 }
 0x566   : > { %v7661_v11 = vpop.f32.mrf.mxu0 }
 0x567   : > { %v7598_v54 = vadd.f32 %v7597_v32, %v7566_v5 }
 0x569   : > { %v7626_v59 = vadd.f32 %v7625_v4, %v7598_v54 }
 0x56a   : > { %v8744_v28 = vld.sshfl [vmem:[#allocation1] sm:$0xff pattern:$0x75316420]  ;;  %v8745_v46 = vld.sshfl [vmem:[#allocation1 + $0x8] sm:$0xff pattern:$0x75316420] }
 0x56b   : > { %8826 = vst [vmem:[#allocation1] ss:$2 sm:$0xff] %v17150_v16  ;;  %8762 = vrot.lane.b32.xlu1 %v8745_v46, %s11657_s2  ;;  %8760 = vrot.lane.b32.xlu0 %v8744_v28, %s11657_s2  ;;  %v7662_v21 = vadd.f32 %v7661_v11, %v7626_v59 }
 0x56d   : > { %v7717_v25 = vpop.f32.mrf.mxu2 }
 0x56e   : > { %v7687_v48 = vpop.f32.mrf.mxu1  ;;  %v7718_v27 = vadd.f32 %v7717_v25, %v17141_v60 }
 0x56f   : > { %v7763_v41 = vpop.f32.mrf.mxu3  ;;  %v7688_v17 = vadd.f32 %v7687_v48, %v7662_v21 }
 0x570   : > { %v7764_v13 = vadd.f32 %v7763_v41, %v7718_v27 }
 0x571   : > { %v7795_v53 = vpop.f32.mrf.mxu0  ;;  %vm8682_vm13 = vcmp.ge.f32.partialorder %v7688_v17, 0.0  ;;  %v8691_v19 = vmul.f32 %v17145_v3, %v7688_v17 }
 0x572   : > { %v8833_v7 = vld.sshfl [vmem:[#allocation1] sm:$0xff pattern:$0x75316420]  ;;  %v8834_v10 = vld.sshfl [vmem:[#allocation1 + $0x8] sm:$0xff pattern:$0x75316420]  ;;  %v7796_v24 = vadd.f32 %v7795_v53, %v7764_v13 }
 0x573   : > { %8939 = vst [vmem:[#allocation1] ss:$2 sm:$0xff] %v17150_v16  ;;  %8851 = vrot.lane.b32.xlu2 %v8834_v10, %s11658_s19  ;;  %8849 = vrot.lane.b32.xlu1 %v8833_v7, %s11658_s19  ;;  %v8699_v18 = vsel %vm8682_vm13, %v7688_v17, %v8691_v19 }
 0x57a   : > { %v8946_v20 = vld.sshfl [vmem:[#allocation1] sm:$0xff pattern:$0x75316420]  ;;  %v8947_v14 = vld.sshfl [vmem:[#allocation1 + $0x8] sm:$0xff pattern:$0x75316420]  ;;  %v7823_v43 = vpop.f32.mrf.mxu1 }
 0x57b   : > { %9028 = vst [vmem:[#allocation1] ss:$2 sm:$0xff] %v17150_v16  ;;  %v7824_v42 = vadd.f32 %v7823_v43, %v7796_v24  ;;  %v7859_v6 = vpop.f32.mrf.mxu2  ;;  %8962 = vrot.lane.b32.xlu0 %v8946_v20, %s11659_s20 }
 0x57c   : > { %v7915_v50 = vpop.f32.mrf.mxu0 }
 0x57d   : > { %v7860_v40 = vadd.f32 %v7859_v6, %v7824_v42  ;;  %v7885_v55 = vpop.f32.mrf.mxu3  ;;  %v7916_v52 = vadd.f32 %v7915_v50, %v17141_v60 }
 0x57f   : > { %v7886_v62 = vadd.f32 %v7885_v55, %v7860_v40 }
 0x581   : > { %vm8683_vm14 = vcmp.ge.f32.partialorder %v7886_v62, 0.0  ;;  %v8692_v31 = vmul.f32 %v17145_v3, %v7886_v62 }
 0x582   : > { %v9035_v36 = vld.sshfl [vmem:[#allocation1] sm:$0xff pattern:$0x75316420]  ;;  %v9036_v1 = vld.sshfl [vmem:[#allocation1 + $0x8] sm:$0xff pattern:$0x75316420] }
 0x583   : > { %9141 = vst [vmem:[#allocation1] ss:$2 sm:$0xff] %v17150_v16  ;;  %v8700_v15 = vsel %vm8683_vm14, %v7886_v62, %v8692_v31  ;;  %8964 = vrot.lane.b32.xlu0 %v8947_v14, %s11659_s20  ;;  %9051 = vrot.lane.b32.xlu1 %v9035_v36, %s11660_s30 }
 0x584   : > { %v8714_v49 = vrot.slane %v8700_v15, 4 }
 0x586   : > { %v17169_v38 = vsel %vm6144_vm2, %v8699_v18, %v8714_v49  ;;  %v7961_v8 = vpop.f32.mrf.mxu1 }
 0x587   : > { %8739 = vst [vmem:[#allocation1 + $0x10] ss:$2 sm:$0xff] %v17169_v38  ;;  %v7993_v37 = vpop.f32.mrf.mxu2  ;;  %v7962_v30 = vadd.f32 %v7961_v8, %v7916_v52 }
 0x589   : > { %v8021_v45 = vpop.f32.mrf.mxu3  ;;  %v7994_v9 = vadd.f32 %v7993_v37, %v7962_v30 }
 0x58a   : > { %v9148_v29 = vld.sshfl [vmem:[#allocation1] sm:$0xff pattern:$0x75316420]  ;;  %v9149_v23 = vld.sshfl [vmem:[#allocation1 + $0x8] sm:$0xff pattern:$0x75316420]  ;;  %v8057_v51 = vpop.f32.mrf.mxu0 }
 0x58b   : > { %9164 = vst [vmem:[#allocation5 + $0x30] sm:$0xf] %v9148_v29  ;;  %9053 = vrot.lane.b32.xlu1 %v9036_v1, %s11660_s30  ;;  %v8022_v63 = vadd.f32 %v8021_v45, %v7994_v9 }
 0x58c   : > { %9165 = vst [vmem:[#allocation5 + $0xe0] sm:$0xf] %v9149_v23 }
 0x58d   : > { %9180 = vst [vmem:[#allocation1] ss:$2 sm:$0xff] %v17150_v16  ;;  %v8058_v4 = vadd.f32 %v8057_v51, %v8022_v63 }
 0x58e   : > { %v8746_v58 = vld.sshfl [vmem:[#allocation1 + $0x10] sm:$0xff pattern:$0x75316420]  ;;  %v17174_v57 = vld.sshfl [vmem:[#allocation1 + $0x18] sm:$0xff pattern:$0x75316420] }
 0x58f   : > { %8828 = vst [vmem:[#allocation1 + $0x10] ss:$2 sm:$0xff] %v17169_v38  ;;  %8764 = vrot.lane.b32.xlu2 %v8746_v58, %s11657_s2 }
 0x591   : > { %v8113_v61 = vpop.f32.mrf.mxu2 }
 0x592   : > { %v8083_v39 = vpop.f32.mrf.mxu1  ;;  %v8114_v56 = vadd.f32 %v8113_v61, %v17141_v60 }
 0x593   : > { %v8159_v34 = vpop.f32.mrf.mxu3  ;;  %v8084_v48 = vadd.f32 %v8083_v39, %v8058_v4 }
 0x594   : > { %v9188_v44 = vld.sshfl [vmem:[#allocation1 + $0x8] sm:$0xff pattern:$0x75316420]  ;;  %v9187_v0 = vld.sshfl [vmem:[#allocation1] sm:$0xff pattern:$0x75316420]  ;;  %v8160_v35 = vadd.f32 %v8159_v34, %v8114_v56 }
 0x595   : > { %9205 = vrot.lane.b32.xlu1 %v9188_v44, %s11661_s12  ;;  %9203 = vrot.lane.b32.xlu0 %v9187_v0, %s11661_s12  ;;  %9293 = vst [vmem:[#allocation1] ss:$2 sm:$0xff] %v17150_v16  ;;  %v8191_v12 = vpop.f32.mrf.mxu0  ;;  %vm8684_vm15 = vcmp.ge.f32.partialorder %v8084_v48, 0.0  ;;  %v8693_v59 = vmul.f32 %v17145_v3, %v8084_v48 }
 0x596   : > { %v8835_v26 = vld.sshfl [vmem:[#allocation1 + $0x10] sm:$0xff pattern:$0x75316420]  ;;  %v17183_v33 = vld.sshfl [vmem:[#allocation1 + $0x18] sm:$0xff pattern:$0x75316420]  ;;  %v8192_v2 = vadd.f32 %v8191_v12, %v8160_v35 }
 0x597   : > { %8941 = vst [vmem:[#allocation1 + $0x10] ss:$2 sm:$0xff] %v17169_v38  ;;  %8853 = vrot.lane.b32.xlu2 %v8835_v26, %s11658_s19  ;;  %v8701_v14 = vsel %vm8684_vm15, %v8084_v48, %v8693_v59 }
 0x59c   : > { %v9300_v32 = vld.sshfl [vmem:[#allocation1] sm:$0xff pattern:$0x75316420]  ;;  %v9301_v47 = vld.sshfl [vmem:[#allocation1 + $0x8] sm:$0xff pattern:$0x75316420] }
 0x59d   : > { %9382 = vst [vmem:[#allocation1] ss:$2 sm:$0xff] %v17150_v16 }
 0x59e   : > { %v8948_v28 = vld.sshfl [vmem:[#allocation1 + $0x10] sm:$0xff pattern:$0x75316420]  ;;  %v17188_v46 = vld.sshfl [vmem:[#allocation1 + $0x18] sm:$0xff pattern:$0x75316420]  ;;  %v8219_v5 = vpop.f32.mrf.mxu1 }
 0x59f   : > { %9030 = vst [vmem:[#allocation1 + $0x10] ss:$2 sm:$0xff] %v17169_v38  ;;  %v8220_v11 = vadd.f32 %v8219_v5, %v8192_v2  ;;  %v8255_v25 = vpop.f32.mrf.mxu2  ;;  %8966 = vrot.lane.b32.xlu0 %v8948_v28, %s11659_s20  ;;  %9316 = vrot.lane.b32.xlu2 %v9300_v32, %s11662_s10 }
 0x5a0   : > { %v8311_v43 = vpop.f32.mrf.mxu0 }
 0x5a1   : > { %v8256_v54 = vadd.f32 %v8255_v25, %v8220_v11  ;;  %v8281_v27 = vpop.f32.mrf.mxu3  ;;  %v8312_v19 = vadd.f32 %v8311_v43, %v17141_v60 }
 0x5a3   : > { %v8282_v7 = vadd.f32 %v8281_v27, %v8256_v54 }
 0x5a4   : > { %v9390_v10 = vld.sshfl [vmem:[#allocation1 + $0x8] sm:$0xff pattern:$0x75316420]  ;;  %v9389_v41 = vld.sshfl [vmem:[#allocation1] sm:$0xff pattern:$0x75316420] }
 0x5a5   : > { %vm8685_vm0 = vcmp.ge.f32.partialorder %v8282_v7, 0.0  ;;  %v8694_v13 = vmul.f32 %v17145_v3, %v8282_v7  ;;  %9405 = vrot.lane.b32.xlu1 %v9389_v41, %s11663_s7  ;;  %9495 = vst [vmem:[#allocation1] ss:$2 sm:$0xff] %v17150_v16 }
 0x5a6   : > { %v9037_v53 = vld.sshfl [vmem:[#allocation1 + $0x10] sm:$0xff pattern:$0x75316420]  ;;  %v17197_v21 = vld.sshfl [vmem:[#allocation1 + $0x18] sm:$0xff pattern:$0x75316420] }
 0x5a7   : > { %9143 = vst [vmem:[#allocation1 + $0x10] ss:$2 sm:$0xff] %v17169_v38  ;;  %v8702_v24 = vsel %vm8685_vm0, %v8282_v7, %v8694_v13  ;;  %9318 = vrot.lane.b32.xlu0 %v9301_v47, %s11662_s10  ;;  %9407 = vrot.lane.b32.xlu2 %v9390_v10, %s11663_s7  ;;  %v17252_v13 = vld [vmem:[#allocation13] sm:$0xff] }
 0x5a8   : > { %v8715_v20 = vrot.slane %v8702_v24, 4 }
 0x5aa   : > { %v17203_v42 = vsel %vm6144_vm2, %v8701_v14, %v8715_v20  ;;  %v8357_v16 = vpop.f32.mrf.mxu1  ;;  %v8787_v20 = vperm.slane %v17252_v13, 1 }
 0x5ab   : > { %8741 = vst [vmem:[#allocation1 + $0x20] ss:$2 sm:$0xff] %v17203_v42  ;;  %v8389_v6 = vpop.f32.mrf.mxu2  ;;  %v8358_v15 = vadd.f32 %v8357_v16, %v8312_v19 }
 0x5ac   : > { %v9502_v17 = vld.sshfl [vmem:[#allocation1] sm:$0xff pattern:$0x75316420]  ;;  %v9503_v18 = vld.sshfl [vmem:[#allocation1 + $0x8] sm:$0xff pattern:$0x75316420] }
 0x5ad   : > { %v8417_v62 = vpop.f32.mrf.mxu3  ;;  %v8390_v8 = vadd.f32 %v8389_v6, %v8358_v15 }
 0x5ae   : > { %v9150_v40 = vld.sshfl [vmem:[#allocation1 + $0x10] sm:$0xff pattern:$0x75316420]  ;;  %v9151_v55 = vld.sshfl [vmem:[#allocation1 + $0x18] sm:$0xff pattern:$0x75316420] }
 0x5af   : > { %9182 = vst [vmem:[#allocation1 + $0x10] ss:$2 sm:$0xff] %v17169_v38  ;;  %9055 = vrot.lane.b32.xlu0 %v9037_v53, %s11660_s30  ;;  %9518 = vrot.lane.b32.xlu2 %v9502_v17, %s11664_s25  ;;  %v8418_v51 = vadd.f32 %v8417_v62, %v8390_v8  ;;  %v17268_v62 = vld [vmem:[#allocation13 + $0x8] sm:$0xff] }
 0x5b0   : > { %9166 = vst [vmem:[#allocation5 + $0xb8] sm:$0xf] %v9150_v40  ;;  %v8876_v15 = vperm.slane %v17268_v62, 1 }
 0x5b1   : > { %9167 = vst [vmem:[#allocation5 + $0x48] sm:$0xf] %v9151_v55  ;;  %v8453_v1 = vpop.f32.mrf.mxu0 }
 0x5b2   : > { %v17210_v31 = vld.sshfl [vmem:[#allocation1 + $0x20] sm:$0xff pattern:$0x75316420]  ;;  %v17212_v36 = vld.sshfl [vmem:[#allocation1 + $0x28] sm:$0xff pattern:$0x75316420]  ;;  %v8454_v0 = vadd.f32 %v8453_v1, %v8418_v51 }
 0x5b3   : > { %8830 = vst [vmem:[#allocation1 + $0x20] ss:$2 sm:$0xff] %v17203_v42 }
 0x5b5   : > { %v8509_v49 = vpop.f32.mrf.mxu2 }
 0x5b6   : > { %v9189_v37 = vld.sshfl [vmem:[#allocation1 + $0x10] sm:$0xff pattern:$0x75316420]  ;;  %v9190_v29 = vld.sshfl [vmem:[#allocation1 + $0x18] sm:$0xff pattern:$0x75316420]  ;;  %v8479_v23 = vpop.f32.mrf.mxu1  ;;  %v8510_v50 = vadd.f32 %v8509_v49, %v17141_v60 }
 0x5b7   : > { %9295 = vst [vmem:[#allocation1 + $0x10] ss:$2 sm:$0xff] %v17169_v38  ;;  %9209 = vrot.lane.b32.xlu1 %v9190_v29, %s11661_s12  ;;  %9520 = vrot.lane.b32.xlu0 %v9503_v18, %s11664_s25  ;;  %v8555_v45 = vpop.f32.mrf.mxu3  ;;  %v8480_v32 = vadd.f32 %v8479_v23, %v8454_v0 }
 0x5b8   : > { %9207 = vrot.lane.b32.xlu2 %v9189_v37, %s11661_s12  ;;  %v8556_v30 = vadd.f32 %v8555_v45, %v8510_v50 }
 0x5b9   : > { %v8695_v5 = vmul.f32 %v17145_v3, %v8480_v32  ;;  %vm8686_vm10 = vcmp.ge.f32.partialorder %v8480_v32, 0.0 }
 0x5ba   : > { %v17220_v58 = vld.sshfl [vmem:[#allocation1 + $0x20] sm:$0xff pattern:$0x75316420]  ;;  %v17222_v52 = vld.sshfl [vmem:[#allocation1 + $0x28] sm:$0xff pattern:$0x75316420]  ;;  %v8587_v61 = vpop.f32.mrf.mxu0 }
 0x5bb   : > { %8943 = vst [vmem:[#allocation1 + $0x20] ss:$2 sm:$0xff] %v17203_v42  ;;  %v8588_v60 = vadd.f32 %v8587_v61, %v8556_v30  ;;  %v8703_v27 = vsel %vm8686_vm10, %v8480_v32, %v8695_v5 }
 0x5be   : > { %v9302_v39 = vld.sshfl [vmem:[#allocation1 + $0x10] sm:$0xff pattern:$0x75316420]  ;;  %v9303_v44 = vld.sshfl [vmem:[#allocation1 + $0x18] sm:$0xff pattern:$0x75316420] }
 0x5bf   : > { %9384 = vst [vmem:[#allocation1 + $0x10] ss:$2 sm:$0xff] %v17169_v38  ;;  %9320 = vrot.lane.b32.xlu0 %v9302_v39, %s11662_s10 }
 0x5c0   : > { %v8615_v9 = vpop.f32.mrf.mxu1  ;;  %v8651_v56 = vpop.f32.mrf.mxu2  ;;  %9322 = vrot.lane.b32.xlu2 %v9303_v44, %s11662_s10 }
 0x5c1   : > { %v8616_v26 = vadd.f32 %v8615_v9, %v8588_v60  ;;  %v8677_v35 = vpop.f32.mrf.mxu3  ;;  %v8877_v9 = vperm.slane %v17268_v62, 2 }
 0x5c2   : > { %v17228_v34 = vld.sshfl [vmem:[#allocation1 + $0x20] sm:$0xff pattern:$0x75316420]  ;;  %v17230_v63 = vld.sshfl [vmem:[#allocation1 + $0x28] sm:$0xff pattern:$0x75316420] }
 0x5c3   : > { %9032 = vst [vmem:[#allocation1 + $0x20] ss:$2 sm:$0xff] %v17203_v42  ;;  %v8652_v12 = vadd.f32 %v8651_v56, %v8616_v26  ;;  %v17301_v56 = vld [vmem:[#allocation13 + $0x10] sm:$0xff] }
 0x5c5   : > { %v8678_v47 = vadd.f32 %v8677_v35, %v8652_v12  ;;  %v8989_v12 = vperm.slane %v17301_v56, 1 }
 0x5c6   : > { %v9391_v4 = vld.sshfl [vmem:[#allocation1 + $0x10] sm:$0xff pattern:$0x75316420]  ;;  %v9392_v2 = vld.sshfl [vmem:[#allocation1 + $0x18] sm:$0xff pattern:$0x75316420] }
 0x5c7   : > { %vm8687_vm9 = vcmp.ge.f32.partialorder %v8678_v47, 0.0  ;;  %v8696_v28 = vmul.f32 %v17145_v3, %v8678_v47  ;;  %9411 = vrot.lane.b32.xlu0 %v9392_v2, %s11663_s7  ;;  %9497 = vst [vmem:[#allocation1 + $0x10] ss:$2 sm:$0xff] %v17169_v38 }
 0x5c9   : > { %v8704_v11 = vsel %vm8687_vm9, %v8678_v47, %v8696_v28 }
 0x5ca   : > { %v17237_v25 = vld.sshfl [vmem:[#allocation1 + $0x20] sm:$0xff pattern:$0x75316420]  ;;  %v17239_v48 = vld.sshfl [vmem:[#allocation1 + $0x28] sm:$0xff pattern:$0x75316420] }
 0x5cb   : > { %9145 = vst [vmem:[#allocation1 + $0x20] ss:$2 sm:$0xff] %v17203_v42  ;;  %v8716_v54 = vrot.slane %v8704_v11, 4 }
 0x5cd   : > { %v17243_v7 = vsel %vm6144_vm2, %v8703_v27, %v8716_v54  ;;  %v8852_v55 = vpop.permute.xlu2 %8851 }
 0x5ce   : > { %8743 = vst [vmem:[#allocation1 + $0x30] ss:$2 sm:$0xff] %v17243_v7  ;;  %v9504_v10 = vld.sshfl [vmem:[#allocation1 + $0x10] sm:$0xff pattern:$0x75316420] }
 0x5cf   : > { %9522 = vrot.lane.b32.xlu0 %v9504_v10, %s11664_s25  ;;  %v9505_v39 = vld.sshfl [vmem:[#allocation1 + $0x18] sm:$0xff pattern:$0x75316420] }
 0x5d2   : > { %v9152_v38 = vld.sshfl [vmem:[#allocation1 + $0x20] sm:$0xff pattern:$0x75316420]  ;;  %v9153_v3 = vld.sshfl [vmem:[#allocation1 + $0x28] sm:$0xff pattern:$0x75316420] }
 0x5d3   : > { %9184 = vst [vmem:[#allocation1 + $0x20] ss:$2 sm:$0xff] %v17203_v42 }
 0x5d4   : > { %9168 = vst [vmem:[#allocation5 + $0x28] sm:$0xf] %v9152_v38 }
 0x5d5   : > { %9169 = vst [vmem:[#allocation5 + $0x128] sm:$0xf] %v9153_v3  ;;  %v17248_v41 = vld.sshfl [vmem:[#allocation1 + $0x30] sm:$0xff pattern:$0x75316420] }
 0x5d6   : > { %v8751_v59 = vld.sshfl [vmem:[#allocation1 + $0x38] sm:$0xff pattern:$0x75316420] }
 0x5d7   : > { %8832 = vst [vmem:[#allocation1 + $0x30] ss:$2 sm:$0xff] %v17243_v7  ;;  %8774 = vrot.lane.b32.xlu1 %v8751_v59, %s11657_s2 }
 0x5da   : > { %v17254_v53 = vld.sshfl [vmem:[#allocation1 + $0x28] sm:$0xff pattern:$0x75316420]  ;;  %v9191_v24 = vld.sshfl [vmem:[#allocation1 + $0x20] sm:$0xff pattern:$0x75316420] }
 0x5db   : > { %9211 = vrot.lane.b32.xlu0 %v9191_v24, %s11661_s12  ;;  %9297 = vst [vmem:[#allocation1 + $0x20] ss:$2 sm:$0xff] %v17203_v42 }
 0x5dd   : > { %v8763_v14 = vpop.permute.xlu1 %8762  ;;  %v17259_v43 = vpop.permute.xlu0 %8760 }
 0x5de   : > { %v17261_v6 = vld.sshfl [vmem:[#allocation1 + $0x30] sm:$0xff pattern:$0x75316420]  ;;  %v8840_v16 = vld.sshfl [vmem:[#allocation1 + $0x38] sm:$0xff pattern:$0x75316420]  ;;  %v8782_v17 = vsel %vm6206_vm3, %v17259_v43, %v8763_v14 }
 0x5df   : > { %8945 = vst [vmem:[#allocation1 + $0x30] ss:$2 sm:$0xff] %v17243_v7  ;;  %8863 = vrot.lane.b32.xlu2 %v8840_v16, %s11658_s19  ;;  %v8803_v40 = vmul.f32 %v8787_v20, %v8782_v17 }
 0x5e1   : > { %8811 = vst [vmem:[#allocation5 + $0x130] sm:$0xf] %v8803_v40 }
 0x5e2   : > { %v9304_v19 = vld.sshfl [vmem:[#allocation1 + $0x20] sm:$0xff pattern:$0x75316420]  ;;  %v9305_v1 = vld.sshfl [vmem:[#allocation1 + $0x28] sm:$0xff pattern:$0x75316420] }
 0x5e3   : > { %8855 = vrot.lane.b32.xlu0 %v17183_v33, %s11658_s19  ;;  %9386 = vst [vmem:[#allocation1 + $0x20] ss:$2 sm:$0xff] %v17203_v42  ;;  %v8788_v33 = vperm.slane %v17252_v13, 2 }
 0x5e5   : > { %v17274_v49 = vpop.permute.xlu1 %8849 }
 0x5e6   : > { %v17276_v18 = vld.sshfl [vmem:[#allocation1 + $0x30] sm:$0xff pattern:$0x75316420]  ;;  %v8953_v37 = vld.sshfl [vmem:[#allocation1 + $0x38] sm:$0xff pattern:$0x75316420]  ;;  %v8871_v29 = vsel %vm6296_vm4, %v17274_v49, %v8852_v55 }
 0x5e7   : > { %9034 = vst [vmem:[#allocation1 + $0x30] ss:$2 sm:$0xff] %v17243_v7  ;;  %8976 = vrot.lane.b32.xlu1 %v8953_v37, %s11659_s20  ;;  %9409 = vrot.lane.b32.xlu2 %v9391_v4, %s11663_s7  ;;  %v8892_v23 = vmul.f32 %v8876_v15, %v8871_v29 }
 0x5e9   : > { %v17285_v50 = vpop.permute.xlu2 %8764  ;;  %v8908_v8 = vrot.slane %v8892_v23, 4 }
 0x5ea   : > { %v8781_v45 = vsel %vm6206_vm3, %v8763_v14, %v17285_v50  ;;  %v9393_v30 = vld.sshfl [vmem:[#allocation1 + $0x20] sm:$0xff pattern:$0x75316420]  ;;  %v9394_v51 = vld.sshfl [vmem:[#allocation1 + $0x28] sm:$0xff pattern:$0x75316420] }
 0x5eb   : > { %v8804_v61 = vmul.f32 %v8788_v33, %v8781_v45  ;;  %9326 = vrot.lane.b32.xlu0 %v9305_v1, %s11662_s10  ;;  %8924 = vst [vmem:[#allocation5 + $0x130] sm:$0xf0] %v8908_v8  ;;  %v17340_v14 = vld [vmem:[#allocation13 + $0x28] sm:$0xff] }
 0x5ec   : > { %9499 = vst [vmem:[#allocation1 + $0x20] ss:$2 sm:$0xff] %v17203_v42  ;;  %v9229_v16 = vperm.slane %v17340_v14, 0  ;;  %v9230_v8 = vperm.slane %v17340_v14, 1 }
 0x5ed   : > { %8812 = vst [vmem:[#allocation5 + $0x68] sm:$0xf] %v8804_v61  ;;  %v17292_v44 = vpop.permute.xlu0 %8962 }
 0x5ee   : > { %v17294_v60 = vld.sshfl [vmem:[#allocation1 + $0x30] sm:$0xff pattern:$0x75316420]  ;;  %v9042_v0 = vld.sshfl [vmem:[#allocation1 + $0x38] sm:$0xff pattern:$0x75316420] }
 0x5ef   : > { %9147 = vst [vmem:[#allocation1 + $0x30] ss:$2 sm:$0xff] %v17243_v7  ;;  %8968 = vrot.lane.b32.xlu1 %v17188_v46, %s11659_s20  ;;  %9524 = vrot.lane.b32.xlu2 %v9505_v39, %s11664_s25  ;;  %v17378_v39 = vld [vmem:[#allocation13 + $0x30] sm:$0xff] }
 0x5f1   : > { %v17303_v26 = vpop.permute.xlu2 %8853 }
 0x5f2   : > { %v8870_v42 = vsel %vm6296_vm4, %v8852_v55, %v17303_v26 }
 0x5f3   : > { %v8893_v35 = vmul.f32 %v8877_v9, %v8870_v42  ;;  %8857 = vrot.lane.b32.xlu0 %v17220_v58, %s11658_s19  ;;  %v17319_v58 = vld [vmem:[#allocation13 + $0x18] sm:$0xff]  ;;  %v9507_v20 = vld.sshfl [vmem:[#allocation1 + $0x28] sm:$0xff pattern:$0x75316420]  ;;  %v9342_v42 = vperm.slane %v17378_v39, 0 }
 0x5f4   : > { %v9078_v54 = vperm.slane %v17319_v58, 1  ;;  %v9506_v29 = vld.sshfl [vmem:[#allocation1 + $0x20] sm:$0xff pattern:$0x75316420] }
 0x5f5   : > { %v8909_v32 = vrot.slane %v8893_v35, 4  ;;  %v8965_v46 = vpop.permute.xlu0 %8964  ;;  %v17311_v47 = vpop.permute.xlu1 %9051 }
 0x5f6   : > { %v9154_v4 = vld.sshfl [vmem:[#allocation1 + $0x30] sm:$0xff pattern:$0x75316420]  ;;  %v9155_v2 = vld.sshfl [vmem:[#allocation1 + $0x38] sm:$0xff pattern:$0x75316420]  ;;  %v8984_v28 = vsel %vm6411_vm6, %v17292_v44, %v8965_v46 }
 0x5f7   : > { %9186 = vst [vmem:[#allocation1 + $0x30] ss:$2 sm:$0xff] %v17243_v7  ;;  %9324 = vrot.lane.b32.xlu1 %v9304_v19, %s11662_s10  ;;  %9065 = vrot.lane.b32.xlu2 %v9042_v0, %s11660_s30  ;;  %v9005_v5 = vmul.f32 %v8989_v12, %v8984_v28 }
 0x5f8   : > { %9170 = vst [vmem:[#allocation5 + $0x118] sm:$0xf] %v9154_v4 }
 0x5f9   : > { %9171 = vst [vmem:[#allocation5 + $0x100] sm:$0xf] %v9155_v2  ;;  %v17321_v11 = vpop.permute.xlu2 %9316  ;;  %v9079_v2 = vperm.slane %v17319_v58, 2 }
 0x5fa   : > { %19238 = vst [vmem:[#allocation51_spill] sm:$0xff] %v17321_v11 }
 0x5fb   : > { %8925 = vst [vmem:[#allocation5 + $0x68] sm:$0xf0] %v8909_v32  ;;  %8768 = vrot.lane.b32.xlu0 %v17210_v31, %s11657_s2 }
 0x5fc   : > { %9013 = vst [vmem:[#allocation5 + $0x40] sm:$0xf] %v9005_v5 }
 0x5fd   : > { %v17326_v27 = vpop.permute.xlu1 %9053 }
 0x5fe   : > { %v17328_v10 = vld.sshfl [vmem:[#allocation1 + $0x30] sm:$0xff pattern:$0x75316420]  ;;  %v9194_v38 = vld.sshfl [vmem:[#allocation1 + $0x38] sm:$0xff pattern:$0x75316420]  ;;  %v9073_v3 = vsel %vm6502_vm5, %v17311_v47, %v17326_v27 }
 0x5ff   : > { %9299 = vst [vmem:[#allocation1 + $0x30] ss:$2 sm:$0xff] %v17243_v7  ;;  %9413 = vrot.lane.b32.xlu1 %v9393_v30, %s11663_s7  ;;  %9057 = vrot.lane.b32.xlu2 %v17197_v21, %s11660_s30  ;;  %v9094_v31 = vmul.f32 %v9078_v54, %v9073_v3 }
 0x601   : > { %v9110_v59 = vrot.slane %v9094_v31, 4  ;;  %v17338_v24 = vpop.permute.xlu2 %9407 }
 0x603   : > { %9528 = vrot.lane.b32.xlu0 %v9507_v20, %s11664_s25  ;;  %9126 = vst [vmem:[#allocation5 + $0x40] sm:$0xf0] %v9110_v59 }
 0x606   : > { %v9306_v17 = vld.sshfl [vmem:[#allocation1 + $0x30] sm:$0xff pattern:$0x75316420]  ;;  %v17344_v40 = vld.sshfl [vmem:[#allocation1 + $0x38] sm:$0xff pattern:$0x75316420] }
 0x607   : > { %9388 = vst [vmem:[#allocation1 + $0x30] ss:$2 sm:$0xff] %v17243_v7  ;;  %9415 = vrot.lane.b32.xlu1 %v9394_v51, %s11663_s7  ;;  %8766 = vrot.lane.b32.xlu2 %v17174_v57, %s11657_s2  ;;  %v9206_v21 = vpop.permute.xlu1 %9205  ;;  %v17350_v55 = vpop.permute.xlu0 %9203  ;;  %v8990_v57 = vperm.slane %v17301_v56, 2  ;;  %v17372_v51 = vld [vmem:[#allocation13 + $0x38] sm:$0xff] }
 0x608   : > { %v9225_v19 = vsel %vm6656_vm7, %v17350_v55, %v9206_v21  ;;  %v9431_v0 = vperm.slane %v17372_v51, 0 }
 0x609   : > { %v9245_v1 = vmul.f32 %v9229_v16, %v9225_v19  ;;  %v17355_v15 = vpop.permute.xlu2 %9518 }
 0x60a   : > { %19239 = vst [vmem:[#allocation54_spill] sm:$0xff] %v17355_v15 }
 0x60b   : > { %9061 = vrot.lane.b32.xlu0 %v17239_v48, %s11660_s30  ;;  %v9261_v37 = vrot.slane %v9245_v1, 4 }
 0x60d   : > { %9277 = vst [vmem:[#allocation5 + $0x30] sm:$0xf0] %v9261_v37  ;;  %v9343_v37 = vperm.slane %v17378_v39, 1 }
 0x60e   : > { %v17359_v33 = vld.sshfl [vmem:[#allocation1 + $0x38] sm:$0xff pattern:$0x75316420]  ;;  %v9395_v23 = vld.sshfl [vmem:[#allocation1 + $0x30] sm:$0xff pattern:$0x75316420] }
 0x60f   : > { %9526 = vrot.lane.b32.xlu1 %v9506_v29, %s11664_s25  ;;  %9213 = vrot.lane.b32.xlu2 %v17254_v53, %s11661_s12  ;;  %9501 = vst [vmem:[#allocation1 + $0x30] ss:$2 sm:$0xff] %v17243_v7  ;;  %v9344_v29 = vperm.slane %v17378_v39, 2 }
 0x611   : > { %v17367_v45 = vpop.permute.xlu0 %8966 }
 0x612   : > { %v8983_v48 = vsel %vm6411_vm6, %v8965_v46, %v17367_v45  ;;  %v9208_v30 = vpop.permute.xlu2 %9207 }
 0x613   : > { %8770 = vrot.lane.b32.xlu0 %v17212_v36, %s11657_s2  ;;  %v9006_v61 = vmul.f32 %v8990_v57, %v8983_v48  ;;  %v9224_v7 = vsel %vm6656_vm7, %v9206_v21, %v9208_v30 }
 0x614   : > { %v9246_v53 = vmul.f32 %v9230_v8, %v9224_v7 }
 0x615   : > { %9014 = vst [vmem:[#allocation5 + $0x58] sm:$0xf] %v9006_v61 }
 0x616   : > { %v9262_v9 = vrot.slane %v9246_v53, 4  ;;  %v9508_v31 = vld.sshfl [vmem:[#allocation1 + $0x30] sm:$0xff pattern:$0x75316420] }
 0x617   : > { %9059 = vrot.lane.b32.xlu1 %v17237_v25, %s11660_s30  ;;  %9328 = vrot.lane.b32.xlu2 %v9306_v17, %s11662_s10  ;;  %v17385_v35 = vpop.permute.xlu1 %9405 }
 0x618   : > { %9278 = vst [vmem:[#allocation5 + $0xe0] sm:$0xf0] %v9262_v9  ;;  %v9427_v36 = vsel %vm6862_vm11, %v17385_v35, %v17338_v24 }
 0x619   : > { %v9319_v12 = vpop.permute.xlu0 %9318  ;;  %v9447_v32 = vmul.f32 %v9431_v0, %v9427_v36  ;;  %v8875_v36 = vperm.slane %v17268_v62, 0 }
 0x61a   : > { %v9338_v46 = vsel %vm6771_vm8, %v17321_v11, %v9319_v12  ;;  %v17429_v1 = vpop.permute.xlu2 %9322 }
 0x61b   : > { %9217 = vrot.lane.b32.xlu0 %v9194_v38, %s11661_s12  ;;  %v9358_v25 = vmul.f32 %v9342_v42, %v9338_v46  ;;  %v9463_v4 = vrot.slane %v9447_v32, 4  ;;  %v17407_v38 = vld [vmem:[#allocation13 + $0x40] sm:$0xff] }
 0x61c   : > { %v9544_v59 = vperm.slane %v17407_v38, 0 }
 0x61d   : > { %9366 = vst [vmem:[#allocation5 + $0x98] sm:$0xf] %v9358_v25 }
 0x61e   : > { %9479 = vst [vmem:[#allocation5 + $0x98] sm:$0xf0] %v9463_v4 }
 0x61f   : > { %8970 = vrot.lane.b32.xlu1 %v17228_v34, %s11659_s20  ;;  %9417 = vrot.lane.b32.xlu2 %v9395_v23, %s11663_s7  ;;  %v9231_v34 = vperm.slane %v17340_v14, 2  ;;  %v9593_v23 = vld [vmem:[#allocation5 + $0x30] sm:$0xff] }
 0x621   : > { %v17399_v28 = vpop.permute.xlu0 %9055 }
 0x622   : > { %v9072_v5 = vsel %vm6502_vm5, %v17326_v27, %v17399_v28 }
 0x623   : > { %8861 = vrot.lane.b32.xlu0 %v17261_v6, %s11658_s19  ;;  %v9095_v54 = vmul.f32 %v9079_v2, %v9072_v5 }
 0x625   : > { %v9111_v3 = vrot.slane %v9095_v54, 4  ;;  %v9601_v19 = vld [vmem:[#allocation5 + $0x98] sm:$0xff] }
 0x626   : > { %v17433_v57 = vand.u32 4294901760, %v9601_v19 }
 0x627   : > { %8859 = vrot.lane.b32.xlu1 %v17222_v52, %s11658_s19  ;;  %9530 = vrot.lane.b32.xlu2 %v9508_v31, %s11664_s25  ;;  %9127 = vst [vmem:[#allocation5 + $0x58] sm:$0xf0] %v9111_v3  ;;  %v9509_v3 = vld.sshfl [vmem:[#allocation1 + $0x38] sm:$0xff pattern:$0x75316420] }
 0x628   : > { %v17443_v53 = vsub.f32 %v9601_v19, %v17433_v57 }
 0x629   : > { %v17414_v20 = vpop.permute.xlu1 %9209  ;;  %v17416_v27 = vpop.permute.xlu0 %9520 }
 0x62a   : > { %v9223_v6 = vsel %vm6656_vm7, %v9208_v30, %v17414_v20  ;;  %v9540_v52 = vsel %vm6977_vm12, %v17355_v15, %v17416_v27  ;;  %v17440_v30 = vand.u32 4294901760, %v9593_v23  ;;  %v18637_v32 = vand.u32 4294901760, %v17443_v53 }
 0x62b   : > { %v9247_v16 = vmul.f32 %v9231_v34, %v9223_v6  ;;  %v9560_v17 = vmul.f32 %v9544_v59, %v9540_v52  ;;  %v9432_v59 = vperm.slane %v17372_v51, 1  ;;  %v9433_v6 = vperm.slane %v17372_v51, 2 }
 0x62c   : > { %v17449_v42 = vsub.f32 %v9593_v23, %v17440_v30  ;;  %v9545_v52 = vperm.slane %v17407_v38, 1 }
 0x62d   : > { %v9263_v21 = vrot.slane %v9247_v16, 4  ;;  %9568 = vst [vmem:[#allocation5 + $0x20] sm:$0xf] %v9560_v17 }
 0x62e   : > { %v18634_v4 = vand.u32 4294901760, %v17449_v42 }
 0x62f   : > { %9215 = vrot.lane.b32.xlu1 %v17328_v10, %s11661_s12  ;;  %8972 = vrot.lane.b32.xlu2 %v17230_v63, %s11659_s20  ;;  %9279 = vst [vmem:[#allocation5 + $0xb8] sm:$0xf0] %v9263_v21  ;;  %s11383_s12 = sshll.u32 %s11746_s18, 5  ;;  %s11259_s18 = scalar_lea.sflag [#allocation10], %s11822_s21 }
 0x630   : > { %v9706_v34 = vsub.f32 %v17449_v42, %v18634_v4 }
 0x631   : > { %v9321_v8 = vpop.permute.xlu0 %9320 }
 0x632   : > { %v9336_v48 = vsel %vm6771_vm8, %v9321_v8, %v17429_v1  ;;  %v9337_v10 = vsel %vm6771_vm8, %v9319_v12, %v9321_v8 }
 0x633   : > { %v9359_v63 = vmul.f32 %v9343_v37, %v9337_v10  ;;  %v9360_v61 = vmul.f32 %v9344_v29, %v9336_v48  ;;  %v9707_v29 = vand.u32 4294901760, %v9706_v34 }
 0x634   : > { %v9609_v7 = vld [vmem:[#allocation5 + $0x20] sm:$0xf] }
 0x635   : > { %9367 = vst [vmem:[#allocation5] sm:$0xf] %v9359_v63  ;;  %v9627_v0 = vsel %vm6144_vm2, %v9609_v7, 0 }
 0x636   : > { %9368 = vst [vmem:[#allocation5 + $0x78] sm:$0xf] %v9360_v61  ;;  %v17446_v9 = vand.u32 4294901760, %v9627_v0 }
 0x637   : > { %9330 = vrot.lane.b32.xlu1 %v17344_v40, %s11662_s10  ;;  %9419 = vrot.lane.b32.xlu2 %v17359_v33, %s11663_s7 }
 0x638   : > { %9662 = vmatpush.msra.mxu0 %v17446_v9  ;;  %9770 = vmatpush.msra.mxu3 %v17446_v9  ;;  %v17459_v12 = vsub.f32 %v9627_v0, %v17446_v9 }
 0x639   : > { %v17462_v46 = vpop.permute.xlu2 %8863  ;;  %v17464_v25 = vpop.permute.xlu0 %9411 }
 0x63a   : > { %v8872_v40 = vsel %vm6296_vm4, %v17462_v46, %v17274_v49  ;;  %9664 = vmatpush.msra.mxu0 %v17433_v57  ;;  %9739 = vmatpush.msra.mxu2 %v17459_v12  ;;  %v18638_v33 = vand.u32 4294901760, %v17459_v12  ;;  %v9700_v49 = vsub.f32 %v17443_v53, %v18637_v32 }
 0x63b   : > { %v8891_v2 = vmul.f32 %v8875_v36, %v8872_v40  ;;  %9772 = vmatpush.msra.mxu3 %v17433_v57  ;;  %v9232_v40 = vperm.slane %v17340_v14, 3 }
 0x63c   : > { %9666 = vmatpush.msra.mxu0 %v17440_v30  ;;  %9742 = vmatpush.msra.mxu2 %v17443_v53  ;;  %v9694_v5 = vsub.f32 %v17459_v12, %v18638_v33  ;;  %v9701_v16 = vand.u32 4294901760, %v9700_v49  ;;  %v9077_v49 = vperm.slane %v17319_v58, 0 }
 0x63d   : > { %v8907_v54 = vrot.slane %v8891_v2, 4  ;;  %9774 = vmatpush.msra.mxu3 %v17440_v30 }
 0x63e   : > { %9745 = vmatpush.msra.mxu2 %v17449_v42  ;;  %v9695_v31 = vand.u32 4294901760, %v9694_v5 }
 0x63f   : > { %8923 = vst [vmem:[#allocation5 + $0xa8] sm:$0xf0] %v8907_v54  ;;  %9532 = vrot.lane.b32.xlu1 %v9509_v3, %s11664_s25  ;;  %9063 = vrot.lane.b32.xlu2 %v17294_v60, %s11660_s30  ;;  %s11270_s25 = scalar_lea.hbm %s18358_s9, %s11383_s12 }
 0x640   : > { %9696 = vmatpush.msra.mxu1 %v9695_v31  ;;  %s11274_s27 = sshll.u32 %s11270_s25, 4  ;;  %s11275_s27 = int_to_ptr.hbm [resolvable:$true] %s11274_s27 }
 0x641   : > { %v9410_v17 = vpop.permute.xlu2 %9409  ;;  %v9523_v21 = vpop.permute.xlu0 %9522  ;;  %s11593_s17 = sshra.s32 %s11275_s27, 4  ;;  %s11594_s17 = int_to_ptr.hbm [resolvable:$true] %s11593_s17 }
 0x642   : > { %v9426_v19 = vsel %vm6862_vm11, %v17338_v24, %v9410_v17  ;;  %v9425_v37 = vsel %vm6862_vm11, %v9410_v17, %v17464_v25  ;;  %v9539_v60 = vsel %vm6977_vm12, %v17416_v27, %v9523_v21  ;;  %9702 = vmatpush.msra.mxu1 %v9701_v16  ;;  %v8786_v24 = vperm.slane %v17252_v13, 0  ;;  %s11595_s28 = scalar_lea.hbm %s11594_s17, 32  ;;  %p11600_p12 = scmp.lt.s32.totalorder %s11594_s17, %s18358_s9 }
 0x643   : > { %v9448_v23 = vmul.f32 %v9432_v59, %v9426_v19  ;;  %v9449_v8 = vmul.f32 %v9433_v6, %v9425_v37  ;;  %v9561_v48 = vmul.f32 %v9545_v52, %v9539_v60  ;;  %v9546_v27 = vperm.slane %v17407_v38, 2  ;;  %v9576_v59 = vld [vmem:[%s18354_s5] sm:$0xf]  ;;  %p11596_p1 = scmp.ne.s32.totalorder %s11594_s17, %s11595_s28  ;;  %p11601_p7 = scmp.lt.s32.totalorder %s11599_s1, %s11595_s28 }
 0x644   : > { %9708 = vmatpush.msra.mxu1 %v9707_v29  ;;  %v9080_v60 = vperm.slane %v17319_v58, 3 }
 0x645   : > { %v9464_v10 = vrot.slane %v9448_v23, 4  ;;  %v9465_v63 = vrot.slane %v9449_v8, 4  ;;  %9569 = vst [vmem:[#allocation5 + $0xc8] sm:$0xf] %v9561_v48  ;;  %p11597_p3 = pnand %p11596_p1, %p11791_p4  ;;  %p11602_p8 = por %p11601_p7, %p11600_p12 }
 0x647   : > { %9480 = vst [vmem:[#allocation5] sm:$0xf0] %v9464_v10  ;;  %8974 = vrot.lane.b32.xlu1 %v17276_v18, %s11659_s20  ;;  %8772 = vrot.lane.b32.xlu2 %v17248_v41, %s11657_s2  ;;  %s11376_s20 = sshll.u32 %s11822_s21, 5  ;;  %p11598_p5 = pneg %p11597_p3 }
 0x648   : > { %9481 = vst [vmem:[#allocation5 + $0x78] sm:$0xf0] %v9465_v63  ;;  %s18300_s30 = scalar_lea.vmem [#allocation14], %s11376_s20 }
 0x649   : > { %v17509_v61 = vpop.permute.xlu1 %8774  ;;  %v17511_v7 = vpop.permute.xlu2 %9524  ;;  %s11272_s26 = sshll.u32 %s18300_s30, 4  ;;  %p11603_p9 = pnand %p11602_p8, %p11598_p5  ;;  %s11273_s26 = int_to_ptr.vmem [resolvable:$true] %s11272_s26 }
 0x64a   : > { %19240 = vst [vmem:[#allocation57_spill] sm:$0xff] %v17509_v61  ;;  %v8783_v0 = vsel %vm6206_vm3, %v17509_v61, %v17259_v43  ;;  %v9538_v18 = vsel %vm6977_vm12, %v9523_v21, %v17511_v7  ;;  %v9624_v21 = vsel %vm7068_vm1, %v9576_v59, 0  ;;  %v8789_v59 = vperm.slane %v17252_v13, 3 }
 0x64b   : > { %v8802_v36 = vmul.f32 %v8786_v24, %v8783_v0  ;;  %v9562_v41 = vmul.f32 %v9546_v27, %v9538_v18  ;;  %v17547_v8 = vand.u32 4294901760, %v9624_v21  ;;  %v9594_v27 = vld [vmem:[#allocation5 + $0xe0] sm:$0xff] }
 0x64c   : > { %v9610_v31 = vld [vmem:[#allocation5 + $0xc8] sm:$0xf] }
 0x64d   : > { %8810 = vst [vmem:[#allocation5 + $0xa8] sm:$0xf] %v8802_v36  ;;  %v17521_v2 = vpop.permute.xlu0 %9211  ;;  %v9630_v52 = vsel %vm6144_vm2, %v9610_v31, 0  ;;  %v9586_v31 = vld [vmem:[#allocation5 + $0x40] sm:$0xff] }
 0x64e   : > { %9570 = vst [vmem:[#allocation5 + $0x70] sm:$0xf] %v9562_v41  ;;  %v9222_v5 = vsel %vm6656_vm7, %v17414_v20, %v17521_v2  ;;  %v8878_v20 = vperm.slane %v17268_v62, 3  ;;  %v9602_v37 = vld [vmem:[#allocation5] sm:$0xff]  ;;  %v17545_v23 = vand.u32 4294901760, %v9630_v52 }
 0x64f   : > { %v9248_v43 = vmul.f32 %v9232_v40, %v9222_v5  ;;  %v17553_v24 = vand.u32 4294901760, %v9602_v37  ;;  %v17566_v5 = vand.u32 4294901760, %v9594_v27 }
 0x650   : > { %v17564_v40 = vsub.f32 %v9630_v52, %v17545_v23  ;;  %v17581_v52 = vand.u32 4294901760, %v9586_v31 }
 0x651   : > { %v17528_v54 = vpop.permute.xlu2 %9065  ;;  %v9264_v3 = vrot.slane %v9248_v43, 4 }
 0x652   : > { %v9074_v34 = vsel %vm6502_vm5, %v17528_v54, %v17311_v47  ;;  %v8988_v47 = vperm.slane %v17301_v56, 0  ;;  %v17615_v4 = vsub.f32 %v9586_v31, %v17581_v52 }
 0x653   : > { %v9093_v6 = vmul.f32 %v9077_v49, %v9074_v34  ;;  %9280 = vst [vmem:[#allocation5 + $0x48] sm:$0xf0] %v9264_v3  ;;  %v17569_v49 = vsub.f32 %v9624_v21, %v17547_v8  ;;  %v8991_v34 = vperm.slane %v17301_v56, 3  ;;  %v17587_v21 = vsub.f32 %v9594_v27, %v17566_v5 }
 0x654   : > { %v9577_v18 = vld [vmem:[#allocation5 + $0xa8] sm:$0xff] }
 0x655   : > { %v9109_v16 = vrot.slane %v9093_v6, 4  ;;  %v8856_v17 = vpop.permute.xlu0 %8855  ;;  %v18636_v6 = vand.u32 4294901760, %v17564_v40 }
 0x656   : > { %v8869_v19 = vsel %vm6296_vm4, %v17303_v26, %v8856_v17 }
 0x657   : > { %9125 = vst [vmem:[#allocation5 + $0x8] sm:$0xf0] %v9109_v16  ;;  %v8894_v29 = vmul.f32 %v8878_v20, %v8869_v19  ;;  %v9578_v20 = vld [vmem:[#allocation5 + $0x130] sm:$0xff]  ;;  %v17584_v16 = vand.u32 4294901760, %v17569_v49 }
 0x658   : > { %v17605_v27 = vand.u32 4294901760, %v9578_v20 }
 0x659   : > { %v17549_v48 = vpop.permute.xlu1 %8976  ;;  %v17551_v10 = vpop.permute.xlu2 %9057  ;;  %v8910_v63 = vrot.slane %v8894_v29, 4 }
 0x65a   : > { %19241 = vst [vmem:[#allocation35_spill] sm:$0xff] %v17549_v48  ;;  %v8985_v26 = vsel %vm6411_vm6, %v17549_v48, %v17292_v44  ;;  %v9071_v0 = vsel %vm6502_vm5, %v17399_v28, %v17551_v10  ;;  %v17571_v44 = vand.u32 4294901760, %v9577_v18  ;;  %v17576_v28 = vsub.f32 %v9602_v37, %v17553_v24 }
 0x65b   : > { %v9004_v36 = vmul.f32 %v8988_v47, %v8985_v26  ;;  %v9096_v41 = vmul.f32 %v9080_v60, %v9071_v0  ;;  %8926 = vst [vmem:[#allocation5 + $0x90] sm:$0xf0] %v8910_v63 }
 0x65c   : > { %v17594_v47 = vsub.f32 %v9577_v18, %v17571_v44  ;;  %v18635_v60 = vand.u32 4294901760, %v17576_v28  ;;  %v9892_v18 = vsub.f32 %v17564_v40, %v18636_v6 }
 0x65d   : > { %9012 = vst [vmem:[#allocation5 + $0x8] sm:$0xf] %v9004_v36  ;;  %v9112_v43 = vrot.slane %v9096_v41, 4  ;;  %v17573_v3 = vpop.permute.xlu0 %9326  ;;  %v8879_v36 = vperm.slane %v17268_v62, 4  ;;  %v9345_v62 = vperm.slane %v17378_v39, 3 }
 0x65e   : > { %v9893_v6 = vand.u32 4294901760, %v9892_v18  ;;  %v19242_v18 = vand.u32 4294901760, %v17594_v47 }
 0x65f   : > { %9128 = vst [vmem:[#allocation5 + $0xc0] sm:$0xf0] %v9112_v43  ;;  %v9674_v43 = vsub.f32 %v17569_v49, %v17584_v16 }
 0x661   : > { %v17589_v19 = vpop.permute.xlu1 %8968  ;;  %v17591_v37 = vpop.permute.xlu2 %8766  ;;  %v17637_v33 = vand.u32 4294901760, %v9674_v43 }
 0x662   : > { %v8982_v29 = vsel %vm6411_vm6, %v17367_v45, %v17589_v19  ;;  %v8780_v63 = vsel %vm6206_vm3, %v17285_v50, %v17591_v37  ;;  %v18641_v45 = vand.u32 4294901760, %v17587_v21 }
 0x663   : > { %v9007_v26 = vmul.f32 %v8991_v34, %v8982_v29  ;;  %v8805_v0 = vmul.f32 %v8789_v59, %v8780_v63  ;;  %v9898_v59 = vsub.f32 %v17576_v28, %v18635_v60  ;;  %v17627_v63 = vsub.f32 %v9578_v20, %v17605_v27 }
 0x664   : > { %v9585_v41 = vld [vmem:[#allocation5 + $0x8] sm:$0xff]  ;;  %v9904_v20 = vsub.f32 %v17587_v21, %v18641_v45 }
 0x665   : > { %9015 = vst [vmem:[#allocation5 + $0xc0] sm:$0xf] %v9007_v26  ;;  %v17617_v50 = vand.u32 4294901760, %v9585_v41  ;;  %v17623_v29 = vpop.permute.xlu0 %8857  ;;  %v9233_v26 = vperm.slane %v17340_v14, 4 }
 0x666   : > { %8813 = vst [vmem:[#allocation5 + $0x90] sm:$0xf] %v8805_v0  ;;  %v8868_v31 = vsel %vm6296_vm4, %v8856_v17, %v17623_v29  ;;  %v9346_v0 = vperm.slane %v17378_v39, 4  ;;  %v19243_v17 = vand.u32 4294901760, %v17459_v12 }
 0x667   : > { %9668 = vmatpush.msra.mxu0 %v17617_v50  ;;  %9776 = vmatpush.msra.mxu3 %v17617_v50  ;;  %v9710_v60 = vsub.f32 %v9585_v41, %v17617_v50  ;;  %v8895_v32 = vmul.f32 %v8879_v36, %v8868_v31  ;;  %v9718_v36 = vsub.f32 %v17594_v47, %v19242_v18  ;;  %v9899_v41 = vand.u32 4294901760, %v9898_v59 }
 0x669   : > { %v9325_v34 = vpop.permute.xlu1 %9324  ;;  %v17643_v48 = vpop.permute.xlu2 %9213  ;;  %9670 = vmatpush.msra.mxu0 %v17571_v44  ;;  %9748 = vmatpush.msra.mxu2 %v9710_v60  ;;  %v9711_v15 = vand.u32 4294901760, %v9710_v60  ;;  %v8911_v43 = vrot.slane %v8895_v32, 4  ;;  %v8790_v32 = vperm.slane %v17252_v13, 4 }
 0x66a   : > { %v9335_v31 = vsel %vm6771_vm8, %v17429_v1, %v9325_v34  ;;  %v9221_v45 = vsel %vm6656_vm7, %v17521_v2, %v17643_v48  ;;  %9778 = vmatpush.msra.mxu3 %v17571_v44  ;;  %v9334_v18 = vsel %vm6771_vm8, %v9325_v34, %v17573_v3  ;;  %v19244_v2 = vand.u32 4294901760, %v17443_v53  ;;  %9676 = vmatmul.f32.vlgmr.msra.gmra.mxu0 %v17637_v33 }
 0x66b   : > { %9800 = vmatpush.msrb.mxu0 %v19243_v17  ;;  %v9361_v59 = vmul.f32 %v9345_v62, %v9335_v31  ;;  %v9249_v11 = vmul.f32 %v9233_v26, %v9221_v45  ;;  %9751 = vmatpush.msra.mxu2 %v17594_v47  ;;  %v9712_v1 = vsub.f32 %v9710_v60, %v9711_v15  ;;  %v9905_v34 = vand.u32 4294901760, %v9904_v20  ;;  %v9611_v20 = vld [vmem:[#allocation5 + $0x70] sm:$0xf] }
 0x66c   : > { %9894 = vmatpush.msrb.mxu3 %v9893_v6  ;;  %8927 = vst [vmem:[#allocation5 + $0xa0] sm:$0xf0] %v8911_v43  ;;  %v9362_v12 = vmul.f32 %v9346_v0, %v9334_v18  ;;  %v9915_v45 = vand.u32 4294901760, %v17627_v63  ;;  %v19245_v6 = vand.u32 4294901760, %v17449_v42  ;;  %v9434_v53 = vperm.slane %v17372_v51, 3  ;;  %9754 = vmatmul.f32.vlgmr.msra.gmra.mxu2 %v17569_v49 }
 0x66d   : > { %9804 = vmatpush.msrb.mxu0 %v19244_v2  ;;  %9860 = vmatpush.msrb.mxu2 %v17545_v23  ;;  %9369 = vst [vmem:[#allocation5 + $0x108] sm:$0xf] %v9361_v59  ;;  %v9265_v17 = vrot.slane %v9249_v11, 4  ;;  %v9713_v61 = vand.u32 4294901760, %v9712_v1  ;;  %v17669_v62 = vpop.permute.xlu0 %8768  ;;  %v19246_v60 = vand.u32 4294901760, %v17615_v4  ;;  %v9347_v0 = vperm.slane %v17378_v39, 5 }
 0x66e   : > { %9900 = vmatpush.msrb.mxu3 %v9899_v41  ;;  %9370 = vst [vmem:[#allocation5 + $0x110] sm:$0xf] %v9362_v12  ;;  %v8779_v26 = vsel %vm6206_vm3, %v17591_v37, %v17669_v62  ;;  %v9719_v42 = vand.u32 4294901760, %v9718_v36  ;;  %v9916_v37 = vsub.f32 %v17627_v63, %v9915_v45  ;;  %v9633_v18 = vsel %vm6144_vm2, %v9611_v20, 0  ;;  %v9603_v2 = vld [vmem:[#allocation5 + $0x78] sm:$0xff] }
 0x66f   : > { %9808 = vmatpush.msrb.mxu0 %v19245_v6  ;;  %9862 = vmatpush.msrb.mxu2 %v17553_v24  ;;  %v9910_v11 = vsub.f32 %v17615_v4, %v19246_v60  ;;  %9281 = vst [vmem:[#allocation5 + $0x28] sm:$0xf0] %v9265_v17  ;;  %v8806_v41 = vmul.f32 %v8790_v32, %v8779_v26  ;;  %v19248_v1 = vand.u32 4294901760, %v17564_v40  ;;  %v9436_v12 = vperm.slane %v17372_v51, 5  ;;  %v9579_v17 = vld [vmem:[#allocation5 + $0x68] sm:$0xff]  ;;  %v9595_v60 = vld [vmem:[#allocation5 + $0xb8] sm:$0xff] }
 0x670   : > { %9714 = vmatpush.msra.mxu1 %v9713_v61  ;;  %9906 = vmatpush.msrb.mxu3 %v9905_v34  ;;  %v19247_v61 = vand.u32 4294901760, %v17594_v47  ;;  %v19249_v34 = vand.u32 4294901760, %v17576_v28  ;;  %v17723_v6 = vand.u32 4294901760, %v9603_v2 }
 0x671   : > { %9812 = vmatpush.msrb.mxu0 %v9711_v15  ;;  %9864 = vmatpush.msrb.mxu2 %v17566_v5  ;;  %v9414_v43 = vpop.permute.xlu1 %9413  ;;  %v17684_v31 = vpop.permute.xlu2 %9328  ;;  %8814 = vst [vmem:[#allocation5 + $0xa0] sm:$0xf] %v8806_v41  ;;  %v9911_v36 = vand.u32 4294901760, %v9910_v11  ;;  %v9587_v11 = vld [vmem:[#allocation5 + $0x58] sm:$0xff]  ;;  %v17742_v41 = vand.u32 4294901760, %v9595_v60 }
 0x672   : > { %9720 = vmatpush.msra.mxu1 %v9719_v42  ;;  %v9424_v39 = vsel %vm6862_vm11, %v17464_v25, %v9414_v43  ;;  %v9333_v15 = vsel %vm6771_vm8, %v17573_v3, %v17684_v31  ;;  %v9917_v3 = vand.u32 4294901760, %v9916_v37  ;;  %9782 = vmatmul.f32.vlgmr.msra.gmra.mxu3 %v17584_v16 }
 0x673   : > { %9816 = vmatpush.msrb.mxu0 %v19247_v61  ;;  %v9450_v32 = vmul.f32 %v9434_v53, %v9424_v39  ;;  %v9363_v59 = vmul.f32 %v9347_v0, %v9333_v15  ;;  %9866 = vmatpush.msrb.mxu2 %v17581_v52  ;;  %v17736_v0 = vand.u32 4294901760, %v9579_v17  ;;  %v17750_v15 = vsub.f32 %v9603_v2, %v17723_v6 }
 0x674   : > { %9834 = vmatpush.msrb.mxu1 %v17446_v9  ;;  %9912 = vmatpush.msrb.mxu3 %v9911_v36  ;;  %v17706_v9 = vand.u32 4294901760, %v9633_v18 }
 0x675   : > { %9937 = vmatpush.msra.mxu0 %v17564_v40  ;;  %v9466_v25 = vrot.slane %v9450_v32, 4  ;;  %9371 = vst [vmem:[#allocation5 + $0xd0] sm:$0xf] %v9363_v59  ;;  %9868 = vmatpush.msrb.mxu2 %v17605_v27  ;;  %v17708_v47 = vpop.permute.xlu0 %9528  ;;  %v17758_v36 = vsub.f32 %v9579_v17, %v17736_v0  ;;  %v17769_v32 = vsub.f32 %v9595_v60, %v17742_v41 }
 0x676   : > { %9836 = vmatpush.msrb.mxu1 %v17433_v57  ;;  %9918 = vmatpush.msrb.mxu3 %v9917_v3  ;;  %v9435_v57 = vperm.slane %v17372_v51, 4  ;;  %v17726_v53 = vsub.f32 %v9633_v18, %v17706_v9  ;;  %v9549_v18 = vperm.slane %v17407_v38, 5 }
 0x677   : > { %9940 = vmatpush.msra.mxu0 %v17576_v28  ;;  %9998 = vmatpush.msra.mxu2 %v19248_v1  ;;  %9482 = vst [vmem:[#allocation5 + $0x108] sm:$0xf0] %v9466_v25 }
 0x678   : > { %9838 = vmatpush.msrb.mxu1 %v17440_v30  ;;  %10032 = vmatpush.msra.mxu3 %v17545_v23 }
 0x679   : > { %9943 = vmatpush.msra.mxu0 %v17587_v21  ;;  %10002 = vmatpush.msra.mxu2 %v19249_v34  ;;  %v9416_v30 = vpop.permute.xlu1 %9415  ;;  %v17721_v40 = vpop.permute.xlu2 %9417  ;;  %v10101_v34 = vand.u32 4294901760, %v17769_v32 }
 0x67a   : > { %9840 = vmatpush.msrb.mxu1 %v17617_v50  ;;  %v9423_v28 = vsel %vm6862_vm11, %v9414_v43, %v9416_v30  ;;  %v9422_v26 = vsel %vm6862_vm11, %v9416_v30, %v17721_v40  ;;  %v19250_v50 = vand.u32 4294901760, %v17587_v21  ;;  %10034 = vmatpush.msra.mxu3 %v17553_v24  ;;  %v17744_v43 = vand.u32 4294901760, %v9587_v11 }
 0x67b   : > { %9946 = vmatpush.msra.mxu0 %v17615_v4  ;;  %v9451_v42 = vmul.f32 %v9435_v57, %v9423_v28  ;;  %v9452_v20 = vmul.f32 %v9436_v12, %v9422_v26  ;;  %9722 = vmatmul.f32.vlgmr.msra.gmra.mxu1 %v17547_v8  ;;  %v19251_v21 = vand.u32 4294901760, %v17615_v4  ;;  %v9547_v4 = vperm.slane %v17407_v38, 3 }
 0x67c   : > { %10006 = vmatpush.msra.mxu2 %v19250_v50  ;;  %9842 = vmatpush.msrb.mxu1 %v17571_v44  ;;  %v10089_v44 = vand.u32 4294901760, %v17726_v53  ;;  %v17772_v59 = vsub.f32 %v9587_v11, %v17744_v43  ;;  %v10113_v57 = vand.u32 4294901760, %v17758_v36  ;;  %v9081_v50 = vperm.slane %v17319_v58, 4 }
 0x67d   : > { %9949 = vmatpush.msra.mxu0 %v17627_v63  ;;  %v9467_v37 = vrot.slane %v9451_v42, 4  ;;  %v9468_v39 = vrot.slane %v9452_v20, 4  ;;  %v17753_v61 = vpop.permute.xlu0 %9061  ;;  %10036 = vmatpush.msra.mxu3 %v17566_v5  ;;  %v10095_v63 = vand.u32 4294901760, %v17750_v15  ;;  %v9082_v42 = vperm.slane %v17319_v58, 5 }
 0x67e   : > { %9968 = vmatpush.msra.mxu1 %v17545_v23  ;;  %10010 = vmatpush.msra.mxu2 %v19251_v21  ;;  %v9548_v23 = vperm.slane %v17407_v38, 4  ;;  %v10090_v38 = vsub.f32 %v17726_v53, %v10089_v44  ;;  %v10107_v30 = vand.u32 4294901760, %v17772_v59  ;;  %v17816_v11 = vsub.f32 %v17758_v36, %v10113_v57  ;;  %v9604_v28 = vld [vmem:[#allocation5 + $0x108] sm:$0xff] }
 0x67f   : > { %9818 = vmatmul.f32.vlgmr.msrb.gmra.mxu0 %v17547_v8  ;;  %9483 = vst [vmem:[#allocation5 + $0x110] sm:$0xf0] %v9467_v37  ;;  %10038 = vmatpush.msra.mxu3 %v17581_v52  ;;  %v10096_v60 = vsub.f32 %v17750_v15, %v10095_v63  ;;  %v10102_v37 = vsub.f32 %v17769_v32, %v10101_v34 }
 0x680   : > { %10058 = vmatpush.msrb.mxu0 %v17706_v9  ;;  %9970 = vmatpush.msra.mxu1 %v17553_v24  ;;  %9484 = vst [vmem:[#allocation5 + $0xd0] sm:$0xf0] %v9468_v39  ;;  %v10091_v26 = vand.u32 4294901760, %v10090_v38  ;;  %v10115_v38 = vand.u32 4294901760, %v17816_v11 }
 0x681   : > { %10014 = vmatpush.msra.mxu2 %v9915_v45  ;;  %v9527_v24 = vpop.permute.xlu1 %9526  ;;  %v17776_v25 = vpop.permute.xlu2 %9530  ;;  %v9596_v45 = vld [vmem:[#allocation5 + $0x48] sm:$0xff]  ;;  %10040 = vmatpush.msra.mxu3 %v17605_v27  ;;  %v10097_v58 = vand.u32 4294901760, %v10096_v60 }
 0x682   : > { %9874 = vmatmul.f32.vlgmr.msrb.gmra.mxu2 %v17637_v33  ;;  %10060 = vmatpush.msrb.mxu0 %v17723_v6  ;;  %v9537_v3 = vsel %vm6977_vm12, %v17511_v7, %v9527_v24  ;;  %v9535_v1 = vsel %vm6977_vm12, %v17708_v47, %v17776_v25  ;;  %v9536_v2 = vsel %vm6977_vm12, %v9527_v24, %v17708_v47  ;;  %v8791_v7 = vperm.slane %v17252_v13, 5 }
 0x683   : > { %10135 = vmatpush.msrb.mxu2 %v17726_v53  ;;  %9972 = vmatpush.msra.mxu1 %v17566_v5  ;;  %v9563_v5 = vmul.f32 %v9547_v4, %v9537_v3  ;;  %v9564_v12 = vmul.f32 %v9548_v23, %v9536_v2  ;;  %v9565_v17 = vmul.f32 %v9549_v18, %v9535_v1  ;;  %v17802_v47 = vand.u32 4294901760, %v9596_v45  ;;  %v9580_v18 = vld [vmem:[#allocation5 + $0x90] sm:$0xff] }
 0x684   : > { %10062 = vmatpush.msrb.mxu0 %v17742_v41  ;;  %9920 = vmatmul.f32.vlgmr.msrb.gmra.mxu3 %v17547_v8  ;;  %v17840_v23 = vand.u32 4294901760, %v9604_v28 }
 0x685   : > { %10138 = vmatpush.msrb.mxu2 %v17750_v15  ;;  %9571 = vst [vmem:[#allocation5 + $0x120] sm:$0xf] %v9563_v5  ;;  %9974 = vmatpush.msra.mxu1 %v17581_v52  ;;  %v17809_v13 = vpop.permute.xlu0 %8770  ;;  %v17835_v39 = vsub.f32 %v9596_v45, %v17802_v47  ;;  %v9236_v5 = vperm.slane %v17340_v14, 7  ;;  %v8992_v15 = vperm.slane %v17301_v56, 4 }
 0x686   : > { %10166 = vmatpush.msrb.mxu3 %v17706_v9  ;;  %10064 = vmatpush.msrb.mxu0 %v17744_v43  ;;  %9572 = vst [vmem:[#allocation5 + $0x50] sm:$0xf] %v9564_v12  ;;  %v8778_v52 = vsel %vm6206_vm3, %v17669_v62, %v17809_v13  ;;  %v9588_v62 = vld [vmem:[#allocation5 + $0xc0] sm:$0xff]  ;;  %v17866_v11 = vsub.f32 %v9604_v28, %v17840_v23 }
 0x687   : > { %10141 = vmatpush.msrb.mxu2 %v17769_v32  ;;  %9976 = vmatpush.msra.mxu1 %v17605_v27  ;;  %9573 = vst [vmem:[#allocation5 + $0xf0] sm:$0xf] %v9565_v17  ;;  %v8807_v20 = vmul.f32 %v8791_v7, %v8778_v52  ;;  %v10108_v27 = vsub.f32 %v17772_v59, %v10107_v30  ;;  %v17853_v2 = vand.u32 4294901760, %v9588_v62  ;;  %v17858_v7 = vand.u32 4294901760, %v9580_v18 }
 0x688   : > { %10168 = vmatpush.msrb.mxu3 %v17723_v6  ;;  %9844 = vmatmul.f32.vlgmr.msrb.gmra.mxu1 %v17547_v8  ;;  %v10299_v60 = vand.u32 4294901760, %v17835_v39  ;;  %v9438_v32 = vperm.slane %v17372_v51, 7 }
 0x689   : > { %10066 = vmatpush.msrb.mxu0 %v17736_v0  ;;  %10092 = vmatpush.msrb.mxu1 %v10091_v26  ;;  %v9060_v21 = vpop.permute.xlu1 %9059  ;;  %v17838_v4 = vpop.permute.xlu2 %8972  ;;  %8815 = vst [vmem:[#allocation5 + $0xd8] sm:$0xf] %v8807_v20  ;;  %v10109_v12 = vand.u32 4294901760, %v10108_v27  ;;  %v8993_v20 = vperm.slane %v17301_v56, 5  ;;  %v17889_v27 = vsub.f32 %v9588_v62, %v17853_v2 }
 0x68a   : > { %10144 = vmatpush.msrb.mxu2 %v17772_v59  ;;  %9952 = vmatmul.f32.vlgmr.msra.gmra.mxu0 %v17569_v49  ;;  %v9070_v24 = vsel %vm6502_vm5, %v17551_v10, %v9060_v21  ;;  %v9069_v45 = vsel %vm6502_vm5, %v9060_v21, %v17753_v61  ;;  %v10103_v10 = vand.u32 4294901760, %v10102_v37  ;;  %v9617_v37 = vld [vmem:[%s18355_s6] sm:$0xf] }
 0x68b   : > { %10170 = vmatpush.msrb.mxu3 %v17742_v41  ;;  %10196 = vmatpush.msra.mxu0 %v10089_v44  ;;  %v9097_v3 = vmul.f32 %v9081_v50, %v9070_v24  ;;  %v9098_v1 = vmul.f32 %v9082_v42, %v9069_v45  ;;  %v17875_v42 = vld [vmem:[#allocation5 + $0x110] sm:$0xff]  ;;  %v10293_v45 = vand.u32 4294901760, %v17866_v11 }
 0x68c   : > { %10098 = vmatpush.msrb.mxu1 %v10097_v58  ;;  %10147 = vmatpush.msrb.mxu2 %v17758_v36  ;;  %v9612_v17 = vld [vmem:[#allocation5 + $0x120] sm:$0xf]  ;;  %v10305_v36 = vand.u32 4294901760, %v17889_v27 }
 0x68d   : > { %10172 = vmatpush.msrb.mxu3 %v17744_v43  ;;  %10200 = vmatpush.msra.mxu0 %v10095_v63  ;;  %v9113_v53 = vrot.slane %v9097_v3, 4  ;;  %v9114_v44 = vrot.slane %v9098_v1, 4  ;;  %v9636_v14 = vsel %vm6144_vm2, %v9612_v17, 0  ;;  %v9613_v52 = vld [vmem:[#allocation5 + $0x50] sm:$0xf]  ;;  %v17868_v26 = vpop.permute.xlu0 %9217 }
 0x68e   : > { %10016 = vmatmul.f32.vlgmr.msra.gmra.mxu2 %v17547_v8  ;;  %10104 = vmatpush.msrb.mxu1 %v10103_v10  ;;  %v17871_v50 = vand.u32 4294901760, %v9636_v14  ;;  %v9639_v63 = vsel %vm6144_vm2, %v9613_v52, 0  ;;  %v9226_v28 = vsel %vm6656_vm7, %v17868_v26, %v17350_v55  ;;  %v9437_v55 = vperm.slane %v17372_v51, 6  ;;  %v9597_v10 = vld [vmem:[#allocation5 + $0x28] sm:$0xff] }
 0x68f   : > { %10174 = vmatpush.msrb.mxu3 %v17736_v0  ;;  %9129 = vst [vmem:[#allocation5 + $0x138] sm:$0xf0] %v9113_v53  ;;  %10204 = vmatpush.msra.mxu0 %v10101_v34  ;;  %v17891_v58 = vand.u32 4294901760, %v9639_v63  ;;  %v9252_v21 = vmul.f32 %v9236_v5, %v9226_v28  ;;  %v17900_v34 = vsub.f32 %v9580_v18, %v17858_v7  ;;  %v17910_v51 = vand.u32 4294901760, %v17875_v42 }
 0x690   : > { %10042 = vmatmul.f32.vlgmr.msra.gmra.mxu3 %v17547_v8  ;;  %10110 = vmatpush.msrb.mxu1 %v10109_v12  ;;  %9130 = vst [vmem:[#allocation5 + $0x80] sm:$0xf0] %v9114_v44  ;;  %v17897_v56 = vsub.f32 %v9636_v14, %v17871_v50 }
 0x691   : > { %10256 = vmatpush.msra.mxu2 %v17871_v50  ;;  %10208 = vmatpush.msra.mxu0 %v10107_v30  ;;  %v8971_v62 = vpop.permute.xlu1 %8970  ;;  %v9420_v24 = vpop.permute.xlu2 %9419  ;;  %v17907_v3 = vsub.f32 %v9639_v63, %v17891_v58  ;;  %v9268_v1 = vrot.slane %v9252_v21, 4 }
 0x692   : > { %9980 = vmatmul.f32.vlgmr.msra.gmra.mxu1 %v17584_v16  ;;  %v8980_v18 = vsel %vm6411_vm6, %v8971_v62, %v17838_v4  ;;  %v8981_v59 = vsel %vm6411_vm6, %v17589_v19, %v8971_v62  ;;  %9620 = vperm.xlu0 %11465, %v9617_v37   ;;  %v9421_v30 = vsel %vm6862_vm11, %v17721_v40, %v9420_v24  ;;  %v10287_v5 = vand.u32 4294901760, %v17897_v56  ;;  %v17928_v19 = vld [vmem:[#allocation13 + $0x8] sm:$0xff]  ;;  %v11483_v37 = vld [vmem:[#allocation13 + $0x18] sm:$0xff] }
 0x693   : > { %10116 = vmatpush.msrb.mxu1 %v10115_v38  ;;  %10212 = vmatpush.msra.mxu0 %v10113_v57  ;;  %v9008_v38 = vmul.f32 %v8992_v15, %v8981_v59  ;;  %v9009_v12 = vmul.f32 %v8993_v20, %v8980_v18  ;;  %v9428_v17 = vsel %vm6862_vm11, %v9420_v24, %v17385_v35  ;;  %v8882_v53 = vperm.slane %v17928_v19, 7 }
 0x694   : > { %v9453_v44 = vmul.f32 %v9437_v55, %v9421_v30  ;;  %v9454_v40 = vmul.f32 %v9438_v32, %v9428_v17  ;;  %10072 = vmatmul.f32.vlgmr.msrb.gmra.mxu0 %v17637_v33  ;;  %10258 = vmatpush.msra.mxu2 %v17840_v23  ;;  %9284 = vst [vmem:[#allocation5 + $0x100] sm:$0xf0] %v9268_v1  ;;  %v17944_v57 = vand.u32 4294901760, %v9597_v10  ;;  %v8880_v20 = vperm.slane %v17928_v19, 5 }
 0x695   : > { %10230 = vmatpush.msra.mxu1 %v17706_v9  ;;  %v10288_v9 = vsub.f32 %v17897_v56, %v10287_v5  ;;  %9016 = vst [vmem:[#allocation5 + $0x138] sm:$0xf] %v9008_v38  ;;  %10333 = vmatpush.msrb.mxu0 %v17897_v56  ;;  %v17941_v35 = vsub.f32 %v17835_v39, %v10299_v60  ;;  %v8862_v14 = vpop.permute.xlu0 %8861  ;;  %v9083_v21 = vperm.slane %v11483_v37, 6  ;;  %v9084_v55 = vperm.slane %v11483_v37, 7 }
 0x696   : > { %9017 = vst [vmem:[#allocation5 + $0x80] sm:$0xf] %v9009_v12  ;;  %v9469_v52 = vrot.slane %v9453_v44, 4  ;;  %v9470_v15 = vrot.slane %v9454_v40, 4  ;;  %10260 = vmatpush.msra.mxu2 %v17802_v47  ;;  %v8865_v28 = vsel %vm6296_vm4, %v8862_v14, %v17462_v46  ;;  %v10294_v62 = vsub.f32 %v17866_v11, %v10293_v45 }
 0x697   : > { %10232 = vmatpush.msra.mxu1 %v17723_v6  ;;  %v10289_v63 = vand.u32 4294901760, %v10288_v9  ;;  %v17947_v6 = vld [vmem:[#allocation5 + $0xa0] sm:$0xff]  ;;  %10336 = vmatpush.msrb.mxu0 %v17866_v11  ;;  %v8898_v32 = vmul.f32 %v8882_v53, %v8865_v28  ;;  %v10485_v46 = vand.u32 4294901760, %v17907_v3  ;;  %v17963_v24 = vsub.f32 %v17875_v42, %v17910_v51 }
 0x698   : > { %9485 = vst [vmem:[#allocation5 + $0x10] sm:$0xf0] %v9469_v52  ;;  %10262 = vmatpush.msra.mxu2 %v17853_v2  ;;  %v17970_v59 = vsub.f32 %v17889_v27, %v10305_v36  ;;  %v17973_v30 = vand.u32 4294901760, %v17947_v6  ;;  %v17976_v38 = vsub.f32 %v9597_v10, %v17944_v57  ;;  %v8881_v10 = vperm.slane %v17928_v19, 6  ;;  %10178 = vmatmul.f32.vlgmr.msrb.gmra.mxu3 %v17584_v16 }
 0x699   : > { %10234 = vmatpush.msra.mxu1 %v17742_v41  ;;  %10290 = vmatpush.msra.mxu3 %v10289_v63  ;;  %v10311_v41 = vand.u32 4294901760, %v17900_v34  ;;  %9486 = vst [vmem:[#allocation5 + $0x18] sm:$0xf0] %v9470_v15  ;;  %v8860_v1 = vpop.permute.xlu1 %8859  ;;  %v9064_v18 = vpop.permute.xlu2 %9063  ;;  %v8914_v42 = vrot.slane %v8898_v32, 4  ;;  %v10491_v19 = vand.u32 4294901760, %v17963_v24  ;;  %v10301_v28 = vand.u32 4294901760, %v17941_v35 }
 0x69a   : > { %10339 = vmatpush.msrb.mxu0 %v17835_v39  ;;  %10118 = vmatmul.f32.vlgmr.msrb.gmra.mxu1 %v17547_v8  ;;  %v9067_v12 = vsel %vm6502_vm5, %v9064_v18, %v17528_v54  ;;  %v9068_v17 = vsel %vm6502_vm5, %v17753_v61, %v9064_v18  ;;  %v10486_v54 = vsub.f32 %v17907_v3, %v10485_v46  ;;  %v11485_v35 = vld [vmem:[#allocation13] sm:$0xff]  ;;  %v10497_v11 = vand.u32 4294901760, %v17976_v38 }
 0x69b   : > { %10236 = vmatpush.msra.mxu1 %v17744_v43  ;;  %10150 = vmatmul.f32.vlgmr.msrb.gmra.mxu2 %v17569_v49  ;;  %v8867_v43 = vsel %vm6296_vm4, %v17623_v29, %v8860_v1  ;;  %v9099_v44 = vmul.f32 %v9083_v21, %v9068_v17  ;;  %v9100_v40 = vmul.f32 %v9084_v55, %v9067_v12  ;;  %v10295_v29 = vand.u32 4294901760, %v10294_v62 }
 0x69c   : > { %10264 = vmatpush.msra.mxu2 %v17858_v7  ;;  %v8896_v53 = vmul.f32 %v8880_v20, %v8867_v43  ;;  %8930 = vst [vmem:[#allocation5 + $0xb0] sm:$0xf0] %v8914_v42  ;;  %10342 = vmatpush.msrb.mxu0 %v17889_v27  ;;  %v9589_v61 = vld [vmem:[#allocation5 + $0x138] sm:$0xff]  ;;  %v10307_v20 = vand.u32 4294901760, %v17970_v59  ;;  %v10312_v56 = vsub.f32 %v17900_v34, %v10311_v41  ;;  %v8792_v32 = vperm.slane %v11485_v35, 6 }
 0x69d   : > { %10238 = vmatpush.msra.mxu1 %v17736_v0  ;;  %v8866_v0 = vsel %vm6296_vm4, %v8860_v1, %v8862_v14  ;;  %v9115_v52 = vrot.slane %v9099_v44, 4  ;;  %v9116_v15 = vrot.slane %v9100_v40, 4  ;;  %v18003_v63 = vand.u32 4294901760, %v9589_v61  ;;  %10296 = vmatpush.msra.mxu3 %v10295_v29 }
 0x69e   : > { %v8912_v9 = vrot.slane %v8896_v53, 4  ;;  %10394 = vmatpush.msrb.mxu2 %v10287_v5  ;;  %v8897_v37 = vmul.f32 %v8881_v10, %v8866_v0  ;;  %10345 = vmatpush.msrb.mxu0 %v17900_v34  ;;  %v11484_v5 = vld [vmem:[#allocation13 + $0x28] sm:$0xff]  ;;  %v18022_v62 = vsub.f32 %v17947_v6, %v17973_v30  ;;  %v10487_v1 = vand.u32 4294901760, %v10486_v54  ;;  %v19252_v10 = vld [vmem:[#allocation57_spill] sm:$0xff] }
 0x69f   : > { %10364 = vmatpush.msrb.mxu1 %v17871_v50  ;;  %v9234_v14 = vperm.slane %v11484_v5, 5  ;;  %v9235_v21 = vperm.slane %v11484_v5, 6  ;;  %v18015_v55 = vsub.f32 %v9589_v61, %v18003_v63  ;;  %9131 = vst [vmem:[#allocation5 + $0xf8] sm:$0xf0] %v9115_v52  ;;  %10214 = vmatmul.f32.vlgmr.msra.gmra.mxu0 %v17547_v8  ;;  %v8793_v59 = vperm.slane %v11485_v35, 7 }
 0x6a0   : > { %8928 = vst [vmem:[#allocation5 + $0xd8] sm:$0xf0] %v8912_v9  ;;  %10398 = vmatpush.msrb.mxu2 %v10293_v45  ;;  %v8913_v45 = vrot.slane %v8897_v37, 4  ;;  %10454 = vmatpush.msra.mxu0 %v17891_v58  ;;  %v10492_v43 = vsub.f32 %v17963_v24, %v10491_v19  ;;  %v10498_v61 = vsub.f32 %v17976_v38, %v10497_v11  ;;  %v10509_v27 = vand.u32 4294901760, %v18022_v62  ;;  %v11486_v9 = vld [vmem:[#allocation13 + $0x30] sm:$0xff] }
 0x6a1   : > { %10366 = vmatpush.msrb.mxu1 %v17840_v23  ;;  %9132 = vst [vmem:[#allocation5 + $0x38] sm:$0xf0] %v9116_v15  ;;  %10302 = vmatpush.msra.mxu3 %v10301_v28  ;;  %v9216_v18 = vpop.permute.xlu1 %9215  ;;  %v8773_v42 = vpop.permute.xlu2 %8772  ;;  %v10503_v12 = vand.u32 4294901760, %v18015_v55  ;;  %v9348_v52 = vperm.slane %v11486_v9, 6  ;;  %v9349_v15 = vperm.slane %v11486_v9, 7 }
 0x6a2   : > { %10402 = vmatpush.msrb.mxu2 %v10299_v60  ;;  %v9219_v6 = vsel %vm6656_vm7, %v9216_v18, %v17868_v26  ;;  %v9220_v17 = vsel %vm6656_vm7, %v17643_v48, %v9216_v18  ;;  %v8776_v53 = vsel %vm6206_vm3, %v8773_v42, %v19252_v10  ;;  %8929 = vst [vmem:[#allocation5 + $0xe8] sm:$0xf0] %v8913_v45  ;;  %v10313_v48 = vand.u32 4294901760, %v10312_v56 }
 0x6a3   : > { %10368 = vmatpush.msrb.mxu1 %v17802_v47  ;;  %10456 = vmatpush.msra.mxu0 %v17910_v51  ;;  %v9250_v44 = vmul.f32 %v9234_v14, %v9220_v17  ;;  %v9251_v40 = vmul.f32 %v9235_v21, %v9219_v6  ;;  %v8777_v39 = vsel %vm6206_vm3, %v17809_v13, %v8773_v42  ;;  %v10493_v0 = vand.u32 4294901760, %v10492_v43  ;;  %v9606_v14 = vld [vmem:[#allocation5 + $0xd0] sm:$0xff]  ;;  %v19254_v42 = vld [vmem:[#allocation54_spill] sm:$0xff] }
 0x6a4   : > { %10308 = vmatpush.msra.mxu3 %v10307_v20  ;;  %10406 = vmatpush.msrb.mxu2 %v10305_v36  ;;  %v8808_v60 = vmul.f32 %v8792_v32, %v8777_v39  ;;  %v8809_v54 = vmul.f32 %v8793_v59, %v8776_v53  ;;  %v10504_v13 = vsub.f32 %v18015_v55, %v10503_v12  ;;  %v9614_v36 = vld [vmem:[#allocation5 + $0xf0] sm:$0xf]  ;;  %v10499_v28 = vand.u32 4294901760, %v10498_v61 }
 0x6a5   : > { %10370 = vmatpush.msrb.mxu1 %v17853_v2  ;;  %10458 = vmatpush.msra.mxu0 %v17944_v57  ;;  %v9266_v26 = vrot.slane %v9250_v44, 4  ;;  %v9267_v29 = vrot.slane %v9251_v40, 4  ;;  %v9642_v37 = vsel %vm6144_vm2, %v9614_v36, 0  ;;  %v10510_v5 = vsub.f32 %v18022_v62, %v10509_v27 }
 0x6a6   : > { %10240 = vmatmul.f32.vlgmr.msra.gmra.mxu1 %v17547_v8  ;;  %10270 = vmatmul.f32.vlgmr.msra.gmra.mxu2 %v17637_v33  ;;  %8816 = vst [vmem:[#allocation5 + $0xe8] sm:$0xf] %v8808_v60  ;;  %v10505_v34 = vand.u32 4294901760, %v10504_v13  ;;  %v19255_v60 = vld [vmem:[#allocation35_spill] sm:$0xff] }
 0x6a7   : > { %10372 = vmatpush.msrb.mxu1 %v17858_v7  ;;  %10314 = vmatpush.msra.mxu3 %v10313_v48  ;;  %9282 = vst [vmem:[#allocation5 + $0x128] sm:$0xf0] %v9266_v26  ;;  %v10511_v32 = vand.u32 4294901760, %v10510_v5  ;;  %v9582_v6 = vld [vmem:[#allocation5 + $0xd8] sm:$0xff] }
 0x6a8   : > { %10410 = vmatpush.msrb.mxu2 %v10311_v41  ;;  %9283 = vst [vmem:[#allocation5 + $0x118] sm:$0xf0] %v9267_v29  ;;  %10460 = vmatpush.msra.mxu0 %v18003_v63 }
 0x6a9   : > { %10488 = vmatpush.msra.mxu1 %v10487_v1  ;;  %10428 = vmatpush.msrb.mxu3 %v17871_v50  ;;  %8817 = vst [vmem:[#allocation5 + $0xb0] sm:$0xf] %v8809_v54  ;;  %v9331_v20 = vpop.permute.xlu1 %9330  ;;  %v19253_v50 = vld [vmem:[#allocation51_spill] sm:$0xff]  ;;  %v11487_v1 = vld [vmem:[#allocation13 + $0x40] sm:$0xff] }
 0x6aa   : > { %10316 = vmatmul.f32.vlgmr.msra.gmra.mxu3 %v17547_v8  ;;  %10531 = vmatpush.msra.mxu2 %v17907_v3  ;;  %v9332_v41 = vsel %vm6771_vm8, %v17684_v31, %v9331_v20  ;;  %v9339_v56 = vsel %vm6771_vm8, %v9331_v20, %v19253_v50  ;;  %v18083_v31 = vand.u32 4294901760, %v9606_v14  ;;  %v9550_v18 = vperm.slane %v11487_v1, 6 }
 0x6ab   : > { %10494 = vmatpush.msra.mxu1 %v10493_v0  ;;  %10430 = vmatpush.msrb.mxu3 %v17840_v23  ;;  %v9364_v21 = vmul.f32 %v9348_v52, %v9332_v41  ;;  %v9365_v35 = vmul.f32 %v9349_v15, %v9339_v56  ;;  %v18078_v23 = vand.u32 4294901760, %v9642_v37  ;;  %v9551_v3 = vperm.slane %v11487_v1, 7 }
 0x6ac   : > { %10462 = vmatpush.msra.mxu0 %v17973_v30  ;;  %10534 = vmatpush.msra.mxu2 %v17963_v24  ;;  %v18099_v24 = vsub.f32 %v9606_v14, %v18083_v31 }
 0x6ad   : > { %10500 = vmatpush.msra.mxu1 %v10499_v28  ;;  %10348 = vmatmul.f32.vlgmr.msrb.gmra.mxu0 %v17569_v49  ;;  %9372 = vst [vmem:[#allocation5 + $0x10] sm:$0xf] %v9364_v21  ;;  %v9583_v14 = vld [vmem:[#allocation5 + $0xe8] sm:$0xff] }
 0x6ae   : > { %10592 = vmatpush.msrb.mxu0 %v10485_v46  ;;  %10432 = vmatpush.msrb.mxu3 %v17802_v47  ;;  %9373 = vst [vmem:[#allocation5 + $0x18] sm:$0xf] %v9365_v35  ;;  %v9598_v45 = vld [vmem:[#allocation5 + $0x128] sm:$0xff]  ;;  %v18091_v47 = vsub.f32 %v9642_v37, %v18078_v23  ;;  %v10689_v10 = vand.u32 4294901760, %v18099_v24  ;;  %v18194_v1 = vand.u32 4294901760, %v9583_v14 }
 0x6af   : > { %10537 = vmatpush.msra.mxu2 %v17976_v38  ;;  %10506 = vmatpush.msra.mxu1 %v10505_v34  ;;  %v18093_v46 = vand.u32 4294901760, %v9598_v45  ;;  %v9599_v28 = vld [vmem:[#allocation5 + $0x118] sm:$0xff] }
 0x6b0   : > { %10596 = vmatpush.msrb.mxu0 %v10491_v19  ;;  %10434 = vmatpush.msrb.mxu3 %v17853_v2  ;;  %v9590_v19 = vld [vmem:[#allocation5 + $0x80] sm:$0xff]  ;;  %v18179_v41 = vand.u32 4294901760, %v9599_v28 }
 0x6b1   : > { %10412 = vmatmul.f32.vlgmr.msrb.gmra.mxu2 %v17547_v8  ;;  %10512 = vmatpush.msra.mxu1 %v10511_v32  ;;  %v9533_v2 = vpop.permute.xlu1 %9532  ;;  %v18118_v17 = vsub.f32 %v9598_v45, %v18093_v46 }
 0x6b2   : > { %10540 = vmatpush.msra.mxu2 %v18015_v55  ;;  %10600 = vmatpush.msrb.mxu0 %v10497_v11  ;;  %v9534_v59 = vsel %vm6977_vm12, %v17776_v25, %v9533_v2  ;;  %v9541_v43 = vsel %vm6977_vm12, %v9533_v2, %v19254_v42  ;;  %v10683_v25 = vand.u32 4294901760, %v18091_v47  ;;  %v18126_v55 = vand.u32 4294901760, %v9582_v6 }
 0x6b3   : > { %10436 = vmatpush.msrb.mxu3 %v17858_v7  ;;  %10376 = vmatmul.f32.vlgmr.msrb.gmra.mxu1 %v17584_v16  ;;  %v9566_v38 = vmul.f32 %v9550_v18, %v9534_v59  ;;  %v9567_v11 = vmul.f32 %v9551_v3, %v9541_v43  ;;  %v18114_v7 = vand.u32 4294901760, %v9590_v19  ;;  %v18192_v45 = vsub.f32 %v9599_v28, %v18179_v41  ;;  %v9600_v43 = vld [vmem:[#allocation5 + $0x100] sm:$0xff] }
 0x6b4   : > { %10438 = vmatmul.f32.vlgmr.msrb.gmra.mxu3 %v17547_v8  ;;  %10543 = vmatpush.msra.mxu2 %v18022_v62  ;;  %v10684_v44 = vsub.f32 %v18091_v47, %v10683_v25  ;;  %v10695_v62 = vand.u32 4294901760, %v18118_v17  ;;  %v18143_v48 = vsub.f32 %v9582_v6, %v18126_v55  ;;  %v9607_v9 = vld [vmem:[#allocation5 + $0x10] sm:$0xff] }
 0x6b5   : > { %10562 = vmatpush.msra.mxu3 %v17891_v58  ;;  %10604 = vmatpush.msrb.mxu0 %v10503_v12  ;;  %9574 = vst [vmem:[#allocation5 + $0x60] sm:$0xf] %v9566_v38  ;;  %v11488_v12 = vld [vmem:[#allocation13 + $0x10] sm:$0xff]  ;;  %v18134_v40 = vsub.f32 %v9590_v19, %v18114_v7  ;;  %v18175_v37 = vand.u32 4294901760, %v9607_v9  ;;  %v9608_v19 = vld [vmem:[#allocation5 + $0x18] sm:$0xff]  ;;  %v10893_v59 = vand.u32 4294901760, %v18192_v45 }
 0x6b6   : > { %10626 = vmatpush.msrb.mxu1 %v17891_v58  ;;  %10652 = vmatpush.msrb.mxu2 %v18078_v23  ;;  %9575 = vst [vmem:[#allocation5 + $0x88] sm:$0xf] %v9567_v11  ;;  %v8994_v53 = vperm.slane %v11488_v12, 6  ;;  %v8995_v58 = vperm.slane %v11488_v12, 7  ;;  %v10685_v61 = vand.u32 4294901760, %v10684_v44  ;;  %v10696_v13 = vsub.f32 %v18118_v17, %v10695_v62  ;;  %v9584_v44 = vld [vmem:[#allocation5 + $0xb0] sm:$0xff] }
 0x6b7   : > { %10564 = vmatpush.msra.mxu3 %v17910_v51  ;;  %10608 = vmatpush.msrb.mxu0 %v10509_v27  ;;  %v10701_v27 = vand.u32 4294901760, %v18134_v40  ;;  %v18187_v32 = vsub.f32 %v9607_v9, %v18175_v37  ;;  %v18223_v11 = vand.u32 4294901760, %v9608_v19 }
 0x6b8   : > { %10628 = vmatpush.msrb.mxu1 %v17910_v51  ;;  %10468 = vmatmul.f32.vlgmr.msra.gmra.mxu0 %v17637_v33  ;;  %v10690_v51 = vsub.f32 %v18099_v24, %v10689_v10 }
 0x6b9   : > { %10654 = vmatpush.msrb.mxu2 %v18083_v31  ;;  %10729 = vmatpush.msra.mxu0 %v18091_v47  ;;  %v8975_v39 = vpop.permute.xlu1 %8974  ;;  %v10702_v52 = vsub.f32 %v18134_v40, %v10701_v27 }
 0x6ba   : > { %10566 = vmatpush.msra.mxu3 %v17944_v57  ;;  %10630 = vmatpush.msrb.mxu1 %v17944_v57  ;;  %v8978_v26 = vsel %vm6411_vm6, %v8975_v39, %v19255_v60  ;;  %v8979_v29 = vsel %vm6411_vm6, %v17838_v4, %v8975_v39  ;;  %v10691_v4 = vand.u32 4294901760, %v10690_v51 }
 0x6bb   : > { %10732 = vmatpush.msra.mxu0 %v18099_v24  ;;  %10656 = vmatpush.msrb.mxu2 %v18093_v46  ;;  %v9010_v57 = vmul.f32 %v8994_v53, %v8979_v29  ;;  %v9011_v54 = vmul.f32 %v8995_v58, %v8978_v26  ;;  %v10703_v34 = vand.u32 4294901760, %v10702_v52  ;;  %v10887_v24 = vand.u32 4294901760, %v18187_v32 }
 0x6bc   : > { %10568 = vmatpush.msra.mxu3 %v18003_v63  ;;  %10632 = vmatpush.msrb.mxu1 %v18003_v63  ;;  %v9615_v36 = vld [vmem:[#allocation5 + $0x60] sm:$0xf]  ;;  %v10707_v63 = vand.u32 4294901760, %v18143_v48  ;;  %v11084_v58 = vsub.f32 %v9608_v19, %v18223_v11 }
 0x6bd   : > { %10514 = vmatmul.f32.vlgmr.msra.gmra.mxu1 %v17547_v8  ;;  %10658 = vmatpush.msrb.mxu2 %v18114_v7  ;;  %9018 = vst [vmem:[#allocation5 + $0xf8] sm:$0xf] %v9010_v57  ;;  %v9645_v22 = vsel %vm6144_vm2, %v9615_v36, 0  ;;  %v9616_v21 = vld [vmem:[#allocation5 + $0x88] sm:$0xf]  ;;  %v10888_v38 = vsub.f32 %v18187_v32, %v10887_v24 }
 0x6be   : > { %10570 = vmatpush.msra.mxu3 %v17973_v30  ;;  %10634 = vmatpush.msrb.mxu1 %v17973_v30  ;;  %9019 = vst [vmem:[#allocation5 + $0x38] sm:$0xf] %v9011_v54  ;;  %v18162_v0 = vand.u32 4294901760, %v9645_v22  ;;  %v10697_v30 = vand.u32 4294901760, %v10696_v13  ;;  %v10708_v20 = vsub.f32 %v18143_v48, %v10707_v63  ;;  %v9648_v3 = vsel %vm6144_vm2, %v9616_v21, 0 }
 0x6bf   : > { %10735 = vmatpush.msra.mxu0 %v18118_v17  ;;  %10546 = vmatmul.f32.vlgmr.msra.gmra.mxu2 %v17569_v49  ;;  %v18209_v2 = vand.u32 4294901760, %v9648_v3  ;;  %v11085_v60 = vand.u32 4294901760, %v11084_v58 }
 0x6c0   : > { %10686 = vmatpush.msrb.mxu3 %v10685_v61  ;;  %10760 = vmatpush.msra.mxu1 %v18078_v23  ;;  %v18171_v15 = vsub.f32 %v9645_v22, %v18162_v0  ;;  %v10709_v35 = vand.u32 4294901760, %v10708_v20 }
 0x6c1   : > { %10660 = vmatpush.msrb.mxu2 %v18126_v55  ;;  %10738 = vmatpush.msra.mxu0 %v18134_v40  ;;  %v18228_v6 = vsub.f32 %v9648_v3, %v18209_v2  ;;  %v11086_v13 = vsub.f32 %v11084_v58, %v11085_v60 }
 0x6c2   : > { %10692 = vmatpush.msrb.mxu3 %v10691_v4  ;;  %10762 = vmatpush.msra.mxu1 %v18083_v31  ;;  %v10881_v5 = vand.u32 4294901760, %v18171_v15 }
 0x6c3   : > { %10790 = vmatpush.msra.mxu2 %v10683_v25  ;;  %10574 = vmatmul.f32.vlgmr.msra.gmra.mxu3 %v17584_v16  ;;  %v10894_v25 = vsub.f32 %v18192_v45, %v10893_v59  ;;  %v11079_v40 = vand.u32 4294901760, %v18228_v6 }
 0x6c4   : > { %10741 = vmatpush.msra.mxu0 %v18143_v48  ;;  %10764 = vmatpush.msra.mxu1 %v18093_v46  ;;  %v9591_v50 = vld [vmem:[#allocation5 + $0xf8] sm:$0xff]  ;;  %v10882_v47 = vsub.f32 %v18171_v15, %v10881_v5  ;;  %v18252_v48 = vand.u32 4294901760, %v9584_v44 }
 0x6c5   : > { %10794 = vmatpush.msra.mxu2 %v10689_v10  ;;  %10698 = vmatpush.msrb.mxu3 %v10697_v30  ;;  %v18183_v56 = vand.u32 4294901760, %v9591_v50  ;;  %v18234_v10 = vand.u32 4294901760, %v9600_v43  ;;  %v11080_v29 = vsub.f32 %v18228_v6, %v11079_v40 }
 0x6c6   : > { %10766 = vmatpush.msra.mxu1 %v18114_v7  ;;  %10610 = vmatmul.f32.vlgmr.msrb.gmra.mxu0 %v17547_v8  ;;  %v11102_v61 = vsub.f32 %v9584_v44, %v18252_v48 }
 0x6c7   : > { %10798 = vmatpush.msra.mxu2 %v10695_v62  ;;  %10704 = vmatpush.msrb.mxu3 %v10703_v34  ;;  %v18197_v18 = vsub.f32 %v9591_v50, %v18183_v56  ;;  %v11090_v39 = vsub.f32 %v9600_v43, %v18234_v10  ;;  %v11081_v36 = vand.u32 4294901760, %v11080_v29 }
 0x6c8   : > { %10768 = vmatpush.msra.mxu1 %v18126_v55  ;;  %10666 = vmatmul.f32.vlgmr.msrb.gmra.mxu2 %v17637_v33  ;;  %v11103_v4 = vand.u32 4294901760, %v11102_v61 }
 0x6c9   : > { %10802 = vmatpush.msra.mxu2 %v10701_v27  ;;  %10710 = vmatpush.msrb.mxu3 %v10709_v35  ;;  %v10899_v42 = vand.u32 4294901760, %v18197_v18  ;;  %v11091_v54 = vand.u32 4294901760, %v11090_v39 }
 0x6ca   : > { %10850 = vmatpush.msrb.mxu0 %v18162_v0  ;;  %10636 = vmatmul.f32.vlgmr.msrb.gmra.mxu1 %v17547_v8  ;;  %v11104_v52 = vsub.f32 %v11102_v61, %v11103_v4 }
 0x6cb   : > { %10824 = vmatpush.msra.mxu3 %v18078_v23  ;;  %10806 = vmatpush.msra.mxu2 %v10707_v63  ;;  %v18214_v23 = vsub.f32 %v9583_v14, %v18194_v1  ;;  %v10900_v17 = vsub.f32 %v18197_v18, %v10899_v42  ;;  %v11092_v22 = vsub.f32 %v11090_v39, %v11091_v54  ;;  %v11087_v63 = vand.u32 4294901760, %v11086_v13 }
 0x6cc   : > { %10712 = vmatmul.f32.vlgmr.msrb.gmra.mxu3 %v17547_v8  ;;  %10852 = vmatpush.msrb.mxu0 %v18175_v37 }
 0x6cd   : > { %10826 = vmatpush.msra.mxu3 %v18083_v31  ;;  %10927 = vmatpush.msrb.mxu2 %v18171_v15  ;;  %v10883_v31 = vand.u32 4294901760, %v10882_v47  ;;  %v10905_v12 = vand.u32 4294901760, %v18214_v23  ;;  %v10901_v62 = vand.u32 4294901760, %v10900_v17  ;;  %v11093_v30 = vand.u32 4294901760, %v11092_v22 }
 0x6ce   : > { %10744 = vmatmul.f32.vlgmr.msra.gmra.mxu0 %v17569_v49 }
 0x6cf   : > { %10828 = vmatpush.msra.mxu3 %v18093_v46  ;;  %10854 = vmatpush.msrb.mxu0 %v18179_v41  ;;  %v9592_v46 = vld [vmem:[#allocation5 + $0x38] sm:$0xff]  ;;  %v10906_v51 = vsub.f32 %v18214_v23, %v10905_v12 }
 0x6d0   : > { %10930 = vmatpush.msrb.mxu2 %v18187_v32  ;;  %10884 = vmatpush.msrb.mxu1 %v10883_v31  ;;  %v18240_v53 = vand.u32 4294901760, %v9592_v46 }
 0x6d1   : > { %10830 = vmatpush.msra.mxu3 %v18114_v7  ;;  %10808 = vmatmul.f32.vlgmr.msra.gmra.mxu2 %v17547_v8  ;;  %v10889_v7 = vand.u32 4294901760, %v10888_v38  ;;  %v10907_v57 = vand.u32 4294901760, %v10906_v51 }
 0x6d2   : > { %10933 = vmatpush.msrb.mxu2 %v18192_v45  ;;  %10856 = vmatpush.msrb.mxu0 %v18183_v56  ;;  %v11096_v26 = vsub.f32 %v9592_v46, %v18240_v53 }
 0x6d3   : > { %10832 = vmatpush.msra.mxu3 %v18126_v55  ;;  %10772 = vmatmul.f32.vlgmr.msra.gmra.mxu1 %v17584_v16  ;;  %v10895_v55 = vand.u32 4294901760, %v10894_v25 }
 0x6d4   : > { %10834 = vmatmul.f32.vlgmr.msra.gmra.mxu3 %v17547_v8  ;;  %10858 = vmatpush.msrb.mxu0 %v18194_v1  ;;  %v11097_v27 = vand.u32 4294901760, %v11096_v26 }
 0x6d5   : > { %10958 = vmatpush.msrb.mxu3 %v18162_v0  ;;  %10936 = vmatpush.msrb.mxu2 %v18197_v18 }
 0x6d6   : > { %10890 = vmatpush.msrb.mxu1 %v10889_v7  ;;  %10988 = vmatpush.msra.mxu0 %v10881_v5  ;;  %v11098_v9 = vsub.f32 %v11096_v26, %v11097_v27 }
 0x6d7   : > { %10960 = vmatpush.msrb.mxu3 %v18175_v37  ;;  %10939 = vmatpush.msrb.mxu2 %v18214_v23 }
 0x6d8   : > { %10896 = vmatpush.msrb.mxu1 %v10895_v55  ;;  %10992 = vmatpush.msra.mxu0 %v10887_v24  ;;  %v11099_v15 = vand.u32 4294901760, %v11098_v9 }
 0x6d9   : > { %10962 = vmatpush.msrb.mxu3 %v18179_v41  ;;  %11048 = vmatpush.msra.mxu2 %v18209_v2 }
 0x6da   : > { %10902 = vmatpush.msrb.mxu1 %v10901_v62  ;;  %10996 = vmatpush.msra.mxu0 %v10893_v59 }
 0x6db   : > { %10964 = vmatpush.msrb.mxu3 %v18183_v56  ;;  %11050 = vmatpush.msra.mxu2 %v18223_v11 }
 0x6dc   : > { %10908 = vmatpush.msrb.mxu1 %v10907_v57  ;;  %10942 = vmatmul.f32.vlgmr.msrb.gmra.mxu2 %v17569_v49 }
 0x6dd   : > { %10966 = vmatpush.msrb.mxu3 %v18194_v1  ;;  %11000 = vmatpush.msra.mxu0 %v10899_v42 }
 0x6de   : > { %11052 = vmatpush.msra.mxu2 %v18234_v10  ;;  %10864 = vmatmul.f32.vlgmr.msrb.gmra.mxu0 %v17637_v33 }
 0x6df   : > { %11082 = vmatpush.msra.mxu3 %v11081_v36  ;;  %11004 = vmatpush.msra.mxu0 %v10905_v12 }
 0x6e0   : > { %10970 = vmatmul.f32.vlgmr.msrb.gmra.mxu3 %v17584_v16  ;;  %11022 = vmatpush.msra.mxu1 %v18162_v0  ;;  %v11105_v0 = vand.u32 4294901760, %v11104_v52 }
 0x6e1   : > { %11054 = vmatpush.msra.mxu2 %v18240_v53  ;;  %11088 = vmatpush.msra.mxu3 %v11087_v63 }
 0x6e2   : > { %11125 = vmatpush.msrb.mxu0 %v18228_v6  ;;  %10910 = vmatmul.f32.vlgmr.msrb.gmra.mxu1 %v17547_v8 }
 0x6e3   : > { %11056 = vmatpush.msra.mxu2 %v18252_v48  ;;  %11024 = vmatpush.msra.mxu1 %v18175_v37 }
 0x6e4   : > { %11094 = vmatpush.msra.mxu3 %v11093_v30  ;;  %11128 = vmatpush.msrb.mxu0 %v11084_v58 }
 0x6e5   : > { %11186 = vmatpush.msrb.mxu2 %v11079_v40  ;;  %11026 = vmatpush.msra.mxu1 %v18179_v41 }
 0x6e6   : > { %11100 = vmatpush.msra.mxu3 %v11099_v15  ;;  %11131 = vmatpush.msrb.mxu0 %v11090_v39 }
 0x6e7   : > { %11190 = vmatpush.msrb.mxu2 %v11085_v60  ;;  %11028 = vmatpush.msra.mxu1 %v18183_v56 }
 0x6e8   : > { %11062 = vmatmul.f32.vlgmr.msra.gmra.mxu2 %v17637_v33  ;;  %11106 = vmatpush.msra.mxu3 %v11105_v0  ;;  %v9677_v33 = vpop.f32.mrf.mxu0 }
 0x6e9   : > { %11134 = vmatpush.msrb.mxu0 %v11096_v26  ;;  %11194 = vmatpush.msrb.mxu2 %v11091_v54 }
 0x6ea   : > { %11220 = vmatpush.msrb.mxu3 %v18209_v2  ;;  %11006 = vmatmul.f32.vlgmr.msra.gmra.mxu0 %v17547_v8 }
 0x6eb   : > { %11030 = vmatpush.msra.mxu1 %v18194_v1  ;;  %11108 = vmatmul.f32.vlgmr.msra.gmra.mxu3 %v17547_v8 }
 0x6ec   : > { %11137 = vmatpush.msrb.mxu0 %v11102_v61  ;;  %11198 = vmatpush.msrb.mxu2 %v11097_v27 }
 0x6ed   : > { %11156 = vmatpush.msrb.mxu1 %v18209_v2  ;;  %11222 = vmatpush.msrb.mxu3 %v18223_v11 }
 0x6ee   : > { %11032 = vmatmul.f32.vlgmr.msra.gmra.mxu1 %v17547_v8  ;;  %11202 = vmatpush.msrb.mxu2 %v11103_v4 }
 0x6ef   : > { %11158 = vmatpush.msrb.mxu1 %v18223_v11  ;;  %11224 = vmatpush.msrb.mxu3 %v18234_v10  ;;  %v9755_v28 = vpop.f32.mrf.mxu2 }
 0x6f0   : > { %11204 = vmatmul.f32.vlgmr.msrb.gmra.mxu2 %v17547_v8 }
 0x6f1   : > { %11160 = vmatpush.msrb.mxu1 %v18234_v10  ;;  %11226 = vmatpush.msrb.mxu3 %v18240_v53 }
 0x6f2   : > { %11140 = vmatmul.f32.vlgmr.msrb.gmra.mxu0 %v17569_v49 }
 0x6f3   : > { %11162 = vmatpush.msrb.mxu1 %v18240_v53  ;;  %11228 = vmatpush.msrb.mxu3 %v18252_v48 }
 0x6f4   : > { %11230 = vmatmul.f32.vlgmr.msrb.gmra.mxu3 %v17547_v8 }
 0x6f5   : > { %11164 = vmatpush.msrb.mxu1 %v18252_v48  ;;  %v9783_v37 = vpop.f32.mrf.mxu3 }
 0x6f6   : > { %11168 = vmatmul.f32.vlgmr.msrb.gmra.mxu1 %v17584_v16 }
 0x6f8   : > { %v9723_v20 = vpop.f32.mrf.mxu1 }
 0x6fc   : > { %v9819_v34 = vpop.f32.mrf.mxu0 }
 0x704   : > { %v18294_v41 = vpop.permute.xlu0 %9620 }
 0x705   : > { %v9875_v50 = vpop.f32.mrf.mxu2  ;;  %v9845_v56 = vpop.f32.mrf.mxu1  ;;  %v9678_v49 = vadd.f32 %v9677_v33, %v18294_v41 }
 0x706   : > { %v9876_v5 = vadd.f32 %v9875_v50, %v18294_v41 }
 0x707   : > { %v9724_v14 = vadd.f32 %v9723_v20, %v9678_v49  ;;  %v9921_v8 = vpop.f32.mrf.mxu3  ;;  %v9953_v35 = vpop.f32.mrf.mxu0 }
 0x708   : > { %v9922_v21 = vadd.f32 %v9921_v8, %v9876_v5 }
 0x709   : > { %v9756_v32 = vadd.f32 %v9755_v28, %v9724_v14 }
 0x70a   : > { %v9954_v16 = vadd.f32 %v9953_v35, %v9922_v21 }
 0x70b   : > { %v9784_v45 = vadd.f32 %v9783_v37, %v9756_v32 }
 0x70d   : > { %v9820_v3 = vadd.f32 %v9819_v34, %v9784_v45 }
 0x70f   : > { %v9981_v1 = vpop.f32.mrf.mxu1  ;;  %v9846_v19 = vadd.f32 %v9845_v56, %v9820_v3 }
 0x710   : > { %v9982_v18 = vadd.f32 %v9981_v1, %v9954_v16 }
 0x711   : > { %v10017_v47 = vpop.f32.mrf.mxu2  ;;  %v10073_v31 = vpop.f32.mrf.mxu0 }
 0x712   : > { %v10018_v24 = vadd.f32 %v10017_v47, %v9982_v18  ;;  %v10074_v46 = vadd.f32 %v10073_v31, %v18294_v41 }
 0x713   : > { %v10043_v2 = vpop.f32.mrf.mxu3 }
 0x714   : > { %v10044_v23 = vadd.f32 %v10043_v2, %v10018_v24 }
 0x716   : > { %v11242_v59 = vrot.slane %v10044_v23, 4 }
 0x717   : > { %v10119_v43 = vpop.f32.mrf.mxu1 }
 0x718   : > { %v11246_v42 = vsel %vm6144_vm2, %v9846_v19, %v11242_v59  ;;  %v10120_v17 = vadd.f32 %v10119_v43, %v10074_v46 }
 0x719   : > { %11254 = vst [vmem:[%s18300_s30] sm:$0xff] %v11246_v42 }
 0x71b   : > { %v10179_v11 = vpop.f32.mrf.mxu3 }
 0x71c   : > { %v10215_v6 = vpop.f32.mrf.mxu0 }
 0x71e   : > { %v10151_v38 = vpop.f32.mrf.mxu2 }
 0x71f   : > { %v10152_v58 = vadd.f32 %v10151_v38, %v10120_v17 }
 0x721   : > { %v10180_v62 = vadd.f32 %v10179_v11, %v10152_v58 }
 0x723   : > { %v10241_v25 = vpop.f32.mrf.mxu1  ;;  %v10216_v60 = vadd.f32 %v10215_v6, %v10180_v62 }
 0x725   : > { %v10242_v57 = vadd.f32 %v10241_v25, %v10216_v60 }
 0x729   : > { %v10271_v10 = vpop.f32.mrf.mxu2 }
 0x72a   : > { %v10272_v12 = vadd.f32 %v10271_v10, %v18294_v41  ;;  %v10349_v53 = vpop.f32.mrf.mxu0 }
 0x72d   : > { %v10317_v7 = vpop.f32.mrf.mxu3 }
 0x72e   : > { %v10318_v44 = vadd.f32 %v10317_v7, %v10272_v12 }
 0x730   : > { %v10350_v40 = vadd.f32 %v10349_v53, %v10318_v44  ;;  %v10377_v55 = vpop.f32.mrf.mxu1 }
 0x732   : > { %v10378_v51 = vadd.f32 %v10377_v55, %v10350_v40 }
 0x734   : > { %v10413_v39 = vpop.f32.mrf.mxu2 }
 0x735   : > { %v10414_v48 = vadd.f32 %v10413_v39, %v10378_v51  ;;  %v10469_v61 = vpop.f32.mrf.mxu0 }
 0x736   : > { %v10470_v4 = vadd.f32 %v10469_v61, %v18294_v41 }
 0x737   : > { %v10439_v26 = vpop.f32.mrf.mxu3 }
 0x738   : > { %v10440_v29 = vadd.f32 %v10439_v26, %v10414_v48 }
 0x73a   : > { %v11243_v54 = vrot.slane %v10440_v29, 4  ;;  %v10515_v27 = vpop.f32.mrf.mxu1 }
 0x73b   : > { %v10516_v9 = vadd.f32 %v10515_v27, %v10470_v4 }
 0x73c   : > { %v11247_v13 = vsel %vm6144_vm2, %v10242_v57, %v11243_v54 }
 0x73d   : > { %11255 = vst [vmem:[%s18300_s30 + $0x8] sm:$0xff] %v11247_v13 }
 0x742   : > { %v10547_v36 = vpop.f32.mrf.mxu2 }
 0x743   : > { %v10611_v22 = vpop.f32.mrf.mxu0  ;;  %v10548_v0 = vadd.f32 %v10547_v36, %v10516_v9 }
 0x746   : > { %v10575_v63 = vpop.f32.mrf.mxu3 }
 0x747   : > { %v10637_v30 = vpop.f32.mrf.mxu1  ;;  %v10576_v37 = vadd.f32 %v10575_v63, %v10548_v0 }
 0x749   : > { %v10612_v5 = vadd.f32 %v10611_v22, %v10576_v37 }
 0x74b   : > { %v10667_v52 = vpop.f32.mrf.mxu2  ;;  %v10745_v28 = vpop.f32.mrf.mxu0  ;;  %v10638_v35 = vadd.f32 %v10637_v30, %v10612_v5 }
 0x74c   : > { %v10668_v15 = vadd.f32 %v10667_v52, %v18294_v41 }
 0x74f   : > { %v10713_v33 = vpop.f32.mrf.mxu3 }
 0x750   : > { %v10714_v20 = vadd.f32 %v10713_v33, %v10668_v15  ;;  %v10773_v50 = vpop.f32.mrf.mxu1 }
 0x752   : > { %v10746_v34 = vadd.f32 %v10745_v28, %v10714_v20 }
 0x754   : > { %v10774_v56 = vadd.f32 %v10773_v50, %v10746_v34  ;;  %v10809_v49 = vpop.f32.mrf.mxu2 }
 0x756   : > { %v10810_v14 = vadd.f32 %v10809_v49, %v10774_v56 }
 0x757   : > { %v10835_v8 = vpop.f32.mrf.mxu3 }
 0x758   : > { %v10836_v21 = vadd.f32 %v10835_v8, %v10810_v14 }
 0x75a   : > { %v11244_v32 = vrot.slane %v10836_v21, 4 }
 0x75b   : > { %v10865_v45 = vpop.f32.mrf.mxu0 }
 0x75c   : > { %v11248_v16 = vsel %vm6144_vm2, %v10638_v35, %v11244_v32  ;;  %v10866_v47 = vadd.f32 %v10865_v45, %v18294_v41 }
 0x75d   : > { %11256 = vst [vmem:[%s18300_s30 + $0x10] sm:$0xff] %v11248_v16 }
 0x75f   : > { %v10911_v1 = vpop.f32.mrf.mxu1  ;;  %v10943_v18 = vpop.f32.mrf.mxu2 }
 0x760   : > { %v10912_v2 = vadd.f32 %v10911_v1, %v10866_v47 }
 0x762   : > { %v10944_v42 = vadd.f32 %v10943_v18, %v10912_v2 }
 0x763   : > { %v10971_v3 = vpop.f32.mrf.mxu3 }
 0x764   : > { %v10972_v6 = vadd.f32 %v10971_v3, %v10944_v42 }
 0x767   : > { %v11007_v24 = vpop.f32.mrf.mxu0 }
 0x768   : > { %v11008_v12 = vadd.f32 %v11007_v24, %v10972_v6 }
 0x76b   : > { %v11033_v19 = vpop.f32.mrf.mxu1  ;;  %v11063_v23 = vpop.f32.mrf.mxu2 }
 0x76c   : > { %v11064_v59 = vadd.f32 %v11063_v23, %v18294_v41  ;;  %v11034_v53 = vadd.f32 %v11033_v19, %v11008_v12 }
 0x76e   : > { %v11109_v31 = vpop.f32.mrf.mxu3 }
 0x76f   : > { %v11110_v43 = vadd.f32 %v11109_v31, %v11064_v59  ;;  %v11141_v38 = vpop.f32.mrf.mxu0 }
 0x771   : > { %v11142_v11 = vadd.f32 %v11141_v38, %v11110_v43 }
 0x773   : > { %v11169_v46 = vpop.f32.mrf.mxu1  ;;  %v11205_v25 = vpop.f32.mrf.mxu2 }
 0x774   : > { %v11170_v17 = vadd.f32 %v11169_v46, %v11142_v11 }
 0x776   : > { %v11206_v10 = vadd.f32 %v11205_v25, %v11170_v17 }
 0x777   : > { %v11231_v41 = vpop.f32.mrf.mxu3 }
 0x778   : > { %v11232_v7 = vadd.f32 %v11231_v41, %v11206_v10 }
 0x77a   : > { %v11245_v58 = vrot.slane %v11232_v7, 4 }
 0x77c   : > { %v11249_v44 = vsel %vm6144_vm2, %v11034_v53, %v11245_v58 }
 0x77d   : > { %11257 = vst [vmem:[%s18300_s30 + $0x18] sm:$0xff] %v11249_v44 }
 0x77e   : > { %11606 = shalt.err (!%p11603_p9)
}
 0x77f   : > { %11394 = dma.vmem_to_hbm [thread:$0]  (%p11791_p4), %s11273_s26, 512, %s11275_s27, %s11259_s18  }
 0x780 PF: > { %s11286_s21 = sand.u32 1, %s11637_s13   ;;  %p19256_p10 = scmp.ge.s32.totalorder %s11649_s16, 2 }
 0x781   : > { %s11287_s20 = scalar_lea.sflag [#allocation10], %s11286_s21 }
 0x782   : > { %p11408_p13 = pnand %p19256_p10, %p11795_p6 }
 0x784   : > { %p11409_p11 = pneg %p11408_p13 }
 0x786   : > { %11632 = dma.done.wait (%p11409_p11), %s11287_s20, 512  }
 0x787   : > { %11634 = vsyncadd (%p11409_p11), %s11287_s20, 4294966784  ;;  %p25_p0 = scmp.ge.s32.totalorder %s11765_s11, 4   ;;  %s19257_s13 = smov %s11641_s14 }
 0x788   : > { %s19258_s14 = smov %s11645_s15  ;;  %s19259_s15 = smov %s11776_s8 }
 0x789   : > { %s19260_s16 = smov %s11765_s11  ;;  %27 = sbr.rel (!%p25_p0) target bundleno = 11 (0xb), region = 170 }
 0x78e   :  { %11293 = vsyncpa [#allocation9], 1 }
 0x78f   :  { %11295 = vsyncpa [#allocation9 + $0x1], 1 }
 0x790   :  { %11296 = vsyncpa [#allocation12], 1 }
 0x791   :  { %11297 = vsyncpa [#allocation10], 1 }
 0x792   :  { %11299 = vsyncpa [#allocation10 + $0x1], 1 }

</bundles_post_ra>
